<compile_context>
chip_gen: v6e
topology: v6e:2x2x1
jax: 0.10.0
libtpu: 0.0.40
codegen_flags: <defaults>
</compile_context>

<pallas_src>
import jax
import jax.numpy as jnp
from jax import lax
from jax.experimental import pallas as pl
from jax.experimental.pallas import tpu as pltpu

N_SUBSTEPS = 4          # fixed RK4 substeps per time interval
_TIME_UNROLL_MAX = 16   # fully unroll the time loop up to this many points


def _make_kernel(T, D, H, n_substeps):
    """Builds the kernel for a static number of time points T."""

    def kernel(ts_ref, y0_ref, w1_ref, b1_ref, w2_ref, b2_ref, out_ref):
        # ts_ref : SMEM [T]              time grid
        # y0_ref : VMEM [bn, D]          initial state tile (batch tile)
        # w1/b1/w2/b2 : VMEM             ODE-func MLP params
        # out_ref: VMEM [bn, T*D]        lane-dense trajectory slab
        bn = y0_ref.shape[0]

        # Hoist parameter loads and bias broadcasts out of the RK4 chain.
        w1 = w1_ref[...]
        w2 = w2_ref[...]
        b1b = jnp.broadcast_to(b1_ref[...], (bn, H))
        b2b = jnp.broadcast_to(b2_ref[...], (bn, D))

        def f(y):
            hid = jnp.tanh(
                jnp.dot(y, w1, preferred_element_type=jnp.float32) + b1b)
            return jnp.dot(hid, w2, preferred_element_type=jnp.float32) + b2b

        def integrate_interval(y, dt):
            # Per-interval scalars hoisted out of the unrolled RK4 stages.
            h = dt / jnp.float32(n_substeps)
            half_h = 0.5 * h
            h6 = h / 6.0

            def rk4_step(_, yv):
                k1 = f(yv)
                k2 = f(yv + half_h * k1)
                k3 = f(yv + half_h * k2)
                k4 = f(yv + h * k3)
                return yv + h6 * (k1 + 2.0 * k2 + 2.0 * k3 + k4)

            return lax.fori_loop(0, n_substeps, rk4_step, y, unroll=True)

        y = y0_ref[...].astype(jnp.float32)

        if T <= _TIME_UNROLL_MAX:
            # Small static T: fully unrolled chain.  The whole trajectory is
            # collected in vregs and written back with a single lane-dense
            # (bn, T*D) store instead of T masked D-wide stores.
            states = [y]
            for t in range(T - 1):
                dt = ts_ref[t + 1] - ts_ref[t]
                y = integrate_interval(y, dt)
                states.append(y)
            out_ref[...] = jnp.concatenate(states, axis=-1)
        else:
            # Larger T: roll the time loop so live ranges stay bounded (no
            # spill blowup); aligned dynamic-slice stores per time point.
            out_ref[:, pl.ds(0, D)] = y

            def interval_body(t, yv):
                dt = ts_ref[t + 1] - ts_ref[t]
                yv = integrate_interval(yv, dt)
                out_ref[:, pl.ds(pl.multiple_of((t + 1) * D, D), D)] = yv
                return yv

            lax.fori_loop(0, T - 1, interval_body, y)

    return kernel


def _round_up(x, m):
    return (x + m - 1) // m * m


def _choose_batch_tile(N, max_bn):
    """Batch tile selection: fill the MXU M dimension, and for moderate N
    produce >=2 grid blocks so the 'parallel' axis can shard across both
    TensorCores (megacore / v7x)."""
    if N <= 8:
        return N
    if N <= 2 * max_bn:
        return min(max_bn, _round_up(pl.cdiv(N, 2), 8))
    return max_bn


def diffeq_solver(first_point, time_steps, w1, b1, w2, b2,
                  *, n_substeps=N_SUBSTEPS, max_rows_per_tile=256):
    """first_point [N, D], time_steps [T]  ->  pred [N, T, D] (PyTorch layout).

    N may be a stacked batch (batch * n_traj_samples) -- all rows are
    integrated in the same latency chain, filling the MXU M dimension.
    Pass max_rows_per_tile=128 on v5e (128x128 MXU, single vst slot).
    """
    N, D = first_point.shape
    H = w1.shape[1]
    T = time_steps.shape[0]

    bn = _choose_batch_tile(N, max_rows_per_tile)
    grid = (pl.cdiv(N, bn),)
    # NOTE: padded rows of a ragged last batch tile integrate garbage data;
    # they are clipped on writeback, so results stay correct.

    n_evals = 4 * n_substeps * max(T - 1, 0)          # f() evaluations
    cost = pl.CostEstimate(
        flops=n_evals * 4 * N * D * H,                # 2 matmuls per eval
        transcendentals=n_evals * N * H,              # tanh
        bytes_accessed=4 * (N * D + D * H + H + H * D + D + T + N * T * D),
    )

    out = pl.pallas_call(
        _make_kernel(T, D, H, n_substeps),
        out_shape=jax.ShapeDtypeStruct((N, T * D), jnp.float32),
        grid=grid,
        in_specs=[
            pl.BlockSpec(memory_space=pltpu.SMEM),       # time_steps [T]
            pl.BlockSpec((bn, D), lambda b: (b, 0)),     # first_point tile
            pl.BlockSpec((D, H), lambda b: (0, 0)),      # W1
            pl.BlockSpec((1, H), lambda b: (0, 0)),      # b1
            pl.BlockSpec((H, D), lambda b: (0, 0)),      # W2
            pl.BlockSpec((1, D), lambda b: (0, 0)),      # b2
        ],
        out_specs=pl.BlockSpec((bn, T * D), lambda b: (b, 0)),
        compiler_params=pltpu.CompilerParams(
            dimension_semantics=("parallel",),           # batch tiles independent
            vmem_limit_bytes=32 * 1024 * 1024,
        ),
        cost_estimate=cost,
    )(time_steps, first_point, w1, b1, w2, b2)

    # [N, T*D] slab -> [N, T, D]: free row-major reshape, no transpose needed.
    return out.reshape(N, T, D)


def reference_solver(first_point, time_steps, w1, b1, w2, b2):
    """Pure-JAX RK4 reference, same discretization as the kernel."""
    def f(y):
        return jnp.tanh(y @ w1 + b1) @ w2 + b2

    def interval(y, dt):
        h = dt / N_SUBSTEPS
        def sub(y, _):
            k1 = f(y)
            k2 = f(y + 0.5 * h * k1)
            k3 = f(y + 0.5 * h * k2)
            k4 = f(y + h * k3)
            return y + (h / 6.0) * (k1 + 2 * k2 + 2 * k3 + k4), None
        y, _ = lax.scan(sub, y, jnp.arange(N_SUBSTEPS))
        return y, y

    dts = jnp.diff(time_steps)
    _, traj = lax.scan(interval, first_point, dts)
    pred = jnp.concatenate([first_point[None], traj], axis=0)   # [T, N, D]
    return jnp.transpose(pred, (1, 0, 2))                       # [N, T, D]


if __name__ == "__main__":
    key = jax.random.PRNGKey(0)
    k0, k1, k2, k3, k4 = jax.random.split(key, 5)

    N, D, H, T = 8, 32, 32, 8   # batch, latent dim, ODE-func hidden, time steps

    first_point = jax.random.normal(k0, (N, D), dtype=jnp.float32)
    time_steps = jnp.linspace(0.0, 1.0, T, dtype=jnp.float32)

    # Deterministic synthetic ODE-func parameters (small scale -> stable ODE).
    w1 = 0.1 * jax.random.normal(k1, (D, H), dtype=jnp.float32)
    b1 = 0.1 * jax.random.normal(k2, (1, H), dtype=jnp.float32)
    w2 = 0.1 * jax.random.normal(k3, (H, D), dtype=jnp.float32)
    b2 = 0.1 * jax.random.normal(k4, (1, D), dtype=jnp.float32)

    pred = diffeq_solver(first_point, time_steps, w1, b1, w2, b2)
    pred = jax.block_until_ready(pred)

    # The module's own assertions.
    assert pred.shape == (N, T, D)
    assert float(jnp.mean(pred[:, 0, :] - first_point)) < 0.001

    # Cross-check against the pure-JAX reference integrator.
    ref = reference_solver(first_point, time_steps, w1, b1, w2, b2)
    assert jnp.allclose(pred, ref, atol=1e-5, rtol=1e-5)
    assert jnp.allclose(pred[:, 0, :], first_point)

    print("KERNEL_OK")
</pallas_src>

<mosaic_0001>
module attributes {stable_mosaic.version = 11 : i64} {
  func.func @kernel(%arg0: i32, %arg1: memref<8xf32, #tpu.memory_space<smem>>, %arg2: memref<8x32xf32, #tpu.memory_space<vmem>>, %arg3: memref<32x32xf32, #tpu.memory_space<vmem>>, %arg4: memref<1x32xf32, #tpu.memory_space<vmem>>, %arg5: memref<32x32xf32, #tpu.memory_space<vmem>>, %arg6: memref<1x32xf32, #tpu.memory_space<vmem>>, %arg7: memref<8x256xf32, #tpu.memory_space<vmem>>) attributes {dimension_semantics = [#tpu.dimension_semantics<parallel>], iteration_bounds = array<i64: 1>, scalar_prefetch = 0 : i64, scratch_operands = 0 : i64, tpu.core_type = #tpu.core_type<tc>, window_params = [{transform_indices = @transform_0, window_bounds = array<i64: 8>}, {transform_indices = @transform_1, window_bounds = array<i64: 8, 32>}, {pipeline_mode = #tpu.pipeline_mode<synchronous>, transform_indices = @transform_2, window_bounds = array<i64: 32, 32>}, {pipeline_mode = #tpu.pipeline_mode<synchronous>, transform_indices = @transform_3, window_bounds = array<i64: 1, 32>}, {pipeline_mode = #tpu.pipeline_mode<synchronous>, transform_indices = @transform_4, window_bounds = array<i64: 32, 32>}, {pipeline_mode = #tpu.pipeline_mode<synchronous>, transform_indices = @transform_5, window_bounds = array<i64: 1, 32>}, {transform_indices = @transform_6, window_bounds = array<i64: 8, 256>}]} {
    %c0 = arith.constant 0 : index
    %c0_0 = arith.constant 0 : index
    %0 = vector.load %arg3[%c0, %c0_0] : memref<32x32xf32, #tpu.memory_space<vmem>>, vector<32x32xf32>
    %c0_1 = arith.constant 0 : index
    %c0_2 = arith.constant 0 : index
    %1 = vector.load %arg5[%c0_1, %c0_2] : memref<32x32xf32, #tpu.memory_space<vmem>>, vector<32x32xf32>
    %c0_3 = arith.constant 0 : index
    %c0_4 = arith.constant 0 : index
    %2 = vector.load %arg4[%c0_3, %c0_4] : memref<1x32xf32, #tpu.memory_space<vmem>>, vector<1x32xf32>
    %3 = vector.shape_cast %2 : vector<1x32xf32> to vector<1x32xf32>
    %4 = vector.broadcast %3 : vector<1x32xf32> to vector<8x32xf32>
    %c0_5 = arith.constant 0 : index
    %c0_6 = arith.constant 0 : index
    %5 = vector.load %arg6[%c0_5, %c0_6] : memref<1x32xf32, #tpu.memory_space<vmem>>, vector<1x32xf32>
    %6 = vector.shape_cast %5 : vector<1x32xf32> to vector<1x32xf32>
    %7 = vector.broadcast %6 : vector<1x32xf32> to vector<8x32xf32>
    %c0_7 = arith.constant 0 : index
    %c0_8 = arith.constant 0 : index
    %8 = vector.load %arg2[%c0_7, %c0_8] : memref<8x32xf32, #tpu.memory_space<vmem>>, vector<8x32xf32>
    %c1 = arith.constant 1 : index
    %9 = memref.load %arg1[%c1] : memref<8xf32, #tpu.memory_space<smem>>
    %c0_9 = arith.constant 0 : index
    %10 = memref.load %arg1[%c0_9] : memref<8xf32, #tpu.memory_space<smem>>
    %11 = arith.subf %9, %10 : f32
    %cst = arith.constant 4.000000e+00 : f32
    %12 = arith.divf %11, %cst : f32
    %cst_10 = arith.constant 5.000000e-01 : f32
    %13 = arith.mulf %cst_10, %12 : f32
    %cst_11 = arith.constant 6.000000e+00 : f32
    %14 = arith.divf %12, %cst_11 : f32
    %c0_i32 = arith.constant 0 : i32
    %cst_12 = arith.constant dense<0.000000e+00> : vector<8x32xf32>
    %15 = tpu.matmul %8, %0, %cst_12 {dimension_numbers = #tpu.dot_dimension_numbers<[1], [0], [0], [1], [0, 0, 1, 1], [], []>} : vector<8x32xf32>, vector<32x32xf32>, vector<8x32xf32> -> vector<8x32xf32>
    %16 = arith.addf %15, %4 : vector<8x32xf32>
    %17 = math.tanh %16 : vector<8x32xf32>
    %cst_13 = arith.constant dense<0.000000e+00> : vector<8x32xf32>
    %18 = tpu.matmul %17, %1, %cst_13 {dimension_numbers = #tpu.dot_dimension_numbers<[1], [0], [0], [1], [0, 0, 1, 1], [], []>} : vector<8x32xf32>, vector<32x32xf32>, vector<8x32xf32> -> vector<8x32xf32>
    %19 = arith.addf %18, %7 : vector<8x32xf32>
    %20 = vector.broadcast %13 : f32 to vector<8x32xf32>
    %21 = arith.mulf %20, %19 : vector<8x32xf32>
    %22 = arith.addf %8, %21 : vector<8x32xf32>
    %cst_14 = arith.constant dense<0.000000e+00> : vector<8x32xf32>
    %23 = tpu.matmul %22, %0, %cst_14 {dimension_numbers = #tpu.dot_dimension_numbers<[1], [0], [0], [1], [0, 0, 1, 1], [], []>} : vector<8x32xf32>, vector<32x32xf32>, vector<8x32xf32> -> vector<8x32xf32>
    %24 = arith.addf %23, %4 : vector<8x32xf32>
    %25 = math.tanh %24 : vector<8x32xf32>
    %cst_15 = arith.constant dense<0.000000e+00> : vector<8x32xf32>
    %26 = tpu.matmul %25, %1, %cst_15 {dimension_numbers = #tpu.dot_dimension_numbers<[1], [0], [0], [1], [0, 0, 1, 1], [], []>} : vector<8x32xf32>, vector<32x32xf32>, vector<8x32xf32> -> vector<8x32xf32>
    %27 = arith.addf %26, %7 : vector<8x32xf32>
    %28 = vector.broadcast %13 : f32 to vector<8x32xf32>
    %29 = arith.mulf %28, %27 : vector<8x32xf32>
    %30 = arith.addf %8, %29 : vector<8x32xf32>
    %cst_16 = arith.constant dense<0.000000e+00> : vector<8x32xf32>
    %31 = tpu.matmul %30, %0, %cst_16 {dimension_numbers = #tpu.dot_dimension_numbers<[1], [0], [0], [1], [0, 0, 1, 1], [], []>} : vector<8x32xf32>, vector<32x32xf32>, vector<8x32xf32> -> vector<8x32xf32>
    %32 = arith.addf %31, %4 : vector<8x32xf32>
    %33 = math.tanh %32 : vector<8x32xf32>
    %cst_17 = arith.constant dense<0.000000e+00> : vector<8x32xf32>
    %34 = tpu.matmul %33, %1, %cst_17 {dimension_numbers = #tpu.dot_dimension_numbers<[1], [0], [0], [1], [0, 0, 1, 1], [], []>} : vector<8x32xf32>, vector<32x32xf32>, vector<8x32xf32> -> vector<8x32xf32>
    %35 = arith.addf %34, %7 : vector<8x32xf32>
    %36 = vector.broadcast %12 : f32 to vector<8x32xf32>
    %37 = arith.mulf %36, %35 : vector<8x32xf32>
    %38 = arith.addf %8, %37 : vector<8x32xf32>
    %cst_18 = arith.constant dense<0.000000e+00> : vector<8x32xf32>
    %39 = tpu.matmul %38, %0, %cst_18 {dimension_numbers = #tpu.dot_dimension_numbers<[1], [0], [0], [1], [0, 0, 1, 1], [], []>} : vector<8x32xf32>, vector<32x32xf32>, vector<8x32xf32> -> vector<8x32xf32>
    %40 = arith.addf %39, %4 : vector<8x32xf32>
    %41 = math.tanh %40 : vector<8x32xf32>
    %cst_19 = arith.constant dense<0.000000e+00> : vector<8x32xf32>
    %42 = tpu.matmul %41, %1, %cst_19 {dimension_numbers = #tpu.dot_dimension_numbers<[1], [0], [0], [1], [0, 0, 1, 1], [], []>} : vector<8x32xf32>, vector<32x32xf32>, vector<8x32xf32> -> vector<8x32xf32>
    %43 = arith.addf %42, %7 : vector<8x32xf32>
    %cst_20 = arith.constant 2.000000e+00 : f32
    %44 = vector.broadcast %cst_20 : f32 to vector<8x32xf32>
    %45 = arith.mulf %44, %27 : vector<8x32xf32>
    %46 = arith.addf %19, %45 : vector<8x32xf32>
    %cst_21 = arith.constant 2.000000e+00 : f32
    %47 = vector.broadcast %cst_21 : f32 to vector<8x32xf32>
    %48 = arith.mulf %47, %35 : vector<8x32xf32>
    %49 = arith.addf %46, %48 : vector<8x32xf32>
    %50 = arith.addf %49, %43 : vector<8x32xf32>
    %51 = vector.broadcast %14 : f32 to vector<8x32xf32>
    %52 = arith.mulf %51, %50 : vector<8x32xf32>
    %53 = arith.addf %8, %52 : vector<8x32xf32>
    %c1_i32 = arith.constant 1 : i32
    %cst_22 = arith.constant dense<0.000000e+00> : vector<8x32xf32>
    %54 = tpu.matmul %53, %0, %cst_22 {dimension_numbers = #tpu.dot_dimension_numbers<[1], [0], [0], [1], [0, 0, 1, 1], [], []>} : vector<8x32xf32>, vector<32x32xf32>, vector<8x32xf32> -> vector<8x32xf32>
    %55 = arith.addf %54, %4 : vector<8x32xf32>
    %56 = math.tanh %55 : vector<8x32xf32>
    %cst_23 = arith.constant dense<0.000000e+00> : vector<8x32xf32>
    %57 = tpu.matmul %56, %1, %cst_23 {dimension_numbers = #tpu.dot_dimension_numbers<[1], [0], [0], [1], [0, 0, 1, 1], [], []>} : vector<8x32xf32>, vector<32x32xf32>, vector<8x32xf32> -> vector<8x32xf32>
    %58 = arith.addf %57, %7 : vector<8x32xf32>
    %59 = vector.broadcast %13 : f32 to vector<8x32xf32>
    %60 = arith.mulf %59, %58 : vector<8x32xf32>
    %61 = arith.addf %53, %60 : vector<8x32xf32>
    %cst_24 = arith.constant dense<0.000000e+00> : vector<8x32xf32>
    %62 = tpu.matmul %61, %0, %cst_24 {dimension_numbers = #tpu.dot_dimension_numbers<[1], [0], [0], [1], [0, 0, 1, 1], [], []>} : vector<8x32xf32>, vector<32x32xf32>, vector<8x32xf32> -> vector<8x32xf32>
    %63 = arith.addf %62, %4 : vector<8x32xf32>
    %64 = math.tanh %63 : vector<8x32xf32>
    %cst_25 = arith.constant dense<0.000000e+00> : vector<8x32xf32>
    %65 = tpu.matmul %64, %1, %cst_25 {dimension_numbers = #tpu.dot_dimension_numbers<[1], [0], [0], [1], [0, 0, 1, 1], [], []>} : vector<8x32xf32>, vector<32x32xf32>, vector<8x32xf32> -> vector<8x32xf32>
    %66 = arith.addf %65, %7 : vector<8x32xf32>
    %67 = vector.broadcast %13 : f32 to vector<8x32xf32>
    %68 = arith.mulf %67, %66 : vector<8x32xf32>
    %69 = arith.addf %53, %68 : vector<8x32xf32>
    %cst_26 = arith.constant dense<0.000000e+00> : vector<8x32xf32>
    %70 = tpu.matmul %69, %0, %cst_26 {dimension_numbers = #tpu.dot_dimension_numbers<[1], [0], [0], [1], [0, 0, 1, 1], [], []>} : vector<8x32xf32>, vector<32x32xf32>, vector<8x32xf32> -> vector<8x32xf32>
    %71 = arith.addf %70, %4 : vector<8x32xf32>
    %72 = math.tanh %71 : vector<8x32xf32>
    %cst_27 = arith.constant dense<0.000000e+00> : vector<8x32xf32>
    %73 = tpu.matmul %72, %1, %cst_27 {dimension_numbers = #tpu.dot_dimension_numbers<[1], [0], [0], [1], [0, 0, 1, 1], [], []>} : vector<8x32xf32>, vector<32x32xf32>, vector<8x32xf32> -> vector<8x32xf32>
    %74 = arith.addf %73, %7 : vector<8x32xf32>
    %75 = vector.broadcast %12 : f32 to vector<8x32xf32>
    %76 = arith.mulf %75, %74 : vector<8x32xf32>
    %77 = arith.addf %53, %76 : vector<8x32xf32>
    %cst_28 = arith.constant dense<0.000000e+00> : vector<8x32xf32>
    %78 = tpu.matmul %77, %0, %cst_28 {dimension_numbers = #tpu.dot_dimension_numbers<[1], [0], [0], [1], [0, 0, 1, 1], [], []>} : vector<8x32xf32>, vector<32x32xf32>, vector<8x32xf32> -> vector<8x32xf32>
    %79 = arith.addf %78, %4 : vector<8x32xf32>
    %80 = math.tanh %79 : vector<8x32xf32>
    %cst_29 = arith.constant dense<0.000000e+00> : vector<8x32xf32>
    %81 = tpu.matmul %80, %1, %cst_29 {dimension_numbers = #tpu.dot_dimension_numbers<[1], [0], [0], [1], [0, 0, 1, 1], [], []>} : vector<8x32xf32>, vector<32x32xf32>, vector<8x32xf32> -> vector<8x32xf32>
    %82 = arith.addf %81, %7 : vector<8x32xf32>
    %cst_30 = arith.constant 2.000000e+00 : f32
    %83 = vector.broadcast %cst_30 : f32 to vector<8x32xf32>
    %84 = arith.mulf %83, %66 : vector<8x32xf32>
    %85 = arith.addf %58, %84 : vector<8x32xf32>
    %cst_31 = arith.constant 2.000000e+00 : f32
    %86 = vector.broadcast %cst_31 : f32 to vector<8x32xf32>
    %87 = arith.mulf %86, %74 : vector<8x32xf32>
    %88 = arith.addf %85, %87 : vector<8x32xf32>
    %89 = arith.addf %88, %82 : vector<8x32xf32>
    %90 = vector.broadcast %14 : f32 to vector<8x32xf32>
    %91 = arith.mulf %90, %89 : vector<8x32xf32>
    %92 = arith.addf %53, %91 : vector<8x32xf32>
    %c2_i32 = arith.constant 2 : i32
    %cst_32 = arith.constant dense<0.000000e+00> : vector<8x32xf32>
    %93 = tpu.matmul %92, %0, %cst_32 {dimension_numbers = #tpu.dot_dimension_numbers<[1], [0], [0], [1], [0, 0, 1, 1], [], []>} : vector<8x32xf32>, vector<32x32xf32>, vector<8x32xf32> -> vector<8x32xf32>
    %94 = arith.addf %93, %4 : vector<8x32xf32>
    %95 = math.tanh %94 : vector<8x32xf32>
    %cst_33 = arith.constant dense<0.000000e+00> : vector<8x32xf32>
    %96 = tpu.matmul %95, %1, %cst_33 {dimension_numbers = #tpu.dot_dimension_numbers<[1], [0], [0], [1], [0, 0, 1, 1], [], []>} : vector<8x32xf32>, vector<32x32xf32>, vector<8x32xf32> -> vector<8x32xf32>
    %97 = arith.addf %96, %7 : vector<8x32xf32>
    %98 = vector.broadcast %13 : f32 to vector<8x32xf32>
    %99 = arith.mulf %98, %97 : vector<8x32xf32>
    %100 = arith.addf %92, %99 : vector<8x32xf32>
    %cst_34 = arith.constant dense<0.000000e+00> : vector<8x32xf32>
    %101 = tpu.matmul %100, %0, %cst_34 {dimension_numbers = #tpu.dot_dimension_numbers<[1], [0], [0], [1], [0, 0, 1, 1], [], []>} : vector<8x32xf32>, vector<32x32xf32>, vector<8x32xf32> -> vector<8x32xf32>
    %102 = arith.addf %101, %4 : vector<8x32xf32>
    %103 = math.tanh %102 : vector<8x32xf32>
    %cst_35 = arith.constant dense<0.000000e+00> : vector<8x32xf32>
    %104 = tpu.matmul %103, %1, %cst_35 {dimension_numbers = #tpu.dot_dimension_numbers<[1], [0], [0], [1], [0, 0, 1, 1], [], []>} : vector<8x32xf32>, vector<32x32xf32>, vector<8x32xf32> -> vector<8x32xf32>
    %105 = arith.addf %104, %7 : vector<8x32xf32>
    %106 = vector.broadcast %13 : f32 to vector<8x32xf32>
    %107 = arith.mulf %106, %105 : vector<8x32xf32>
    %108 = arith.addf %92, %107 : vector<8x32xf32>
    %cst_36 = arith.constant dense<0.000000e+00> : vector<8x32xf32>
    %109 = tpu.matmul %108, %0, %cst_36 {dimension_numbers = #tpu.dot_dimension_numbers<[1], [0], [0], [1], [0, 0, 1, 1], [], []>} : vector<8x32xf32>, vector<32x32xf32>, vector<8x32xf32> -> vector<8x32xf32>
    %110 = arith.addf %109, %4 : vector<8x32xf32>
    %111 = math.tanh %110 : vector<8x32xf32>
    %cst_37 = arith.constant dense<0.000000e+00> : vector<8x32xf32>
    %112 = tpu.matmul %111, %1, %cst_37 {dimension_numbers = #tpu.dot_dimension_numbers<[1], [0], [0], [1], [0, 0, 1, 1], [], []>} : vector<8x32xf32>, vector<32x32xf32>, vector<8x32xf32> -> vector<8x32xf32>
    %113 = arith.addf %112, %7 : vector<8x32xf32>
    %114 = vector.broadcast %12 : f32 to vector<8x32xf32>
    %115 = arith.mulf %114, %113 : vector<8x32xf32>
    %116 = arith.addf %92, %115 : vector<8x32xf32>
    %cst_38 = arith.constant dense<0.000000e+00> : vector<8x32xf32>
    %117 = tpu.matmul %116, %0, %cst_38 {dimension_numbers = #tpu.dot_dimension_numbers<[1], [0], [0], [1], [0, 0, 1, 1], [], []>} : vector<8x32xf32>, vector<32x32xf32>, vector<8x32xf32> -> vector<8x32xf32>
    %118 = arith.addf %117, %4 : vector<8x32xf32>
    %119 = math.tanh %118 : vector<8x32xf32>
    %cst_39 = arith.constant dense<0.000000e+00> : vector<8x32xf32>
    %120 = tpu.matmul %119, %1, %cst_39 {dimension_numbers = #tpu.dot_dimension_numbers<[1], [0], [0], [1], [0, 0, 1, 1], [], []>} : vector<8x32xf32>, vector<32x32xf32>, vector<8x32xf32> -> vector<8x32xf32>
    %121 = arith.addf %120, %7 : vector<8x32xf32>
    %cst_40 = arith.constant 2.000000e+00 : f32
    %122 = vector.broadcast %cst_40 : f32 to vector<8x32xf32>
    %123 = arith.mulf %122, %105 : vector<8x32xf32>
    %124 = arith.addf %97, %123 : vector<8x32xf32>
    %cst_41 = arith.constant 2.000000e+00 : f32
    %125 = vector.broadcast %cst_41 : f32 to vector<8x32xf32>
    %126 = arith.mulf %125, %113 : vector<8x32xf32>
    %127 = arith.addf %124, %126 : vector<8x32xf32>
    %128 = arith.addf %127, %121 : vector<8x32xf32>
    %129 = vector.broadcast %14 : f32 to vector<8x32xf32>
    %130 = arith.mulf %129, %128 : vector<8x32xf32>
    %131 = arith.addf %92, %130 : vector<8x32xf32>
    %c3_i32 = arith.constant 3 : i32
    %cst_42 = arith.constant dense<0.000000e+00> : vector<8x32xf32>
    %132 = tpu.matmul %131, %0, %cst_42 {dimension_numbers = #tpu.dot_dimension_numbers<[1], [0], [0], [1], [0, 0, 1, 1], [], []>} : vector<8x32xf32>, vector<32x32xf32>, vector<8x32xf32> -> vector<8x32xf32>
    %133 = arith.addf %132, %4 : vector<8x32xf32>
    %134 = math.tanh %133 : vector<8x32xf32>
    %cst_43 = arith.constant dense<0.000000e+00> : vector<8x32xf32>
    %135 = tpu.matmul %134, %1, %cst_43 {dimension_numbers = #tpu.dot_dimension_numbers<[1], [0], [0], [1], [0, 0, 1, 1], [], []>} : vector<8x32xf32>, vector<32x32xf32>, vector<8x32xf32> -> vector<8x32xf32>
    %136 = arith.addf %135, %7 : vector<8x32xf32>
    %137 = vector.broadcast %13 : f32 to vector<8x32xf32>
    %138 = arith.mulf %137, %136 : vector<8x32xf32>
    %139 = arith.addf %131, %138 : vector<8x32xf32>
    %cst_44 = arith.constant dense<0.000000e+00> : vector<8x32xf32>
    %140 = tpu.matmul %139, %0, %cst_44 {dimension_numbers = #tpu.dot_dimension_numbers<[1], [0], [0], [1], [0, 0, 1, 1], [], []>} : vector<8x32xf32>, vector<32x32xf32>, vector<8x32xf32> -> vector<8x32xf32>
    %141 = arith.addf %140, %4 : vector<8x32xf32>
    %142 = math.tanh %141 : vector<8x32xf32>
    %cst_45 = arith.constant dense<0.000000e+00> : vector<8x32xf32>
    %143 = tpu.matmul %142, %1, %cst_45 {dimension_numbers = #tpu.dot_dimension_numbers<[1], [0], [0], [1], [0, 0, 1, 1], [], []>} : vector<8x32xf32>, vector<32x32xf32>, vector<8x32xf32> -> vector<8x32xf32>
    %144 = arith.addf %143, %7 : vector<8x32xf32>
    %145 = vector.broadcast %13 : f32 to vector<8x32xf32>
    %146 = arith.mulf %145, %144 : vector<8x32xf32>
    %147 = arith.addf %131, %146 : vector<8x32xf32>
    %cst_46 = arith.constant dense<0.000000e+00> : vector<8x32xf32>
    %148 = tpu.matmul %147, %0, %cst_46 {dimension_numbers = #tpu.dot_dimension_numbers<[1], [0], [0], [1], [0, 0, 1, 1], [], []>} : vector<8x32xf32>, vector<32x32xf32>, vector<8x32xf32> -> vector<8x32xf32>
    %149 = arith.addf %148, %4 : vector<8x32xf32>
    %150 = math.tanh %149 : vector<8x32xf32>
    %cst_47 = arith.constant dense<0.000000e+00> : vector<8x32xf32>
    %151 = tpu.matmul %150, %1, %cst_47 {dimension_numbers = #tpu.dot_dimension_numbers<[1], [0], [0], [1], [0, 0, 1, 1], [], []>} : vector<8x32xf32>, vector<32x32xf32>, vector<8x32xf32> -> vector<8x32xf32>
    %152 = arith.addf %151, %7 : vector<8x32xf32>
    %153 = vector.broadcast %12 : f32 to vector<8x32xf32>
    %154 = arith.mulf %153, %152 : vector<8x32xf32>
    %155 = arith.addf %131, %154 : vector<8x32xf32>
    %cst_48 = arith.constant dense<0.000000e+00> : vector<8x32xf32>
    %156 = tpu.matmul %155, %0, %cst_48 {dimension_numbers = #tpu.dot_dimension_numbers<[1], [0], [0], [1], [0, 0, 1, 1], [], []>} : vector<8x32xf32>, vector<32x32xf32>, vector<8x32xf32> -> vector<8x32xf32>
    %157 = arith.addf %156, %4 : vector<8x32xf32>
    %158 = math.tanh %157 : vector<8x32xf32>
    %cst_49 = arith.constant dense<0.000000e+00> : vector<8x32xf32>
    %159 = tpu.matmul %158, %1, %cst_49 {dimension_numbers = #tpu.dot_dimension_numbers<[1], [0], [0], [1], [0, 0, 1, 1], [], []>} : vector<8x32xf32>, vector<32x32xf32>, vector<8x32xf32> -> vector<8x32xf32>
    %160 = arith.addf %159, %7 : vector<8x32xf32>
    %cst_50 = arith.constant 2.000000e+00 : f32
    %161 = vector.broadcast %cst_50 : f32 to vector<8x32xf32>
    %162 = arith.mulf %161, %144 : vector<8x32xf32>
    %163 = arith.addf %136, %162 : vector<8x32xf32>
    %cst_51 = arith.constant 2.000000e+00 : f32
    %164 = vector.broadcast %cst_51 : f32 to vector<8x32xf32>
    %165 = arith.mulf %164, %152 : vector<8x32xf32>
    %166 = arith.addf %163, %165 : vector<8x32xf32>
    %167 = arith.addf %166, %160 : vector<8x32xf32>
    %168 = vector.broadcast %14 : f32 to vector<8x32xf32>
    %169 = arith.mulf %168, %167 : vector<8x32xf32>
    %170 = arith.addf %131, %169 : vector<8x32xf32>
    %c2 = arith.constant 2 : index
    %171 = memref.load %arg1[%c2] : memref<8xf32, #tpu.memory_space<smem>>
    %c1_52 = arith.constant 1 : index
    %172 = memref.load %arg1[%c1_52] : memref<8xf32, #tpu.memory_space<smem>>
    %173 = arith.subf %171, %172 : f32
    %cst_53 = arith.constant 4.000000e+00 : f32
    %174 = arith.divf %173, %cst_53 : f32
    %cst_54 = arith.constant 5.000000e-01 : f32
    %175 = arith.mulf %cst_54, %174 : f32
    %cst_55 = arith.constant 6.000000e+00 : f32
    %176 = arith.divf %174, %cst_55 : f32
    %c0_i32_56 = arith.constant 0 : i32
    %cst_57 = arith.constant dense<0.000000e+00> : vector<8x32xf32>
    %177 = tpu.matmul %170, %0, %cst_57 {dimension_numbers = #tpu.dot_dimension_numbers<[1], [0], [0], [1], [0, 0, 1, 1], [], []>} : vector<8x32xf32>, vector<32x32xf32>, vector<8x32xf32> -> vector<8x32xf32>
    %178 = arith.addf %177, %4 : vector<8x32xf32>
    %179 = math.tanh %178 : vector<8x32xf32>
    %cst_58 = arith.constant dense<0.000000e+00> : vector<8x32xf32>
    %180 = tpu.matmul %179, %1, %cst_58 {dimension_numbers = #tpu.dot_dimension_numbers<[1], [0], [0], [1], [0, 0, 1, 1], [], []>} : vector<8x32xf32>, vector<32x32xf32>, vector<8x32xf32> -> vector<8x32xf32>
    %181 = arith.addf %180, %7 : vector<8x32xf32>
    %182 = vector.broadcast %175 : f32 to vector<8x32xf32>
    %183 = arith.mulf %182, %181 : vector<8x32xf32>
    %184 = arith.addf %170, %183 : vector<8x32xf32>
    %cst_59 = arith.constant dense<0.000000e+00> : vector<8x32xf32>
    %185 = tpu.matmul %184, %0, %cst_59 {dimension_numbers = #tpu.dot_dimension_numbers<[1], [0], [0], [1], [0, 0, 1, 1], [], []>} : vector<8x32xf32>, vector<32x32xf32>, vector<8x32xf32> -> vector<8x32xf32>
    %186 = arith.addf %185, %4 : vector<8x32xf32>
    %187 = math.tanh %186 : vector<8x32xf32>
    %cst_60 = arith.constant dense<0.000000e+00> : vector<8x32xf32>
    %188 = tpu.matmul %187, %1, %cst_60 {dimension_numbers = #tpu.dot_dimension_numbers<[1], [0], [0], [1], [0, 0, 1, 1], [], []>} : vector<8x32xf32>, vector<32x32xf32>, vector<8x32xf32> -> vector<8x32xf32>
    %189 = arith.addf %188, %7 : vector<8x32xf32>
    %190 = vector.broadcast %175 : f32 to vector<8x32xf32>
    %191 = arith.mulf %190, %189 : vector<8x32xf32>
    %192 = arith.addf %170, %191 : vector<8x32xf32>
    %cst_61 = arith.constant dense<0.000000e+00> : vector<8x32xf32>
    %193 = tpu.matmul %192, %0, %cst_61 {dimension_numbers = #tpu.dot_dimension_numbers<[1], [0], [0], [1], [0, 0, 1, 1], [], []>} : vector<8x32xf32>, vector<32x32xf32>, vector<8x32xf32> -> vector<8x32xf32>
    %194 = arith.addf %193, %4 : vector<8x32xf32>
    %195 = math.tanh %194 : vector<8x32xf32>
    %cst_62 = arith.constant dense<0.000000e+00> : vector<8x32xf32>
    %196 = tpu.matmul %195, %1, %cst_62 {dimension_numbers = #tpu.dot_dimension_numbers<[1], [0], [0], [1], [0, 0, 1, 1], [], []>} : vector<8x32xf32>, vector<32x32xf32>, vector<8x32xf32> -> vector<8x32xf32>
    %197 = arith.addf %196, %7 : vector<8x32xf32>
    %198 = vector.broadcast %174 : f32 to vector<8x32xf32>
    %199 = arith.mulf %198, %197 : vector<8x32xf32>
    %200 = arith.addf %170, %199 : vector<8x32xf32>
    %cst_63 = arith.constant dense<0.000000e+00> : vector<8x32xf32>
    %201 = tpu.matmul %200, %0, %cst_63 {dimension_numbers = #tpu.dot_dimension_numbers<[1], [0], [0], [1], [0, 0, 1, 1], [], []>} : vector<8x32xf32>, vector<32x32xf32>, vector<8x32xf32> -> vector<8x32xf32>
    %202 = arith.addf %201, %4 : vector<8x32xf32>
    %203 = math.tanh %202 : vector<8x32xf32>
    %cst_64 = arith.constant dense<0.000000e+00> : vector<8x32xf32>
    %204 = tpu.matmul %203, %1, %cst_64 {dimension_numbers = #tpu.dot_dimension_numbers<[1], [0], [0], [1], [0, 0, 1, 1], [], []>} : vector<8x32xf32>, vector<32x32xf32>, vector<8x32xf32> -> vector<8x32xf32>
    %205 = arith.addf %204, %7 : vector<8x32xf32>
    %cst_65 = arith.constant 2.000000e+00 : f32
    %206 = vector.broadcast %cst_65 : f32 to vector<8x32xf32>
    %207 = arith.mulf %206, %189 : vector<8x32xf32>
    %208 = arith.addf %181, %207 : vector<8x32xf32>
    %cst_66 = arith.constant 2.000000e+00 : f32
    %209 = vector.broadcast %cst_66 : f32 to vector<8x32xf32>
    %210 = arith.mulf %209, %197 : vector<8x32xf32>
    %211 = arith.addf %208, %210 : vector<8x32xf32>
    %212 = arith.addf %211, %205 : vector<8x32xf32>
    %213 = vector.broadcast %176 : f32 to vector<8x32xf32>
    %214 = arith.mulf %213, %212 : vector<8x32xf32>
    %215 = arith.addf %170, %214 : vector<8x32xf32>
    %c1_i32_67 = arith.constant 1 : i32
    %cst_68 = arith.constant dense<0.000000e+00> : vector<8x32xf32>
    %216 = tpu.matmul %215, %0, %cst_68 {dimension_numbers = #tpu.dot_dimension_numbers<[1], [0], [0], [1], [0, 0, 1, 1], [], []>} : vector<8x32xf32>, vector<32x32xf32>, vector<8x32xf32> -> vector<8x32xf32>
    %217 = arith.addf %216, %4 : vector<8x32xf32>
    %218 = math.tanh %217 : vector<8x32xf32>
    %cst_69 = arith.constant dense<0.000000e+00> : vector<8x32xf32>
    %219 = tpu.matmul %218, %1, %cst_69 {dimension_numbers = #tpu.dot_dimension_numbers<[1], [0], [0], [1], [0, 0, 1, 1], [], []>} : vector<8x32xf32>, vector<32x32xf32>, vector<8x32xf32> -> vector<8x32xf32>
    %220 = arith.addf %219, %7 : vector<8x32xf32>
    %221 = vector.broadcast %175 : f32 to vector<8x32xf32>
    %222 = arith.mulf %221, %220 : vector<8x32xf32>
    %223 = arith.addf %215, %222 : vector<8x32xf32>
    %cst_70 = arith.constant dense<0.000000e+00> : vector<8x32xf32>
    %224 = tpu.matmul %223, %0, %cst_70 {dimension_numbers = #tpu.dot_dimension_numbers<[1], [0], [0], [1], [0, 0, 1, 1], [], []>} : vector<8x32xf32>, vector<32x32xf32>, vector<8x32xf32> -> vector<8x32xf32>
    %225 = arith.addf %224, %4 : vector<8x32xf32>
    %226 = math.tanh %225 : vector<8x32xf32>
    %cst_71 = arith.constant dense<0.000000e+00> : vector<8x32xf32>
    %227 = tpu.matmul %226, %1, %cst_71 {dimension_numbers = #tpu.dot_dimension_numbers<[1], [0], [0], [1], [0, 0, 1, 1], [], []>} : vector<8x32xf32>, vector<32x32xf32>, vector<8x32xf32> -> vector<8x32xf32>
    %228 = arith.addf %227, %7 : vector<8x32xf32>
    %229 = vector.broadcast %175 : f32 to vector<8x32xf32>
    %230 = arith.mulf %229, %228 : vector<8x32xf32>
    %231 = arith.addf %215, %230 : vector<8x32xf32>
    %cst_72 = arith.constant dense<0.000000e+00> : vector<8x32xf32>
    %232 = tpu.matmul %231, %0, %cst_72 {dimension_numbers = #tpu.dot_dimension_numbers<[1], [0], [0], [1], [0, 0, 1, 1], [], []>} : vector<8x32xf32>, vector<32x32xf32>, vector<8x32xf32> -> vector<8x32xf32>
    %233 = arith.addf %232, %4 : vector<8x32xf32>
    %234 = math.tanh %233 : vector<8x32xf32>
    %cst_73 = arith.constant dense<0.000000e+00> : vector<8x32xf32>
    %235 = tpu.matmul %234, %1, %cst_73 {dimension_numbers = #tpu.dot_dimension_numbers<[1], [0], [0], [1], [0, 0, 1, 1], [], []>} : vector<8x32xf32>, vector<32x32xf32>, vector<8x32xf32> -> vector<8x32xf32>
    %236 = arith.addf %235, %7 : vector<8x32xf32>
    %237 = vector.broadcast %174 : f32 to vector<8x32xf32>
    %238 = arith.mulf %237, %236 : vector<8x32xf32>
    %239 = arith.addf %215, %238 : vector<8x32xf32>
    %cst_74 = arith.constant dense<0.000000e+00> : vector<8x32xf32>
    %240 = tpu.matmul %239, %0, %cst_74 {dimension_numbers = #tpu.dot_dimension_numbers<[1], [0], [0], [1], [0, 0, 1, 1], [], []>} : vector<8x32xf32>, vector<32x32xf32>, vector<8x32xf32> -> vector<8x32xf32>
    %241 = arith.addf %240, %4 : vector<8x32xf32>
    %242 = math.tanh %241 : vector<8x32xf32>
    %cst_75 = arith.constant dense<0.000000e+00> : vector<8x32xf32>
    %243 = tpu.matmul %242, %1, %cst_75 {dimension_numbers = #tpu.dot_dimension_numbers<[1], [0], [0], [1], [0, 0, 1, 1], [], []>} : vector<8x32xf32>, vector<32x32xf32>, vector<8x32xf32> -> vector<8x32xf32>
    %244 = arith.addf %243, %7 : vector<8x32xf32>
    %cst_76 = arith.constant 2.000000e+00 : f32
    %245 = vector.broadcast %cst_76 : f32 to vector<8x32xf32>
    %246 = arith.mulf %245, %228 : vector<8x32xf32>
    %247 = arith.addf %220, %246 : vector<8x32xf32>
    %cst_77 = arith.constant 2.000000e+00 : f32
    %248 = vector.broadcast %cst_77 : f32 to vector<8x32xf32>
    %249 = arith.mulf %248, %236 : vector<8x32xf32>
    %250 = arith.addf %247, %249 : vector<8x32xf32>
    %251 = arith.addf %250, %244 : vector<8x32xf32>
    %252 = vector.broadcast %176 : f32 to vector<8x32xf32>
    %253 = arith.mulf %252, %251 : vector<8x32xf32>
    %254 = arith.addf %215, %253 : vector<8x32xf32>
    %c2_i32_78 = arith.constant 2 : i32
    %cst_79 = arith.constant dense<0.000000e+00> : vector<8x32xf32>
    %255 = tpu.matmul %254, %0, %cst_79 {dimension_numbers = #tpu.dot_dimension_numbers<[1], [0], [0], [1], [0, 0, 1, 1], [], []>} : vector<8x32xf32>, vector<32x32xf32>, vector<8x32xf32> -> vector<8x32xf32>
    %256 = arith.addf %255, %4 : vector<8x32xf32>
    %257 = math.tanh %256 : vector<8x32xf32>
    %cst_80 = arith.constant dense<0.000000e+00> : vector<8x32xf32>
    %258 = tpu.matmul %257, %1, %cst_80 {dimension_numbers = #tpu.dot_dimension_numbers<[1], [0], [0], [1], [0, 0, 1, 1], [], []>} : vector<8x32xf32>, vector<32x32xf32>, vector<8x32xf32> -> vector<8x32xf32>
    %259 = arith.addf %258, %7 : vector<8x32xf32>
    %260 = vector.broadcast %175 : f32 to vector<8x32xf32>
    %261 = arith.mulf %260, %259 : vector<8x32xf32>
    %262 = arith.addf %254, %261 : vector<8x32xf32>
    %cst_81 = arith.constant dense<0.000000e+00> : vector<8x32xf32>
    %263 = tpu.matmul %262, %0, %cst_81 {dimension_numbers = #tpu.dot_dimension_numbers<[1], [0], [0], [1], [0, 0, 1, 1], [], []>} : vector<8x32xf32>, vector<32x32xf32>, vector<8x32xf32> -> vector<8x32xf32>
    %264 = arith.addf %263, %4 : vector<8x32xf32>
    %265 = math.tanh %264 : vector<8x32xf32>
    %cst_82 = arith.constant dense<0.000000e+00> : vector<8x32xf32>
    %266 = tpu.matmul %265, %1, %cst_82 {dimension_numbers = #tpu.dot_dimension_numbers<[1], [0], [0], [1], [0, 0, 1, 1], [], []>} : vector<8x32xf32>, vector<32x32xf32>, vector<8x32xf32> -> vector<8x32xf32>
    %267 = arith.addf %266, %7 : vector<8x32xf32>
    %268 = vector.broadcast %175 : f32 to vector<8x32xf32>
    %269 = arith.mulf %268, %267 : vector<8x32xf32>
    %270 = arith.addf %254, %269 : vector<8x32xf32>
    %cst_83 = arith.constant dense<0.000000e+00> : vector<8x32xf32>
    %271 = tpu.matmul %270, %0, %cst_83 {dimension_numbers = #tpu.dot_dimension_numbers<[1], [0], [0], [1], [0, 0, 1, 1], [], []>} : vector<8x32xf32>, vector<32x32xf32>, vector<8x32xf32> -> vector<8x32xf32>
    %272 = arith.addf %271, %4 : vector<8x32xf32>
    %273 = math.tanh %272 : vector<8x32xf32>
    %cst_84 = arith.constant dense<0.000000e+00> : vector<8x32xf32>
    %274 = tpu.matmul %273, %1, %cst_84 {dimension_numbers = #tpu.dot_dimension_numbers<[1], [0], [0], [1], [0, 0, 1, 1], [], []>} : vector<8x32xf32>, vector<32x32xf32>, vector<8x32xf32> -> vector<8x32xf32>
    %275 = arith.addf %274, %7 : vector<8x32xf32>
    %276 = vector.broadcast %174 : f32 to vector<8x32xf32>
    %277 = arith.mulf %276, %275 : vector<8x32xf32>
    %278 = arith.addf %254, %277 : vector<8x32xf32>
    %cst_85 = arith.constant dense<0.000000e+00> : vector<8x32xf32>
    %279 = tpu.matmul %278, %0, %cst_85 {dimension_numbers = #tpu.dot_dimension_numbers<[1], [0], [0], [1], [0, 0, 1, 1], [], []>} : vector<8x32xf32>, vector<32x32xf32>, vector<8x32xf32> -> vector<8x32xf32>
    %280 = arith.addf %279, %4 : vector<8x32xf32>
    %281 = math.tanh %280 : vector<8x32xf32>
    %cst_86 = arith.constant dense<0.000000e+00> : vector<8x32xf32>
    %282 = tpu.matmul %281, %1, %cst_86 {dimension_numbers = #tpu.dot_dimension_numbers<[1], [0], [0], [1], [0, 0, 1, 1], [], []>} : vector<8x32xf32>, vector<32x32xf32>, vector<8x32xf32> -> vector<8x32xf32>
    %283 = arith.addf %282, %7 : vector<8x32xf32>
    %cst_87 = arith.constant 2.000000e+00 : f32
    %284 = vector.broadcast %cst_87 : f32 to vector<8x32xf32>
    %285 = arith.mulf %284, %267 : vector<8x32xf32>
    %286 = arith.addf %259, %285 : vector<8x32xf32>
    %cst_88 = arith.constant 2.000000e+00 : f32
    %287 = vector.broadcast %cst_88 : f32 to vector<8x32xf32>
    %288 = arith.mulf %287, %275 : vector<8x32xf32>
    %289 = arith.addf %286, %288 : vector<8x32xf32>
    %290 = arith.addf %289, %283 : vector<8x32xf32>
    %291 = vector.broadcast %176 : f32 to vector<8x32xf32>
    %292 = arith.mulf %291, %290 : vector<8x32xf32>
    %293 = arith.addf %254, %292 : vector<8x32xf32>
    %c3_i32_89 = arith.constant 3 : i32
    %cst_90 = arith.constant dense<0.000000e+00> : vector<8x32xf32>
    %294 = tpu.matmul %293, %0, %cst_90 {dimension_numbers = #tpu.dot_dimension_numbers<[1], [0], [0], [1], [0, 0, 1, 1], [], []>} : vector<8x32xf32>, vector<32x32xf32>, vector<8x32xf32> -> vector<8x32xf32>
    %295 = arith.addf %294, %4 : vector<8x32xf32>
    %296 = math.tanh %295 : vector<8x32xf32>
    %cst_91 = arith.constant dense<0.000000e+00> : vector<8x32xf32>
    %297 = tpu.matmul %296, %1, %cst_91 {dimension_numbers = #tpu.dot_dimension_numbers<[1], [0], [0], [1], [0, 0, 1, 1], [], []>} : vector<8x32xf32>, vector<32x32xf32>, vector<8x32xf32> -> vector<8x32xf32>
    %298 = arith.addf %297, %7 : vector<8x32xf32>
    %299 = vector.broadcast %175 : f32 to vector<8x32xf32>
    %300 = arith.mulf %299, %298 : vector<8x32xf32>
    %301 = arith.addf %293, %300 : vector<8x32xf32>
    %cst_92 = arith.constant dense<0.000000e+00> : vector<8x32xf32>
    %302 = tpu.matmul %301, %0, %cst_92 {dimension_numbers = #tpu.dot_dimension_numbers<[1], [0], [0], [1], [0, 0, 1, 1], [], []>} : vector<8x32xf32>, vector<32x32xf32>, vector<8x32xf32> -> vector<8x32xf32>
    %303 = arith.addf %302, %4 : vector<8x32xf32>
    %304 = math.tanh %303 : vector<8x32xf32>
    %cst_93 = arith.constant dense<0.000000e+00> : vector<8x32xf32>
    %305 = tpu.matmul %304, %1, %cst_93 {dimension_numbers = #tpu.dot_dimension_numbers<[1], [0], [0], [1], [0, 0, 1, 1], [], []>} : vector<8x32xf32>, vector<32x32xf32>, vector<8x32xf32> -> vector<8x32xf32>
    %306 = arith.addf %305, %7 : vector<8x32xf32>
    %307 = vector.broadcast %175 : f32 to vector<8x32xf32>
    %308 = arith.mulf %307, %306 : vector<8x32xf32>
    %309 = arith.addf %293, %308 : vector<8x32xf32>
    %cst_94 = arith.constant dense<0.000000e+00> : vector<8x32xf32>
    %310 = tpu.matmul %309, %0, %cst_94 {dimension_numbers = #tpu.dot_dimension_numbers<[1], [0], [0], [1], [0, 0, 1, 1], [], []>} : vector<8x32xf32>, vector<32x32xf32>, vector<8x32xf32> -> vector<8x32xf32>
    %311 = arith.addf %310, %4 : vector<8x32xf32>
    %312 = math.tanh %311 : vector<8x32xf32>
    %cst_95 = arith.constant dense<0.000000e+00> : vector<8x32xf32>
    %313 = tpu.matmul %312, %1, %cst_95 {dimension_numbers = #tpu.dot_dimension_numbers<[1], [0], [0], [1], [0, 0, 1, 1], [], []>} : vector<8x32xf32>, vector<32x32xf32>, vector<8x32xf32> -> vector<8x32xf32>
    %314 = arith.addf %313, %7 : vector<8x32xf32>
    %315 = vector.broadcast %174 : f32 to vector<8x32xf32>
    %316 = arith.mulf %315, %314 : vector<8x32xf32>
    %317 = arith.addf %293, %316 : vector<8x32xf32>
    %cst_96 = arith.constant dense<0.000000e+00> : vector<8x32xf32>
    %318 = tpu.matmul %317, %0, %cst_96 {dimension_numbers = #tpu.dot_dimension_numbers<[1], [0], [0], [1], [0, 0, 1, 1], [], []>} : vector<8x32xf32>, vector<32x32xf32>, vector<8x32xf32> -> vector<8x32xf32>
    %319 = arith.addf %318, %4 : vector<8x32xf32>
    %320 = math.tanh %319 : vector<8x32xf32>
    %cst_97 = arith.constant dense<0.000000e+00> : vector<8x32xf32>
    %321 = tpu.matmul %320, %1, %cst_97 {dimension_numbers = #tpu.dot_dimension_numbers<[1], [0], [0], [1], [0, 0, 1, 1], [], []>} : vector<8x32xf32>, vector<32x32xf32>, vector<8x32xf32> -> vector<8x32xf32>
    %322 = arith.addf %321, %7 : vector<8x32xf32>
    %cst_98 = arith.constant 2.000000e+00 : f32
    %323 = vector.broadcast %cst_98 : f32 to vector<8x32xf32>
    %324 = arith.mulf %323, %306 : vector<8x32xf32>
    %325 = arith.addf %298, %324 : vector<8x32xf32>
    %cst_99 = arith.constant 2.000000e+00 : f32
    %326 = vector.broadcast %cst_99 : f32 to vector<8x32xf32>
    %327 = arith.mulf %326, %314 : vector<8x32xf32>
    %328 = arith.addf %325, %327 : vector<8x32xf32>
    %329 = arith.addf %328, %322 : vector<8x32xf32>
    %330 = vector.broadcast %176 : f32 to vector<8x32xf32>
    %331 = arith.mulf %330, %329 : vector<8x32xf32>
    %332 = arith.addf %293, %331 : vector<8x32xf32>
    %c3 = arith.constant 3 : index
    %333 = memref.load %arg1[%c3] : memref<8xf32, #tpu.memory_space<smem>>
    %c2_100 = arith.constant 2 : index
    %334 = memref.load %arg1[%c2_100] : memref<8xf32, #tpu.memory_space<smem>>
    %335 = arith.subf %333, %334 : f32
    %cst_101 = arith.constant 4.000000e+00 : f32
    %336 = arith.divf %335, %cst_101 : f32
    %cst_102 = arith.constant 5.000000e-01 : f32
    %337 = arith.mulf %cst_102, %336 : f32
    %cst_103 = arith.constant 6.000000e+00 : f32
    %338 = arith.divf %336, %cst_103 : f32
    %c0_i32_104 = arith.constant 0 : i32
    %cst_105 = arith.constant dense<0.000000e+00> : vector<8x32xf32>
    %339 = tpu.matmul %332, %0, %cst_105 {dimension_numbers = #tpu.dot_dimension_numbers<[1], [0], [0], [1], [0, 0, 1, 1], [], []>} : vector<8x32xf32>, vector<32x32xf32>, vector<8x32xf32> -> vector<8x32xf32>
    %340 = arith.addf %339, %4 : vector<8x32xf32>
    %341 = math.tanh %340 : vector<8x32xf32>
    %cst_106 = arith.constant dense<0.000000e+00> : vector<8x32xf32>
    %342 = tpu.matmul %341, %1, %cst_106 {dimension_numbers = #tpu.dot_dimension_numbers<[1], [0], [0], [1], [0, 0, 1, 1], [], []>} : vector<8x32xf32>, vector<32x32xf32>, vector<8x32xf32> -> vector<8x32xf32>
    %343 = arith.addf %342, %7 : vector<8x32xf32>
    %344 = vector.broadcast %337 : f32 to vector<8x32xf32>
    %345 = arith.mulf %344, %343 : vector<8x32xf32>
    %346 = arith.addf %332, %345 : vector<8x32xf32>
    %cst_107 = arith.constant dense<0.000000e+00> : vector<8x32xf32>
    %347 = tpu.matmul %346, %0, %cst_107 {dimension_numbers = #tpu.dot_dimension_numbers<[1], [0], [0], [1], [0, 0, 1, 1], [], []>} : vector<8x32xf32>, vector<32x32xf32>, vector<8x32xf32> -> vector<8x32xf32>
    %348 = arith.addf %347, %4 : vector<8x32xf32>
    %349 = math.tanh %348 : vector<8x32xf32>
    %cst_108 = arith.constant dense<0.000000e+00> : vector<8x32xf32>
    %350 = tpu.matmul %349, %1, %cst_108 {dimension_numbers = #tpu.dot_dimension_numbers<[1], [0], [0], [1], [0, 0, 1, 1], [], []>} : vector<8x32xf32>, vector<32x32xf32>, vector<8x32xf32> -> vector<8x32xf32>
    %351 = arith.addf %350, %7 : vector<8x32xf32>
    %352 = vector.broadcast %337 : f32 to vector<8x32xf32>
    %353 = arith.mulf %352, %351 : vector<8x32xf32>
    %354 = arith.addf %332, %353 : vector<8x32xf32>
    %cst_109 = arith.constant dense<0.000000e+00> : vector<8x32xf32>
    %355 = tpu.matmul %354, %0, %cst_109 {dimension_numbers = #tpu.dot_dimension_numbers<[1], [0], [0], [1], [0, 0, 1, 1], [], []>} : vector<8x32xf32>, vector<32x32xf32>, vector<8x32xf32> -> vector<8x32xf32>
    %356 = arith.addf %355, %4 : vector<8x32xf32>
    %357 = math.tanh %356 : vector<8x32xf32>
    %cst_110 = arith.constant dense<0.000000e+00> : vector<8x32xf32>
    %358 = tpu.matmul %357, %1, %cst_110 {dimension_numbers = #tpu.dot_dimension_numbers<[1], [0], [0], [1], [0, 0, 1, 1], [], []>} : vector<8x32xf32>, vector<32x32xf32>, vector<8x32xf32> -> vector<8x32xf32>
    %359 = arith.addf %358, %7 : vector<8x32xf32>
    %360 = vector.broadcast %336 : f32 to vector<8x32xf32>
    %361 = arith.mulf %360, %359 : vector<8x32xf32>
    %362 = arith.addf %332, %361 : vector<8x32xf32>
    %cst_111 = arith.constant dense<0.000000e+00> : vector<8x32xf32>
    %363 = tpu.matmul %362, %0, %cst_111 {dimension_numbers = #tpu.dot_dimension_numbers<[1], [0], [0], [1], [0, 0, 1, 1], [], []>} : vector<8x32xf32>, vector<32x32xf32>, vector<8x32xf32> -> vector<8x32xf32>
    %364 = arith.addf %363, %4 : vector<8x32xf32>
    %365 = math.tanh %364 : vector<8x32xf32>
    %cst_112 = arith.constant dense<0.000000e+00> : vector<8x32xf32>
    %366 = tpu.matmul %365, %1, %cst_112 {dimension_numbers = #tpu.dot_dimension_numbers<[1], [0], [0], [1], [0, 0, 1, 1], [], []>} : vector<8x32xf32>, vector<32x32xf32>, vector<8x32xf32> -> vector<8x32xf32>
    %367 = arith.addf %366, %7 : vector<8x32xf32>
    %cst_113 = arith.constant 2.000000e+00 : f32
    %368 = vector.broadcast %cst_113 : f32 to vector<8x32xf32>
    %369 = arith.mulf %368, %351 : vector<8x32xf32>
    %370 = arith.addf %343, %369 : vector<8x32xf32>
    %cst_114 = arith.constant 2.000000e+00 : f32
    %371 = vector.broadcast %cst_114 : f32 to vector<8x32xf32>
    %372 = arith.mulf %371, %359 : vector<8x32xf32>
    %373 = arith.addf %370, %372 : vector<8x32xf32>
    %374 = arith.addf %373, %367 : vector<8x32xf32>
    %375 = vector.broadcast %338 : f32 to vector<8x32xf32>
    %376 = arith.mulf %375, %374 : vector<8x32xf32>
    %377 = arith.addf %332, %376 : vector<8x32xf32>
    %c1_i32_115 = arith.constant 1 : i32
    %cst_116 = arith.constant dense<0.000000e+00> : vector<8x32xf32>
    %378 = tpu.matmul %377, %0, %cst_116 {dimension_numbers = #tpu.dot_dimension_numbers<[1], [0], [0], [1], [0, 0, 1, 1], [], []>} : vector<8x32xf32>, vector<32x32xf32>, vector<8x32xf32> -> vector<8x32xf32>
    %379 = arith.addf %378, %4 : vector<8x32xf32>
    %380 = math.tanh %379 : vector<8x32xf32>
    %cst_117 = arith.constant dense<0.000000e+00> : vector<8x32xf32>
    %381 = tpu.matmul %380, %1, %cst_117 {dimension_numbers = #tpu.dot_dimension_numbers<[1], [0], [0], [1], [0, 0, 1, 1], [], []>} : vector<8x32xf32>, vector<32x32xf32>, vector<8x32xf32> -> vector<8x32xf32>
    %382 = arith.addf %381, %7 : vector<8x32xf32>
    %383 = vector.broadcast %337 : f32 to vector<8x32xf32>
    %384 = arith.mulf %383, %382 : vector<8x32xf32>
    %385 = arith.addf %377, %384 : vector<8x32xf32>
    %cst_118 = arith.constant dense<0.000000e+00> : vector<8x32xf32>
    %386 = tpu.matmul %385, %0, %cst_118 {dimension_numbers = #tpu.dot_dimension_numbers<[1], [0], [0], [1], [0, 0, 1, 1], [], []>} : vector<8x32xf32>, vector<32x32xf32>, vector<8x32xf32> -> vector<8x32xf32>
    %387 = arith.addf %386, %4 : vector<8x32xf32>
    %388 = math.tanh %387 : vector<8x32xf32>
    %cst_119 = arith.constant dense<0.000000e+00> : vector<8x32xf32>
    %389 = tpu.matmul %388, %1, %cst_119 {dimension_numbers = #tpu.dot_dimension_numbers<[1], [0], [0], [1], [0, 0, 1, 1], [], []>} : vector<8x32xf32>, vector<32x32xf32>, vector<8x32xf32> -> vector<8x32xf32>
    %390 = arith.addf %389, %7 : vector<8x32xf32>
    %391 = vector.broadcast %337 : f32 to vector<8x32xf32>
    %392 = arith.mulf %391, %390 : vector<8x32xf32>
    %393 = arith.addf %377, %392 : vector<8x32xf32>
    %cst_120 = arith.constant dense<0.000000e+00> : vector<8x32xf32>
    %394 = tpu.matmul %393, %0, %cst_120 {dimension_numbers = #tpu.dot_dimension_numbers<[1], [0], [0], [1], [0, 0, 1, 1], [], []>} : vector<8x32xf32>, vector<32x32xf32>, vector<8x32xf32> -> vector<8x32xf32>
    %395 = arith.addf %394, %4 : vector<8x32xf32>
    %396 = math.tanh %395 : vector<8x32xf32>
    %cst_121 = arith.constant dense<0.000000e+00> : vector<8x32xf32>
    %397 = tpu.matmul %396, %1, %cst_121 {dimension_numbers = #tpu.dot_dimension_numbers<[1], [0], [0], [1], [0, 0, 1, 1], [], []>} : vector<8x32xf32>, vector<32x32xf32>, vector<8x32xf32> -> vector<8x32xf32>
    %398 = arith.addf %397, %7 : vector<8x32xf32>
    %399 = vector.broadcast %336 : f32 to vector<8x32xf32>
    %400 = arith.mulf %399, %398 : vector<8x32xf32>
    %401 = arith.addf %377, %400 : vector<8x32xf32>
    %cst_122 = arith.constant dense<0.000000e+00> : vector<8x32xf32>
    %402 = tpu.matmul %401, %0, %cst_122 {dimension_numbers = #tpu.dot_dimension_numbers<[1], [0], [0], [1], [0, 0, 1, 1], [], []>} : vector<8x32xf32>, vector<32x32xf32>, vector<8x32xf32> -> vector<8x32xf32>
    %403 = arith.addf %402, %4 : vector<8x32xf32>
    %404 = math.tanh %403 : vector<8x32xf32>
    %cst_123 = arith.constant dense<0.000000e+00> : vector<8x32xf32>
    %405 = tpu.matmul %404, %1, %cst_123 {dimension_numbers = #tpu.dot_dimension_numbers<[1], [0], [0], [1], [0, 0, 1, 1], [], []>} : vector<8x32xf32>, vector<32x32xf32>, vector<8x32xf32> -> vector<8x32xf32>
    %406 = arith.addf %405, %7 : vector<8x32xf32>
    %cst_124 = arith.constant 2.000000e+00 : f32
    %407 = vector.broadcast %cst_124 : f32 to vector<8x32xf32>
    %408 = arith.mulf %407, %390 : vector<8x32xf32>
    %409 = arith.addf %382, %408 : vector<8x32xf32>
    %cst_125 = arith.constant 2.000000e+00 : f32
    %410 = vector.broadcast %cst_125 : f32 to vector<8x32xf32>
    %411 = arith.mulf %410, %398 : vector<8x32xf32>
    %412 = arith.addf %409, %411 : vector<8x32xf32>
    %413 = arith.addf %412, %406 : vector<8x32xf32>
    %414 = vector.broadcast %338 : f32 to vector<8x32xf32>
    %415 = arith.mulf %414, %413 : vector<8x32xf32>
    %416 = arith.addf %377, %415 : vector<8x32xf32>
    %c2_i32_126 = arith.constant 2 : i32
    %cst_127 = arith.constant dense<0.000000e+00> : vector<8x32xf32>
    %417 = tpu.matmul %416, %0, %cst_127 {dimension_numbers = #tpu.dot_dimension_numbers<[1], [0], [0], [1], [0, 0, 1, 1], [], []>} : vector<8x32xf32>, vector<32x32xf32>, vector<8x32xf32> -> vector<8x32xf32>
    %418 = arith.addf %417, %4 : vector<8x32xf32>
    %419 = math.tanh %418 : vector<8x32xf32>
    %cst_128 = arith.constant dense<0.000000e+00> : vector<8x32xf32>
    %420 = tpu.matmul %419, %1, %cst_128 {dimension_numbers = #tpu.dot_dimension_numbers<[1], [0], [0], [1], [0, 0, 1, 1], [], []>} : vector<8x32xf32>, vector<32x32xf32>, vector<8x32xf32> -> vector<8x32xf32>
    %421 = arith.addf %420, %7 : vector<8x32xf32>
    %422 = vector.broadcast %337 : f32 to vector<8x32xf32>
    %423 = arith.mulf %422, %421 : vector<8x32xf32>
    %424 = arith.addf %416, %423 : vector<8x32xf32>
    %cst_129 = arith.constant dense<0.000000e+00> : vector<8x32xf32>
    %425 = tpu.matmul %424, %0, %cst_129 {dimension_numbers = #tpu.dot_dimension_numbers<[1], [0], [0], [1], [0, 0, 1, 1], [], []>} : vector<8x32xf32>, vector<32x32xf32>, vector<8x32xf32> -> vector<8x32xf32>
    %426 = arith.addf %425, %4 : vector<8x32xf32>
    %427 = math.tanh %426 : vector<8x32xf32>
    %cst_130 = arith.constant dense<0.000000e+00> : vector<8x32xf32>
    %428 = tpu.matmul %427, %1, %cst_130 {dimension_numbers = #tpu.dot_dimension_numbers<[1], [0], [0], [1], [0, 0, 1, 1], [], []>} : vector<8x32xf32>, vector<32x32xf32>, vector<8x32xf32> -> vector<8x32xf32>
    %429 = arith.addf %428, %7 : vector<8x32xf32>
    %430 = vector.broadcast %337 : f32 to vector<8x32xf32>
    %431 = arith.mulf %430, %429 : vector<8x32xf32>
    %432 = arith.addf %416, %431 : vector<8x32xf32>
    %cst_131 = arith.constant dense<0.000000e+00> : vector<8x32xf32>
    %433 = tpu.matmul %432, %0, %cst_131 {dimension_numbers = #tpu.dot_dimension_numbers<[1], [0], [0], [1], [0, 0, 1, 1], [], []>} : vector<8x32xf32>, vector<32x32xf32>, vector<8x32xf32> -> vector<8x32xf32>
    %434 = arith.addf %433, %4 : vector<8x32xf32>
    %435 = math.tanh %434 : vector<8x32xf32>
    %cst_132 = arith.constant dense<0.000000e+00> : vector<8x32xf32>
    %436 = tpu.matmul %435, %1, %cst_132 {dimension_numbers = #tpu.dot_dimension_numbers<[1], [0], [0], [1], [0, 0, 1, 1], [], []>} : vector<8x32xf32>, vector<32x32xf32>, vector<8x32xf32> -> vector<8x32xf32>
    %437 = arith.addf %436, %7 : vector<8x32xf32>
    %438 = vector.broadcast %336 : f32 to vector<8x32xf32>
    %439 = arith.mulf %438, %437 : vector<8x32xf32>
    %440 = arith.addf %416, %439 : vector<8x32xf32>
    %cst_133 = arith.constant dense<0.000000e+00> : vector<8x32xf32>
    %441 = tpu.matmul %440, %0, %cst_133 {dimension_numbers = #tpu.dot_dimension_numbers<[1], [0], [0], [1], [0, 0, 1, 1], [], []>} : vector<8x32xf32>, vector<32x32xf32>, vector<8x32xf32> -> vector<8x32xf32>
    %442 = arith.addf %441, %4 : vector<8x32xf32>
    %443 = math.tanh %442 : vector<8x32xf32>
    %cst_134 = arith.constant dense<0.000000e+00> : vector<8x32xf32>
    %444 = tpu.matmul %443, %1, %cst_134 {dimension_numbers = #tpu.dot_dimension_numbers<[1], [0], [0], [1], [0, 0, 1, 1], [], []>} : vector<8x32xf32>, vector<32x32xf32>, vector<8x32xf32> -> vector<8x32xf32>
    %445 = arith.addf %444, %7 : vector<8x32xf32>
    %cst_135 = arith.constant 2.000000e+00 : f32
    %446 = vector.broadcast %cst_135 : f32 to vector<8x32xf32>
    %447 = arith.mulf %446, %429 : vector<8x32xf32>
    %448 = arith.addf %421, %447 : vector<8x32xf32>
    %cst_136 = arith.constant 2.000000e+00 : f32
    %449 = vector.broadcast %cst_136 : f32 to vector<8x32xf32>
    %450 = arith.mulf %449, %437 : vector<8x32xf32>
    %451 = arith.addf %448, %450 : vector<8x32xf32>
    %452 = arith.addf %451, %445 : vector<8x32xf32>
    %453 = vector.broadcast %338 : f32 to vector<8x32xf32>
    %454 = arith.mulf %453, %452 : vector<8x32xf32>
    %455 = arith.addf %416, %454 : vector<8x32xf32>
    %c3_i32_137 = arith.constant 3 : i32
    %cst_138 = arith.constant dense<0.000000e+00> : vector<8x32xf32>
    %456 = tpu.matmul %455, %0, %cst_138 {dimension_numbers = #tpu.dot_dimension_numbers<[1], [0], [0], [1], [0, 0, 1, 1], [], []>} : vector<8x32xf32>, vector<32x32xf32>, vector<8x32xf32> -> vector<8x32xf32>
    %457 = arith.addf %456, %4 : vector<8x32xf32>
    %458 = math.tanh %457 : vector<8x32xf32>
    %cst_139 = arith.constant dense<0.000000e+00> : vector<8x32xf32>
    %459 = tpu.matmul %458, %1, %cst_139 {dimension_numbers = #tpu.dot_dimension_numbers<[1], [0], [0], [1], [0, 0, 1, 1], [], []>} : vector<8x32xf32>, vector<32x32xf32>, vector<8x32xf32> -> vector<8x32xf32>
    %460 = arith.addf %459, %7 : vector<8x32xf32>
    %461 = vector.broadcast %337 : f32 to vector<8x32xf32>
    %462 = arith.mulf %461, %460 : vector<8x32xf32>
    %463 = arith.addf %455, %462 : vector<8x32xf32>
    %cst_140 = arith.constant dense<0.000000e+00> : vector<8x32xf32>
    %464 = tpu.matmul %463, %0, %cst_140 {dimension_numbers = #tpu.dot_dimension_numbers<[1], [0], [0], [1], [0, 0, 1, 1], [], []>} : vector<8x32xf32>, vector<32x32xf32>, vector<8x32xf32> -> vector<8x32xf32>
    %465 = arith.addf %464, %4 : vector<8x32xf32>
    %466 = math.tanh %465 : vector<8x32xf32>
    %cst_141 = arith.constant dense<0.000000e+00> : vector<8x32xf32>
    %467 = tpu.matmul %466, %1, %cst_141 {dimension_numbers = #tpu.dot_dimension_numbers<[1], [0], [0], [1], [0, 0, 1, 1], [], []>} : vector<8x32xf32>, vector<32x32xf32>, vector<8x32xf32> -> vector<8x32xf32>
    %468 = arith.addf %467, %7 : vector<8x32xf32>
    %469 = vector.broadcast %337 : f32 to vector<8x32xf32>
    %470 = arith.mulf %469, %468 : vector<8x32xf32>
    %471 = arith.addf %455, %470 : vector<8x32xf32>
    %cst_142 = arith.constant dense<0.000000e+00> : vector<8x32xf32>
    %472 = tpu.matmul %471, %0, %cst_142 {dimension_numbers = #tpu.dot_dimension_numbers<[1], [0], [0], [1], [0, 0, 1, 1], [], []>} : vector<8x32xf32>, vector<32x32xf32>, vector<8x32xf32> -> vector<8x32xf32>
    %473 = arith.addf %472, %4 : vector<8x32xf32>
    %474 = math.tanh %473 : vector<8x32xf32>
    %cst_143 = arith.constant dense<0.000000e+00> : vector<8x32xf32>
    %475 = tpu.matmul %474, %1, %cst_143 {dimension_numbers = #tpu.dot_dimension_numbers<[1], [0], [0], [1], [0, 0, 1, 1], [], []>} : vector<8x32xf32>, vector<32x32xf32>, vector<8x32xf32> -> vector<8x32xf32>
    %476 = arith.addf %475, %7 : vector<8x32xf32>
    %477 = vector.broadcast %336 : f32 to vector<8x32xf32>
    %478 = arith.mulf %477, %476 : vector<8x32xf32>
    %479 = arith.addf %455, %478 : vector<8x32xf32>
    %cst_144 = arith.constant dense<0.000000e+00> : vector<8x32xf32>
    %480 = tpu.matmul %479, %0, %cst_144 {dimension_numbers = #tpu.dot_dimension_numbers<[1], [0], [0], [1], [0, 0, 1, 1], [], []>} : vector<8x32xf32>, vector<32x32xf32>, vector<8x32xf32> -> vector<8x32xf32>
    %481 = arith.addf %480, %4 : vector<8x32xf32>
    %482 = math.tanh %481 : vector<8x32xf32>
    %cst_145 = arith.constant dense<0.000000e+00> : vector<8x32xf32>
    %483 = tpu.matmul %482, %1, %cst_145 {dimension_numbers = #tpu.dot_dimension_numbers<[1], [0], [0], [1], [0, 0, 1, 1], [], []>} : vector<8x32xf32>, vector<32x32xf32>, vector<8x32xf32> -> vector<8x32xf32>
    %484 = arith.addf %483, %7 : vector<8x32xf32>
    %cst_146 = arith.constant 2.000000e+00 : f32
    %485 = vector.broadcast %cst_146 : f32 to vector<8x32xf32>
    %486 = arith.mulf %485, %468 : vector<8x32xf32>
    %487 = arith.addf %460, %486 : vector<8x32xf32>
    %cst_147 = arith.constant 2.000000e+00 : f32
    %488 = vector.broadcast %cst_147 : f32 to vector<8x32xf32>
    %489 = arith.mulf %488, %476 : vector<8x32xf32>
    %490 = arith.addf %487, %489 : vector<8x32xf32>
    %491 = arith.addf %490, %484 : vector<8x32xf32>
    %492 = vector.broadcast %338 : f32 to vector<8x32xf32>
    %493 = arith.mulf %492, %491 : vector<8x32xf32>
    %494 = arith.addf %455, %493 : vector<8x32xf32>
    %c4 = arith.constant 4 : index
    %495 = memref.load %arg1[%c4] : memref<8xf32, #tpu.memory_space<smem>>
    %c3_148 = arith.constant 3 : index
    %496 = memref.load %arg1[%c3_148] : memref<8xf32, #tpu.memory_space<smem>>
    %497 = arith.subf %495, %496 : f32
    %cst_149 = arith.constant 4.000000e+00 : f32
    %498 = arith.divf %497, %cst_149 : f32
    %cst_150 = arith.constant 5.000000e-01 : f32
    %499 = arith.mulf %cst_150, %498 : f32
    %cst_151 = arith.constant 6.000000e+00 : f32
    %500 = arith.divf %498, %cst_151 : f32
    %c0_i32_152 = arith.constant 0 : i32
    %cst_153 = arith.constant dense<0.000000e+00> : vector<8x32xf32>
    %501 = tpu.matmul %494, %0, %cst_153 {dimension_numbers = #tpu.dot_dimension_numbers<[1], [0], [0], [1], [0, 0, 1, 1], [], []>} : vector<8x32xf32>, vector<32x32xf32>, vector<8x32xf32> -> vector<8x32xf32>
    %502 = arith.addf %501, %4 : vector<8x32xf32>
    %503 = math.tanh %502 : vector<8x32xf32>
    %cst_154 = arith.constant dense<0.000000e+00> : vector<8x32xf32>
    %504 = tpu.matmul %503, %1, %cst_154 {dimension_numbers = #tpu.dot_dimension_numbers<[1], [0], [0], [1], [0, 0, 1, 1], [], []>} : vector<8x32xf32>, vector<32x32xf32>, vector<8x32xf32> -> vector<8x32xf32>
    %505 = arith.addf %504, %7 : vector<8x32xf32>
    %506 = vector.broadcast %499 : f32 to vector<8x32xf32>
    %507 = arith.mulf %506, %505 : vector<8x32xf32>
    %508 = arith.addf %494, %507 : vector<8x32xf32>
    %cst_155 = arith.constant dense<0.000000e+00> : vector<8x32xf32>
    %509 = tpu.matmul %508, %0, %cst_155 {dimension_numbers = #tpu.dot_dimension_numbers<[1], [0], [0], [1], [0, 0, 1, 1], [], []>} : vector<8x32xf32>, vector<32x32xf32>, vector<8x32xf32> -> vector<8x32xf32>
    %510 = arith.addf %509, %4 : vector<8x32xf32>
    %511 = math.tanh %510 : vector<8x32xf32>
    %cst_156 = arith.constant dense<0.000000e+00> : vector<8x32xf32>
    %512 = tpu.matmul %511, %1, %cst_156 {dimension_numbers = #tpu.dot_dimension_numbers<[1], [0], [0], [1], [0, 0, 1, 1], [], []>} : vector<8x32xf32>, vector<32x32xf32>, vector<8x32xf32> -> vector<8x32xf32>
    %513 = arith.addf %512, %7 : vector<8x32xf32>
    %514 = vector.broadcast %499 : f32 to vector<8x32xf32>
    %515 = arith.mulf %514, %513 : vector<8x32xf32>
    %516 = arith.addf %494, %515 : vector<8x32xf32>
    %cst_157 = arith.constant dense<0.000000e+00> : vector<8x32xf32>
    %517 = tpu.matmul %516, %0, %cst_157 {dimension_numbers = #tpu.dot_dimension_numbers<[1], [0], [0], [1], [0, 0, 1, 1], [], []>} : vector<8x32xf32>, vector<32x32xf32>, vector<8x32xf32> -> vector<8x32xf32>
    %518 = arith.addf %517, %4 : vector<8x32xf32>
    %519 = math.tanh %518 : vector<8x32xf32>
    %cst_158 = arith.constant dense<0.000000e+00> : vector<8x32xf32>
    %520 = tpu.matmul %519, %1, %cst_158 {dimension_numbers = #tpu.dot_dimension_numbers<[1], [0], [0], [1], [0, 0, 1, 1], [], []>} : vector<8x32xf32>, vector<32x32xf32>, vector<8x32xf32> -> vector<8x32xf32>
    %521 = arith.addf %520, %7 : vector<8x32xf32>
    %522 = vector.broadcast %498 : f32 to vector<8x32xf32>
    %523 = arith.mulf %522, %521 : vector<8x32xf32>
    %524 = arith.addf %494, %523 : vector<8x32xf32>
    %cst_159 = arith.constant dense<0.000000e+00> : vector<8x32xf32>
    %525 = tpu.matmul %524, %0, %cst_159 {dimension_numbers = #tpu.dot_dimension_numbers<[1], [0], [0], [1], [0, 0, 1, 1], [], []>} : vector<8x32xf32>, vector<32x32xf32>, vector<8x32xf32> -> vector<8x32xf32>
    %526 = arith.addf %525, %4 : vector<8x32xf32>
    %527 = math.tanh %526 : vector<8x32xf32>
    %cst_160 = arith.constant dense<0.000000e+00> : vector<8x32xf32>
    %528 = tpu.matmul %527, %1, %cst_160 {dimension_numbers = #tpu.dot_dimension_numbers<[1], [0], [0], [1], [0, 0, 1, 1], [], []>} : vector<8x32xf32>, vector<32x32xf32>, vector<8x32xf32> -> vector<8x32xf32>
    %529 = arith.addf %528, %7 : vector<8x32xf32>
    %cst_161 = arith.constant 2.000000e+00 : f32
    %530 = vector.broadcast %cst_161 : f32 to vector<8x32xf32>
    %531 = arith.mulf %530, %513 : vector<8x32xf32>
    %532 = arith.addf %505, %531 : vector<8x32xf32>
    %cst_162 = arith.constant 2.000000e+00 : f32
    %533 = vector.broadcast %cst_162 : f32 to vector<8x32xf32>
    %534 = arith.mulf %533, %521 : vector<8x32xf32>
    %535 = arith.addf %532, %534 : vector<8x32xf32>
    %536 = arith.addf %535, %529 : vector<8x32xf32>
    %537 = vector.broadcast %500 : f32 to vector<8x32xf32>
    %538 = arith.mulf %537, %536 : vector<8x32xf32>
    %539 = arith.addf %494, %538 : vector<8x32xf32>
    %c1_i32_163 = arith.constant 1 : i32
    %cst_164 = arith.constant dense<0.000000e+00> : vector<8x32xf32>
    %540 = tpu.matmul %539, %0, %cst_164 {dimension_numbers = #tpu.dot_dimension_numbers<[1], [0], [0], [1], [0, 0, 1, 1], [], []>} : vector<8x32xf32>, vector<32x32xf32>, vector<8x32xf32> -> vector<8x32xf32>
    %541 = arith.addf %540, %4 : vector<8x32xf32>
    %542 = math.tanh %541 : vector<8x32xf32>
    %cst_165 = arith.constant dense<0.000000e+00> : vector<8x32xf32>
    %543 = tpu.matmul %542, %1, %cst_165 {dimension_numbers = #tpu.dot_dimension_numbers<[1], [0], [0], [1], [0, 0, 1, 1], [], []>} : vector<8x32xf32>, vector<32x32xf32>, vector<8x32xf32> -> vector<8x32xf32>
    %544 = arith.addf %543, %7 : vector<8x32xf32>
    %545 = vector.broadcast %499 : f32 to vector<8x32xf32>
    %546 = arith.mulf %545, %544 : vector<8x32xf32>
    %547 = arith.addf %539, %546 : vector<8x32xf32>
    %cst_166 = arith.constant dense<0.000000e+00> : vector<8x32xf32>
    %548 = tpu.matmul %547, %0, %cst_166 {dimension_numbers = #tpu.dot_dimension_numbers<[1], [0], [0], [1], [0, 0, 1, 1], [], []>} : vector<8x32xf32>, vector<32x32xf32>, vector<8x32xf32> -> vector<8x32xf32>
    %549 = arith.addf %548, %4 : vector<8x32xf32>
    %550 = math.tanh %549 : vector<8x32xf32>
    %cst_167 = arith.constant dense<0.000000e+00> : vector<8x32xf32>
    %551 = tpu.matmul %550, %1, %cst_167 {dimension_numbers = #tpu.dot_dimension_numbers<[1], [0], [0], [1], [0, 0, 1, 1], [], []>} : vector<8x32xf32>, vector<32x32xf32>, vector<8x32xf32> -> vector<8x32xf32>
    %552 = arith.addf %551, %7 : vector<8x32xf32>
    %553 = vector.broadcast %499 : f32 to vector<8x32xf32>
    %554 = arith.mulf %553, %552 : vector<8x32xf32>
    %555 = arith.addf %539, %554 : vector<8x32xf32>
    %cst_168 = arith.constant dense<0.000000e+00> : vector<8x32xf32>
    %556 = tpu.matmul %555, %0, %cst_168 {dimension_numbers = #tpu.dot_dimension_numbers<[1], [0], [0], [1], [0, 0, 1, 1], [], []>} : vector<8x32xf32>, vector<32x32xf32>, vector<8x32xf32> -> vector<8x32xf32>
    %557 = arith.addf %556, %4 : vector<8x32xf32>
    %558 = math.tanh %557 : vector<8x32xf32>
    %cst_169 = arith.constant dense<0.000000e+00> : vector<8x32xf32>
    %559 = tpu.matmul %558, %1, %cst_169 {dimension_numbers = #tpu.dot_dimension_numbers<[1], [0], [0], [1], [0, 0, 1, 1], [], []>} : vector<8x32xf32>, vector<32x32xf32>, vector<8x32xf32> -> vector<8x32xf32>
    %560 = arith.addf %559, %7 : vector<8x32xf32>
    %561 = vector.broadcast %498 : f32 to vector<8x32xf32>
    %562 = arith.mulf %561, %560 : vector<8x32xf32>
    %563 = arith.addf %539, %562 : vector<8x32xf32>
    %cst_170 = arith.constant dense<0.000000e+00> : vector<8x32xf32>
    %564 = tpu.matmul %563, %0, %cst_170 {dimension_numbers = #tpu.dot_dimension_numbers<[1], [0], [0], [1], [0, 0, 1, 1], [], []>} : vector<8x32xf32>, vector<32x32xf32>, vector<8x32xf32> -> vector<8x32xf32>
    %565 = arith.addf %564, %4 : vector<8x32xf32>
    %566 = math.tanh %565 : vector<8x32xf32>
    %cst_171 = arith.constant dense<0.000000e+00> : vector<8x32xf32>
    %567 = tpu.matmul %566, %1, %cst_171 {dimension_numbers = #tpu.dot_dimension_numbers<[1], [0], [0], [1], [0, 0, 1, 1], [], []>} : vector<8x32xf32>, vector<32x32xf32>, vector<8x32xf32> -> vector<8x32xf32>
    %568 = arith.addf %567, %7 : vector<8x32xf32>
    %cst_172 = arith.constant 2.000000e+00 : f32
    %569 = vector.broadcast %cst_172 : f32 to vector<8x32xf32>
    %570 = arith.mulf %569, %552 : vector<8x32xf32>
    %571 = arith.addf %544, %570 : vector<8x32xf32>
    %cst_173 = arith.constant 2.000000e+00 : f32
    %572 = vector.broadcast %cst_173 : f32 to vector<8x32xf32>
    %573 = arith.mulf %572, %560 : vector<8x32xf32>
    %574 = arith.addf %571, %573 : vector<8x32xf32>
    %575 = arith.addf %574, %568 : vector<8x32xf32>
    %576 = vector.broadcast %500 : f32 to vector<8x32xf32>
    %577 = arith.mulf %576, %575 : vector<8x32xf32>
    %578 = arith.addf %539, %577 : vector<8x32xf32>
    %c2_i32_174 = arith.constant 2 : i32
    %cst_175 = arith.constant dense<0.000000e+00> : vector<8x32xf32>
    %579 = tpu.matmul %578, %0, %cst_175 {dimension_numbers = #tpu.dot_dimension_numbers<[1], [0], [0], [1], [0, 0, 1, 1], [], []>} : vector<8x32xf32>, vector<32x32xf32>, vector<8x32xf32> -> vector<8x32xf32>
    %580 = arith.addf %579, %4 : vector<8x32xf32>
    %581 = math.tanh %580 : vector<8x32xf32>
    %cst_176 = arith.constant dense<0.000000e+00> : vector<8x32xf32>
    %582 = tpu.matmul %581, %1, %cst_176 {dimension_numbers = #tpu.dot_dimension_numbers<[1], [0], [0], [1], [0, 0, 1, 1], [], []>} : vector<8x32xf32>, vector<32x32xf32>, vector<8x32xf32> -> vector<8x32xf32>
    %583 = arith.addf %582, %7 : vector<8x32xf32>
    %584 = vector.broadcast %499 : f32 to vector<8x32xf32>
    %585 = arith.mulf %584, %583 : vector<8x32xf32>
    %586 = arith.addf %578, %585 : vector<8x32xf32>
    %cst_177 = arith.constant dense<0.000000e+00> : vector<8x32xf32>
    %587 = tpu.matmul %586, %0, %cst_177 {dimension_numbers = #tpu.dot_dimension_numbers<[1], [0], [0], [1], [0, 0, 1, 1], [], []>} : vector<8x32xf32>, vector<32x32xf32>, vector<8x32xf32> -> vector<8x32xf32>
    %588 = arith.addf %587, %4 : vector<8x32xf32>
    %589 = math.tanh %588 : vector<8x32xf32>
    %cst_178 = arith.constant dense<0.000000e+00> : vector<8x32xf32>
    %590 = tpu.matmul %589, %1, %cst_178 {dimension_numbers = #tpu.dot_dimension_numbers<[1], [0], [0], [1], [0, 0, 1, 1], [], []>} : vector<8x32xf32>, vector<32x32xf32>, vector<8x32xf32> -> vector<8x32xf32>
    %591 = arith.addf %590, %7 : vector<8x32xf32>
    %592 = vector.broadcast %499 : f32 to vector<8x32xf32>
    %593 = arith.mulf %592, %591 : vector<8x32xf32>
    %594 = arith.addf %578, %593 : vector<8x32xf32>
    %cst_179 = arith.constant dense<0.000000e+00> : vector<8x32xf32>
    %595 = tpu.matmul %594, %0, %cst_179 {dimension_numbers = #tpu.dot_dimension_numbers<[1], [0], [0], [1], [0, 0, 1, 1], [], []>} : vector<8x32xf32>, vector<32x32xf32>, vector<8x32xf32> -> vector<8x32xf32>
    %596 = arith.addf %595, %4 : vector<8x32xf32>
    %597 = math.tanh %596 : vector<8x32xf32>
    %cst_180 = arith.constant dense<0.000000e+00> : vector<8x32xf32>
    %598 = tpu.matmul %597, %1, %cst_180 {dimension_numbers = #tpu.dot_dimension_numbers<[1], [0], [0], [1], [0, 0, 1, 1], [], []>} : vector<8x32xf32>, vector<32x32xf32>, vector<8x32xf32> -> vector<8x32xf32>
    %599 = arith.addf %598, %7 : vector<8x32xf32>
    %600 = vector.broadcast %498 : f32 to vector<8x32xf32>
    %601 = arith.mulf %600, %599 : vector<8x32xf32>
    %602 = arith.addf %578, %601 : vector<8x32xf32>
    %cst_181 = arith.constant dense<0.000000e+00> : vector<8x32xf32>
    %603 = tpu.matmul %602, %0, %cst_181 {dimension_numbers = #tpu.dot_dimension_numbers<[1], [0], [0], [1], [0, 0, 1, 1], [], []>} : vector<8x32xf32>, vector<32x32xf32>, vector<8x32xf32> -> vector<8x32xf32>
    %604 = arith.addf %603, %4 : vector<8x32xf32>
    %605 = math.tanh %604 : vector<8x32xf32>
    %cst_182 = arith.constant dense<0.000000e+00> : vector<8x32xf32>
    %606 = tpu.matmul %605, %1, %cst_182 {dimension_numbers = #tpu.dot_dimension_numbers<[1], [0], [0], [1], [0, 0, 1, 1], [], []>} : vector<8x32xf32>, vector<32x32xf32>, vector<8x32xf32> -> vector<8x32xf32>
    %607 = arith.addf %606, %7 : vector<8x32xf32>
    %cst_183 = arith.constant 2.000000e+00 : f32
    %608 = vector.broadcast %cst_183 : f32 to vector<8x32xf32>
    %609 = arith.mulf %608, %591 : vector<8x32xf32>
    %610 = arith.addf %583, %609 : vector<8x32xf32>
    %cst_184 = arith.constant 2.000000e+00 : f32
    %611 = vector.broadcast %cst_184 : f32 to vector<8x32xf32>
    %612 = arith.mulf %611, %599 : vector<8x32xf32>
    %613 = arith.addf %610, %612 : vector<8x32xf32>
    %614 = arith.addf %613, %607 : vector<8x32xf32>
    %615 = vector.broadcast %500 : f32 to vector<8x32xf32>
    %616 = arith.mulf %615, %614 : vector<8x32xf32>
    %617 = arith.addf %578, %616 : vector<8x32xf32>
    %c3_i32_185 = arith.constant 3 : i32
    %cst_186 = arith.constant dense<0.000000e+00> : vector<8x32xf32>
    %618 = tpu.matmul %617, %0, %cst_186 {dimension_numbers = #tpu.dot_dimension_numbers<[1], [0], [0], [1], [0, 0, 1, 1], [], []>} : vector<8x32xf32>, vector<32x32xf32>, vector<8x32xf32> -> vector<8x32xf32>
    %619 = arith.addf %618, %4 : vector<8x32xf32>
    %620 = math.tanh %619 : vector<8x32xf32>
    %cst_187 = arith.constant dense<0.000000e+00> : vector<8x32xf32>
    %621 = tpu.matmul %620, %1, %cst_187 {dimension_numbers = #tpu.dot_dimension_numbers<[1], [0], [0], [1], [0, 0, 1, 1], [], []>} : vector<8x32xf32>, vector<32x32xf32>, vector<8x32xf32> -> vector<8x32xf32>
    %622 = arith.addf %621, %7 : vector<8x32xf32>
    %623 = vector.broadcast %499 : f32 to vector<8x32xf32>
    %624 = arith.mulf %623, %622 : vector<8x32xf32>
    %625 = arith.addf %617, %624 : vector<8x32xf32>
    %cst_188 = arith.constant dense<0.000000e+00> : vector<8x32xf32>
    %626 = tpu.matmul %625, %0, %cst_188 {dimension_numbers = #tpu.dot_dimension_numbers<[1], [0], [0], [1], [0, 0, 1, 1], [], []>} : vector<8x32xf32>, vector<32x32xf32>, vector<8x32xf32> -> vector<8x32xf32>
    %627 = arith.addf %626, %4 : vector<8x32xf32>
    %628 = math.tanh %627 : vector<8x32xf32>
    %cst_189 = arith.constant dense<0.000000e+00> : vector<8x32xf32>
    %629 = tpu.matmul %628, %1, %cst_189 {dimension_numbers = #tpu.dot_dimension_numbers<[1], [0], [0], [1], [0, 0, 1, 1], [], []>} : vector<8x32xf32>, vector<32x32xf32>, vector<8x32xf32> -> vector<8x32xf32>
    %630 = arith.addf %629, %7 : vector<8x32xf32>
    %631 = vector.broadcast %499 : f32 to vector<8x32xf32>
    %632 = arith.mulf %631, %630 : vector<8x32xf32>
    %633 = arith.addf %617, %632 : vector<8x32xf32>
    %cst_190 = arith.constant dense<0.000000e+00> : vector<8x32xf32>
    %634 = tpu.matmul %633, %0, %cst_190 {dimension_numbers = #tpu.dot_dimension_numbers<[1], [0], [0], [1], [0, 0, 1, 1], [], []>} : vector<8x32xf32>, vector<32x32xf32>, vector<8x32xf32> -> vector<8x32xf32>
    %635 = arith.addf %634, %4 : vector<8x32xf32>
    %636 = math.tanh %635 : vector<8x32xf32>
    %cst_191 = arith.constant dense<0.000000e+00> : vector<8x32xf32>
    %637 = tpu.matmul %636, %1, %cst_191 {dimension_numbers = #tpu.dot_dimension_numbers<[1], [0], [0], [1], [0, 0, 1, 1], [], []>} : vector<8x32xf32>, vector<32x32xf32>, vector<8x32xf32> -> vector<8x32xf32>
    %638 = arith.addf %637, %7 : vector<8x32xf32>
    %639 = vector.broadcast %498 : f32 to vector<8x32xf32>
    %640 = arith.mulf %639, %638 : vector<8x32xf32>
    %641 = arith.addf %617, %640 : vector<8x32xf32>
    %cst_192 = arith.constant dense<0.000000e+00> : vector<8x32xf32>
    %642 = tpu.matmul %641, %0, %cst_192 {dimension_numbers = #tpu.dot_dimension_numbers<[1], [0], [0], [1], [0, 0, 1, 1], [], []>} : vector<8x32xf32>, vector<32x32xf32>, vector<8x32xf32> -> vector<8x32xf32>
    %643 = arith.addf %642, %4 : vector<8x32xf32>
    %644 = math.tanh %643 : vector<8x32xf32>
    %cst_193 = arith.constant dense<0.000000e+00> : vector<8x32xf32>
    %645 = tpu.matmul %644, %1, %cst_193 {dimension_numbers = #tpu.dot_dimension_numbers<[1], [0], [0], [1], [0, 0, 1, 1], [], []>} : vector<8x32xf32>, vector<32x32xf32>, vector<8x32xf32> -> vector<8x32xf32>
    %646 = arith.addf %645, %7 : vector<8x32xf32>
    %cst_194 = arith.constant 2.000000e+00 : f32
    %647 = vector.broadcast %cst_194 : f32 to vector<8x32xf32>
    %648 = arith.mulf %647, %630 : vector<8x32xf32>
    %649 = arith.addf %622, %648 : vector<8x32xf32>
    %cst_195 = arith.constant 2.000000e+00 : f32
    %650 = vector.broadcast %cst_195 : f32 to vector<8x32xf32>
    %651 = arith.mulf %650, %638 : vector<8x32xf32>
    %652 = arith.addf %649, %651 : vector<8x32xf32>
    %653 = arith.addf %652, %646 : vector<8x32xf32>
    %654 = vector.broadcast %500 : f32 to vector<8x32xf32>
    %655 = arith.mulf %654, %653 : vector<8x32xf32>
    %656 = arith.addf %617, %655 : vector<8x32xf32>
    %c5 = arith.constant 5 : index
    %657 = memref.load %arg1[%c5] : memref<8xf32, #tpu.memory_space<smem>>
    %c4_196 = arith.constant 4 : index
    %658 = memref.load %arg1[%c4_196] : memref<8xf32, #tpu.memory_space<smem>>
    %659 = arith.subf %657, %658 : f32
    %cst_197 = arith.constant 4.000000e+00 : f32
    %660 = arith.divf %659, %cst_197 : f32
    %cst_198 = arith.constant 5.000000e-01 : f32
    %661 = arith.mulf %cst_198, %660 : f32
    %cst_199 = arith.constant 6.000000e+00 : f32
    %662 = arith.divf %660, %cst_199 : f32
    %c0_i32_200 = arith.constant 0 : i32
    %cst_201 = arith.constant dense<0.000000e+00> : vector<8x32xf32>
    %663 = tpu.matmul %656, %0, %cst_201 {dimension_numbers = #tpu.dot_dimension_numbers<[1], [0], [0], [1], [0, 0, 1, 1], [], []>} : vector<8x32xf32>, vector<32x32xf32>, vector<8x32xf32> -> vector<8x32xf32>
    %664 = arith.addf %663, %4 : vector<8x32xf32>
    %665 = math.tanh %664 : vector<8x32xf32>
    %cst_202 = arith.constant dense<0.000000e+00> : vector<8x32xf32>
    %666 = tpu.matmul %665, %1, %cst_202 {dimension_numbers = #tpu.dot_dimension_numbers<[1], [0], [0], [1], [0, 0, 1, 1], [], []>} : vector<8x32xf32>, vector<32x32xf32>, vector<8x32xf32> -> vector<8x32xf32>
    %667 = arith.addf %666, %7 : vector<8x32xf32>
    %668 = vector.broadcast %661 : f32 to vector<8x32xf32>
    %669 = arith.mulf %668, %667 : vector<8x32xf32>
    %670 = arith.addf %656, %669 : vector<8x32xf32>
    %cst_203 = arith.constant dense<0.000000e+00> : vector<8x32xf32>
    %671 = tpu.matmul %670, %0, %cst_203 {dimension_numbers = #tpu.dot_dimension_numbers<[1], [0], [0], [1], [0, 0, 1, 1], [], []>} : vector<8x32xf32>, vector<32x32xf32>, vector<8x32xf32> -> vector<8x32xf32>
    %672 = arith.addf %671, %4 : vector<8x32xf32>
    %673 = math.tanh %672 : vector<8x32xf32>
    %cst_204 = arith.constant dense<0.000000e+00> : vector<8x32xf32>
    %674 = tpu.matmul %673, %1, %cst_204 {dimension_numbers = #tpu.dot_dimension_numbers<[1], [0], [0], [1], [0, 0, 1, 1], [], []>} : vector<8x32xf32>, vector<32x32xf32>, vector<8x32xf32> -> vector<8x32xf32>
    %675 = arith.addf %674, %7 : vector<8x32xf32>
    %676 = vector.broadcast %661 : f32 to vector<8x32xf32>
    %677 = arith.mulf %676, %675 : vector<8x32xf32>
    %678 = arith.addf %656, %677 : vector<8x32xf32>
    %cst_205 = arith.constant dense<0.000000e+00> : vector<8x32xf32>
    %679 = tpu.matmul %678, %0, %cst_205 {dimension_numbers = #tpu.dot_dimension_numbers<[1], [0], [0], [1], [0, 0, 1, 1], [], []>} : vector<8x32xf32>, vector<32x32xf32>, vector<8x32xf32> -> vector<8x32xf32>
    %680 = arith.addf %679, %4 : vector<8x32xf32>
    %681 = math.tanh %680 : vector<8x32xf32>
    %cst_206 = arith.constant dense<0.000000e+00> : vector<8x32xf32>
    %682 = tpu.matmul %681, %1, %cst_206 {dimension_numbers = #tpu.dot_dimension_numbers<[1], [0], [0], [1], [0, 0, 1, 1], [], []>} : vector<8x32xf32>, vector<32x32xf32>, vector<8x32xf32> -> vector<8x32xf32>
    %683 = arith.addf %682, %7 : vector<8x32xf32>
    %684 = vector.broadcast %660 : f32 to vector<8x32xf32>
    %685 = arith.mulf %684, %683 : vector<8x32xf32>
    %686 = arith.addf %656, %685 : vector<8x32xf32>
    %cst_207 = arith.constant dense<0.000000e+00> : vector<8x32xf32>
    %687 = tpu.matmul %686, %0, %cst_207 {dimension_numbers = #tpu.dot_dimension_numbers<[1], [0], [0], [1], [0, 0, 1, 1], [], []>} : vector<8x32xf32>, vector<32x32xf32>, vector<8x32xf32> -> vector<8x32xf32>
    %688 = arith.addf %687, %4 : vector<8x32xf32>
    %689 = math.tanh %688 : vector<8x32xf32>
    %cst_208 = arith.constant dense<0.000000e+00> : vector<8x32xf32>
    %690 = tpu.matmul %689, %1, %cst_208 {dimension_numbers = #tpu.dot_dimension_numbers<[1], [0], [0], [1], [0, 0, 1, 1], [], []>} : vector<8x32xf32>, vector<32x32xf32>, vector<8x32xf32> -> vector<8x32xf32>
    %691 = arith.addf %690, %7 : vector<8x32xf32>
    %cst_209 = arith.constant 2.000000e+00 : f32
    %692 = vector.broadcast %cst_209 : f32 to vector<8x32xf32>
    %693 = arith.mulf %692, %675 : vector<8x32xf32>
    %694 = arith.addf %667, %693 : vector<8x32xf32>
    %cst_210 = arith.constant 2.000000e+00 : f32
    %695 = vector.broadcast %cst_210 : f32 to vector<8x32xf32>
    %696 = arith.mulf %695, %683 : vector<8x32xf32>
    %697 = arith.addf %694, %696 : vector<8x32xf32>
    %698 = arith.addf %697, %691 : vector<8x32xf32>
    %699 = vector.broadcast %662 : f32 to vector<8x32xf32>
    %700 = arith.mulf %699, %698 : vector<8x32xf32>
    %701 = arith.addf %656, %700 : vector<8x32xf32>
    %c1_i32_211 = arith.constant 1 : i32
    %cst_212 = arith.constant dense<0.000000e+00> : vector<8x32xf32>
    %702 = tpu.matmul %701, %0, %cst_212 {dimension_numbers = #tpu.dot_dimension_numbers<[1], [0], [0], [1], [0, 0, 1, 1], [], []>} : vector<8x32xf32>, vector<32x32xf32>, vector<8x32xf32> -> vector<8x32xf32>
    %703 = arith.addf %702, %4 : vector<8x32xf32>
    %704 = math.tanh %703 : vector<8x32xf32>
    %cst_213 = arith.constant dense<0.000000e+00> : vector<8x32xf32>
    %705 = tpu.matmul %704, %1, %cst_213 {dimension_numbers = #tpu.dot_dimension_numbers<[1], [0], [0], [1], [0, 0, 1, 1], [], []>} : vector<8x32xf32>, vector<32x32xf32>, vector<8x32xf32> -> vector<8x32xf32>
    %706 = arith.addf %705, %7 : vector<8x32xf32>
    %707 = vector.broadcast %661 : f32 to vector<8x32xf32>
    %708 = arith.mulf %707, %706 : vector<8x32xf32>
    %709 = arith.addf %701, %708 : vector<8x32xf32>
    %cst_214 = arith.constant dense<0.000000e+00> : vector<8x32xf32>
    %710 = tpu.matmul %709, %0, %cst_214 {dimension_numbers = #tpu.dot_dimension_numbers<[1], [0], [0], [1], [0, 0, 1, 1], [], []>} : vector<8x32xf32>, vector<32x32xf32>, vector<8x32xf32> -> vector<8x32xf32>
    %711 = arith.addf %710, %4 : vector<8x32xf32>
    %712 = math.tanh %711 : vector<8x32xf32>
    %cst_215 = arith.constant dense<0.000000e+00> : vector<8x32xf32>
    %713 = tpu.matmul %712, %1, %cst_215 {dimension_numbers = #tpu.dot_dimension_numbers<[1], [0], [0], [1], [0, 0, 1, 1], [], []>} : vector<8x32xf32>, vector<32x32xf32>, vector<8x32xf32> -> vector<8x32xf32>
    %714 = arith.addf %713, %7 : vector<8x32xf32>
    %715 = vector.broadcast %661 : f32 to vector<8x32xf32>
    %716 = arith.mulf %715, %714 : vector<8x32xf32>
    %717 = arith.addf %701, %716 : vector<8x32xf32>
    %cst_216 = arith.constant dense<0.000000e+00> : vector<8x32xf32>
    %718 = tpu.matmul %717, %0, %cst_216 {dimension_numbers = #tpu.dot_dimension_numbers<[1], [0], [0], [1], [0, 0, 1, 1], [], []>} : vector<8x32xf32>, vector<32x32xf32>, vector<8x32xf32> -> vector<8x32xf32>
    %719 = arith.addf %718, %4 : vector<8x32xf32>
    %720 = math.tanh %719 : vector<8x32xf32>
    %cst_217 = arith.constant dense<0.000000e+00> : vector<8x32xf32>
    %721 = tpu.matmul %720, %1, %cst_217 {dimension_numbers = #tpu.dot_dimension_numbers<[1], [0], [0], [1], [0, 0, 1, 1], [], []>} : vector<8x32xf32>, vector<32x32xf32>, vector<8x32xf32> -> vector<8x32xf32>
    %722 = arith.addf %721, %7 : vector<8x32xf32>
    %723 = vector.broadcast %660 : f32 to vector<8x32xf32>
    %724 = arith.mulf %723, %722 : vector<8x32xf32>
    %725 = arith.addf %701, %724 : vector<8x32xf32>
    %cst_218 = arith.constant dense<0.000000e+00> : vector<8x32xf32>
    %726 = tpu.matmul %725, %0, %cst_218 {dimension_numbers = #tpu.dot_dimension_numbers<[1], [0], [0], [1], [0, 0, 1, 1], [], []>} : vector<8x32xf32>, vector<32x32xf32>, vector<8x32xf32> -> vector<8x32xf32>
    %727 = arith.addf %726, %4 : vector<8x32xf32>
    %728 = math.tanh %727 : vector<8x32xf32>
    %cst_219 = arith.constant dense<0.000000e+00> : vector<8x32xf32>
    %729 = tpu.matmul %728, %1, %cst_219 {dimension_numbers = #tpu.dot_dimension_numbers<[1], [0], [0], [1], [0, 0, 1, 1], [], []>} : vector<8x32xf32>, vector<32x32xf32>, vector<8x32xf32> -> vector<8x32xf32>
    %730 = arith.addf %729, %7 : vector<8x32xf32>
    %cst_220 = arith.constant 2.000000e+00 : f32
    %731 = vector.broadcast %cst_220 : f32 to vector<8x32xf32>
    %732 = arith.mulf %731, %714 : vector<8x32xf32>
    %733 = arith.addf %706, %732 : vector<8x32xf32>
    %cst_221 = arith.constant 2.000000e+00 : f32
    %734 = vector.broadcast %cst_221 : f32 to vector<8x32xf32>
    %735 = arith.mulf %734, %722 : vector<8x32xf32>
    %736 = arith.addf %733, %735 : vector<8x32xf32>
    %737 = arith.addf %736, %730 : vector<8x32xf32>
    %738 = vector.broadcast %662 : f32 to vector<8x32xf32>
    %739 = arith.mulf %738, %737 : vector<8x32xf32>
    %740 = arith.addf %701, %739 : vector<8x32xf32>
    %c2_i32_222 = arith.constant 2 : i32
    %cst_223 = arith.constant dense<0.000000e+00> : vector<8x32xf32>
    %741 = tpu.matmul %740, %0, %cst_223 {dimension_numbers = #tpu.dot_dimension_numbers<[1], [0], [0], [1], [0, 0, 1, 1], [], []>} : vector<8x32xf32>, vector<32x32xf32>, vector<8x32xf32> -> vector<8x32xf32>
    %742 = arith.addf %741, %4 : vector<8x32xf32>
    %743 = math.tanh %742 : vector<8x32xf32>
    %cst_224 = arith.constant dense<0.000000e+00> : vector<8x32xf32>
    %744 = tpu.matmul %743, %1, %cst_224 {dimension_numbers = #tpu.dot_dimension_numbers<[1], [0], [0], [1], [0, 0, 1, 1], [], []>} : vector<8x32xf32>, vector<32x32xf32>, vector<8x32xf32> -> vector<8x32xf32>
    %745 = arith.addf %744, %7 : vector<8x32xf32>
    %746 = vector.broadcast %661 : f32 to vector<8x32xf32>
    %747 = arith.mulf %746, %745 : vector<8x32xf32>
    %748 = arith.addf %740, %747 : vector<8x32xf32>
    %cst_225 = arith.constant dense<0.000000e+00> : vector<8x32xf32>
    %749 = tpu.matmul %748, %0, %cst_225 {dimension_numbers = #tpu.dot_dimension_numbers<[1], [0], [0], [1], [0, 0, 1, 1], [], []>} : vector<8x32xf32>, vector<32x32xf32>, vector<8x32xf32> -> vector<8x32xf32>
    %750 = arith.addf %749, %4 : vector<8x32xf32>
    %751 = math.tanh %750 : vector<8x32xf32>
    %cst_226 = arith.constant dense<0.000000e+00> : vector<8x32xf32>
    %752 = tpu.matmul %751, %1, %cst_226 {dimension_numbers = #tpu.dot_dimension_numbers<[1], [0], [0], [1], [0, 0, 1, 1], [], []>} : vector<8x32xf32>, vector<32x32xf32>, vector<8x32xf32> -> vector<8x32xf32>
    %753 = arith.addf %752, %7 : vector<8x32xf32>
    %754 = vector.broadcast %661 : f32 to vector<8x32xf32>
    %755 = arith.mulf %754, %753 : vector<8x32xf32>
    %756 = arith.addf %740, %755 : vector<8x32xf32>
    %cst_227 = arith.constant dense<0.000000e+00> : vector<8x32xf32>
    %757 = tpu.matmul %756, %0, %cst_227 {dimension_numbers = #tpu.dot_dimension_numbers<[1], [0], [0], [1], [0, 0, 1, 1], [], []>} : vector<8x32xf32>, vector<32x32xf32>, vector<8x32xf32> -> vector<8x32xf32>
    %758 = arith.addf %757, %4 : vector<8x32xf32>
    %759 = math.tanh %758 : vector<8x32xf32>
    %cst_228 = arith.constant dense<0.000000e+00> : vector<8x32xf32>
    %760 = tpu.matmul %759, %1, %cst_228 {dimension_numbers = #tpu.dot_dimension_numbers<[1], [0], [0], [1], [0, 0, 1, 1], [], []>} : vector<8x32xf32>, vector<32x32xf32>, vector<8x32xf32> -> vector<8x32xf32>
    %761 = arith.addf %760, %7 : vector<8x32xf32>
    %762 = vector.broadcast %660 : f32 to vector<8x32xf32>
    %763 = arith.mulf %762, %761 : vector<8x32xf32>
    %764 = arith.addf %740, %763 : vector<8x32xf32>
    %cst_229 = arith.constant dense<0.000000e+00> : vector<8x32xf32>
    %765 = tpu.matmul %764, %0, %cst_229 {dimension_numbers = #tpu.dot_dimension_numbers<[1], [0], [0], [1], [0, 0, 1, 1], [], []>} : vector<8x32xf32>, vector<32x32xf32>, vector<8x32xf32> -> vector<8x32xf32>
    %766 = arith.addf %765, %4 : vector<8x32xf32>
    %767 = math.tanh %766 : vector<8x32xf32>
    %cst_230 = arith.constant dense<0.000000e+00> : vector<8x32xf32>
    %768 = tpu.matmul %767, %1, %cst_230 {dimension_numbers = #tpu.dot_dimension_numbers<[1], [0], [0], [1], [0, 0, 1, 1], [], []>} : vector<8x32xf32>, vector<32x32xf32>, vector<8x32xf32> -> vector<8x32xf32>
    %769 = arith.addf %768, %7 : vector<8x32xf32>
    %cst_231 = arith.constant 2.000000e+00 : f32
    %770 = vector.broadcast %cst_231 : f32 to vector<8x32xf32>
    %771 = arith.mulf %770, %753 : vector<8x32xf32>
    %772 = arith.addf %745, %771 : vector<8x32xf32>
    %cst_232 = arith.constant 2.000000e+00 : f32
    %773 = vector.broadcast %cst_232 : f32 to vector<8x32xf32>
    %774 = arith.mulf %773, %761 : vector<8x32xf32>
    %775 = arith.addf %772, %774 : vector<8x32xf32>
    %776 = arith.addf %775, %769 : vector<8x32xf32>
    %777 = vector.broadcast %662 : f32 to vector<8x32xf32>
    %778 = arith.mulf %777, %776 : vector<8x32xf32>
    %779 = arith.addf %740, %778 : vector<8x32xf32>
    %c3_i32_233 = arith.constant 3 : i32
    %cst_234 = arith.constant dense<0.000000e+00> : vector<8x32xf32>
    %780 = tpu.matmul %779, %0, %cst_234 {dimension_numbers = #tpu.dot_dimension_numbers<[1], [0], [0], [1], [0, 0, 1, 1], [], []>} : vector<8x32xf32>, vector<32x32xf32>, vector<8x32xf32> -> vector<8x32xf32>
    %781 = arith.addf %780, %4 : vector<8x32xf32>
    %782 = math.tanh %781 : vector<8x32xf32>
    %cst_235 = arith.constant dense<0.000000e+00> : vector<8x32xf32>
    %783 = tpu.matmul %782, %1, %cst_235 {dimension_numbers = #tpu.dot_dimension_numbers<[1], [0], [0], [1], [0, 0, 1, 1], [], []>} : vector<8x32xf32>, vector<32x32xf32>, vector<8x32xf32> -> vector<8x32xf32>
    %784 = arith.addf %783, %7 : vector<8x32xf32>
    %785 = vector.broadcast %661 : f32 to vector<8x32xf32>
    %786 = arith.mulf %785, %784 : vector<8x32xf32>
    %787 = arith.addf %779, %786 : vector<8x32xf32>
    %cst_236 = arith.constant dense<0.000000e+00> : vector<8x32xf32>
    %788 = tpu.matmul %787, %0, %cst_236 {dimension_numbers = #tpu.dot_dimension_numbers<[1], [0], [0], [1], [0, 0, 1, 1], [], []>} : vector<8x32xf32>, vector<32x32xf32>, vector<8x32xf32> -> vector<8x32xf32>
    %789 = arith.addf %788, %4 : vector<8x32xf32>
    %790 = math.tanh %789 : vector<8x32xf32>
    %cst_237 = arith.constant dense<0.000000e+00> : vector<8x32xf32>
    %791 = tpu.matmul %790, %1, %cst_237 {dimension_numbers = #tpu.dot_dimension_numbers<[1], [0], [0], [1], [0, 0, 1, 1], [], []>} : vector<8x32xf32>, vector<32x32xf32>, vector<8x32xf32> -> vector<8x32xf32>
    %792 = arith.addf %791, %7 : vector<8x32xf32>
    %793 = vector.broadcast %661 : f32 to vector<8x32xf32>
    %794 = arith.mulf %793, %792 : vector<8x32xf32>
    %795 = arith.addf %779, %794 : vector<8x32xf32>
    %cst_238 = arith.constant dense<0.000000e+00> : vector<8x32xf32>
    %796 = tpu.matmul %795, %0, %cst_238 {dimension_numbers = #tpu.dot_dimension_numbers<[1], [0], [0], [1], [0, 0, 1, 1], [], []>} : vector<8x32xf32>, vector<32x32xf32>, vector<8x32xf32> -> vector<8x32xf32>
    %797 = arith.addf %796, %4 : vector<8x32xf32>
    %798 = math.tanh %797 : vector<8x32xf32>
    %cst_239 = arith.constant dense<0.000000e+00> : vector<8x32xf32>
    %799 = tpu.matmul %798, %1, %cst_239 {dimension_numbers = #tpu.dot_dimension_numbers<[1], [0], [0], [1], [0, 0, 1, 1], [], []>} : vector<8x32xf32>, vector<32x32xf32>, vector<8x32xf32> -> vector<8x32xf32>
    %800 = arith.addf %799, %7 : vector<8x32xf32>
    %801 = vector.broadcast %660 : f32 to vector<8x32xf32>
    %802 = arith.mulf %801, %800 : vector<8x32xf32>
    %803 = arith.addf %779, %802 : vector<8x32xf32>
    %cst_240 = arith.constant dense<0.000000e+00> : vector<8x32xf32>
    %804 = tpu.matmul %803, %0, %cst_240 {dimension_numbers = #tpu.dot_dimension_numbers<[1], [0], [0], [1], [0, 0, 1, 1], [], []>} : vector<8x32xf32>, vector<32x32xf32>, vector<8x32xf32> -> vector<8x32xf32>
    %805 = arith.addf %804, %4 : vector<8x32xf32>
    %806 = math.tanh %805 : vector<8x32xf32>
    %cst_241 = arith.constant dense<0.000000e+00> : vector<8x32xf32>
    %807 = tpu.matmul %806, %1, %cst_241 {dimension_numbers = #tpu.dot_dimension_numbers<[1], [0], [0], [1], [0, 0, 1, 1], [], []>} : vector<8x32xf32>, vector<32x32xf32>, vector<8x32xf32> -> vector<8x32xf32>
    %808 = arith.addf %807, %7 : vector<8x32xf32>
    %cst_242 = arith.constant 2.000000e+00 : f32
    %809 = vector.broadcast %cst_242 : f32 to vector<8x32xf32>
    %810 = arith.mulf %809, %792 : vector<8x32xf32>
    %811 = arith.addf %784, %810 : vector<8x32xf32>
    %cst_243 = arith.constant 2.000000e+00 : f32
    %812 = vector.broadcast %cst_243 : f32 to vector<8x32xf32>
    %813 = arith.mulf %812, %800 : vector<8x32xf32>
    %814 = arith.addf %811, %813 : vector<8x32xf32>
    %815 = arith.addf %814, %808 : vector<8x32xf32>
    %816 = vector.broadcast %662 : f32 to vector<8x32xf32>
    %817 = arith.mulf %816, %815 : vector<8x32xf32>
    %818 = arith.addf %779, %817 : vector<8x32xf32>
    %c6 = arith.constant 6 : index
    %819 = memref.load %arg1[%c6] : memref<8xf32, #tpu.memory_space<smem>>
    %c5_244 = arith.constant 5 : index
    %820 = memref.load %arg1[%c5_244] : memref<8xf32, #tpu.memory_space<smem>>
    %821 = arith.subf %819, %820 : f32
    %cst_245 = arith.constant 4.000000e+00 : f32
    %822 = arith.divf %821, %cst_245 : f32
    %cst_246 = arith.constant 5.000000e-01 : f32
    %823 = arith.mulf %cst_246, %822 : f32
    %cst_247 = arith.constant 6.000000e+00 : f32
    %824 = arith.divf %822, %cst_247 : f32
    %c0_i32_248 = arith.constant 0 : i32
    %cst_249 = arith.constant dense<0.000000e+00> : vector<8x32xf32>
    %825 = tpu.matmul %818, %0, %cst_249 {dimension_numbers = #tpu.dot_dimension_numbers<[1], [0], [0], [1], [0, 0, 1, 1], [], []>} : vector<8x32xf32>, vector<32x32xf32>, vector<8x32xf32> -> vector<8x32xf32>
    %826 = arith.addf %825, %4 : vector<8x32xf32>
    %827 = math.tanh %826 : vector<8x32xf32>
    %cst_250 = arith.constant dense<0.000000e+00> : vector<8x32xf32>
    %828 = tpu.matmul %827, %1, %cst_250 {dimension_numbers = #tpu.dot_dimension_numbers<[1], [0], [0], [1], [0, 0, 1, 1], [], []>} : vector<8x32xf32>, vector<32x32xf32>, vector<8x32xf32> -> vector<8x32xf32>
    %829 = arith.addf %828, %7 : vector<8x32xf32>
    %830 = vector.broadcast %823 : f32 to vector<8x32xf32>
    %831 = arith.mulf %830, %829 : vector<8x32xf32>
    %832 = arith.addf %818, %831 : vector<8x32xf32>
    %cst_251 = arith.constant dense<0.000000e+00> : vector<8x32xf32>
    %833 = tpu.matmul %832, %0, %cst_251 {dimension_numbers = #tpu.dot_dimension_numbers<[1], [0], [0], [1], [0, 0, 1, 1], [], []>} : vector<8x32xf32>, vector<32x32xf32>, vector<8x32xf32> -> vector<8x32xf32>
    %834 = arith.addf %833, %4 : vector<8x32xf32>
    %835 = math.tanh %834 : vector<8x32xf32>
    %cst_252 = arith.constant dense<0.000000e+00> : vector<8x32xf32>
    %836 = tpu.matmul %835, %1, %cst_252 {dimension_numbers = #tpu.dot_dimension_numbers<[1], [0], [0], [1], [0, 0, 1, 1], [], []>} : vector<8x32xf32>, vector<32x32xf32>, vector<8x32xf32> -> vector<8x32xf32>
    %837 = arith.addf %836, %7 : vector<8x32xf32>
    %838 = vector.broadcast %823 : f32 to vector<8x32xf32>
    %839 = arith.mulf %838, %837 : vector<8x32xf32>
    %840 = arith.addf %818, %839 : vector<8x32xf32>
    %cst_253 = arith.constant dense<0.000000e+00> : vector<8x32xf32>
    %841 = tpu.matmul %840, %0, %cst_253 {dimension_numbers = #tpu.dot_dimension_numbers<[1], [0], [0], [1], [0, 0, 1, 1], [], []>} : vector<8x32xf32>, vector<32x32xf32>, vector<8x32xf32> -> vector<8x32xf32>
    %842 = arith.addf %841, %4 : vector<8x32xf32>
    %843 = math.tanh %842 : vector<8x32xf32>
    %cst_254 = arith.constant dense<0.000000e+00> : vector<8x32xf32>
    %844 = tpu.matmul %843, %1, %cst_254 {dimension_numbers = #tpu.dot_dimension_numbers<[1], [0], [0], [1], [0, 0, 1, 1], [], []>} : vector<8x32xf32>, vector<32x32xf32>, vector<8x32xf32> -> vector<8x32xf32>
    %845 = arith.addf %844, %7 : vector<8x32xf32>
    %846 = vector.broadcast %822 : f32 to vector<8x32xf32>
    %847 = arith.mulf %846, %845 : vector<8x32xf32>
    %848 = arith.addf %818, %847 : vector<8x32xf32>
    %cst_255 = arith.constant dense<0.000000e+00> : vector<8x32xf32>
    %849 = tpu.matmul %848, %0, %cst_255 {dimension_numbers = #tpu.dot_dimension_numbers<[1], [0], [0], [1], [0, 0, 1, 1], [], []>} : vector<8x32xf32>, vector<32x32xf32>, vector<8x32xf32> -> vector<8x32xf32>
    %850 = arith.addf %849, %4 : vector<8x32xf32>
    %851 = math.tanh %850 : vector<8x32xf32>
    %cst_256 = arith.constant dense<0.000000e+00> : vector<8x32xf32>
    %852 = tpu.matmul %851, %1, %cst_256 {dimension_numbers = #tpu.dot_dimension_numbers<[1], [0], [0], [1], [0, 0, 1, 1], [], []>} : vector<8x32xf32>, vector<32x32xf32>, vector<8x32xf32> -> vector<8x32xf32>
    %853 = arith.addf %852, %7 : vector<8x32xf32>
    %cst_257 = arith.constant 2.000000e+00 : f32
    %854 = vector.broadcast %cst_257 : f32 to vector<8x32xf32>
    %855 = arith.mulf %854, %837 : vector<8x32xf32>
    %856 = arith.addf %829, %855 : vector<8x32xf32>
    %cst_258 = arith.constant 2.000000e+00 : f32
    %857 = vector.broadcast %cst_258 : f32 to vector<8x32xf32>
    %858 = arith.mulf %857, %845 : vector<8x32xf32>
    %859 = arith.addf %856, %858 : vector<8x32xf32>
    %860 = arith.addf %859, %853 : vector<8x32xf32>
    %861 = vector.broadcast %824 : f32 to vector<8x32xf32>
    %862 = arith.mulf %861, %860 : vector<8x32xf32>
    %863 = arith.addf %818, %862 : vector<8x32xf32>
    %c1_i32_259 = arith.constant 1 : i32
    %cst_260 = arith.constant dense<0.000000e+00> : vector<8x32xf32>
    %864 = tpu.matmul %863, %0, %cst_260 {dimension_numbers = #tpu.dot_dimension_numbers<[1], [0], [0], [1], [0, 0, 1, 1], [], []>} : vector<8x32xf32>, vector<32x32xf32>, vector<8x32xf32> -> vector<8x32xf32>
    %865 = arith.addf %864, %4 : vector<8x32xf32>
    %866 = math.tanh %865 : vector<8x32xf32>
    %cst_261 = arith.constant dense<0.000000e+00> : vector<8x32xf32>
    %867 = tpu.matmul %866, %1, %cst_261 {dimension_numbers = #tpu.dot_dimension_numbers<[1], [0], [0], [1], [0, 0, 1, 1], [], []>} : vector<8x32xf32>, vector<32x32xf32>, vector<8x32xf32> -> vector<8x32xf32>
    %868 = arith.addf %867, %7 : vector<8x32xf32>
    %869 = vector.broadcast %823 : f32 to vector<8x32xf32>
    %870 = arith.mulf %869, %868 : vector<8x32xf32>
    %871 = arith.addf %863, %870 : vector<8x32xf32>
    %cst_262 = arith.constant dense<0.000000e+00> : vector<8x32xf32>
    %872 = tpu.matmul %871, %0, %cst_262 {dimension_numbers = #tpu.dot_dimension_numbers<[1], [0], [0], [1], [0, 0, 1, 1], [], []>} : vector<8x32xf32>, vector<32x32xf32>, vector<8x32xf32> -> vector<8x32xf32>
    %873 = arith.addf %872, %4 : vector<8x32xf32>
    %874 = math.tanh %873 : vector<8x32xf32>
    %cst_263 = arith.constant dense<0.000000e+00> : vector<8x32xf32>
    %875 = tpu.matmul %874, %1, %cst_263 {dimension_numbers = #tpu.dot_dimension_numbers<[1], [0], [0], [1], [0, 0, 1, 1], [], []>} : vector<8x32xf32>, vector<32x32xf32>, vector<8x32xf32> -> vector<8x32xf32>
    %876 = arith.addf %875, %7 : vector<8x32xf32>
    %877 = vector.broadcast %823 : f32 to vector<8x32xf32>
    %878 = arith.mulf %877, %876 : vector<8x32xf32>
    %879 = arith.addf %863, %878 : vector<8x32xf32>
    %cst_264 = arith.constant dense<0.000000e+00> : vector<8x32xf32>
    %880 = tpu.matmul %879, %0, %cst_264 {dimension_numbers = #tpu.dot_dimension_numbers<[1], [0], [0], [1], [0, 0, 1, 1], [], []>} : vector<8x32xf32>, vector<32x32xf32>, vector<8x32xf32> -> vector<8x32xf32>
    %881 = arith.addf %880, %4 : vector<8x32xf32>
    %882 = math.tanh %881 : vector<8x32xf32>
    %cst_265 = arith.constant dense<0.000000e+00> : vector<8x32xf32>
    %883 = tpu.matmul %882, %1, %cst_265 {dimension_numbers = #tpu.dot_dimension_numbers<[1], [0], [0], [1], [0, 0, 1, 1], [], []>} : vector<8x32xf32>, vector<32x32xf32>, vector<8x32xf32> -> vector<8x32xf32>
    %884 = arith.addf %883, %7 : vector<8x32xf32>
    %885 = vector.broadcast %822 : f32 to vector<8x32xf32>
    %886 = arith.mulf %885, %884 : vector<8x32xf32>
    %887 = arith.addf %863, %886 : vector<8x32xf32>
    %cst_266 = arith.constant dense<0.000000e+00> : vector<8x32xf32>
    %888 = tpu.matmul %887, %0, %cst_266 {dimension_numbers = #tpu.dot_dimension_numbers<[1], [0], [0], [1], [0, 0, 1, 1], [], []>} : vector<8x32xf32>, vector<32x32xf32>, vector<8x32xf32> -> vector<8x32xf32>
    %889 = arith.addf %888, %4 : vector<8x32xf32>
    %890 = math.tanh %889 : vector<8x32xf32>
    %cst_267 = arith.constant dense<0.000000e+00> : vector<8x32xf32>
    %891 = tpu.matmul %890, %1, %cst_267 {dimension_numbers = #tpu.dot_dimension_numbers<[1], [0], [0], [1], [0, 0, 1, 1], [], []>} : vector<8x32xf32>, vector<32x32xf32>, vector<8x32xf32> -> vector<8x32xf32>
    %892 = arith.addf %891, %7 : vector<8x32xf32>
    %cst_268 = arith.constant 2.000000e+00 : f32
    %893 = vector.broadcast %cst_268 : f32 to vector<8x32xf32>
    %894 = arith.mulf %893, %876 : vector<8x32xf32>
    %895 = arith.addf %868, %894 : vector<8x32xf32>
    %cst_269 = arith.constant 2.000000e+00 : f32
    %896 = vector.broadcast %cst_269 : f32 to vector<8x32xf32>
    %897 = arith.mulf %896, %884 : vector<8x32xf32>
    %898 = arith.addf %895, %897 : vector<8x32xf32>
    %899 = arith.addf %898, %892 : vector<8x32xf32>
    %900 = vector.broadcast %824 : f32 to vector<8x32xf32>
    %901 = arith.mulf %900, %899 : vector<8x32xf32>
    %902 = arith.addf %863, %901 : vector<8x32xf32>
    %c2_i32_270 = arith.constant 2 : i32
    %cst_271 = arith.constant dense<0.000000e+00> : vector<8x32xf32>
    %903 = tpu.matmul %902, %0, %cst_271 {dimension_numbers = #tpu.dot_dimension_numbers<[1], [0], [0], [1], [0, 0, 1, 1], [], []>} : vector<8x32xf32>, vector<32x32xf32>, vector<8x32xf32> -> vector<8x32xf32>
    %904 = arith.addf %903, %4 : vector<8x32xf32>
    %905 = math.tanh %904 : vector<8x32xf32>
    %cst_272 = arith.constant dense<0.000000e+00> : vector<8x32xf32>
    %906 = tpu.matmul %905, %1, %cst_272 {dimension_numbers = #tpu.dot_dimension_numbers<[1], [0], [0], [1], [0, 0, 1, 1], [], []>} : vector<8x32xf32>, vector<32x32xf32>, vector<8x32xf32> -> vector<8x32xf32>
    %907 = arith.addf %906, %7 : vector<8x32xf32>
    %908 = vector.broadcast %823 : f32 to vector<8x32xf32>
    %909 = arith.mulf %908, %907 : vector<8x32xf32>
    %910 = arith.addf %902, %909 : vector<8x32xf32>
    %cst_273 = arith.constant dense<0.000000e+00> : vector<8x32xf32>
    %911 = tpu.matmul %910, %0, %cst_273 {dimension_numbers = #tpu.dot_dimension_numbers<[1], [0], [0], [1], [0, 0, 1, 1], [], []>} : vector<8x32xf32>, vector<32x32xf32>, vector<8x32xf32> -> vector<8x32xf32>
    %912 = arith.addf %911, %4 : vector<8x32xf32>
    %913 = math.tanh %912 : vector<8x32xf32>
    %cst_274 = arith.constant dense<0.000000e+00> : vector<8x32xf32>
    %914 = tpu.matmul %913, %1, %cst_274 {dimension_numbers = #tpu.dot_dimension_numbers<[1], [0], [0], [1], [0, 0, 1, 1], [], []>} : vector<8x32xf32>, vector<32x32xf32>, vector<8x32xf32> -> vector<8x32xf32>
    %915 = arith.addf %914, %7 : vector<8x32xf32>
    %916 = vector.broadcast %823 : f32 to vector<8x32xf32>
    %917 = arith.mulf %916, %915 : vector<8x32xf32>
    %918 = arith.addf %902, %917 : vector<8x32xf32>
    %cst_275 = arith.constant dense<0.000000e+00> : vector<8x32xf32>
    %919 = tpu.matmul %918, %0, %cst_275 {dimension_numbers = #tpu.dot_dimension_numbers<[1], [0], [0], [1], [0, 0, 1, 1], [], []>} : vector<8x32xf32>, vector<32x32xf32>, vector<8x32xf32> -> vector<8x32xf32>
    %920 = arith.addf %919, %4 : vector<8x32xf32>
    %921 = math.tanh %920 : vector<8x32xf32>
    %cst_276 = arith.constant dense<0.000000e+00> : vector<8x32xf32>
    %922 = tpu.matmul %921, %1, %cst_276 {dimension_numbers = #tpu.dot_dimension_numbers<[1], [0], [0], [1], [0, 0, 1, 1], [], []>} : vector<8x32xf32>, vector<32x32xf32>, vector<8x32xf32> -> vector<8x32xf32>
    %923 = arith.addf %922, %7 : vector<8x32xf32>
    %924 = vector.broadcast %822 : f32 to vector<8x32xf32>
    %925 = arith.mulf %924, %923 : vector<8x32xf32>
    %926 = arith.addf %902, %925 : vector<8x32xf32>
    %cst_277 = arith.constant dense<0.000000e+00> : vector<8x32xf32>
    %927 = tpu.matmul %926, %0, %cst_277 {dimension_numbers = #tpu.dot_dimension_numbers<[1], [0], [0], [1], [0, 0, 1, 1], [], []>} : vector<8x32xf32>, vector<32x32xf32>, vector<8x32xf32> -> vector<8x32xf32>
    %928 = arith.addf %927, %4 : vector<8x32xf32>
    %929 = math.tanh %928 : vector<8x32xf32>
    %cst_278 = arith.constant dense<0.000000e+00> : vector<8x32xf32>
    %930 = tpu.matmul %929, %1, %cst_278 {dimension_numbers = #tpu.dot_dimension_numbers<[1], [0], [0], [1], [0, 0, 1, 1], [], []>} : vector<8x32xf32>, vector<32x32xf32>, vector<8x32xf32> -> vector<8x32xf32>
    %931 = arith.addf %930, %7 : vector<8x32xf32>
    %cst_279 = arith.constant 2.000000e+00 : f32
    %932 = vector.broadcast %cst_279 : f32 to vector<8x32xf32>
    %933 = arith.mulf %932, %915 : vector<8x32xf32>
    %934 = arith.addf %907, %933 : vector<8x32xf32>
    %cst_280 = arith.constant 2.000000e+00 : f32
    %935 = vector.broadcast %cst_280 : f32 to vector<8x32xf32>
    %936 = arith.mulf %935, %923 : vector<8x32xf32>
    %937 = arith.addf %934, %936 : vector<8x32xf32>
    %938 = arith.addf %937, %931 : vector<8x32xf32>
    %939 = vector.broadcast %824 : f32 to vector<8x32xf32>
    %940 = arith.mulf %939, %938 : vector<8x32xf32>
    %941 = arith.addf %902, %940 : vector<8x32xf32>
    %c3_i32_281 = arith.constant 3 : i32
    %cst_282 = arith.constant dense<0.000000e+00> : vector<8x32xf32>
    %942 = tpu.matmul %941, %0, %cst_282 {dimension_numbers = #tpu.dot_dimension_numbers<[1], [0], [0], [1], [0, 0, 1, 1], [], []>} : vector<8x32xf32>, vector<32x32xf32>, vector<8x32xf32> -> vector<8x32xf32>
    %943 = arith.addf %942, %4 : vector<8x32xf32>
    %944 = math.tanh %943 : vector<8x32xf32>
    %cst_283 = arith.constant dense<0.000000e+00> : vector<8x32xf32>
    %945 = tpu.matmul %944, %1, %cst_283 {dimension_numbers = #tpu.dot_dimension_numbers<[1], [0], [0], [1], [0, 0, 1, 1], [], []>} : vector<8x32xf32>, vector<32x32xf32>, vector<8x32xf32> -> vector<8x32xf32>
    %946 = arith.addf %945, %7 : vector<8x32xf32>
    %947 = vector.broadcast %823 : f32 to vector<8x32xf32>
    %948 = arith.mulf %947, %946 : vector<8x32xf32>
    %949 = arith.addf %941, %948 : vector<8x32xf32>
    %cst_284 = arith.constant dense<0.000000e+00> : vector<8x32xf32>
    %950 = tpu.matmul %949, %0, %cst_284 {dimension_numbers = #tpu.dot_dimension_numbers<[1], [0], [0], [1], [0, 0, 1, 1], [], []>} : vector<8x32xf32>, vector<32x32xf32>, vector<8x32xf32> -> vector<8x32xf32>
    %951 = arith.addf %950, %4 : vector<8x32xf32>
    %952 = math.tanh %951 : vector<8x32xf32>
    %cst_285 = arith.constant dense<0.000000e+00> : vector<8x32xf32>
    %953 = tpu.matmul %952, %1, %cst_285 {dimension_numbers = #tpu.dot_dimension_numbers<[1], [0], [0], [1], [0, 0, 1, 1], [], []>} : vector<8x32xf32>, vector<32x32xf32>, vector<8x32xf32> -> vector<8x32xf32>
    %954 = arith.addf %953, %7 : vector<8x32xf32>
    %955 = vector.broadcast %823 : f32 to vector<8x32xf32>
    %956 = arith.mulf %955, %954 : vector<8x32xf32>
    %957 = arith.addf %941, %956 : vector<8x32xf32>
    %cst_286 = arith.constant dense<0.000000e+00> : vector<8x32xf32>
    %958 = tpu.matmul %957, %0, %cst_286 {dimension_numbers = #tpu.dot_dimension_numbers<[1], [0], [0], [1], [0, 0, 1, 1], [], []>} : vector<8x32xf32>, vector<32x32xf32>, vector<8x32xf32> -> vector<8x32xf32>
    %959 = arith.addf %958, %4 : vector<8x32xf32>
    %960 = math.tanh %959 : vector<8x32xf32>
    %cst_287 = arith.constant dense<0.000000e+00> : vector<8x32xf32>
    %961 = tpu.matmul %960, %1, %cst_287 {dimension_numbers = #tpu.dot_dimension_numbers<[1], [0], [0], [1], [0, 0, 1, 1], [], []>} : vector<8x32xf32>, vector<32x32xf32>, vector<8x32xf32> -> vector<8x32xf32>
    %962 = arith.addf %961, %7 : vector<8x32xf32>
    %963 = vector.broadcast %822 : f32 to vector<8x32xf32>
    %964 = arith.mulf %963, %962 : vector<8x32xf32>
    %965 = arith.addf %941, %964 : vector<8x32xf32>
    %cst_288 = arith.constant dense<0.000000e+00> : vector<8x32xf32>
    %966 = tpu.matmul %965, %0, %cst_288 {dimension_numbers = #tpu.dot_dimension_numbers<[1], [0], [0], [1], [0, 0, 1, 1], [], []>} : vector<8x32xf32>, vector<32x32xf32>, vector<8x32xf32> -> vector<8x32xf32>
    %967 = arith.addf %966, %4 : vector<8x32xf32>
    %968 = math.tanh %967 : vector<8x32xf32>
    %cst_289 = arith.constant dense<0.000000e+00> : vector<8x32xf32>
    %969 = tpu.matmul %968, %1, %cst_289 {dimension_numbers = #tpu.dot_dimension_numbers<[1], [0], [0], [1], [0, 0, 1, 1], [], []>} : vector<8x32xf32>, vector<32x32xf32>, vector<8x32xf32> -> vector<8x32xf32>
    %970 = arith.addf %969, %7 : vector<8x32xf32>
    %cst_290 = arith.constant 2.000000e+00 : f32
    %971 = vector.broadcast %cst_290 : f32 to vector<8x32xf32>
    %972 = arith.mulf %971, %954 : vector<8x32xf32>
    %973 = arith.addf %946, %972 : vector<8x32xf32>
    %cst_291 = arith.constant 2.000000e+00 : f32
    %974 = vector.broadcast %cst_291 : f32 to vector<8x32xf32>
    %975 = arith.mulf %974, %962 : vector<8x32xf32>
    %976 = arith.addf %973, %975 : vector<8x32xf32>
    %977 = arith.addf %976, %970 : vector<8x32xf32>
    %978 = vector.broadcast %824 : f32 to vector<8x32xf32>
    %979 = arith.mulf %978, %977 : vector<8x32xf32>
    %980 = arith.addf %941, %979 : vector<8x32xf32>
    %c7 = arith.constant 7 : index
    %981 = memref.load %arg1[%c7] : memref<8xf32, #tpu.memory_space<smem>>
    %c6_292 = arith.constant 6 : index
    %982 = memref.load %arg1[%c6_292] : memref<8xf32, #tpu.memory_space<smem>>
    %983 = arith.subf %981, %982 : f32
    %cst_293 = arith.constant 4.000000e+00 : f32
    %984 = arith.divf %983, %cst_293 : f32
    %cst_294 = arith.constant 5.000000e-01 : f32
    %985 = arith.mulf %cst_294, %984 : f32
    %cst_295 = arith.constant 6.000000e+00 : f32
    %986 = arith.divf %984, %cst_295 : f32
    %c0_i32_296 = arith.constant 0 : i32
    %cst_297 = arith.constant dense<0.000000e+00> : vector<8x32xf32>
    %987 = tpu.matmul %980, %0, %cst_297 {dimension_numbers = #tpu.dot_dimension_numbers<[1], [0], [0], [1], [0, 0, 1, 1], [], []>} : vector<8x32xf32>, vector<32x32xf32>, vector<8x32xf32> -> vector<8x32xf32>
    %988 = arith.addf %987, %4 : vector<8x32xf32>
    %989 = math.tanh %988 : vector<8x32xf32>
    %cst_298 = arith.constant dense<0.000000e+00> : vector<8x32xf32>
    %990 = tpu.matmul %989, %1, %cst_298 {dimension_numbers = #tpu.dot_dimension_numbers<[1], [0], [0], [1], [0, 0, 1, 1], [], []>} : vector<8x32xf32>, vector<32x32xf32>, vector<8x32xf32> -> vector<8x32xf32>
    %991 = arith.addf %990, %7 : vector<8x32xf32>
    %992 = vector.broadcast %985 : f32 to vector<8x32xf32>
    %993 = arith.mulf %992, %991 : vector<8x32xf32>
    %994 = arith.addf %980, %993 : vector<8x32xf32>
    %cst_299 = arith.constant dense<0.000000e+00> : vector<8x32xf32>
    %995 = tpu.matmul %994, %0, %cst_299 {dimension_numbers = #tpu.dot_dimension_numbers<[1], [0], [0], [1], [0, 0, 1, 1], [], []>} : vector<8x32xf32>, vector<32x32xf32>, vector<8x32xf32> -> vector<8x32xf32>
    %996 = arith.addf %995, %4 : vector<8x32xf32>
    %997 = math.tanh %996 : vector<8x32xf32>
    %cst_300 = arith.constant dense<0.000000e+00> : vector<8x32xf32>
    %998 = tpu.matmul %997, %1, %cst_300 {dimension_numbers = #tpu.dot_dimension_numbers<[1], [0], [0], [1], [0, 0, 1, 1], [], []>} : vector<8x32xf32>, vector<32x32xf32>, vector<8x32xf32> -> vector<8x32xf32>
    %999 = arith.addf %998, %7 : vector<8x32xf32>
    %1000 = vector.broadcast %985 : f32 to vector<8x32xf32>
    %1001 = arith.mulf %1000, %999 : vector<8x32xf32>
    %1002 = arith.addf %980, %1001 : vector<8x32xf32>
    %cst_301 = arith.constant dense<0.000000e+00> : vector<8x32xf32>
    %1003 = tpu.matmul %1002, %0, %cst_301 {dimension_numbers = #tpu.dot_dimension_numbers<[1], [0], [0], [1], [0, 0, 1, 1], [], []>} : vector<8x32xf32>, vector<32x32xf32>, vector<8x32xf32> -> vector<8x32xf32>
    %1004 = arith.addf %1003, %4 : vector<8x32xf32>
    %1005 = math.tanh %1004 : vector<8x32xf32>
    %cst_302 = arith.constant dense<0.000000e+00> : vector<8x32xf32>
    %1006 = tpu.matmul %1005, %1, %cst_302 {dimension_numbers = #tpu.dot_dimension_numbers<[1], [0], [0], [1], [0, 0, 1, 1], [], []>} : vector<8x32xf32>, vector<32x32xf32>, vector<8x32xf32> -> vector<8x32xf32>
    %1007 = arith.addf %1006, %7 : vector<8x32xf32>
    %1008 = vector.broadcast %984 : f32 to vector<8x32xf32>
    %1009 = arith.mulf %1008, %1007 : vector<8x32xf32>
    %1010 = arith.addf %980, %1009 : vector<8x32xf32>
    %cst_303 = arith.constant dense<0.000000e+00> : vector<8x32xf32>
    %1011 = tpu.matmul %1010, %0, %cst_303 {dimension_numbers = #tpu.dot_dimension_numbers<[1], [0], [0], [1], [0, 0, 1, 1], [], []>} : vector<8x32xf32>, vector<32x32xf32>, vector<8x32xf32> -> vector<8x32xf32>
    %1012 = arith.addf %1011, %4 : vector<8x32xf32>
    %1013 = math.tanh %1012 : vector<8x32xf32>
    %cst_304 = arith.constant dense<0.000000e+00> : vector<8x32xf32>
    %1014 = tpu.matmul %1013, %1, %cst_304 {dimension_numbers = #tpu.dot_dimension_numbers<[1], [0], [0], [1], [0, 0, 1, 1], [], []>} : vector<8x32xf32>, vector<32x32xf32>, vector<8x32xf32> -> vector<8x32xf32>
    %1015 = arith.addf %1014, %7 : vector<8x32xf32>
    %cst_305 = arith.constant 2.000000e+00 : f32
    %1016 = vector.broadcast %cst_305 : f32 to vector<8x32xf32>
    %1017 = arith.mulf %1016, %999 : vector<8x32xf32>
    %1018 = arith.addf %991, %1017 : vector<8x32xf32>
    %cst_306 = arith.constant 2.000000e+00 : f32
    %1019 = vector.broadcast %cst_306 : f32 to vector<8x32xf32>
    %1020 = arith.mulf %1019, %1007 : vector<8x32xf32>
    %1021 = arith.addf %1018, %1020 : vector<8x32xf32>
    %1022 = arith.addf %1021, %1015 : vector<8x32xf32>
    %1023 = vector.broadcast %986 : f32 to vector<8x32xf32>
    %1024 = arith.mulf %1023, %1022 : vector<8x32xf32>
    %1025 = arith.addf %980, %1024 : vector<8x32xf32>
    %c1_i32_307 = arith.constant 1 : i32
    %cst_308 = arith.constant dense<0.000000e+00> : vector<8x32xf32>
    %1026 = tpu.matmul %1025, %0, %cst_308 {dimension_numbers = #tpu.dot_dimension_numbers<[1], [0], [0], [1], [0, 0, 1, 1], [], []>} : vector<8x32xf32>, vector<32x32xf32>, vector<8x32xf32> -> vector<8x32xf32>
    %1027 = arith.addf %1026, %4 : vector<8x32xf32>
    %1028 = math.tanh %1027 : vector<8x32xf32>
    %cst_309 = arith.constant dense<0.000000e+00> : vector<8x32xf32>
    %1029 = tpu.matmul %1028, %1, %cst_309 {dimension_numbers = #tpu.dot_dimension_numbers<[1], [0], [0], [1], [0, 0, 1, 1], [], []>} : vector<8x32xf32>, vector<32x32xf32>, vector<8x32xf32> -> vector<8x32xf32>
    %1030 = arith.addf %1029, %7 : vector<8x32xf32>
    %1031 = vector.broadcast %985 : f32 to vector<8x32xf32>
    %1032 = arith.mulf %1031, %1030 : vector<8x32xf32>
    %1033 = arith.addf %1025, %1032 : vector<8x32xf32>
    %cst_310 = arith.constant dense<0.000000e+00> : vector<8x32xf32>
    %1034 = tpu.matmul %1033, %0, %cst_310 {dimension_numbers = #tpu.dot_dimension_numbers<[1], [0], [0], [1], [0, 0, 1, 1], [], []>} : vector<8x32xf32>, vector<32x32xf32>, vector<8x32xf32> -> vector<8x32xf32>
    %1035 = arith.addf %1034, %4 : vector<8x32xf32>
    %1036 = math.tanh %1035 : vector<8x32xf32>
    %cst_311 = arith.constant dense<0.000000e+00> : vector<8x32xf32>
    %1037 = tpu.matmul %1036, %1, %cst_311 {dimension_numbers = #tpu.dot_dimension_numbers<[1], [0], [0], [1], [0, 0, 1, 1], [], []>} : vector<8x32xf32>, vector<32x32xf32>, vector<8x32xf32> -> vector<8x32xf32>
    %1038 = arith.addf %1037, %7 : vector<8x32xf32>
    %1039 = vector.broadcast %985 : f32 to vector<8x32xf32>
    %1040 = arith.mulf %1039, %1038 : vector<8x32xf32>
    %1041 = arith.addf %1025, %1040 : vector<8x32xf32>
    %cst_312 = arith.constant dense<0.000000e+00> : vector<8x32xf32>
    %1042 = tpu.matmul %1041, %0, %cst_312 {dimension_numbers = #tpu.dot_dimension_numbers<[1], [0], [0], [1], [0, 0, 1, 1], [], []>} : vector<8x32xf32>, vector<32x32xf32>, vector<8x32xf32> -> vector<8x32xf32>
    %1043 = arith.addf %1042, %4 : vector<8x32xf32>
    %1044 = math.tanh %1043 : vector<8x32xf32>
    %cst_313 = arith.constant dense<0.000000e+00> : vector<8x32xf32>
    %1045 = tpu.matmul %1044, %1, %cst_313 {dimension_numbers = #tpu.dot_dimension_numbers<[1], [0], [0], [1], [0, 0, 1, 1], [], []>} : vector<8x32xf32>, vector<32x32xf32>, vector<8x32xf32> -> vector<8x32xf32>
    %1046 = arith.addf %1045, %7 : vector<8x32xf32>
    %1047 = vector.broadcast %984 : f32 to vector<8x32xf32>
    %1048 = arith.mulf %1047, %1046 : vector<8x32xf32>
    %1049 = arith.addf %1025, %1048 : vector<8x32xf32>
    %cst_314 = arith.constant dense<0.000000e+00> : vector<8x32xf32>
    %1050 = tpu.matmul %1049, %0, %cst_314 {dimension_numbers = #tpu.dot_dimension_numbers<[1], [0], [0], [1], [0, 0, 1, 1], [], []>} : vector<8x32xf32>, vector<32x32xf32>, vector<8x32xf32> -> vector<8x32xf32>
    %1051 = arith.addf %1050, %4 : vector<8x32xf32>
    %1052 = math.tanh %1051 : vector<8x32xf32>
    %cst_315 = arith.constant dense<0.000000e+00> : vector<8x32xf32>
    %1053 = tpu.matmul %1052, %1, %cst_315 {dimension_numbers = #tpu.dot_dimension_numbers<[1], [0], [0], [1], [0, 0, 1, 1], [], []>} : vector<8x32xf32>, vector<32x32xf32>, vector<8x32xf32> -> vector<8x32xf32>
    %1054 = arith.addf %1053, %7 : vector<8x32xf32>
    %cst_316 = arith.constant 2.000000e+00 : f32
    %1055 = vector.broadcast %cst_316 : f32 to vector<8x32xf32>
    %1056 = arith.mulf %1055, %1038 : vector<8x32xf32>
    %1057 = arith.addf %1030, %1056 : vector<8x32xf32>
    %cst_317 = arith.constant 2.000000e+00 : f32
    %1058 = vector.broadcast %cst_317 : f32 to vector<8x32xf32>
    %1059 = arith.mulf %1058, %1046 : vector<8x32xf32>
    %1060 = arith.addf %1057, %1059 : vector<8x32xf32>
    %1061 = arith.addf %1060, %1054 : vector<8x32xf32>
    %1062 = vector.broadcast %986 : f32 to vector<8x32xf32>
    %1063 = arith.mulf %1062, %1061 : vector<8x32xf32>
    %1064 = arith.addf %1025, %1063 : vector<8x32xf32>
    %c2_i32_318 = arith.constant 2 : i32
    %cst_319 = arith.constant dense<0.000000e+00> : vector<8x32xf32>
    %1065 = tpu.matmul %1064, %0, %cst_319 {dimension_numbers = #tpu.dot_dimension_numbers<[1], [0], [0], [1], [0, 0, 1, 1], [], []>} : vector<8x32xf32>, vector<32x32xf32>, vector<8x32xf32> -> vector<8x32xf32>
    %1066 = arith.addf %1065, %4 : vector<8x32xf32>
    %1067 = math.tanh %1066 : vector<8x32xf32>
    %cst_320 = arith.constant dense<0.000000e+00> : vector<8x32xf32>
    %1068 = tpu.matmul %1067, %1, %cst_320 {dimension_numbers = #tpu.dot_dimension_numbers<[1], [0], [0], [1], [0, 0, 1, 1], [], []>} : vector<8x32xf32>, vector<32x32xf32>, vector<8x32xf32> -> vector<8x32xf32>
    %1069 = arith.addf %1068, %7 : vector<8x32xf32>
    %1070 = vector.broadcast %985 : f32 to vector<8x32xf32>
    %1071 = arith.mulf %1070, %1069 : vector<8x32xf32>
    %1072 = arith.addf %1064, %1071 : vector<8x32xf32>
    %cst_321 = arith.constant dense<0.000000e+00> : vector<8x32xf32>
    %1073 = tpu.matmul %1072, %0, %cst_321 {dimension_numbers = #tpu.dot_dimension_numbers<[1], [0], [0], [1], [0, 0, 1, 1], [], []>} : vector<8x32xf32>, vector<32x32xf32>, vector<8x32xf32> -> vector<8x32xf32>
    %1074 = arith.addf %1073, %4 : vector<8x32xf32>
    %1075 = math.tanh %1074 : vector<8x32xf32>
    %cst_322 = arith.constant dense<0.000000e+00> : vector<8x32xf32>
    %1076 = tpu.matmul %1075, %1, %cst_322 {dimension_numbers = #tpu.dot_dimension_numbers<[1], [0], [0], [1], [0, 0, 1, 1], [], []>} : vector<8x32xf32>, vector<32x32xf32>, vector<8x32xf32> -> vector<8x32xf32>
    %1077 = arith.addf %1076, %7 : vector<8x32xf32>
    %1078 = vector.broadcast %985 : f32 to vector<8x32xf32>
    %1079 = arith.mulf %1078, %1077 : vector<8x32xf32>
    %1080 = arith.addf %1064, %1079 : vector<8x32xf32>
    %cst_323 = arith.constant dense<0.000000e+00> : vector<8x32xf32>
    %1081 = tpu.matmul %1080, %0, %cst_323 {dimension_numbers = #tpu.dot_dimension_numbers<[1], [0], [0], [1], [0, 0, 1, 1], [], []>} : vector<8x32xf32>, vector<32x32xf32>, vector<8x32xf32> -> vector<8x32xf32>
    %1082 = arith.addf %1081, %4 : vector<8x32xf32>
    %1083 = math.tanh %1082 : vector<8x32xf32>
    %cst_324 = arith.constant dense<0.000000e+00> : vector<8x32xf32>
    %1084 = tpu.matmul %1083, %1, %cst_324 {dimension_numbers = #tpu.dot_dimension_numbers<[1], [0], [0], [1], [0, 0, 1, 1], [], []>} : vector<8x32xf32>, vector<32x32xf32>, vector<8x32xf32> -> vector<8x32xf32>
    %1085 = arith.addf %1084, %7 : vector<8x32xf32>
    %1086 = vector.broadcast %984 : f32 to vector<8x32xf32>
    %1087 = arith.mulf %1086, %1085 : vector<8x32xf32>
    %1088 = arith.addf %1064, %1087 : vector<8x32xf32>
    %cst_325 = arith.constant dense<0.000000e+00> : vector<8x32xf32>
    %1089 = tpu.matmul %1088, %0, %cst_325 {dimension_numbers = #tpu.dot_dimension_numbers<[1], [0], [0], [1], [0, 0, 1, 1], [], []>} : vector<8x32xf32>, vector<32x32xf32>, vector<8x32xf32> -> vector<8x32xf32>
    %1090 = arith.addf %1089, %4 : vector<8x32xf32>
    %1091 = math.tanh %1090 : vector<8x32xf32>
    %cst_326 = arith.constant dense<0.000000e+00> : vector<8x32xf32>
    %1092 = tpu.matmul %1091, %1, %cst_326 {dimension_numbers = #tpu.dot_dimension_numbers<[1], [0], [0], [1], [0, 0, 1, 1], [], []>} : vector<8x32xf32>, vector<32x32xf32>, vector<8x32xf32> -> vector<8x32xf32>
    %1093 = arith.addf %1092, %7 : vector<8x32xf32>
    %cst_327 = arith.constant 2.000000e+00 : f32
    %1094 = vector.broadcast %cst_327 : f32 to vector<8x32xf32>
    %1095 = arith.mulf %1094, %1077 : vector<8x32xf32>
    %1096 = arith.addf %1069, %1095 : vector<8x32xf32>
    %cst_328 = arith.constant 2.000000e+00 : f32
    %1097 = vector.broadcast %cst_328 : f32 to vector<8x32xf32>
    %1098 = arith.mulf %1097, %1085 : vector<8x32xf32>
    %1099 = arith.addf %1096, %1098 : vector<8x32xf32>
    %1100 = arith.addf %1099, %1093 : vector<8x32xf32>
    %1101 = vector.broadcast %986 : f32 to vector<8x32xf32>
    %1102 = arith.mulf %1101, %1100 : vector<8x32xf32>
    %1103 = arith.addf %1064, %1102 : vector<8x32xf32>
    %c3_i32_329 = arith.constant 3 : i32
    %cst_330 = arith.constant dense<0.000000e+00> : vector<8x32xf32>
    %1104 = tpu.matmul %1103, %0, %cst_330 {dimension_numbers = #tpu.dot_dimension_numbers<[1], [0], [0], [1], [0, 0, 1, 1], [], []>} : vector<8x32xf32>, vector<32x32xf32>, vector<8x32xf32> -> vector<8x32xf32>
    %1105 = arith.addf %1104, %4 : vector<8x32xf32>
    %1106 = math.tanh %1105 : vector<8x32xf32>
    %cst_331 = arith.constant dense<0.000000e+00> : vector<8x32xf32>
    %1107 = tpu.matmul %1106, %1, %cst_331 {dimension_numbers = #tpu.dot_dimension_numbers<[1], [0], [0], [1], [0, 0, 1, 1], [], []>} : vector<8x32xf32>, vector<32x32xf32>, vector<8x32xf32> -> vector<8x32xf32>
    %1108 = arith.addf %1107, %7 : vector<8x32xf32>
    %1109 = vector.broadcast %985 : f32 to vector<8x32xf32>
    %1110 = arith.mulf %1109, %1108 : vector<8x32xf32>
    %1111 = arith.addf %1103, %1110 : vector<8x32xf32>
    %cst_332 = arith.constant dense<0.000000e+00> : vector<8x32xf32>
    %1112 = tpu.matmul %1111, %0, %cst_332 {dimension_numbers = #tpu.dot_dimension_numbers<[1], [0], [0], [1], [0, 0, 1, 1], [], []>} : vector<8x32xf32>, vector<32x32xf32>, vector<8x32xf32> -> vector<8x32xf32>
    %1113 = arith.addf %1112, %4 : vector<8x32xf32>
    %1114 = math.tanh %1113 : vector<8x32xf32>
    %cst_333 = arith.constant dense<0.000000e+00> : vector<8x32xf32>
    %1115 = tpu.matmul %1114, %1, %cst_333 {dimension_numbers = #tpu.dot_dimension_numbers<[1], [0], [0], [1], [0, 0, 1, 1], [], []>} : vector<8x32xf32>, vector<32x32xf32>, vector<8x32xf32> -> vector<8x32xf32>
    %1116 = arith.addf %1115, %7 : vector<8x32xf32>
    %1117 = vector.broadcast %985 : f32 to vector<8x32xf32>
    %1118 = arith.mulf %1117, %1116 : vector<8x32xf32>
    %1119 = arith.addf %1103, %1118 : vector<8x32xf32>
    %cst_334 = arith.constant dense<0.000000e+00> : vector<8x32xf32>
    %1120 = tpu.matmul %1119, %0, %cst_334 {dimension_numbers = #tpu.dot_dimension_numbers<[1], [0], [0], [1], [0, 0, 1, 1], [], []>} : vector<8x32xf32>, vector<32x32xf32>, vector<8x32xf32> -> vector<8x32xf32>
    %1121 = arith.addf %1120, %4 : vector<8x32xf32>
    %1122 = math.tanh %1121 : vector<8x32xf32>
    %cst_335 = arith.constant dense<0.000000e+00> : vector<8x32xf32>
    %1123 = tpu.matmul %1122, %1, %cst_335 {dimension_numbers = #tpu.dot_dimension_numbers<[1], [0], [0], [1], [0, 0, 1, 1], [], []>} : vector<8x32xf32>, vector<32x32xf32>, vector<8x32xf32> -> vector<8x32xf32>
    %1124 = arith.addf %1123, %7 : vector<8x32xf32>
    %1125 = vector.broadcast %984 : f32 to vector<8x32xf32>
    %1126 = arith.mulf %1125, %1124 : vector<8x32xf32>
    %1127 = arith.addf %1103, %1126 : vector<8x32xf32>
    %cst_336 = arith.constant dense<0.000000e+00> : vector<8x32xf32>
    %1128 = tpu.matmul %1127, %0, %cst_336 {dimension_numbers = #tpu.dot_dimension_numbers<[1], [0], [0], [1], [0, 0, 1, 1], [], []>} : vector<8x32xf32>, vector<32x32xf32>, vector<8x32xf32> -> vector<8x32xf32>
    %1129 = arith.addf %1128, %4 : vector<8x32xf32>
    %1130 = math.tanh %1129 : vector<8x32xf32>
    %cst_337 = arith.constant dense<0.000000e+00> : vector<8x32xf32>
    %1131 = tpu.matmul %1130, %1, %cst_337 {dimension_numbers = #tpu.dot_dimension_numbers<[1], [0], [0], [1], [0, 0, 1, 1], [], []>} : vector<8x32xf32>, vector<32x32xf32>, vector<8x32xf32> -> vector<8x32xf32>
    %1132 = arith.addf %1131, %7 : vector<8x32xf32>
    %cst_338 = arith.constant 2.000000e+00 : f32
    %1133 = vector.broadcast %cst_338 : f32 to vector<8x32xf32>
    %1134 = arith.mulf %1133, %1116 : vector<8x32xf32>
    %1135 = arith.addf %1108, %1134 : vector<8x32xf32>
    %cst_339 = arith.constant 2.000000e+00 : f32
    %1136 = vector.broadcast %cst_339 : f32 to vector<8x32xf32>
    %1137 = arith.mulf %1136, %1124 : vector<8x32xf32>
    %1138 = arith.addf %1135, %1137 : vector<8x32xf32>
    %1139 = arith.addf %1138, %1132 : vector<8x32xf32>
    %1140 = vector.broadcast %986 : f32 to vector<8x32xf32>
    %1141 = arith.mulf %1140, %1139 : vector<8x32xf32>
    %1142 = arith.addf %1103, %1141 : vector<8x32xf32>
    %1143 = tpu.concatenate %8, %170, %332, %494, %656, %818, %980, %1142 in 1 : vector<8x32xf32>, vector<8x32xf32>, vector<8x32xf32>, vector<8x32xf32>, vector<8x32xf32>, vector<8x32xf32>, vector<8x32xf32>, vector<8x32xf32> -> vector<8x256xf32>
    %c0_340 = arith.constant 0 : index
    %c0_341 = arith.constant 0 : index
    %1144 = vector.load %arg7[%c0_340, %c0_341] : memref<8x256xf32, #tpu.memory_space<vmem>>, vector<8x256xf32>
    tpu.vector_store %arg7[%c0_340, %c0_341], %1143 {strides = array<i32>} : memref<8x256xf32, #tpu.memory_space<vmem>>, vector<8x256xf32>,
    return
  }
  func.func @transform_0(%arg0: i32) -> i32 {
    %c0_i32 = arith.constant 0 : i32
    %c0_i32_0 = arith.constant 0 : i32
    return %c0_i32 : i32
  }
  func.func @transform_1(%arg0: i32) -> (i32, i32) {
    %c0_i32 = arith.constant 0 : i32
    %c0_i32_0 = arith.constant 0 : i32
    return %arg0, %c0_i32 : i32, i32
  }
  func.func @transform_2(%arg0: i32) -> (i32, i32) {
    %c0_i32 = arith.constant 0 : i32
    %c0_i32_0 = arith.constant 0 : i32
    %c0_i32_1 = arith.constant 0 : i32
    return %c0_i32, %c0_i32_0 : i32, i32
  }
  func.func @transform_3(%arg0: i32) -> (i32, i32) {
    %c0_i32 = arith.constant 0 : i32
    %c0_i32_0 = arith.constant 0 : i32
    %c0_i32_1 = arith.constant 0 : i32
    return %c0_i32, %c0_i32_0 : i32, i32
  }
  func.func @transform_4(%arg0: i32) -> (i32, i32) {
    %c0_i32 = arith.constant 0 : i32
    %c0_i32_0 = arith.constant 0 : i32
    %c0_i32_1 = arith.constant 0 : i32
    return %c0_i32, %c0_i32_0 : i32, i32
  }
  func.func @transform_5(%arg0: i32) -> (i32, i32) {
    %c0_i32 = arith.constant 0 : i32
    %c0_i32_0 = arith.constant 0 : i32
    %c0_i32_1 = arith.constant 0 : i32
    return %c0_i32, %c0_i32_0 : i32, i32
  }
  func.func @transform_6(%arg0: i32) -> (i32, i32) {
    %c0_i32 = arith.constant 0 : i32
    %c0_i32_0 = arith.constant 0 : i32
    return %arg0, %c0_i32 : i32, i32
  }
}

</mosaic_0001>

<bundles_post_ra>
// kernel: tpu_custom_call.1
= control target key start
LH: loop header
LB: loop body
LE: loop exit
PB: predicated region body
PF: predicated region fallthrough
CT: control target
= control target key end

     0   :  { %11 = vsyncpa [#allocation5], 0  ;;  %s24737_s0 = inlined_call_operand.hbm [shape: f32[8], index: 0, kind: input, shape index: {}]   ;;  %s24738_s1 = inlined_call_operand.hbm [shape: f32[8,32], index: 1, kind: input, shape index: {}]   ;;  %s24739_s2 = inlined_call_operand.hbm [shape: f32[32,32], index: 2, kind: input, shape index: {}]   ;;  %s24740_s3 = inlined_call_operand.vmem [shape: f32[1,32], index: 3, kind: input, shape index: {}]   ;;  %s24741_s4 = inlined_call_operand.hbm [shape: f32[32,32], index: 4, kind: input, shape index: {}]   ;;  %s24742_s5 = inlined_call_operand.vmem [shape: f32[1,32], index: 5, kind: input, shape index: {}]   ;;  %s24743_s6 = inlined_call_operand.hbm [shape: f32[8,256], index: 6, kind: output, shape index: {}]  }
   0x1   :  { %12 = vsyncpa [#allocation3], 0 }
   0x2   :  { %13 = vsyncpa [#allocation8], 0 }
   0x3   :  { %14 = vsyncpa [#allocation4], 0  ;;  %s21267_s21 = smov [#allocation7]  }
   0x4   :  { %s38_s22 = sshll.u32 %s21267_s21, 4  ;;  %s39_s22 = int_to_ptr.vmem [resolvable:$true] %s38_s22 }
   0x5   :  { %s21179_s23 = scalar_lea.vmem %s39_s22, 512  ;;  %p21184_p1 = scmp.lt.s32.totalorder %s39_s22, %s39_s22 }
   0x6   :  { %p21180_p0 = scmp.ne.s32.totalorder %s39_s22, %s21179_s23  ;;  %p21185_p2 = scmp.lt.s32.totalorder %s21179_s23, %s21179_s23 }
   0x8   :  { %p21186_p3 = por %p21185_p2, %p21184_p1 }
   0xa   :  { %p21187_p4 = pnand %p21186_p3, %p21180_p0 }
   0xc   :  { %21190 = shalt.err (!%p21187_p4)
}
   0xd   :  { %s21268_s24 = smov 128   ;;  %s21269_s25 = smov 8  }
   0xe   :  { %44 = dma.hbm_to_vmem [thread:$0]  %s24739_s2, 512, %s39_s22, [#allocation8], %s21268_s24, %s21268_s24, %s21269_s25  }
   0xf   :  { %s21270_s28 = smov [#allocation2]   ;;  %s21271_s7 = smov [#allocation6]  }
  0x10   :  { %22 = dma.hbm_to_smem %s24737_s0, 16, %s21270_s28, [#allocation5]  }
  0x11   :  { %s29_s8 = sshll.u32 %s21271_s7, 4  ;;  %s21272_s9 = smov [#allocation9]   ;;  %s30_s8 = int_to_ptr.vmem [resolvable:$true] %s29_s8 }
  0x12   :  { %s52_s10 = sshll.u32 %s21272_s9, 4  ;;  %s21207_s11 = scalar_lea.vmem %s30_s8, 128  ;;  %s53_s10 = int_to_ptr.vmem [resolvable:$true] %s52_s10 }
  0x13   :  { %p21208_p5 = scmp.ne.s32.totalorder %s30_s8, %s21207_s11  ;;  %p21212_p6 = scmp.lt.s32.totalorder %s30_s8, %s30_s8 }
  0x14   :  { %p21213_p7 = scmp.lt.s32.totalorder %s21207_s11, %s21207_s11 }
  0x16   :  { %p21214_p8 = por %p21213_p7, %p21212_p6 }
  0x18   :  { %p21215_p9 = pnand %p21214_p8, %p21208_p5 }
  0x1a   :  { %21218 = shalt.err (!%p21215_p9)
}
  0x1b   :  { %32 = dma.hbm_to_vmem [thread:$0]  %s24738_s1, 128, %s30_s8, [#allocation3]  }
  0x1c   :  { %s21227_s13 = scalar_lea.vmem %s53_s10, 512  ;;  %p21232_p11 = scmp.lt.s32.totalorder %s53_s10, %s53_s10 }
  0x1d   :  { %p21228_p10 = scmp.ne.s32.totalorder %s53_s10, %s21227_s13  ;;  %p21233_p12 = scmp.lt.s32.totalorder %s21227_s13, %s21227_s13 }
  0x1f   :  { %p21234_p13 = por %p21233_p12, %p21232_p11 }
  0x21   :  { %p21235_p0 = pnand %p21234_p13, %p21228_p10 }
  0x23   :  { %21238 = shalt.err (!%p21235_p0)
}
  0x24   :  { %58 = dma.hbm_to_vmem [thread:$0]  %s24741_s4, 512, %s53_s10, [#allocation8], %s21268_s24, %s21268_s24, %s21269_s25  }
  0x25   :  { %21259 = dma.done.wait [#allocation5], 16  }
  0x26   :  { %21260 = vsyncadd [#allocation5], 4294967280 }
  0x27   :  { %21261 = dma.done.wait [#allocation3], 128  }
  0x28   :  { %21262 = vsyncadd [#allocation3], 4294967168 }
  0x29   :  { %21263 = dma.done.wait [#allocation8], 1024  }
  0x2a   :  { %21264 = vsyncadd [#allocation8], 4294966272 }
  0x2b   :  { %73 = sfence }
  0x2c   :  { %v21326_v0 = vld [vmem:[#allocation7 + $0x18] sm:$0xff]  ;;  %v21273_v1 = vmov 0.0   ;;  %v21329_v2 = vld [vmem:[#allocation7 + $0x10] sm:$0xff]  ;;  %vm21274_vm0 = vmmov 0   ;;  %v21336_v3 = vld [vmem:[#allocation7 + $0x8] sm:$0xff]  ;;  %vm107_vm1 = vcmask 261120  }
  0x2d   :  { %18410 = vmatprep.subr.mxu0 %v21273_v1  ;;  %18418 = vmatprep.mubr.msk.f32.mxu0 %vm21274_vm0, %v21273_v1  ;;  %v21342_v4 = vld [vmem:[#allocation7] sm:$0xff]  ;;  %v21345_v5 = vld [vmem:[#allocation6] sm:$0xff]  ;;  %v21364_v7 = vld [vmem:[#allocation9 + $0x10] sm:$0xff]  ;;  %s21395_s15 = sld [smem:[#allocation2 + $0x1]]  ;;  %s21275_s23 = smov 32   ;;  %vm17031_vm2 = vcmask 523264  }
  0x2e   :  { %18411 = vmatpush3.msra.mxu0 %v21326_v0  ;;  %18421 = vmatprep.subr.mxu1 %v21273_v1  ;;  %v21362_v6 = vld [vmem:[#allocation9 + $0x18] sm:$0xff]  ;;  %v21368_v8 = vld [vmem:[#allocation9 + $0x8] sm:$0xff]  ;;  %v21372_v9 = vld [vmem:[#allocation9] sm:$0xff]  ;;  %s98_s16 = sld [smem:[#allocation2]]  ;;  %s21276_s9 = smov 64   ;;  %vm17033_vm3 = vcmask 785408  }
  0x2f   :  { %18412 = vmatprep.subr.mxu0 %v21273_v1  ;;  %18429 = vmatprep.mubr.msk.f32.mxu1 %vm21274_vm0, %v21273_v1  ;;  %v21381_v10 = vld [vmem:[%s24740_s3] ss:$0 sm:$0xff]  ;;  %s21881_s26 = sld [smem:[#allocation2 + $0x2]] }
  0x30   :  { %18413 = vmatpush3.msra.mxu0 %v21329_v2  ;;  %18422 = vmatpush3.msra.mxu1 %v21362_v6  ;;  %v21404_v15 = vld [vmem:[%s24742_s5] ss:$0 sm:$0xff]  ;;  %s22351_s10 = sld [smem:[#allocation2 + $0x3]] }
  0x31   :  { %18414 = vmatprep.subr.mxu0 %v21273_v1  ;;  %18423 = vmatprep.subr.mxu1 %v21273_v1  ;;  %s23317_s25 = sld [smem:[#allocation2 + $0x5]] }
  0x32   :  { %18415 = vmatpush3.msra.mxu0 %v21336_v3  ;;  %18424 = vmatpush3.msra.mxu1 %v21364_v7 }
  0x33   :  { %18416 = vmatprep.subr.mxu0 %v21273_v1  ;;  %18425 = vmatprep.subr.mxu1 %v21273_v1 }
  0x34   :  { %18417 = vmatpush3.msra.mxu0 %v21342_v4  ;;  %18426 = vmatpush3.msra.mxu1 %v21368_v8  ;;  %s99_s17 = ssub.f32 %s21395_s15, %s98_s16 }
  0x35   :  { %18419 = vmatmul.mubr.msk.f32.vlgmr.msra.gmra.mxu0 %vm107_vm1, %v21345_v5  ;;  %18432 = vmatprep.subr.mxu0 %v21273_v1  ;;  %s2516_s27 = ssub.f32 %s21881_s26, %s21395_s15 }
  0x36   :  { %18433 = vmatpush3.msra.mxu0 %v21326_v0  ;;  %18440 = vmatprep.mubr.msk.f32.mxu0 %vm21274_vm0, %v21273_v1  ;;  %s21398_s18 = smul.f32 0.25, %s99_s17  ;;  %s4932_s11 = ssub.f32 %s22351_s10, %s21881_s26 }
  0x37   :  { %18434 = vmatprep.subr.mxu0 %v21273_v1  ;;  %18427 = vmatprep.subr.mxu1 %v21273_v1  ;;  %s21885_s28 = smul.f32 0.25, %s2516_s27  ;;  %s22832_s15 = sld [smem:[#allocation2 + $0x4]] }
  0x38   :  { %18435 = vmatpush3.msra.mxu0 %v21329_v2  ;;  %18428 = vmatpush3.msra.mxu1 %v21372_v9  ;;  %s103_s19 = smul.f32 0.5, %s21398_s18  ;;  %v21464_v37 = vstv %s21398_s18 }
  0x39   :  { %18436 = vmatprep.subr.mxu0 %v21273_v1  ;;  %18443 = vmatprep.subr.mxu1 %v21273_v1  ;;  %s106_s22 = smul.f32 0.16666667, %s21398_s18 }
  0x3a   :  { %18437 = vmatpush3.msra.mxu0 %v21336_v3  ;;  %v21406_v17 = vstv %s103_s19  ;;  %s2520_s29 = smul.f32 0.5, %s21885_s28 }
  0x3b   :  { %18438 = vmatprep.subr.mxu0 %v21273_v1  ;;  %v21495_v51 = vstv %s106_s22  ;;  %s2523_s8 = smul.f32 0.16666667, %s21885_s28 }
  0x3c   :  { %18439 = vmatpush3.msra.mxu0 %v21342_v4  ;;  %s22355_s12 = smul.f32 0.25, %s4932_s11  ;;  %s21277_s11 = smov 96  }
  0x3d   :  { %18454 = vmatprep.subr.mxu0 %v21273_v1  ;;  %s7348_s16 = ssub.f32 %s22832_s15, %s22351_s10 }
  0x3e   :  { %s4936_s2 = smul.f32 0.5, %s22355_s12  ;;  %s9764_s26 = ssub.f32 %s23317_s25, %s22832_s15 }
  0x3f   :  { %s4939_s4 = smul.f32 0.16666667, %s22355_s12 }
  0x40   :  { %s22836_s17 = smul.f32 0.25, %s7348_s16 }
  0x41   :  { %s23321_s27 = smul.f32 0.25, %s9764_s26 }
  0x42   :  { %s7352_s18 = smul.f32 0.5, %s22836_s17 }
  0x43   :  { %s7355_s24 = smul.f32 0.16666667, %s22836_s17 }
  0x44   :  { %s9771_s7 = smul.f32 0.16666667, %s23321_s27 }
  0xf5   :  { %v177_v11 = vpop.f32.mrf.mxu0 }
  0xf6   :  { %v178_v12 = vadd.f32 %v21381_v10, %v177_v11 }
  0xf7   :  { %v18420_v13 = vpop.f32.mrf.mxu0 }
  0xf8   :  { %20886 = vtanh.f32 %v178_v12 }
 0x105   :  { %v20887_v14 = vpop.eup %20886 }
 0x106   :  { %18430 = vmatmul.mubr.msk.f32.vlgmr.msra.gmra.mxu1 %vm107_vm1, %v20887_v14 }
 0x107   :  { %18444 = vmatpush3.msra.mxu1 %v21362_v6  ;;  %18451 = vmatprep.mubr.msk.f32.mxu1 %vm21274_vm0, %v21273_v1 }
 0x108   :  { %18445 = vmatprep.subr.mxu1 %v21273_v1 }
 0x109   :  { %18446 = vmatpush3.msra.mxu1 %v21364_v7 }
 0x10a   :  { %18447 = vmatprep.subr.mxu1 %v21273_v1 }
 0x10b   :  { %18448 = vmatpush3.msra.mxu1 %v21368_v8 }
 0x10c   :  { %18449 = vmatprep.subr.mxu1 %v21273_v1 }
 0x10d   :  { %18450 = vmatpush3.msra.mxu1 %v21372_v9 }
 0x10e   :  { %18465 = vmatprep.subr.mxu1 %v21273_v1 }
 0x1c6   :  { %v251_v16 = vpop.f32.mrf.mxu1 }
 0x1c7   :  { %v21409_v18 = vadd.f32 %v21404_v15, %v251_v16 }
 0x1c8   :  { %v18431_v19 = vpop.f32.mrf.mxu1 }
 0x1c9   :  { %v256_v20 = vmul.f32 %v21406_v17, %v21409_v18 }
 0x1cb   :  { %v257_v21 = vadd.f32 %v256_v20, %v21345_v5 }
 0x1cd   :  { %18441 = vmatmul.mubr.msk.f32.vlgmr.msra.gmra.mxu0 %vm107_vm1, %v257_v21 }
 0x1ce   :  { %18455 = vmatpush3.msra.mxu0 %v21326_v0  ;;  %18462 = vmatprep.mubr.msk.f32.mxu0 %vm21274_vm0, %v21273_v1 }
 0x1cf   :  { %18456 = vmatprep.subr.mxu0 %v21273_v1 }
 0x1d0   :  { %18457 = vmatpush3.msra.mxu0 %v21329_v2 }
 0x1d1   :  { %18458 = vmatprep.subr.mxu0 %v21273_v1 }
 0x1d2   :  { %18459 = vmatpush3.msra.mxu0 %v21336_v3 }
 0x1d3   :  { %18460 = vmatprep.subr.mxu0 %v21273_v1 }
 0x1d4   :  { %18461 = vmatpush3.msra.mxu0 %v21342_v4 }
 0x1d5   :  { %18476 = vmatprep.subr.mxu0 %v21273_v1 }
 0x28d   :  { %v327_v22 = vpop.f32.mrf.mxu0 }
 0x28e   :  { %v328_v23 = vadd.f32 %v21381_v10, %v327_v22 }
 0x28f   :  { %v18442_v24 = vpop.f32.mrf.mxu0 }
 0x290   :  { %20888 = vtanh.f32 %v328_v23 }
 0x29d   :  { %v20889_v25 = vpop.eup %20888 }
 0x29e   :  { %18452 = vmatmul.mubr.msk.f32.vlgmr.msra.gmra.mxu1 %vm107_vm1, %v20889_v25 }
 0x29f   :  { %18466 = vmatpush3.msra.mxu1 %v21362_v6  ;;  %18473 = vmatprep.mubr.msk.f32.mxu1 %vm21274_vm0, %v21273_v1 }
 0x2a0   :  { %18467 = vmatprep.subr.mxu1 %v21273_v1 }
 0x2a1   :  { %18468 = vmatpush3.msra.mxu1 %v21364_v7 }
 0x2a2   :  { %18469 = vmatprep.subr.mxu1 %v21273_v1 }
 0x2a3   :  { %18470 = vmatpush3.msra.mxu1 %v21368_v8 }
 0x2a4   :  { %18471 = vmatprep.subr.mxu1 %v21273_v1 }
 0x2a5   :  { %18472 = vmatpush3.msra.mxu1 %v21372_v9 }
 0x2a6   :  { %18487 = vmatprep.subr.mxu1 %v21273_v1 }
 0x35e   :  { %v401_v26 = vpop.f32.mrf.mxu1 }
 0x35f   :  { %v402_v27 = vadd.f32 %v21404_v15, %v401_v26 }
 0x360   :  { %v18453_v28 = vpop.f32.mrf.mxu1 }
 0x361   :  { %v405_v29 = vmul.f32 %v402_v27, %v21406_v17  ;;  %v704_v35 = vmul.f32 2.0, %v402_v27 }
 0x363   :  { %v406_v30 = vadd.f32 %v405_v29, %v21345_v5  ;;  %v705_v40 = vadd.f32 %v704_v35, %v21409_v18 }
 0x365   :  { %18463 = vmatmul.mubr.msk.f32.vlgmr.msra.gmra.mxu0 %vm107_vm1, %v406_v30 }
 0x366   :  { %18477 = vmatpush3.msra.mxu0 %v21326_v0  ;;  %18484 = vmatprep.mubr.msk.f32.mxu0 %vm21274_vm0, %v21273_v1 }
 0x367   :  { %18478 = vmatprep.subr.mxu0 %v21273_v1 }
 0x368   :  { %18479 = vmatpush3.msra.mxu0 %v21329_v2 }
 0x369   :  { %18480 = vmatprep.subr.mxu0 %v21273_v1 }
 0x36a   :  { %18481 = vmatpush3.msra.mxu0 %v21336_v3 }
 0x36b   :  { %18482 = vmatprep.subr.mxu0 %v21273_v1 }
 0x36c   :  { %18483 = vmatpush3.msra.mxu0 %v21342_v4 }
 0x36d   :  { %18498 = vmatprep.subr.mxu0 %v21273_v1 }
 0x425   :  { %v476_v31 = vpop.f32.mrf.mxu0 }
 0x426   :  { %v477_v32 = vadd.f32 %v21381_v10, %v476_v31 }
 0x427   :  { %v18464_v33 = vpop.f32.mrf.mxu0 }
 0x428   :  { %20890 = vtanh.f32 %v477_v32 }
 0x435   :  { %v20891_v34 = vpop.eup %20890 }
 0x436   :  { %18474 = vmatmul.mubr.msk.f32.vlgmr.msra.gmra.mxu1 %vm107_vm1, %v20891_v34 }
 0x437   :  { %18488 = vmatpush3.msra.mxu1 %v21362_v6  ;;  %18495 = vmatprep.mubr.msk.f32.mxu1 %vm21274_vm0, %v21273_v1 }
 0x438   :  { %18489 = vmatprep.subr.mxu1 %v21273_v1 }
 0x439   :  { %18490 = vmatpush3.msra.mxu1 %v21364_v7 }
 0x43a   :  { %18491 = vmatprep.subr.mxu1 %v21273_v1 }
 0x43b   :  { %18492 = vmatpush3.msra.mxu1 %v21368_v8 }
 0x43c   :  { %18493 = vmatprep.subr.mxu1 %v21273_v1 }
 0x43d   :  { %18494 = vmatpush3.msra.mxu1 %v21372_v9 }
 0x43e   :  { %18509 = vmatprep.subr.mxu1 %v21273_v1 }
 0x4f6   :  { %v550_v36 = vpop.f32.mrf.mxu1 }
 0x4f7   :  { %v551_v38 = vadd.f32 %v21404_v15, %v550_v36 }
 0x4f8   :  { %v18475_v39 = vpop.f32.mrf.mxu1 }
 0x4f9   :  { %v555_v41 = vmul.f32 %v21464_v37, %v551_v38  ;;  %v706_v42 = vmul.f32 2.0, %v551_v38 }
 0x4fb   :  { %v556_v43 = vadd.f32 %v555_v41, %v21345_v5  ;;  %v707_v44 = vadd.f32 %v706_v42, %v705_v40 }
 0x4fd   :  { %18485 = vmatmul.mubr.msk.f32.vlgmr.msra.gmra.mxu0 %vm107_vm1, %v556_v43 }
 0x4fe   :  { %18499 = vmatpush3.msra.mxu0 %v21326_v0  ;;  %18506 = vmatprep.mubr.msk.f32.mxu0 %vm21274_vm0, %v21273_v1 }
 0x4ff   :  { %18500 = vmatprep.subr.mxu0 %v21273_v1 }
 0x500   :  { %18501 = vmatpush3.msra.mxu0 %v21329_v2 }
 0x501   :  { %18502 = vmatprep.subr.mxu0 %v21273_v1 }
 0x502   :  { %18503 = vmatpush3.msra.mxu0 %v21336_v3 }
 0x503   :  { %18504 = vmatprep.subr.mxu0 %v21273_v1 }
 0x504   :  { %18505 = vmatpush3.msra.mxu0 %v21342_v4 }
 0x505   :  { %18520 = vmatprep.subr.mxu0 %v21273_v1 }
 0x5bd   :  { %v626_v45 = vpop.f32.mrf.mxu0 }
 0x5be   :  { %v627_v46 = vadd.f32 %v21381_v10, %v626_v45 }
 0x5bf   :  { %v18486_v47 = vpop.f32.mrf.mxu0 }
 0x5c0   :  { %20892 = vtanh.f32 %v627_v46 }
 0x5cd   :  { %v20893_v48 = vpop.eup %20892 }
 0x5ce   :  { %18496 = vmatmul.mubr.msk.f32.vlgmr.msra.gmra.mxu1 %vm107_vm1, %v20893_v48 }
 0x5cf   :  { %18510 = vmatpush3.msra.mxu1 %v21362_v6  ;;  %18517 = vmatprep.mubr.msk.f32.mxu1 %vm21274_vm0, %v21273_v1 }
 0x5d0   :  { %18511 = vmatprep.subr.mxu1 %v21273_v1 }
 0x5d1   :  { %18512 = vmatpush3.msra.mxu1 %v21364_v7 }
 0x5d2   :  { %18513 = vmatprep.subr.mxu1 %v21273_v1 }
 0x5d3   :  { %18514 = vmatpush3.msra.mxu1 %v21368_v8 }
 0x5d4   :  { %18515 = vmatprep.subr.mxu1 %v21273_v1 }
 0x5d5   :  { %18516 = vmatpush3.msra.mxu1 %v21372_v9 }
 0x5d6   :  { %18531 = vmatprep.subr.mxu1 %v21273_v1 }
 0x68e   :  { %v700_v49 = vpop.f32.mrf.mxu1 }
 0x68f   :  { %v701_v50 = vadd.f32 %v21404_v15, %v700_v49 }
 0x690   :  { %v18497_v52 = vpop.f32.mrf.mxu1 }
 0x691   :  { %v708_v53 = vadd.f32 %v707_v44, %v701_v50 }
 0x693   :  { %v710_v54 = vmul.f32 %v21495_v51, %v708_v53 }
 0x695   :  { %v21499_v55 = vadd.f32 %v710_v54, %v21345_v5 }
 0x697   :  { %18507 = vmatmul.mubr.msk.f32.vlgmr.msra.gmra.mxu0 %vm107_vm1, %v21499_v55 }
 0x698   :  { %18521 = vmatpush3.msra.mxu0 %v21326_v0  ;;  %18528 = vmatprep.mubr.msk.f32.mxu0 %vm21274_vm0, %v21273_v1 }
 0x699   :  { %18522 = vmatprep.subr.mxu0 %v21273_v1 }
 0x69a   :  { %18523 = vmatpush3.msra.mxu0 %v21329_v2 }
 0x69b   :  { %18524 = vmatprep.subr.mxu0 %v21273_v1 }
 0x69c   :  { %18525 = vmatpush3.msra.mxu0 %v21336_v3 }
 0x69d   :  { %18526 = vmatprep.subr.mxu0 %v21273_v1 }
 0x69e   :  { %18527 = vmatpush3.msra.mxu0 %v21342_v4 }
 0x69f   :  { %18542 = vmatprep.subr.mxu0 %v21273_v1 }
 0x757   :  { %v781_v56 = vpop.f32.mrf.mxu0 }
 0x758   :  { %v782_v57 = vadd.f32 %v21381_v10, %v781_v56 }
 0x759   :  { %v18508_v58 = vpop.f32.mrf.mxu0 }
 0x75a   :  { %20894 = vtanh.f32 %v782_v57 }
 0x767   :  { %v20895_v59 = vpop.eup %20894 }
 0x768   :  { %18518 = vmatmul.mubr.msk.f32.vlgmr.msra.gmra.mxu1 %vm107_vm1, %v20895_v59 }
 0x769   :  { %18532 = vmatpush3.msra.mxu1 %v21362_v6  ;;  %18539 = vmatprep.mubr.msk.f32.mxu1 %vm21274_vm0, %v21273_v1 }
 0x76a   :  { %18533 = vmatprep.subr.mxu1 %v21273_v1 }
 0x76b   :  { %18534 = vmatpush3.msra.mxu1 %v21364_v7 }
 0x76c   :  { %18535 = vmatprep.subr.mxu1 %v21273_v1 }
 0x76d   :  { %18536 = vmatpush3.msra.mxu1 %v21368_v8 }
 0x76e   :  { %18537 = vmatprep.subr.mxu1 %v21273_v1 }
 0x76f   :  { %18538 = vmatpush3.msra.mxu1 %v21372_v9 }
 0x770   :  { %18553 = vmatprep.subr.mxu1 %v21273_v1 }
 0x828   :  { %v855_v60 = vpop.f32.mrf.mxu1 }
 0x829   :  { %v21526_v61 = vadd.f32 %v21404_v15, %v855_v60 }
 0x82a   :  { %v18519_v62 = vpop.f32.mrf.mxu1 }
 0x82b   :  { %v859_v63 = vmul.f32 %v21526_v61, %v21406_v17 }
 0x82d   :  { %v860_v5 = vadd.f32 %v859_v63, %v21499_v55 }
 0x82f   :  { %18529 = vmatmul.mubr.msk.f32.vlgmr.msra.gmra.mxu0 %vm107_vm1, %v860_v5 }
 0x830   :  { %18543 = vmatpush3.msra.mxu0 %v21326_v0  ;;  %18550 = vmatprep.mubr.msk.f32.mxu0 %vm21274_vm0, %v21273_v1 }
 0x831   :  { %18544 = vmatprep.subr.mxu0 %v21273_v1 }
 0x832   :  { %18545 = vmatpush3.msra.mxu0 %v21329_v2 }
 0x833   :  { %18546 = vmatprep.subr.mxu0 %v21273_v1 }
 0x834   :  { %18547 = vmatpush3.msra.mxu0 %v21336_v3 }
 0x835   :  { %18548 = vmatprep.subr.mxu0 %v21273_v1 }
 0x836   :  { %18549 = vmatpush3.msra.mxu0 %v21342_v4 }
 0x837   :  { %18564 = vmatprep.subr.mxu0 %v21273_v1 }
 0x8ef   :  { %v930_v11 = vpop.f32.mrf.mxu0 }
 0x8f0   :  { %v931_v12 = vadd.f32 %v21381_v10, %v930_v11 }
 0x8f1   :  { %v18530_v13 = vpop.f32.mrf.mxu0 }
 0x8f2   :  { %20896 = vtanh.f32 %v931_v12 }
 0x8ff   :  { %v20897_v14 = vpop.eup %20896 }
 0x900   :  { %18540 = vmatmul.mubr.msk.f32.vlgmr.msra.gmra.mxu1 %vm107_vm1, %v20897_v14 }
 0x901   :  { %18554 = vmatpush3.msra.mxu1 %v21362_v6  ;;  %18561 = vmatprep.mubr.msk.f32.mxu1 %vm21274_vm0, %v21273_v1 }
 0x902   :  { %18555 = vmatprep.subr.mxu1 %v21273_v1 }
 0x903   :  { %18556 = vmatpush3.msra.mxu1 %v21364_v7 }
 0x904   :  { %18557 = vmatprep.subr.mxu1 %v21273_v1 }
 0x905   :  { %18558 = vmatpush3.msra.mxu1 %v21368_v8 }
 0x906   :  { %18559 = vmatprep.subr.mxu1 %v21273_v1 }
 0x907   :  { %18560 = vmatpush3.msra.mxu1 %v21372_v9 }
 0x908   :  { %18575 = vmatprep.subr.mxu1 %v21273_v1 }
 0x9c0   :  { %v1004_v16 = vpop.f32.mrf.mxu1 }
 0x9c1   :  { %v1005_v18 = vadd.f32 %v21404_v15, %v1004_v16 }
 0x9c2   :  { %v18541_v19 = vpop.f32.mrf.mxu1 }
 0x9c3   :  { %v1008_v20 = vmul.f32 %v1005_v18, %v21406_v17  ;;  %v1306_v26 = vmul.f32 2.0, %v1005_v18 }
 0x9c5   :  { %v1009_v21 = vadd.f32 %v1008_v20, %v21499_v55  ;;  %v1307_v30 = vadd.f32 %v1306_v26, %v21526_v61 }
 0x9c7   :  { %18551 = vmatmul.mubr.msk.f32.vlgmr.msra.gmra.mxu0 %vm107_vm1, %v1009_v21 }
 0x9c8   :  { %18565 = vmatpush3.msra.mxu0 %v21326_v0  ;;  %18572 = vmatprep.mubr.msk.f32.mxu0 %vm21274_vm0, %v21273_v1 }
 0x9c9   :  { %18566 = vmatprep.subr.mxu0 %v21273_v1 }
 0x9ca   :  { %18567 = vmatpush3.msra.mxu0 %v21329_v2 }
 0x9cb   :  { %18568 = vmatprep.subr.mxu0 %v21273_v1 }
 0x9cc   :  { %18569 = vmatpush3.msra.mxu0 %v21336_v3 }
 0x9cd   :  { %18570 = vmatprep.subr.mxu0 %v21273_v1 }
 0x9ce   :  { %18571 = vmatpush3.msra.mxu0 %v21342_v4 }
 0x9cf   :  { %18586 = vmatprep.subr.mxu0 %v21273_v1 }
 0xa87   :  { %v1079_v22 = vpop.f32.mrf.mxu0 }
 0xa88   :  { %v1080_v23 = vadd.f32 %v21381_v10, %v1079_v22 }
 0xa89   :  { %v18552_v24 = vpop.f32.mrf.mxu0 }
 0xa8a   :  { %20898 = vtanh.f32 %v1080_v23 }
 0xa97   :  { %v20899_v25 = vpop.eup %20898 }
 0xa98   :  { %18562 = vmatmul.mubr.msk.f32.vlgmr.msra.gmra.mxu1 %vm107_vm1, %v20899_v25 }
 0xa99   :  { %18576 = vmatpush3.msra.mxu1 %v21362_v6  ;;  %18583 = vmatprep.mubr.msk.f32.mxu1 %vm21274_vm0, %v21273_v1 }
 0xa9a   :  { %18577 = vmatprep.subr.mxu1 %v21273_v1 }
 0xa9b   :  { %18578 = vmatpush3.msra.mxu1 %v21364_v7 }
 0xa9c   :  { %18579 = vmatprep.subr.mxu1 %v21273_v1 }
 0xa9d   :  { %18580 = vmatpush3.msra.mxu1 %v21368_v8 }
 0xa9e   :  { %18581 = vmatprep.subr.mxu1 %v21273_v1 }
 0xa9f   :  { %18582 = vmatpush3.msra.mxu1 %v21372_v9 }
 0xaa0   :  { %18597 = vmatprep.subr.mxu1 %v21273_v1 }
 0xb58   :  { %v1153_v27 = vpop.f32.mrf.mxu1 }
 0xb59   :  { %v1154_v28 = vadd.f32 %v21404_v15, %v1153_v27 }
 0xb5a   :  { %v18563_v29 = vpop.f32.mrf.mxu1 }
 0xb5b   :  { %v1157_v31 = vmul.f32 %v1154_v28, %v21464_v37  ;;  %v1308_v32 = vmul.f32 2.0, %v1154_v28 }
 0xb5d   :  { %v1158_v33 = vadd.f32 %v1157_v31, %v21499_v55  ;;  %v1309_v34 = vadd.f32 %v1308_v32, %v1307_v30 }
 0xb5f   :  { %18573 = vmatmul.mubr.msk.f32.vlgmr.msra.gmra.mxu0 %vm107_vm1, %v1158_v33 }
 0xb60   :  { %18587 = vmatpush3.msra.mxu0 %v21326_v0  ;;  %18594 = vmatprep.mubr.msk.f32.mxu0 %vm21274_vm0, %v21273_v1 }
 0xb61   :  { %18588 = vmatprep.subr.mxu0 %v21273_v1 }
 0xb62   :  { %18589 = vmatpush3.msra.mxu0 %v21329_v2 }
 0xb63   :  { %18590 = vmatprep.subr.mxu0 %v21273_v1 }
 0xb64   :  { %18591 = vmatpush3.msra.mxu0 %v21336_v3 }
 0xb65   :  { %18592 = vmatprep.subr.mxu0 %v21273_v1 }
 0xb66   :  { %18593 = vmatpush3.msra.mxu0 %v21342_v4 }
 0xb67   :  { %18608 = vmatprep.subr.mxu0 %v21273_v1 }
 0xc1f   :  { %v1228_v35 = vpop.f32.mrf.mxu0 }
 0xc20   :  { %v1229_v36 = vadd.f32 %v21381_v10, %v1228_v35 }
 0xc21   :  { %v18574_v38 = vpop.f32.mrf.mxu0 }
 0xc22   :  { %20900 = vtanh.f32 %v1229_v36 }
 0xc2f   :  { %v20901_v39 = vpop.eup %20900 }
 0xc30   :  { %18584 = vmatmul.mubr.msk.f32.vlgmr.msra.gmra.mxu1 %vm107_vm1, %v20901_v39 }
 0xc31   :  { %18598 = vmatpush3.msra.mxu1 %v21362_v6  ;;  %18605 = vmatprep.mubr.msk.f32.mxu1 %vm21274_vm0, %v21273_v1 }
 0xc32   :  { %18599 = vmatprep.subr.mxu1 %v21273_v1 }
 0xc33   :  { %18600 = vmatpush3.msra.mxu1 %v21364_v7 }
 0xc34   :  { %18601 = vmatprep.subr.mxu1 %v21273_v1 }
 0xc35   :  { %18602 = vmatpush3.msra.mxu1 %v21368_v8 }
 0xc36   :  { %18603 = vmatprep.subr.mxu1 %v21273_v1 }
 0xc37   :  { %18604 = vmatpush3.msra.mxu1 %v21372_v9 }
 0xc38   :  { %18619 = vmatprep.subr.mxu1 %v21273_v1 }
 0xcf0   :  { %v1302_v40 = vpop.f32.mrf.mxu1 }
 0xcf1   :  { %v1303_v41 = vadd.f32 %v21404_v15, %v1302_v40 }
 0xcf2   :  { %v18585_v42 = vpop.f32.mrf.mxu1 }
 0xcf3   :  { %v1310_v43 = vadd.f32 %v1309_v34, %v1303_v41 }
 0xcf5   :  { %v1311_v44 = vmul.f32 %v1310_v43, %v21495_v51 }
 0xcf7   :  { %v21610_v45 = vadd.f32 %v1311_v44, %v21499_v55 }
 0xcf9   :  { %18595 = vmatmul.mubr.msk.f32.vlgmr.msra.gmra.mxu0 %vm107_vm1, %v21610_v45 }
 0xcfa   :  { %18609 = vmatpush3.msra.mxu0 %v21326_v0  ;;  %18616 = vmatprep.mubr.msk.f32.mxu0 %vm21274_vm0, %v21273_v1 }
 0xcfb   :  { %18610 = vmatprep.subr.mxu0 %v21273_v1 }
 0xcfc   :  { %18611 = vmatpush3.msra.mxu0 %v21329_v2 }
 0xcfd   :  { %18612 = vmatprep.subr.mxu0 %v21273_v1 }
 0xcfe   :  { %18613 = vmatpush3.msra.mxu0 %v21336_v3 }
 0xcff   :  { %18614 = vmatprep.subr.mxu0 %v21273_v1 }
 0xd00   :  { %18615 = vmatpush3.msra.mxu0 %v21342_v4 }
 0xd01   :  { %18630 = vmatprep.subr.mxu0 %v21273_v1 }
 0xdb9   :  { %v1382_v46 = vpop.f32.mrf.mxu0 }
 0xdba   :  { %v1383_v47 = vadd.f32 %v21381_v10, %v1382_v46 }
 0xdbb   :  { %v18596_v48 = vpop.f32.mrf.mxu0 }
 0xdbc   :  { %20902 = vtanh.f32 %v1383_v47 }
 0xdc9   :  { %v20903_v49 = vpop.eup %20902 }
 0xdca   :  { %18606 = vmatmul.mubr.msk.f32.vlgmr.msra.gmra.mxu1 %vm107_vm1, %v20903_v49 }
 0xdcb   :  { %18620 = vmatpush3.msra.mxu1 %v21362_v6  ;;  %18627 = vmatprep.mubr.msk.f32.mxu1 %vm21274_vm0, %v21273_v1 }
 0xdcc   :  { %18621 = vmatprep.subr.mxu1 %v21273_v1 }
 0xdcd   :  { %18622 = vmatpush3.msra.mxu1 %v21364_v7 }
 0xdce   :  { %18623 = vmatprep.subr.mxu1 %v21273_v1 }
 0xdcf   :  { %18624 = vmatpush3.msra.mxu1 %v21368_v8 }
 0xdd0   :  { %18625 = vmatprep.subr.mxu1 %v21273_v1 }
 0xdd1   :  { %18626 = vmatpush3.msra.mxu1 %v21372_v9 }
 0xdd2   :  { %18641 = vmatprep.subr.mxu1 %v21273_v1 }
 0xe8a   :  { %v1456_v50 = vpop.f32.mrf.mxu1 }
 0xe8b   :  { %v21637_v52 = vadd.f32 %v21404_v15, %v1456_v50 }
 0xe8c   :  { %v18607_v53 = vpop.f32.mrf.mxu1 }
 0xe8d   :  { %v1460_v54 = vmul.f32 %v21637_v52, %v21406_v17 }
 0xe8f   :  { %v1461_v55 = vadd.f32 %v1460_v54, %v21610_v45 }
 0xe91   :  { %18617 = vmatmul.mubr.msk.f32.vlgmr.msra.gmra.mxu0 %vm107_vm1, %v1461_v55 }
 0xe92   :  { %18631 = vmatpush3.msra.mxu0 %v21326_v0  ;;  %18638 = vmatprep.mubr.msk.f32.mxu0 %vm21274_vm0, %v21273_v1 }
 0xe93   :  { %18632 = vmatprep.subr.mxu0 %v21273_v1 }
 0xe94   :  { %18633 = vmatpush3.msra.mxu0 %v21329_v2 }
 0xe95   :  { %18634 = vmatprep.subr.mxu0 %v21273_v1 }
 0xe96   :  { %18635 = vmatpush3.msra.mxu0 %v21336_v3 }
 0xe97   :  { %18636 = vmatprep.subr.mxu0 %v21273_v1 }
 0xe98   :  { %18637 = vmatpush3.msra.mxu0 %v21342_v4 }
 0xe99   :  { %18652 = vmatprep.subr.mxu0 %v21273_v1 }
 0xf51   :  { %v1531_v56 = vpop.f32.mrf.mxu0 }
 0xf52   :  { %v1532_v57 = vadd.f32 %v21381_v10, %v1531_v56 }
 0xf53   :  { %v18618_v58 = vpop.f32.mrf.mxu0 }
 0xf54   :  { %20904 = vtanh.f32 %v1532_v57 }
 0xf61   :  { %v20905_v59 = vpop.eup %20904 }
 0xf62   :  { %18628 = vmatmul.mubr.msk.f32.vlgmr.msra.gmra.mxu1 %vm107_vm1, %v20905_v59 }
 0xf63   :  { %18642 = vmatpush3.msra.mxu1 %v21362_v6  ;;  %18649 = vmatprep.mubr.msk.f32.mxu1 %vm21274_vm0, %v21273_v1 }
 0xf64   :  { %18643 = vmatprep.subr.mxu1 %v21273_v1 }
 0xf65   :  { %18644 = vmatpush3.msra.mxu1 %v21364_v7 }
 0xf66   :  { %18645 = vmatprep.subr.mxu1 %v21273_v1 }
 0xf67   :  { %18646 = vmatpush3.msra.mxu1 %v21368_v8 }
 0xf68   :  { %18647 = vmatprep.subr.mxu1 %v21273_v1 }
 0xf69   :  { %18648 = vmatpush3.msra.mxu1 %v21372_v9 }
 0xf6a   :  { %18663 = vmatprep.subr.mxu1 %v21273_v1 }
0x1022   :  { %v1605_v60 = vpop.f32.mrf.mxu1 }
0x1023   :  { %v1606_v61 = vadd.f32 %v21404_v15, %v1605_v60 }
0x1024   :  { %v18629_v62 = vpop.f32.mrf.mxu1 }
0x1025   :  { %v1609_v63 = vmul.f32 %v1606_v61, %v21406_v17  ;;  %v1907_v16 = vmul.f32 2.0, %v1606_v61 }
0x1027   :  { %v1610_v5 = vadd.f32 %v1609_v63, %v21610_v45  ;;  %v1908_v21 = vadd.f32 %v1907_v16, %v21637_v52 }
0x1029   :  { %18639 = vmatmul.mubr.msk.f32.vlgmr.msra.gmra.mxu0 %vm107_vm1, %v1610_v5 }
0x102a   :  { %18653 = vmatpush3.msra.mxu0 %v21326_v0  ;;  %18660 = vmatprep.mubr.msk.f32.mxu0 %vm21274_vm0, %v21273_v1 }
0x102b   :  { %18654 = vmatprep.subr.mxu0 %v21273_v1 }
0x102c   :  { %18655 = vmatpush3.msra.mxu0 %v21329_v2 }
0x102d   :  { %18656 = vmatprep.subr.mxu0 %v21273_v1 }
0x102e   :  { %18657 = vmatpush3.msra.mxu0 %v21336_v3 }
0x102f   :  { %18658 = vmatprep.subr.mxu0 %v21273_v1 }
0x1030   :  { %18659 = vmatpush3.msra.mxu0 %v21342_v4 }
0x1031   :  { %18674 = vmatprep.subr.mxu0 %v21273_v1 }
0x10e9   :  { %v1680_v11 = vpop.f32.mrf.mxu0 }
0x10ea   :  { %v1681_v12 = vadd.f32 %v21381_v10, %v1680_v11 }
0x10eb   :  { %v18640_v13 = vpop.f32.mrf.mxu0 }
0x10ec   :  { %20906 = vtanh.f32 %v1681_v12  ;;  %v21807_v12 = vld [vmem:[#allocation7 + $0x18] sm:$0xff]  ;;  %v21813_v13 = vld [vmem:[#allocation7 + $0x10] sm:$0xff] }
0x10f9   :  { %v20907_v14 = vpop.eup %20906 }
0x10fa   :  { %18650 = vmatmul.mubr.msk.f32.vlgmr.msra.gmra.mxu1 %vm107_vm1, %v20907_v14 }
0x10fb   :  { %18664 = vmatpush3.msra.mxu1 %v21362_v6  ;;  %18671 = vmatprep.mubr.msk.f32.mxu1 %vm21274_vm0, %v21273_v1 }
0x10fc   :  { %18665 = vmatprep.subr.mxu1 %v21273_v1 }
0x10fd   :  { %18666 = vmatpush3.msra.mxu1 %v21364_v7 }
0x10fe   :  { %18667 = vmatprep.subr.mxu1 %v21273_v1 }
0x10ff   :  { %18668 = vmatpush3.msra.mxu1 %v21368_v8 }
0x1100   :  { %18669 = vmatprep.subr.mxu1 %v21273_v1 }
0x1101   :  { %18670 = vmatpush3.msra.mxu1 %v21372_v9 }
0x1102   :  { %18685 = vmatprep.subr.mxu1 %v21273_v1 }
0x11ba   :  { %v1754_v18 = vpop.f32.mrf.mxu1 }
0x11bb   :  { %v1755_v19 = vadd.f32 %v21404_v15, %v1754_v18 }
0x11bc   :  { %v18651_v20 = vpop.f32.mrf.mxu1 }
0x11bd   :  { %v1758_v22 = vmul.f32 %v1755_v19, %v21464_v37  ;;  %v1909_v23 = vmul.f32 2.0, %v1755_v19 }
0x11bf   :  { %v1759_v24 = vadd.f32 %v1758_v22, %v21610_v45  ;;  %v1910_v25 = vadd.f32 %v1909_v23, %v1908_v21  ;;  %v21863_v23 = vld [vmem:[#allocation9 + $0x18] sm:$0xff] }
0x11c1   :  { %18661 = vmatmul.mubr.msk.f32.vlgmr.msra.gmra.mxu0 %vm107_vm1, %v1759_v24  ;;  %v21869_v24 = vld [vmem:[#allocation9 + $0x10] sm:$0xff] }
0x11c2   :  { %18675 = vmatpush3.msra.mxu0 %v21326_v0  ;;  %18682 = vmatprep.mubr.msk.f32.mxu0 %vm21274_vm0, %v21273_v1 }
0x11c3   :  { %18676 = vmatprep.subr.mxu0 %v21273_v1 }
0x11c4   :  { %18677 = vmatpush3.msra.mxu0 %v21329_v2 }
0x11c5   :  { %18678 = vmatprep.subr.mxu0 %v21273_v1 }
0x11c6   :  { %18679 = vmatpush3.msra.mxu0 %v21336_v3 }
0x11c7   :  { %18680 = vmatprep.subr.mxu0 %v21273_v1 }
0x11c8   :  { %18681 = vmatpush3.msra.mxu0 %v21342_v4 }
0x11c9   :  { %18696 = vmatprep.subr.mxu0 %v21273_v1 }
0x1281   :  { %v1829_v26 = vpop.f32.mrf.mxu0 }
0x1282   :  { %v1830_v27 = vadd.f32 %v21381_v10, %v1829_v26  ;;  %v21877_v26 = vld [vmem:[#allocation9] sm:$0xff] }
0x1283   :  { %v18662_v28 = vpop.f32.mrf.mxu0 }
0x1284   :  { %20908 = vtanh.f32 %v1830_v27  ;;  %v21888_v28 = vstv %s2520_s29 }
0x1291   :  { %v20909_v29 = vpop.eup %20908 }
0x1292   :  { %18672 = vmatmul.mubr.msk.f32.vlgmr.msra.gmra.mxu1 %vm107_vm1, %v20909_v29  ;;  %v21893_v29 = vld [vmem:[%s24742_s5] ss:$0 sm:$0xff] }
0x1293   :  { %18686 = vmatpush3.msra.mxu1 %v21362_v6  ;;  %18693 = vmatprep.mubr.msk.f32.mxu1 %vm21274_vm0, %v21273_v1 }
0x1294   :  { %18687 = vmatprep.subr.mxu1 %v21273_v1 }
0x1295   :  { %18688 = vmatpush3.msra.mxu1 %v21364_v7 }
0x1296   :  { %18689 = vmatprep.subr.mxu1 %v21273_v1 }
0x1297   :  { %18690 = vmatpush3.msra.mxu1 %v21368_v8 }
0x1298   :  { %18691 = vmatprep.subr.mxu1 %v21273_v1 }
0x1299   :  { %18692 = vmatpush3.msra.mxu1 %v21372_v9 }
0x129a   :  { %18707 = vmatprep.subr.mxu1 %v21273_v1 }
0x1352   :  { %v1903_v30 = vpop.f32.mrf.mxu1 }
0x1353   :  { %v1904_v31 = vadd.f32 %v21404_v15, %v1903_v30 }
0x1354   :  { %v18673_v32 = vpop.f32.mrf.mxu1 }
0x1355   :  { %v1911_v33 = vadd.f32 %v1910_v25, %v1904_v31  ;;  %v21873_v25 = vld [vmem:[#allocation9 + $0x8] sm:$0xff] }
0x1357   :  { %v1912_v34 = vmul.f32 %v1911_v33, %v21495_v51 }
0x1359   :  { %v21721_v35 = vadd.f32 %v1912_v34, %v21610_v45 }
0x135b   :  { %18683 = vmatmul.mubr.msk.f32.vlgmr.msra.gmra.mxu0 %vm107_vm1, %v21721_v35 }
0x135c   :  { %18697 = vmatpush3.msra.mxu0 %v21326_v0  ;;  %18704 = vmatprep.mubr.msk.f32.mxu0 %vm21274_vm0, %v21273_v1 }
0x135d   :  { %18698 = vmatprep.subr.mxu0 %v21273_v1 }
0x135e   :  { %18699 = vmatpush3.msra.mxu0 %v21329_v2 }
0x135f   :  { %18700 = vmatprep.subr.mxu0 %v21273_v1 }
0x1360   :  { %18701 = vmatpush3.msra.mxu0 %v21336_v3 }
0x1361   :  { %18702 = vmatprep.subr.mxu0 %v21273_v1 }
0x1362   :  { %18703 = vmatpush3.msra.mxu0 %v21342_v4 }
0x1363   :  { %18718 = vmatprep.subr.mxu0 %v21273_v1 }
0x141b   :  { %v1983_v36 = vpop.f32.mrf.mxu0 }
0x141c   :  { %v1984_v38 = vadd.f32 %v21381_v10, %v1983_v36 }
0x141d   :  { %v18684_v39 = vpop.f32.mrf.mxu0 }
0x141e   :  { %20910 = vtanh.f32 %v1984_v38 }
0x142b   :  { %v20911_v40 = vpop.eup %20910 }
0x142c   :  { %18694 = vmatmul.mubr.msk.f32.vlgmr.msra.gmra.mxu1 %vm107_vm1, %v20911_v40 }
0x142d   :  { %18708 = vmatpush3.msra.mxu1 %v21362_v6  ;;  %18715 = vmatprep.mubr.msk.f32.mxu1 %vm21274_vm0, %v21273_v1 }
0x142e   :  { %18709 = vmatprep.subr.mxu1 %v21273_v1 }
0x142f   :  { %18710 = vmatpush3.msra.mxu1 %v21364_v7 }
0x1430   :  { %18711 = vmatprep.subr.mxu1 %v21273_v1 }
0x1431   :  { %18712 = vmatpush3.msra.mxu1 %v21368_v8 }
0x1432   :  { %18713 = vmatprep.subr.mxu1 %v21273_v1 }
0x1433   :  { %18714 = vmatpush3.msra.mxu1 %v21372_v9 }
0x1434   :  { %18729 = vmatprep.subr.mxu1 %v21273_v1 }
0x14ec   :  { %v2057_v41 = vpop.f32.mrf.mxu1 }
0x14ed   :  { %v21748_v42 = vadd.f32 %v21404_v15, %v2057_v41 }
0x14ee   :  { %v18695_v43 = vpop.f32.mrf.mxu1 }
0x14ef   :  { %v2061_v44 = vmul.f32 %v21748_v42, %v21406_v17 }
0x14f1   :  { %v2062_v45 = vadd.f32 %v2061_v44, %v21721_v35 }
0x14f3   :  { %18705 = vmatmul.mubr.msk.f32.vlgmr.msra.gmra.mxu0 %vm107_vm1, %v2062_v45 }
0x14f4   :  { %18719 = vmatpush3.msra.mxu0 %v21326_v0  ;;  %18726 = vmatprep.mubr.msk.f32.mxu0 %vm21274_vm0, %v21273_v1 }
0x14f5   :  { %18720 = vmatprep.subr.mxu0 %v21273_v1 }
0x14f6   :  { %18721 = vmatpush3.msra.mxu0 %v21329_v2 }
0x14f7   :  { %18722 = vmatprep.subr.mxu0 %v21273_v1 }
0x14f8   :  { %18723 = vmatpush3.msra.mxu0 %v21336_v3 }
0x14f9   :  { %18724 = vmatprep.subr.mxu0 %v21273_v1 }
0x14fa   :  { %18725 = vmatpush3.msra.mxu0 %v21342_v4 }
0x14fb   :  { %18740 = vmatprep.subr.mxu0 %v21273_v1 }
0x15b3   :  { %v2132_v46 = vpop.f32.mrf.mxu0 }
0x15b4   :  { %v2133_v47 = vadd.f32 %v21381_v10, %v2132_v46 }
0x15b5   :  { %v18706_v48 = vpop.f32.mrf.mxu0 }
0x15b6   :  { %20912 = vtanh.f32 %v2133_v47 }
0x15c3   :  { %v20913_v49 = vpop.eup %20912 }
0x15c4   :  { %18716 = vmatmul.mubr.msk.f32.vlgmr.msra.gmra.mxu1 %vm107_vm1, %v20913_v49 }
0x15c5   :  { %18730 = vmatpush3.msra.mxu1 %v21362_v6  ;;  %18737 = vmatprep.mubr.msk.f32.mxu1 %vm21274_vm0, %v21273_v1 }
0x15c6   :  { %18731 = vmatprep.subr.mxu1 %v21273_v1 }
0x15c7   :  { %18732 = vmatpush3.msra.mxu1 %v21364_v7 }
0x15c8   :  { %18733 = vmatprep.subr.mxu1 %v21273_v1 }
0x15c9   :  { %18734 = vmatpush3.msra.mxu1 %v21368_v8 }
0x15ca   :  { %18735 = vmatprep.subr.mxu1 %v21273_v1 }
0x15cb   :  { %18736 = vmatpush3.msra.mxu1 %v21372_v9 }
0x15cc   :  { %18751 = vmatprep.subr.mxu1 %v21273_v1 }
0x1684   :  { %v2206_v50 = vpop.f32.mrf.mxu1 }
0x1685   :  { %v2207_v52 = vadd.f32 %v21404_v15, %v2206_v50  ;;  %v21951_v50 = vstv %s21885_s28  ;;  %s9768_s28 = smul.f32 0.5, %s23321_s27 }
0x1686   :  { %v18717_v53 = vpop.f32.mrf.mxu1 }
0x1687   :  { %v2210_v54 = vmul.f32 %v2207_v52, %v21406_v17 }
0x1689   :  { %v2211_v55 = vadd.f32 %v2210_v54, %v21721_v35 }
0x168b   :  { %18727 = vmatmul.mubr.msk.f32.vlgmr.msra.gmra.mxu0 %vm107_vm1, %v2211_v55 }
0x168c   :  { %18741 = vmatpush3.msra.mxu0 %v21326_v0  ;;  %18748 = vmatprep.mubr.msk.f32.mxu0 %vm21274_vm0, %v21273_v1 }
0x168d   :  { %18742 = vmatprep.subr.mxu0 %v21273_v1 }
0x168e   :  { %18743 = vmatpush3.msra.mxu0 %v21329_v2  ;;  %v2508_v2 = vmul.f32 2.0, %v2207_v52 }
0x168f   :  { %18744 = vmatprep.subr.mxu0 %v21273_v1 }
0x1690   :  { %18745 = vmatpush3.msra.mxu0 %v21336_v3  ;;  %v2509_v61 = vadd.f32 %v2508_v2, %v21748_v42 }
0x1691   :  { %18746 = vmatprep.subr.mxu0 %v21273_v1 }
0x1692   :  { %18747 = vmatpush3.msra.mxu0 %v21342_v4 }
0x1693   :  { %18762 = vmatprep.subr.mxu0 %v21273_v1 }
0x174b   :  { %v2281_v17 = vpop.f32.mrf.mxu0 }
0x174c   :  { %v2282_v0 = vadd.f32 %v21381_v10, %v2281_v17 }
0x174d   :  { %v18728_v56 = vpop.f32.mrf.mxu0 }
0x174e   :  { %20914 = vtanh.f32 %v2282_v0 }
0x175b   :  { %v20915_v57 = vpop.eup %20914 }
0x175c   :  { %18738 = vmatmul.mubr.msk.f32.vlgmr.msra.gmra.mxu1 %vm107_vm1, %v20915_v57 }
0x175d   :  { %18752 = vmatpush3.msra.mxu1 %v21362_v6  ;;  %18759 = vmatprep.mubr.msk.f32.mxu1 %vm21274_vm0, %v21273_v1 }
0x175e   :  { %18753 = vmatprep.subr.mxu1 %v21273_v1 }
0x175f   :  { %18754 = vmatpush3.msra.mxu1 %v21364_v7 }
0x1760   :  { %18755 = vmatprep.subr.mxu1 %v21273_v1 }
0x1761   :  { %18756 = vmatpush3.msra.mxu1 %v21368_v8 }
0x1762   :  { %18757 = vmatprep.subr.mxu1 %v21273_v1 }
0x1763   :  { %18758 = vmatpush3.msra.mxu1 %v21372_v9 }
0x1764   :  { %18773 = vmatprep.subr.mxu1 %v21273_v1 }
0x181c   :  { %v2355_v58 = vpop.f32.mrf.mxu1 }
0x181d   :  { %v2356_v59 = vadd.f32 %v21404_v15, %v2355_v58 }
0x181e   :  { %v18739_v60 = vpop.f32.mrf.mxu1 }
0x181f   :  { %v2359_v62 = vmul.f32 %v2356_v59, %v21464_v37  ;;  %v2510_v63 = vmul.f32 2.0, %v2356_v59 }
0x1821   :  { %v2360_v5 = vadd.f32 %v2359_v62, %v21721_v35  ;;  %v2511_v11 = vadd.f32 %v2510_v63, %v2509_v61  ;;  %v21982_v62 = vstv %s2523_s8 }
0x1823   :  { %18749 = vmatmul.mubr.msk.f32.vlgmr.msra.gmra.mxu0 %vm107_vm1, %v2360_v5 }
0x1824   :  { %18763 = vmatpush3.msra.mxu0 %v21807_v12  ;;  %18770 = vmatprep.mubr.msk.f32.mxu0 %vm21274_vm0, %v21273_v1 }
0x1825   :  { %18764 = vmatprep.subr.mxu0 %v21273_v1 }
0x1826   :  { %18765 = vmatpush3.msra.mxu0 %v21813_v13 }
0x1827   :  { %18766 = vmatprep.subr.mxu0 %v21273_v1 }
0x1828   :  { %18767 = vmatpush3.msra.mxu0 %v21336_v3 }
0x1829   :  { %18768 = vmatprep.subr.mxu0 %v21273_v1 }
0x182a   :  { %18769 = vmatpush3.msra.mxu0 %v21342_v4 }
0x182b   :  { %18784 = vmatprep.subr.mxu0 %v21273_v1 }
0x18e3   :  { %v2430_v37 = vpop.f32.mrf.mxu0 }
0x18e4   :  { %v2431_v14 = vadd.f32 %v21381_v10, %v2430_v37 }
0x18e5   :  { %v18750_v16 = vpop.f32.mrf.mxu0 }
0x18e6   :  { %20916 = vtanh.f32 %v2431_v14 }
0x18f3   :  { %v20917_v18 = vpop.eup %20916 }
0x18f4   :  { %18760 = vmatmul.mubr.msk.f32.vlgmr.msra.gmra.mxu1 %vm107_vm1, %v20917_v18 }
0x18f5   :  { %18774 = vmatpush3.msra.mxu1 %v21362_v6  ;;  %18781 = vmatprep.mubr.msk.f32.mxu1 %vm21274_vm0, %v21273_v1 }
0x18f6   :  { %18775 = vmatprep.subr.mxu1 %v21273_v1 }
0x18f7   :  { %18776 = vmatpush3.msra.mxu1 %v21364_v7  ;;  %v21848_v7 = vld [vmem:[#allocation7 + $0x8] sm:$0xff] }
0x18f8   :  { %18777 = vmatprep.subr.mxu1 %v21273_v1 }
0x18f9   :  { %18778 = vmatpush3.msra.mxu1 %v21368_v8  ;;  %v21852_v8 = vld [vmem:[#allocation7] sm:$0xff] }
0x18fa   :  { %18779 = vmatprep.subr.mxu1 %v21273_v1 }
0x18fb   :  { %18780 = vmatpush3.msra.mxu1 %v21372_v9 }
0x18fc   :  { %18795 = vmatprep.subr.mxu1 %v21273_v1 }
0x19b4   :  { %v2504_v3 = vpop.f32.mrf.mxu1 }
0x19b5   :  { %v2505_v4 = vadd.f32 %v21404_v15, %v2504_v3  ;;  %v21859_v15 = vld [vmem:[%s24740_s3] ss:$0 sm:$0xff] }
0x19b6   :  { %v18761_v6 = vpop.f32.mrf.mxu1 }
0x19b7   :  { %v2512_v10 = vadd.f32 %v2511_v11, %v2505_v4 }
0x19b9   :  { %v2513_v19 = vmul.f32 %v2512_v10, %v21495_v51 }
0x19bb   :  { %v21836_v20 = vadd.f32 %v2513_v19, %v21721_v35 }
0x19bd   :  { %17011 = vrot.lane.b32.xlu0 %v21836_v20, %s21275_s23  ;;  %18771 = vmatmul.mubr.msk.f32.vlgmr.msra.gmra.mxu0 %vm107_vm1, %v21836_v20 }
0x19be   :  { %18785 = vmatpush3.msra.mxu0 %v21807_v12  ;;  %18792 = vmatprep.mubr.msk.f32.mxu0 %vm21274_vm0, %v21273_v1 }
0x19bf   :  { %18786 = vmatprep.subr.mxu0 %v21273_v1 }
0x19c0   :  { %18787 = vmatpush3.msra.mxu0 %v21813_v13 }
0x19c1   :  { %18788 = vmatprep.subr.mxu0 %v21273_v1 }
0x19c2   :  { %18789 = vmatpush3.msra.mxu0 %v21848_v7 }
0x19c3   :  { %18790 = vmatprep.subr.mxu0 %v21273_v1 }
0x19c4   :  { %18791 = vmatpush3.msra.mxu0 %v21852_v8 }
0x19c5   :  { %18806 = vmatprep.subr.mxu0 %v21273_v1 }
0x1a7d   :  { %v2593_v9 = vpop.f32.mrf.mxu0 }
0x1a7e   :  { %v2594_v51 = vadd.f32 %v21859_v15, %v2593_v9 }
0x1a7f   :  { %v18772_v21 = vpop.f32.mrf.mxu0 }
0x1a80   :  { %20918 = vtanh.f32 %v2594_v51 }
0x1a8d   :  { %v20919_v22 = vpop.eup %20918 }
0x1a8e   :  { %18782 = vmatmul.mubr.msk.f32.vlgmr.msra.gmra.mxu1 %vm107_vm1, %v20919_v22 }
0x1a8f   :  { %18796 = vmatpush3.msra.mxu1 %v21863_v23  ;;  %18803 = vmatprep.mubr.msk.f32.mxu1 %vm21274_vm0, %v21273_v1 }
0x1a90   :  { %18797 = vmatprep.subr.mxu1 %v21273_v1 }
0x1a91   :  { %18798 = vmatpush3.msra.mxu1 %v21869_v24 }
0x1a92   :  { %18799 = vmatprep.subr.mxu1 %v21273_v1 }
0x1a93   :  { %18800 = vmatpush3.msra.mxu1 %v21873_v25 }
0x1a94   :  { %18801 = vmatprep.subr.mxu1 %v21273_v1 }
0x1a95   :  { %18802 = vmatpush3.msra.mxu1 %v21877_v26 }
0x1a96   :  { %18817 = vmatprep.subr.mxu1 %v21273_v1 }
0x1b4e   :  { %v2667_v27 = vpop.f32.mrf.mxu1 }
0x1b4f   :  { %v21896_v30 = vadd.f32 %v21893_v29, %v2667_v27 }
0x1b50   :  { %v18783_v31 = vpop.f32.mrf.mxu1 }
0x1b51   :  { %v2672_v32 = vmul.f32 %v21888_v28, %v21896_v30 }
0x1b53   :  { %v2673_v33 = vadd.f32 %v2672_v32, %v21836_v20 }
0x1b55   :  { %18793 = vmatmul.mubr.msk.f32.vlgmr.msra.gmra.mxu0 %vm107_vm1, %v2673_v33 }
0x1b56   :  { %18807 = vmatpush3.msra.mxu0 %v21807_v12  ;;  %18814 = vmatprep.mubr.msk.f32.mxu0 %vm21274_vm0, %v21273_v1 }
0x1b57   :  { %18808 = vmatprep.subr.mxu0 %v21273_v1 }
0x1b58   :  { %18809 = vmatpush3.msra.mxu0 %v21813_v13 }
0x1b59   :  { %18810 = vmatprep.subr.mxu0 %v21273_v1 }
0x1b5a   :  { %18811 = vmatpush3.msra.mxu0 %v21848_v7 }
0x1b5b   :  { %18812 = vmatprep.subr.mxu0 %v21273_v1 }
0x1b5c   :  { %18813 = vmatpush3.msra.mxu0 %v21852_v8 }
0x1b5d   :  { %18828 = vmatprep.subr.mxu0 %v21273_v1 }
0x1c15   :  { %v2743_v34 = vpop.f32.mrf.mxu0 }
0x1c16   :  { %v2744_v35 = vadd.f32 %v21859_v15, %v2743_v34 }
0x1c17   :  { %v18794_v36 = vpop.f32.mrf.mxu0 }
0x1c18   :  { %20920 = vtanh.f32 %v2744_v35 }
0x1c25   :  { %v20921_v38 = vpop.eup %20920 }
0x1c26   :  { %18804 = vmatmul.mubr.msk.f32.vlgmr.msra.gmra.mxu1 %vm107_vm1, %v20921_v38 }
0x1c27   :  { %18818 = vmatpush3.msra.mxu1 %v21863_v23  ;;  %18825 = vmatprep.mubr.msk.f32.mxu1 %vm21274_vm0, %v21273_v1 }
0x1c28   :  { %18819 = vmatprep.subr.mxu1 %v21273_v1 }
0x1c29   :  { %18820 = vmatpush3.msra.mxu1 %v21869_v24 }
0x1c2a   :  { %18821 = vmatprep.subr.mxu1 %v21273_v1 }
0x1c2b   :  { %18822 = vmatpush3.msra.mxu1 %v21873_v25 }
0x1c2c   :  { %18823 = vmatprep.subr.mxu1 %v21273_v1 }
0x1c2d   :  { %18824 = vmatpush3.msra.mxu1 %v21877_v26 }
0x1c2e   :  { %18839 = vmatprep.subr.mxu1 %v21273_v1 }
0x1ce6   :  { %v2817_v39 = vpop.f32.mrf.mxu1 }
0x1ce7   :  { %v2818_v40 = vadd.f32 %v21893_v29, %v2817_v39 }
0x1ce8   :  { %v18805_v41 = vpop.f32.mrf.mxu1 }
0x1ce9   :  { %v2821_v42 = vmul.f32 %v2818_v40, %v21888_v28  ;;  %v3120_v48 = vmul.f32 2.0, %v2818_v40 }
0x1ceb   :  { %v2822_v43 = vadd.f32 %v2821_v42, %v21836_v20  ;;  %v3121_v54 = vadd.f32 %v3120_v48, %v21896_v30 }
0x1ced   :  { %18815 = vmatmul.mubr.msk.f32.vlgmr.msra.gmra.mxu0 %vm107_vm1, %v2822_v43 }
0x1cee   :  { %18829 = vmatpush3.msra.mxu0 %v21807_v12  ;;  %18836 = vmatprep.mubr.msk.f32.mxu0 %vm21274_vm0, %v21273_v1 }
0x1cef   :  { %18830 = vmatprep.subr.mxu0 %v21273_v1 }
0x1cf0   :  { %18831 = vmatpush3.msra.mxu0 %v21813_v13 }
0x1cf1   :  { %18832 = vmatprep.subr.mxu0 %v21273_v1 }
0x1cf2   :  { %18833 = vmatpush3.msra.mxu0 %v21848_v7 }
0x1cf3   :  { %18834 = vmatprep.subr.mxu0 %v21273_v1 }
0x1cf4   :  { %18835 = vmatpush3.msra.mxu0 %v21852_v8 }
0x1cf5   :  { %18850 = vmatprep.subr.mxu0 %v21273_v1 }
0x1dad   :  { %v2892_v44 = vpop.f32.mrf.mxu0 }
0x1dae   :  { %v2893_v45 = vadd.f32 %v21859_v15, %v2892_v44 }
0x1daf   :  { %v18816_v46 = vpop.f32.mrf.mxu0 }
0x1db0   :  { %20922 = vtanh.f32 %v2893_v45 }
0x1dbd   :  { %v20923_v47 = vpop.eup %20922 }
0x1dbe   :  { %18826 = vmatmul.mubr.msk.f32.vlgmr.msra.gmra.mxu1 %vm107_vm1, %v20923_v47 }
0x1dbf   :  { %18840 = vmatpush3.msra.mxu1 %v21863_v23  ;;  %18847 = vmatprep.mubr.msk.f32.mxu1 %vm21274_vm0, %v21273_v1 }
0x1dc0   :  { %18841 = vmatprep.subr.mxu1 %v21273_v1 }
0x1dc1   :  { %18842 = vmatpush3.msra.mxu1 %v21869_v24 }
0x1dc2   :  { %18843 = vmatprep.subr.mxu1 %v21273_v1 }
0x1dc3   :  { %18844 = vmatpush3.msra.mxu1 %v21873_v25 }
0x1dc4   :  { %18845 = vmatprep.subr.mxu1 %v21273_v1 }
0x1dc5   :  { %18846 = vmatpush3.msra.mxu1 %v21877_v26 }
0x1dc6   :  { %18861 = vmatprep.subr.mxu1 %v21273_v1 }
0x1e7e   :  { %v2966_v49 = vpop.f32.mrf.mxu1 }
0x1e7f   :  { %v2967_v52 = vadd.f32 %v21893_v29, %v2966_v49 }
0x1e80   :  { %v18827_v53 = vpop.f32.mrf.mxu1 }
0x1e81   :  { %v2971_v55 = vmul.f32 %v21951_v50, %v2967_v52  ;;  %v3122_v17 = vmul.f32 2.0, %v2967_v52 }
0x1e83   :  { %v2972_v0 = vadd.f32 %v2971_v55, %v21836_v20  ;;  %v3123_v56 = vadd.f32 %v3122_v17, %v3121_v54 }
0x1e85   :  { %18837 = vmatmul.mubr.msk.f32.vlgmr.msra.gmra.mxu0 %vm107_vm1, %v2972_v0 }
0x1e86   :  { %18851 = vmatpush3.msra.mxu0 %v21807_v12  ;;  %18858 = vmatprep.mubr.msk.f32.mxu0 %vm21274_vm0, %v21273_v1 }
0x1e87   :  { %18852 = vmatprep.subr.mxu0 %v21273_v1 }
0x1e88   :  { %18853 = vmatpush3.msra.mxu0 %v21813_v13 }
0x1e89   :  { %18854 = vmatprep.subr.mxu0 %v21273_v1 }
0x1e8a   :  { %18855 = vmatpush3.msra.mxu0 %v21848_v7 }
0x1e8b   :  { %18856 = vmatprep.subr.mxu0 %v21273_v1 }
0x1e8c   :  { %18857 = vmatpush3.msra.mxu0 %v21852_v8 }
0x1e8d   :  { %18872 = vmatprep.subr.mxu0 %v21273_v1 }
0x1f45   :  { %v3042_v57 = vpop.f32.mrf.mxu0 }
0x1f46   :  { %v3043_v2 = vadd.f32 %v21859_v15, %v3042_v57 }
0x1f47   :  { %v18838_v58 = vpop.f32.mrf.mxu0 }
0x1f48   :  { %20924 = vtanh.f32 %v3043_v2 }
0x1f55   :  { %v20925_v59 = vpop.eup %20924 }
0x1f56   :  { %18848 = vmatmul.mubr.msk.f32.vlgmr.msra.gmra.mxu1 %vm107_vm1, %v20925_v59 }
0x1f57   :  { %18862 = vmatpush3.msra.mxu1 %v21863_v23  ;;  %18869 = vmatprep.mubr.msk.f32.mxu1 %vm21274_vm0, %v21273_v1 }
0x1f58   :  { %18863 = vmatprep.subr.mxu1 %v21273_v1 }
0x1f59   :  { %18864 = vmatpush3.msra.mxu1 %v21869_v24 }
0x1f5a   :  { %18865 = vmatprep.subr.mxu1 %v21273_v1 }
0x1f5b   :  { %18866 = vmatpush3.msra.mxu1 %v21873_v25 }
0x1f5c   :  { %18867 = vmatprep.subr.mxu1 %v21273_v1 }
0x1f5d   :  { %18868 = vmatpush3.msra.mxu1 %v21877_v26 }
0x1f5e   :  { %18883 = vmatprep.subr.mxu1 %v21273_v1 }
0x2016   :  { %v3116_v60 = vpop.f32.mrf.mxu1 }
0x2017   :  { %v3117_v61 = vadd.f32 %v21893_v29, %v3116_v60 }
0x2018   :  { %v18849_v63 = vpop.f32.mrf.mxu1 }
0x2019   :  { %v3124_v5 = vadd.f32 %v3123_v56, %v3117_v61 }
0x201b   :  { %v3126_v11 = vmul.f32 %v21982_v62, %v3124_v5 }
0x201d   :  { %v21986_v37 = vadd.f32 %v3126_v11, %v21836_v20 }
0x201f   :  { %18859 = vmatmul.mubr.msk.f32.vlgmr.msra.gmra.mxu0 %vm107_vm1, %v21986_v37 }
0x2020   :  { %18873 = vmatpush3.msra.mxu0 %v21807_v12  ;;  %18880 = vmatprep.mubr.msk.f32.mxu0 %vm21274_vm0, %v21273_v1 }
0x2021   :  { %18874 = vmatprep.subr.mxu0 %v21273_v1 }
0x2022   :  { %18875 = vmatpush3.msra.mxu0 %v21813_v13 }
0x2023   :  { %18876 = vmatprep.subr.mxu0 %v21273_v1 }
0x2024   :  { %18877 = vmatpush3.msra.mxu0 %v21848_v7 }
0x2025   :  { %18878 = vmatprep.subr.mxu0 %v21273_v1 }
0x2026   :  { %18879 = vmatpush3.msra.mxu0 %v21852_v8 }
0x2027   :  { %18894 = vmatprep.subr.mxu0 %v21273_v1 }
0x20df   :  { %v3197_v14 = vpop.f32.mrf.mxu0 }
0x20e0   :  { %v3198_v16 = vadd.f32 %v21859_v15, %v3197_v14 }
0x20e1   :  { %v18860_v18 = vpop.f32.mrf.mxu0 }
0x20e2   :  { %20926 = vtanh.f32 %v3198_v16 }
0x20ef   :  { %v20927_v3 = vpop.eup %20926 }
0x20f0   :  { %18870 = vmatmul.mubr.msk.f32.vlgmr.msra.gmra.mxu1 %vm107_vm1, %v20927_v3 }
0x20f1   :  { %18884 = vmatpush3.msra.mxu1 %v21863_v23  ;;  %18891 = vmatprep.mubr.msk.f32.mxu1 %vm21274_vm0, %v21273_v1 }
0x20f2   :  { %18885 = vmatprep.subr.mxu1 %v21273_v1 }
0x20f3   :  { %18886 = vmatpush3.msra.mxu1 %v21869_v24 }
0x20f4   :  { %18887 = vmatprep.subr.mxu1 %v21273_v1 }
0x20f5   :  { %18888 = vmatpush3.msra.mxu1 %v21873_v25 }
0x20f6   :  { %18889 = vmatprep.subr.mxu1 %v21273_v1 }
0x20f7   :  { %18890 = vmatpush3.msra.mxu1 %v21877_v26 }
0x20f8   :  { %18905 = vmatprep.subr.mxu1 %v21273_v1 }
0x21b0   :  { %v3271_v4 = vpop.f32.mrf.mxu1 }
0x21b1   :  { %v22013_v6 = vadd.f32 %v21893_v29, %v3271_v4 }
0x21b2   :  { %v18871_v10 = vpop.f32.mrf.mxu1 }
0x21b3   :  { %v3275_v19 = vmul.f32 %v22013_v6, %v21888_v28 }
0x21b5   :  { %v3276_v20 = vadd.f32 %v3275_v19, %v21986_v37 }
0x21b7   :  { %18881 = vmatmul.mubr.msk.f32.vlgmr.msra.gmra.mxu0 %vm107_vm1, %v3276_v20 }
0x21b8   :  { %18895 = vmatpush3.msra.mxu0 %v21807_v12  ;;  %18902 = vmatprep.mubr.msk.f32.mxu0 %vm21274_vm0, %v21273_v1 }
0x21b9   :  { %18896 = vmatprep.subr.mxu0 %v21273_v1 }
0x21ba   :  { %18897 = vmatpush3.msra.mxu0 %v21813_v13 }
0x21bb   :  { %18898 = vmatprep.subr.mxu0 %v21273_v1 }
0x21bc   :  { %18899 = vmatpush3.msra.mxu0 %v21848_v7 }
0x21bd   :  { %18900 = vmatprep.subr.mxu0 %v21273_v1 }
0x21be   :  { %18901 = vmatpush3.msra.mxu0 %v21852_v8 }
0x21bf   :  { %18916 = vmatprep.subr.mxu0 %v21273_v1 }
0x2277   :  { %v3346_v9 = vpop.f32.mrf.mxu0 }
0x2278   :  { %v3347_v51 = vadd.f32 %v21859_v15, %v3346_v9 }
0x2279   :  { %v18882_v21 = vpop.f32.mrf.mxu0 }
0x227a   :  { %20928 = vtanh.f32 %v3347_v51 }
0x2287   :  { %v20929_v22 = vpop.eup %20928 }
0x2288   :  { %18892 = vmatmul.mubr.msk.f32.vlgmr.msra.gmra.mxu1 %vm107_vm1, %v20929_v22 }
0x2289   :  { %18906 = vmatpush3.msra.mxu1 %v21863_v23  ;;  %18913 = vmatprep.mubr.msk.f32.mxu1 %vm21274_vm0, %v21273_v1 }
0x228a   :  { %18907 = vmatprep.subr.mxu1 %v21273_v1 }
0x228b   :  { %18908 = vmatpush3.msra.mxu1 %v21869_v24 }
0x228c   :  { %18909 = vmatprep.subr.mxu1 %v21273_v1 }
0x228d   :  { %18910 = vmatpush3.msra.mxu1 %v21873_v25 }
0x228e   :  { %18911 = vmatprep.subr.mxu1 %v21273_v1 }
0x228f   :  { %18912 = vmatpush3.msra.mxu1 %v21877_v26 }
0x2290   :  { %18927 = vmatprep.subr.mxu1 %v21273_v1 }
0x2348   :  { %v3420_v27 = vpop.f32.mrf.mxu1 }
0x2349   :  { %v3421_v30 = vadd.f32 %v21893_v29, %v3420_v27 }
0x234a   :  { %v18893_v31 = vpop.f32.mrf.mxu1 }
0x234b   :  { %v3424_v32 = vmul.f32 %v3421_v30, %v21888_v28  ;;  %v3722_v39 = vmul.f32 2.0, %v3421_v30 }
0x234d   :  { %v3425_v33 = vadd.f32 %v3424_v32, %v21986_v37  ;;  %v3723_v43 = vadd.f32 %v3722_v39, %v22013_v6 }
0x234f   :  { %18903 = vmatmul.mubr.msk.f32.vlgmr.msra.gmra.mxu0 %vm107_vm1, %v3425_v33 }
0x2350   :  { %18917 = vmatpush3.msra.mxu0 %v21807_v12  ;;  %18924 = vmatprep.mubr.msk.f32.mxu0 %vm21274_vm0, %v21273_v1 }
0x2351   :  { %18918 = vmatprep.subr.mxu0 %v21273_v1 }
0x2352   :  { %18919 = vmatpush3.msra.mxu0 %v21813_v13 }
0x2353   :  { %18920 = vmatprep.subr.mxu0 %v21273_v1 }
0x2354   :  { %18921 = vmatpush3.msra.mxu0 %v21848_v7 }
0x2355   :  { %18922 = vmatprep.subr.mxu0 %v21273_v1 }
0x2356   :  { %18923 = vmatpush3.msra.mxu0 %v21852_v8 }
0x2357   :  { %18938 = vmatprep.subr.mxu0 %v21273_v1 }
0x240f   :  { %v3495_v34 = vpop.f32.mrf.mxu0 }
0x2410   :  { %v3496_v35 = vadd.f32 %v21859_v15, %v3495_v34 }
0x2411   :  { %v18904_v36 = vpop.f32.mrf.mxu0 }
0x2412   :  { %20930 = vtanh.f32 %v3496_v35 }
0x241f   :  { %v20931_v38 = vpop.eup %20930 }
0x2420   :  { %18914 = vmatmul.mubr.msk.f32.vlgmr.msra.gmra.mxu1 %vm107_vm1, %v20931_v38 }
0x2421   :  { %18928 = vmatpush3.msra.mxu1 %v21863_v23  ;;  %18935 = vmatprep.mubr.msk.f32.mxu1 %vm21274_vm0, %v21273_v1 }
0x2422   :  { %18929 = vmatprep.subr.mxu1 %v21273_v1 }
0x2423   :  { %18930 = vmatpush3.msra.mxu1 %v21869_v24 }
0x2424   :  { %18931 = vmatprep.subr.mxu1 %v21273_v1 }
0x2425   :  { %18932 = vmatpush3.msra.mxu1 %v21873_v25 }
0x2426   :  { %18933 = vmatprep.subr.mxu1 %v21273_v1 }
0x2427   :  { %18934 = vmatpush3.msra.mxu1 %v21877_v26 }
0x2428   :  { %18949 = vmatprep.subr.mxu1 %v21273_v1 }
0x24e0   :  { %v3569_v40 = vpop.f32.mrf.mxu1 }
0x24e1   :  { %v3570_v41 = vadd.f32 %v21893_v29, %v3569_v40 }
0x24e2   :  { %v18915_v42 = vpop.f32.mrf.mxu1 }
0x24e3   :  { %v3573_v44 = vmul.f32 %v3570_v41, %v21951_v50  ;;  %v3724_v45 = vmul.f32 2.0, %v3570_v41 }
0x24e5   :  { %v3574_v46 = vadd.f32 %v3573_v44, %v21986_v37  ;;  %v3725_v47 = vadd.f32 %v3724_v45, %v3723_v43 }
0x24e7   :  { %18925 = vmatmul.mubr.msk.f32.vlgmr.msra.gmra.mxu0 %vm107_vm1, %v3574_v46 }
0x24e8   :  { %18939 = vmatpush3.msra.mxu0 %v21807_v12  ;;  %18946 = vmatprep.mubr.msk.f32.mxu0 %vm21274_vm0, %v21273_v1 }
0x24e9   :  { %18940 = vmatprep.subr.mxu0 %v21273_v1 }
0x24ea   :  { %18941 = vmatpush3.msra.mxu0 %v21813_v13 }
0x24eb   :  { %18942 = vmatprep.subr.mxu0 %v21273_v1 }
0x24ec   :  { %18943 = vmatpush3.msra.mxu0 %v21848_v7 }
0x24ed   :  { %18944 = vmatprep.subr.mxu0 %v21273_v1 }
0x24ee   :  { %18945 = vmatpush3.msra.mxu0 %v21852_v8 }
0x24ef   :  { %18960 = vmatprep.subr.mxu0 %v21273_v1 }
0x25a7   :  { %v3644_v48 = vpop.f32.mrf.mxu0 }
0x25a8   :  { %v3645_v49 = vadd.f32 %v21859_v15, %v3644_v48 }
0x25a9   :  { %v18926_v52 = vpop.f32.mrf.mxu0 }
0x25aa   :  { %20932 = vtanh.f32 %v3645_v49 }
0x25b7   :  { %v20933_v53 = vpop.eup %20932 }
0x25b8   :  { %18936 = vmatmul.mubr.msk.f32.vlgmr.msra.gmra.mxu1 %vm107_vm1, %v20933_v53 }
0x25b9   :  { %18950 = vmatpush3.msra.mxu1 %v21863_v23  ;;  %18957 = vmatprep.mubr.msk.f32.mxu1 %vm21274_vm0, %v21273_v1 }
0x25ba   :  { %18951 = vmatprep.subr.mxu1 %v21273_v1 }
0x25bb   :  { %18952 = vmatpush3.msra.mxu1 %v21869_v24 }
0x25bc   :  { %18953 = vmatprep.subr.mxu1 %v21273_v1 }
0x25bd   :  { %18954 = vmatpush3.msra.mxu1 %v21873_v25 }
0x25be   :  { %18955 = vmatprep.subr.mxu1 %v21273_v1 }
0x25bf   :  { %18956 = vmatpush3.msra.mxu1 %v21877_v26 }
0x25c0   :  { %18971 = vmatprep.subr.mxu1 %v21273_v1 }
0x2678   :  { %v3718_v54 = vpop.f32.mrf.mxu1 }
0x2679   :  { %v3719_v55 = vadd.f32 %v21893_v29, %v3718_v54 }
0x267a   :  { %v18937_v17 = vpop.f32.mrf.mxu1 }
0x267b   :  { %v3726_v0 = vadd.f32 %v3725_v47, %v3719_v55 }
0x267d   :  { %v3727_v56 = vmul.f32 %v3726_v0, %v21982_v62 }
0x267f   :  { %v22097_v57 = vadd.f32 %v3727_v56, %v21986_v37 }
0x2681   :  { %18947 = vmatmul.mubr.msk.f32.vlgmr.msra.gmra.mxu0 %vm107_vm1, %v22097_v57 }
0x2682   :  { %18961 = vmatpush3.msra.mxu0 %v21807_v12  ;;  %18968 = vmatprep.mubr.msk.f32.mxu0 %vm21274_vm0, %v21273_v1 }
0x2683   :  { %18962 = vmatprep.subr.mxu0 %v21273_v1 }
0x2684   :  { %18963 = vmatpush3.msra.mxu0 %v21813_v13 }
0x2685   :  { %18964 = vmatprep.subr.mxu0 %v21273_v1 }
0x2686   :  { %18965 = vmatpush3.msra.mxu0 %v21848_v7 }
0x2687   :  { %18966 = vmatprep.subr.mxu0 %v21273_v1 }
0x2688   :  { %18967 = vmatpush3.msra.mxu0 %v21852_v8 }
0x2689   :  { %18982 = vmatprep.subr.mxu0 %v21273_v1 }
0x2741   :  { %v3798_v2 = vpop.f32.mrf.mxu0 }
0x2742   :  { %v3799_v58 = vadd.f32 %v21859_v15, %v3798_v2 }
0x2743   :  { %v18948_v59 = vpop.f32.mrf.mxu0 }
0x2744   :  { %20934 = vtanh.f32 %v3799_v58 }
0x2751   :  { %v20935_v60 = vpop.eup %20934 }
0x2752   :  { %18958 = vmatmul.mubr.msk.f32.vlgmr.msra.gmra.mxu1 %vm107_vm1, %v20935_v60 }
0x2753   :  { %18972 = vmatpush3.msra.mxu1 %v21863_v23  ;;  %18979 = vmatprep.mubr.msk.f32.mxu1 %vm21274_vm0, %v21273_v1 }
0x2754   :  { %18973 = vmatprep.subr.mxu1 %v21273_v1 }
0x2755   :  { %18974 = vmatpush3.msra.mxu1 %v21869_v24 }
0x2756   :  { %18975 = vmatprep.subr.mxu1 %v21273_v1 }
0x2757   :  { %18976 = vmatpush3.msra.mxu1 %v21873_v25 }
0x2758   :  { %18977 = vmatprep.subr.mxu1 %v21273_v1 }
0x2759   :  { %18978 = vmatpush3.msra.mxu1 %v21877_v26 }
0x275a   :  { %18993 = vmatprep.subr.mxu1 %v21273_v1 }
0x2812   :  { %v3872_v61 = vpop.f32.mrf.mxu1 }
0x2813   :  { %v22124_v63 = vadd.f32 %v21893_v29, %v3872_v61 }
0x2814   :  { %v18959_v5 = vpop.f32.mrf.mxu1 }
0x2815   :  { %v3876_v11 = vmul.f32 %v22124_v63, %v21888_v28 }
0x2817   :  { %v3877_v37 = vadd.f32 %v3876_v11, %v22097_v57 }
0x2819   :  { %18969 = vmatmul.mubr.msk.f32.vlgmr.msra.gmra.mxu0 %vm107_vm1, %v3877_v37 }
0x281a   :  { %18983 = vmatpush3.msra.mxu0 %v21807_v12  ;;  %18990 = vmatprep.mubr.msk.f32.mxu0 %vm21274_vm0, %v21273_v1 }
0x281b   :  { %18984 = vmatprep.subr.mxu0 %v21273_v1 }
0x281c   :  { %18985 = vmatpush3.msra.mxu0 %v21813_v13 }
0x281d   :  { %18986 = vmatprep.subr.mxu0 %v21273_v1 }
0x281e   :  { %18987 = vmatpush3.msra.mxu0 %v21848_v7 }
0x281f   :  { %18988 = vmatprep.subr.mxu0 %v21273_v1 }
0x2820   :  { %18989 = vmatpush3.msra.mxu0 %v21852_v8 }
0x2821   :  { %19004 = vmatprep.subr.mxu0 %v21273_v1 }
0x28d9   :  { %v3947_v14 = vpop.f32.mrf.mxu0 }
0x28da   :  { %v3948_v16 = vadd.f32 %v21859_v15, %v3947_v14 }
0x28db   :  { %v18970_v18 = vpop.f32.mrf.mxu0 }
0x28dc   :  { %20936 = vtanh.f32 %v3948_v16 }
0x28e9   :  { %v20937_v3 = vpop.eup %20936 }
0x28ea   :  { %18980 = vmatmul.mubr.msk.f32.vlgmr.msra.gmra.mxu1 %vm107_vm1, %v20937_v3 }
0x28eb   :  { %18994 = vmatpush3.msra.mxu1 %v21863_v23  ;;  %19001 = vmatprep.mubr.msk.f32.mxu1 %vm21274_vm0, %v21273_v1 }
0x28ec   :  { %18995 = vmatprep.subr.mxu1 %v21273_v1 }
0x28ed   :  { %18996 = vmatpush3.msra.mxu1 %v21869_v24 }
0x28ee   :  { %18997 = vmatprep.subr.mxu1 %v21273_v1 }
0x28ef   :  { %18998 = vmatpush3.msra.mxu1 %v21873_v25 }
0x28f0   :  { %18999 = vmatprep.subr.mxu1 %v21273_v1 }
0x28f1   :  { %19000 = vmatpush3.msra.mxu1 %v21877_v26 }
0x28f2   :  { %19015 = vmatprep.subr.mxu1 %v21273_v1 }
0x29aa   :  { %v4021_v4 = vpop.f32.mrf.mxu1 }
0x29ab   :  { %v4022_v6 = vadd.f32 %v21893_v29, %v4021_v4 }
0x29ac   :  { %v18981_v10 = vpop.f32.mrf.mxu1 }
0x29ad   :  { %v4025_v19 = vmul.f32 %v4022_v6, %v21888_v28  ;;  %v4323_v27 = vmul.f32 2.0, %v4022_v6 }
0x29af   :  { %v4026_v20 = vadd.f32 %v4025_v19, %v22097_v57  ;;  %v4324_v33 = vadd.f32 %v4323_v27, %v22124_v63 }
0x29b1   :  { %18991 = vmatmul.mubr.msk.f32.vlgmr.msra.gmra.mxu0 %vm107_vm1, %v4026_v20 }
0x29b2   :  { %19005 = vmatpush3.msra.mxu0 %v21807_v12  ;;  %19012 = vmatprep.mubr.msk.f32.mxu0 %vm21274_vm0, %v21273_v1 }
0x29b3   :  { %19006 = vmatprep.subr.mxu0 %v21273_v1 }
0x29b4   :  { %19007 = vmatpush3.msra.mxu0 %v21813_v13 }
0x29b5   :  { %19008 = vmatprep.subr.mxu0 %v21273_v1 }
0x29b6   :  { %19009 = vmatpush3.msra.mxu0 %v21848_v7 }
0x29b7   :  { %19010 = vmatprep.subr.mxu0 %v21273_v1 }
0x29b8   :  { %19011 = vmatpush3.msra.mxu0 %v21852_v8 }
0x29b9   :  { %19026 = vmatprep.subr.mxu0 %v21273_v1 }
0x2a71   :  { %v4096_v9 = vpop.f32.mrf.mxu0 }
0x2a72   :  { %v4097_v51 = vadd.f32 %v21859_v15, %v4096_v9 }
0x2a73   :  { %v18992_v21 = vpop.f32.mrf.mxu0 }
0x2a74   :  { %20938 = vtanh.f32 %v4097_v51 }
0x2a81   :  { %v20939_v22 = vpop.eup %20938 }
0x2a82   :  { %19002 = vmatmul.mubr.msk.f32.vlgmr.msra.gmra.mxu1 %vm107_vm1, %v20939_v22 }
0x2a83   :  { %19016 = vmatpush3.msra.mxu1 %v21863_v23  ;;  %19023 = vmatprep.mubr.msk.f32.mxu1 %vm21274_vm0, %v21273_v1 }
0x2a84   :  { %19017 = vmatprep.subr.mxu1 %v21273_v1 }
0x2a85   :  { %19018 = vmatpush3.msra.mxu1 %v21869_v24 }
0x2a86   :  { %19019 = vmatprep.subr.mxu1 %v21273_v1 }
0x2a87   :  { %19020 = vmatpush3.msra.mxu1 %v21873_v25 }
0x2a88   :  { %19021 = vmatprep.subr.mxu1 %v21273_v1 }
0x2a89   :  { %19022 = vmatpush3.msra.mxu1 %v21877_v26 }
0x2a8a   :  { %19037 = vmatprep.subr.mxu1 %v21273_v1 }
0x2b42   :  { %v4170_v30 = vpop.f32.mrf.mxu1 }
0x2b43   :  { %v4171_v31 = vadd.f32 %v21893_v29, %v4170_v30 }
0x2b44   :  { %v19003_v32 = vpop.f32.mrf.mxu1 }
0x2b45   :  { %v4174_v34 = vmul.f32 %v4171_v31, %v21951_v50  ;;  %v4325_v35 = vmul.f32 2.0, %v4171_v31 }
0x2b47   :  { %v4175_v36 = vadd.f32 %v4174_v34, %v22097_v57  ;;  %v4326_v38 = vadd.f32 %v4325_v35, %v4324_v33  ;;  %v22325_v35 = vld [vmem:[#allocation7 + $0x18] sm:$0xff] }
0x2b49   :  { %19013 = vmatmul.mubr.msk.f32.vlgmr.msra.gmra.mxu0 %vm107_vm1, %v4175_v36 }
0x2b4a   :  { %19027 = vmatpush3.msra.mxu0 %v21807_v12  ;;  %19034 = vmatprep.mubr.msk.f32.mxu0 %vm21274_vm0, %v21273_v1 }
0x2b4b   :  { %19028 = vmatprep.subr.mxu0 %v21273_v1 }
0x2b4c   :  { %19029 = vmatpush3.msra.mxu0 %v21813_v13 }
0x2b4d   :  { %19030 = vmatprep.subr.mxu0 %v21273_v1 }
0x2b4e   :  { %19031 = vmatpush3.msra.mxu0 %v21848_v7 }
0x2b4f   :  { %19032 = vmatprep.subr.mxu0 %v21273_v1 }
0x2b50   :  { %19033 = vmatpush3.msra.mxu0 %v21852_v8 }
0x2b51   :  { %19048 = vmatprep.subr.mxu0 %v21273_v1 }
0x2c09   :  { %v4245_v39 = vpop.f32.mrf.mxu0 }
0x2c0a   :  { %v4246_v40 = vadd.f32 %v21859_v15, %v4245_v39 }
0x2c0b   :  { %v19014_v41 = vpop.f32.mrf.mxu0 }
0x2c0c   :  { %20940 = vtanh.f32 %v4246_v40 }
0x2c19   :  { %v20941_v42 = vpop.eup %20940 }
0x2c1a   :  { %19024 = vmatmul.mubr.msk.f32.vlgmr.msra.gmra.mxu1 %vm107_vm1, %v20941_v42  ;;  %v22384_v42 = vld [vmem:[%s24740_s3] ss:$0 sm:$0xff] }
0x2c1b   :  { %19038 = vmatpush3.msra.mxu1 %v21863_v23  ;;  %19045 = vmatprep.mubr.msk.f32.mxu1 %vm21274_vm0, %v21273_v1 }
0x2c1c   :  { %19039 = vmatprep.subr.mxu1 %v21273_v1 }
0x2c1d   :  { %19040 = vmatpush3.msra.mxu1 %v21869_v24 }
0x2c1e   :  { %19041 = vmatprep.subr.mxu1 %v21273_v1 }
0x2c1f   :  { %19042 = vmatpush3.msra.mxu1 %v21873_v25 }
0x2c20   :  { %19043 = vmatprep.subr.mxu1 %v21273_v1 }
0x2c21   :  { %19044 = vmatpush3.msra.mxu1 %v21877_v26 }
0x2c22   :  { %19059 = vmatprep.subr.mxu1 %v21273_v1 }
0x2cda   :  { %v4319_v43 = vpop.f32.mrf.mxu1 }
0x2cdb   :  { %v4320_v44 = vadd.f32 %v21893_v29, %v4319_v43 }
0x2cdc   :  { %v19025_v45 = vpop.f32.mrf.mxu1 }
0x2cdd   :  { %v4327_v46 = vadd.f32 %v4326_v38, %v4320_v44 }
0x2cdf   :  { %v4328_v47 = vmul.f32 %v4327_v46, %v21982_v62  ;;  %v22388_v46 = vld [vmem:[#allocation9 + $0x18] sm:$0xff] }
0x2ce1   :  { %v22208_v48 = vadd.f32 %v4328_v47, %v22097_v57  ;;  %v22394_v47 = vld [vmem:[#allocation9 + $0x10] sm:$0xff] }
0x2ce3   :  { %19035 = vmatmul.mubr.msk.f32.vlgmr.msra.gmra.mxu0 %vm107_vm1, %v22208_v48 }
0x2ce4   :  { %19049 = vmatpush3.msra.mxu0 %v21807_v12  ;;  %19056 = vmatprep.mubr.msk.f32.mxu0 %vm21274_vm0, %v21273_v1 }
0x2ce5   :  { %19050 = vmatprep.subr.mxu0 %v21273_v1 }
0x2ce6   :  { %19051 = vmatpush3.msra.mxu0 %v21813_v13 }
0x2ce7   :  { %19052 = vmatprep.subr.mxu0 %v21273_v1 }
0x2ce8   :  { %19053 = vmatpush3.msra.mxu0 %v21848_v7 }
0x2ce9   :  { %19054 = vmatprep.subr.mxu0 %v21273_v1 }
0x2cea   :  { %19055 = vmatpush3.msra.mxu0 %v21852_v8 }
0x2ceb   :  { %19070 = vmatprep.subr.mxu0 %v21273_v1 }
0x2da3   :  { %v4399_v49 = vpop.f32.mrf.mxu0 }
0x2da4   :  { %v4400_v52 = vadd.f32 %v21859_v15, %v4399_v49  ;;  %v22402_v49 = vld [vmem:[#allocation9] sm:$0xff] }
0x2da5   :  { %v19036_v53 = vpop.f32.mrf.mxu0 }
0x2da6   :  { %20942 = vtanh.f32 %v4400_v52  ;;  %v22409_v53 = vld [vmem:[%s24742_s5] ss:$0 sm:$0xff] }
0x2db3   :  { %v20943_v54 = vpop.eup %20942 }
0x2db4   :  { %19046 = vmatmul.mubr.msk.f32.vlgmr.msra.gmra.mxu1 %vm107_vm1, %v20943_v54 }
0x2db5   :  { %19060 = vmatpush3.msra.mxu1 %v21863_v23  ;;  %19067 = vmatprep.mubr.msk.f32.mxu1 %vm21274_vm0, %v21273_v1 }
0x2db6   :  { %19061 = vmatprep.subr.mxu1 %v21273_v1 }
0x2db7   :  { %19062 = vmatpush3.msra.mxu1 %v21869_v24 }
0x2db8   :  { %19063 = vmatprep.subr.mxu1 %v21273_v1 }
0x2db9   :  { %19064 = vmatpush3.msra.mxu1 %v21873_v25 }
0x2dba   :  { %19065 = vmatprep.subr.mxu1 %v21273_v1 }
0x2dbb   :  { %19066 = vmatpush3.msra.mxu1 %v21877_v26 }
0x2dbc   :  { %19081 = vmatprep.subr.mxu1 %v21273_v1 }
0x2e74   :  { %v4473_v55 = vpop.f32.mrf.mxu1 }
0x2e75   :  { %v22235_v17 = vadd.f32 %v21893_v29, %v4473_v55 }
0x2e76   :  { %v19047_v0 = vpop.f32.mrf.mxu1 }
0x2e77   :  { %v4477_v56 = vmul.f32 %v22235_v17, %v21888_v28 }
0x2e79   :  { %v4478_v57 = vadd.f32 %v4477_v56, %v22208_v48 }
0x2e7b   :  { %19057 = vmatmul.mubr.msk.f32.vlgmr.msra.gmra.mxu0 %vm107_vm1, %v4478_v57 }
0x2e7c   :  { %19071 = vmatpush3.msra.mxu0 %v21807_v12  ;;  %19078 = vmatprep.mubr.msk.f32.mxu0 %vm21274_vm0, %v21273_v1 }
0x2e7d   :  { %19072 = vmatprep.subr.mxu0 %v21273_v1 }
0x2e7e   :  { %19073 = vmatpush3.msra.mxu0 %v21813_v13 }
0x2e7f   :  { %19074 = vmatprep.subr.mxu0 %v21273_v1 }
0x2e80   :  { %19075 = vmatpush3.msra.mxu0 %v21848_v7 }
0x2e81   :  { %19076 = vmatprep.subr.mxu0 %v21273_v1 }
0x2e82   :  { %19077 = vmatpush3.msra.mxu0 %v21852_v8 }
0x2e83   :  { %19092 = vmatprep.subr.mxu0 %v21273_v1 }
0x2f3b   :  { %v4548_v2 = vpop.f32.mrf.mxu0 }
0x2f3c   :  { %v4549_v58 = vadd.f32 %v21859_v15, %v4548_v2 }
0x2f3d   :  { %v19058_v59 = vpop.f32.mrf.mxu0 }
0x2f3e   :  { %20944 = vtanh.f32 %v4549_v58 }
0x2f4b   :  { %v20945_v60 = vpop.eup %20944 }
0x2f4c   :  { %19068 = vmatmul.mubr.msk.f32.vlgmr.msra.gmra.mxu1 %vm107_vm1, %v20945_v60 }
0x2f4d   :  { %19082 = vmatpush3.msra.mxu1 %v21863_v23  ;;  %19089 = vmatprep.mubr.msk.f32.mxu1 %vm21274_vm0, %v21273_v1 }
0x2f4e   :  { %19083 = vmatprep.subr.mxu1 %v21273_v1 }
0x2f4f   :  { %19084 = vmatpush3.msra.mxu1 %v21869_v24 }
0x2f50   :  { %19085 = vmatprep.subr.mxu1 %v21273_v1 }
0x2f51   :  { %19086 = vmatpush3.msra.mxu1 %v21873_v25 }
0x2f52   :  { %19087 = vmatprep.subr.mxu1 %v21273_v1 }
0x2f53   :  { %19088 = vmatpush3.msra.mxu1 %v21877_v26 }
0x2f54   :  { %19103 = vmatprep.subr.mxu1 %v21273_v1 }
0x300c   :  { %v4622_v61 = vpop.f32.mrf.mxu1 }
0x300d   :  { %v4623_v63 = vadd.f32 %v21893_v29, %v4622_v61  ;;  %v22438_v61 = vstv %s22355_s12 }
0x300e   :  { %v19069_v5 = vpop.f32.mrf.mxu1 }
0x300f   :  { %v4626_v11 = vmul.f32 %v4623_v63, %v21888_v28  ;;  %v4924_v3 = vmul.f32 2.0, %v4623_v63 }
0x3011   :  { %v4627_v37 = vadd.f32 %v4626_v11, %v22208_v48  ;;  %v4925_v19 = vadd.f32 %v4924_v3, %v22235_v17 }
0x3013   :  { %19079 = vmatmul.mubr.msk.f32.vlgmr.msra.gmra.mxu0 %vm107_vm1, %v4627_v37 }
0x3014   :  { %19093 = vmatpush3.msra.mxu0 %v21807_v12  ;;  %19100 = vmatprep.mubr.msk.f32.mxu0 %vm21274_vm0, %v21273_v1 }
0x3015   :  { %19094 = vmatprep.subr.mxu0 %v21273_v1 }
0x3016   :  { %19095 = vmatpush3.msra.mxu0 %v21813_v13 }
0x3017   :  { %19096 = vmatprep.subr.mxu0 %v21273_v1 }
0x3018   :  { %19097 = vmatpush3.msra.mxu0 %v21848_v7 }
0x3019   :  { %19098 = vmatprep.subr.mxu0 %v21273_v1 }
0x301a   :  { %19099 = vmatpush3.msra.mxu0 %v21852_v8 }
0x301b   :  { %19114 = vmatprep.subr.mxu0 %v21273_v1 }
0x30d3   :  { %v4697_v28 = vpop.f32.mrf.mxu0 }
0x30d4   :  { %v4698_v14 = vadd.f32 %v21859_v15, %v4697_v28 }
0x30d5   :  { %v19080_v16 = vpop.f32.mrf.mxu0 }
0x30d6   :  { %20946 = vtanh.f32 %v4698_v14 }
0x30e3   :  { %v20947_v18 = vpop.eup %20946 }
0x30e4   :  { %19090 = vmatmul.mubr.msk.f32.vlgmr.msra.gmra.mxu1 %vm107_vm1, %v20947_v18 }
0x30e5   :  { %19104 = vmatpush3.msra.mxu1 %v21863_v23  ;;  %19111 = vmatprep.mubr.msk.f32.mxu1 %vm21274_vm0, %v21273_v1 }
0x30e6   :  { %19105 = vmatprep.subr.mxu1 %v21273_v1 }
0x30e7   :  { %19106 = vmatpush3.msra.mxu1 %v21869_v24 }
0x30e8   :  { %19107 = vmatprep.subr.mxu1 %v21273_v1 }
0x30e9   :  { %19108 = vmatpush3.msra.mxu1 %v21873_v25 }
0x30ea   :  { %19109 = vmatprep.subr.mxu1 %v21273_v1 }
0x30eb   :  { %19110 = vmatpush3.msra.mxu1 %v21877_v26 }
0x30ec   :  { %19125 = vmatprep.subr.mxu1 %v21273_v1 }
0x31a4   :  { %v4771_v4 = vpop.f32.mrf.mxu1 }
0x31a5   :  { %v4772_v6 = vadd.f32 %v21893_v29, %v4771_v4 }
0x31a6   :  { %v19091_v10 = vpop.f32.mrf.mxu1 }
0x31a7   :  { %v4775_v20 = vmul.f32 %v4772_v6, %v21951_v50  ;;  %v4926_v9 = vmul.f32 2.0, %v4772_v6 }
0x31a9   :  { %v4776_v51 = vadd.f32 %v4775_v20, %v22208_v48  ;;  %v4927_v21 = vadd.f32 %v4926_v9, %v4925_v19  ;;  %v22469_v20 = vstv %s4939_s4 }
0x31ab   :  { %19101 = vmatmul.mubr.msk.f32.vlgmr.msra.gmra.mxu0 %vm107_vm1, %v4776_v51 }
0x31ac   :  { %19115 = vmatpush3.msra.mxu0 %v21807_v12  ;;  %19122 = vmatprep.mubr.msk.f32.mxu0 %vm21274_vm0, %v21273_v1 }
0x31ad   :  { %19116 = vmatprep.subr.mxu0 %v21273_v1 }
0x31ae   :  { %19117 = vmatpush3.msra.mxu0 %v21813_v13 }
0x31af   :  { %19118 = vmatprep.subr.mxu0 %v21273_v1 }
0x31b0   :  { %19119 = vmatpush3.msra.mxu0 %v21848_v7 }
0x31b1   :  { %19120 = vmatprep.subr.mxu0 %v21273_v1 }
0x31b2   :  { %19121 = vmatpush3.msra.mxu0 %v21852_v8 }
0x31b3   :  { %19136 = vmatprep.subr.mxu0 %v21273_v1 }
0x326b   :  { %v4846_v50 = vpop.f32.mrf.mxu0 }
0x326c   :  { %v4847_v12 = vadd.f32 %v21859_v15, %v4846_v50 }
0x326d   :  { %v19102_v22 = vpop.f32.mrf.mxu0 }
0x326e   :  { %20948 = vtanh.f32 %v4847_v12 }
0x327b   :  { %v20949_v27 = vpop.eup %20948 }
0x327c   :  { %19112 = vmatmul.mubr.msk.f32.vlgmr.msra.gmra.mxu1 %vm107_vm1, %v20949_v27 }
0x327d   :  { %19126 = vmatpush3.msra.mxu1 %v21863_v23  ;;  %19133 = vmatprep.mubr.msk.f32.mxu1 %vm21274_vm0, %v21273_v1 }
0x327e   :  { %19127 = vmatprep.subr.mxu1 %v21273_v1 }
0x327f   :  { %19128 = vmatpush3.msra.mxu1 %v21869_v24 }
0x3280   :  { %19129 = vmatprep.subr.mxu1 %v21273_v1 }
0x3281   :  { %19130 = vmatpush3.msra.mxu1 %v21873_v25 }
0x3282   :  { %19131 = vmatprep.subr.mxu1 %v21273_v1 }
0x3283   :  { %19132 = vmatpush3.msra.mxu1 %v21877_v26 }
0x3284   :  { %19147 = vmatprep.subr.mxu1 %v21273_v1 }
0x333c   :  { %v4920_v13 = vpop.f32.mrf.mxu1 }
0x333d   :  { %v4921_v30 = vadd.f32 %v21893_v29, %v4920_v13 }
0x333e   :  { %v19113_v31 = vpop.f32.mrf.mxu1 }
0x333f   :  { %v4928_v32 = vadd.f32 %v4927_v21, %v4921_v30 }
0x3341   :  { %v4929_v33 = vmul.f32 %v4928_v32, %v21982_v62  ;;  %v22331_v62 = vld [vmem:[#allocation7 + $0x10] sm:$0xff] }
0x3343   :  { %v22319_v34 = vadd.f32 %v4929_v33, %v22208_v48  ;;  %v22398_v48 = vld [vmem:[#allocation9 + $0x8] sm:$0xff] }
0x3345   :  { %17014 = vrot.lane.b32.xlu1 %v22319_v34, %s21276_s9  ;;  %19123 = vmatmul.mubr.msk.f32.vlgmr.msra.gmra.mxu0 %vm107_vm1, %v22319_v34 }
0x3346   :  { %19137 = vmatpush3.msra.mxu0 %v22325_v35  ;;  %19144 = vmatprep.mubr.msk.f32.mxu0 %vm21274_vm0, %v21273_v1 }
0x3347   :  { %19138 = vmatprep.subr.mxu0 %v21273_v1 }
0x3348   :  { %19139 = vmatpush3.msra.mxu0 %v22331_v62 }
0x3349   :  { %19140 = vmatprep.subr.mxu0 %v21273_v1 }
0x334a   :  { %19141 = vmatpush3.msra.mxu0 %v21848_v7 }
0x334b   :  { %19142 = vmatprep.subr.mxu0 %v21273_v1 }
0x334c   :  { %19143 = vmatpush3.msra.mxu0 %v21852_v8  ;;  %v22358_v8 = vstv %s4936_s2 }
0x334d   :  { %19158 = vmatprep.subr.mxu0 %v21273_v1 }
0x3405   :  { %v5009_v36 = vpop.f32.mrf.mxu0 }
0x3406   :  { %v5010_v38 = vadd.f32 %v21859_v15, %v5009_v36 }
0x3407   :  { %v19124_v39 = vpop.f32.mrf.mxu0 }
0x3408   :  { %20950 = vtanh.f32 %v5010_v38 }
0x3415   :  { %v20951_v40 = vpop.eup %20950 }
0x3416   :  { %19134 = vmatmul.mubr.msk.f32.vlgmr.msra.gmra.mxu1 %vm107_vm1, %v20951_v40 }
0x3417   :  { %19148 = vmatpush3.msra.mxu1 %v21863_v23  ;;  %19155 = vmatprep.mubr.msk.f32.mxu1 %vm21274_vm0, %v21273_v1 }
0x3418   :  { %19149 = vmatprep.subr.mxu1 %v21273_v1 }
0x3419   :  { %19150 = vmatpush3.msra.mxu1 %v21869_v24 }
0x341a   :  { %19151 = vmatprep.subr.mxu1 %v21273_v1 }
0x341b   :  { %19152 = vmatpush3.msra.mxu1 %v21873_v25 }
0x341c   :  { %19153 = vmatprep.subr.mxu1 %v21273_v1 }
0x341d   :  { %19154 = vmatpush3.msra.mxu1 %v21877_v26  ;;  %v22373_v26 = vld [vmem:[#allocation7 + $0x8] sm:$0xff] }
0x341e   :  { %19169 = vmatprep.subr.mxu1 %v21273_v1 }
0x34d6   :  { %v5083_v7 = vpop.f32.mrf.mxu1 }
0x34d7   :  { %v22361_v15 = vadd.f32 %v21893_v29, %v5083_v7  ;;  %v22377_v29 = vld [vmem:[#allocation7] sm:$0xff] }
0x34d8   :  { %v19135_v23 = vpop.f32.mrf.mxu1 }
0x34d9   :  { %v5088_v24 = vmul.f32 %v22358_v8, %v22361_v15 }
0x34db   :  { %v5089_v25 = vadd.f32 %v5088_v24, %v22319_v34 }
0x34dd   :  { %19145 = vmatmul.mubr.msk.f32.vlgmr.msra.gmra.mxu0 %vm107_vm1, %v5089_v25 }
0x34de   :  { %19159 = vmatpush3.msra.mxu0 %v22325_v35  ;;  %19166 = vmatprep.mubr.msk.f32.mxu0 %vm21274_vm0, %v21273_v1 }
0x34df   :  { %19160 = vmatprep.subr.mxu0 %v21273_v1 }
0x34e0   :  { %19161 = vmatpush3.msra.mxu0 %v22331_v62 }
0x34e1   :  { %19162 = vmatprep.subr.mxu0 %v21273_v1 }
0x34e2   :  { %19163 = vmatpush3.msra.mxu0 %v22373_v26 }
0x34e3   :  { %19164 = vmatprep.subr.mxu0 %v21273_v1 }
0x34e4   :  { %19165 = vmatpush3.msra.mxu0 %v22377_v29 }
0x34e5   :  { %19180 = vmatprep.subr.mxu0 %v21273_v1 }
0x359d   :  { %v5159_v41 = vpop.f32.mrf.mxu0 }
0x359e   :  { %v5160_v43 = vadd.f32 %v22384_v42, %v5159_v41 }
0x359f   :  { %v19146_v44 = vpop.f32.mrf.mxu0 }
0x35a0   :  { %20952 = vtanh.f32 %v5160_v43 }
0x35ad   :  { %v20953_v45 = vpop.eup %20952 }
0x35ae   :  { %19156 = vmatmul.mubr.msk.f32.vlgmr.msra.gmra.mxu1 %vm107_vm1, %v20953_v45 }
0x35af   :  { %19170 = vmatpush3.msra.mxu1 %v22388_v46  ;;  %19177 = vmatprep.mubr.msk.f32.mxu1 %vm21274_vm0, %v21273_v1 }
0x35b0   :  { %19171 = vmatprep.subr.mxu1 %v21273_v1 }
0x35b1   :  { %19172 = vmatpush3.msra.mxu1 %v22394_v47 }
0x35b2   :  { %19173 = vmatprep.subr.mxu1 %v21273_v1 }
0x35b3   :  { %19174 = vmatpush3.msra.mxu1 %v22398_v48 }
0x35b4   :  { %19175 = vmatprep.subr.mxu1 %v21273_v1 }
0x35b5   :  { %19176 = vmatpush3.msra.mxu1 %v22402_v49 }
0x35b6   :  { %19191 = vmatprep.subr.mxu1 %v21273_v1 }
0x366e   :  { %v5233_v52 = vpop.f32.mrf.mxu1 }
0x366f   :  { %v5234_v54 = vadd.f32 %v22409_v53, %v5233_v52 }
0x3670   :  { %v19157_v55 = vpop.f32.mrf.mxu1 }
0x3671   :  { %v5237_v17 = vmul.f32 %v5234_v54, %v22358_v8  ;;  %v5536_v59 = vmul.f32 2.0, %v5234_v54 }
0x3673   :  { %v5238_v0 = vadd.f32 %v5237_v17, %v22319_v34  ;;  %v5537_v11 = vadd.f32 %v5536_v59, %v22361_v15 }
0x3675   :  { %19167 = vmatmul.mubr.msk.f32.vlgmr.msra.gmra.mxu0 %vm107_vm1, %v5238_v0 }
0x3676   :  { %19181 = vmatpush3.msra.mxu0 %v22325_v35  ;;  %19188 = vmatprep.mubr.msk.f32.mxu0 %vm21274_vm0, %v21273_v1 }
0x3677   :  { %19182 = vmatprep.subr.mxu0 %v21273_v1 }
0x3678   :  { %19183 = vmatpush3.msra.mxu0 %v22331_v62 }
0x3679   :  { %19184 = vmatprep.subr.mxu0 %v21273_v1 }
0x367a   :  { %19185 = vmatpush3.msra.mxu0 %v22373_v26 }
0x367b   :  { %19186 = vmatprep.subr.mxu0 %v21273_v1 }
0x367c   :  { %19187 = vmatpush3.msra.mxu0 %v22377_v29 }
0x367d   :  { %19202 = vmatprep.subr.mxu0 %v21273_v1 }
0x3735   :  { %v5308_v56 = vpop.f32.mrf.mxu0 }
0x3736   :  { %v5309_v57 = vadd.f32 %v22384_v42, %v5308_v56 }
0x3737   :  { %v19168_v2 = vpop.f32.mrf.mxu0 }
0x3738   :  { %20954 = vtanh.f32 %v5309_v57 }
0x3745   :  { %v20955_v58 = vpop.eup %20954 }
0x3746   :  { %19178 = vmatmul.mubr.msk.f32.vlgmr.msra.gmra.mxu1 %vm107_vm1, %v20955_v58 }
0x3747   :  { %19192 = vmatpush3.msra.mxu1 %v22388_v46  ;;  %19199 = vmatprep.mubr.msk.f32.mxu1 %vm21274_vm0, %v21273_v1 }
0x3748   :  { %19193 = vmatprep.subr.mxu1 %v21273_v1 }
0x3749   :  { %19194 = vmatpush3.msra.mxu1 %v22394_v47 }
0x374a   :  { %19195 = vmatprep.subr.mxu1 %v21273_v1 }
0x374b   :  { %19196 = vmatpush3.msra.mxu1 %v22398_v48 }
0x374c   :  { %19197 = vmatprep.subr.mxu1 %v21273_v1 }
0x374d   :  { %19198 = vmatpush3.msra.mxu1 %v22402_v49 }
0x374e   :  { %19213 = vmatprep.subr.mxu1 %v21273_v1 }
0x3806   :  { %v5382_v60 = vpop.f32.mrf.mxu1 }
0x3807   :  { %v5383_v63 = vadd.f32 %v22409_v53, %v5382_v60 }
0x3808   :  { %v19179_v5 = vpop.f32.mrf.mxu1 }
0x3809   :  { %v5387_v37 = vmul.f32 %v22438_v61, %v5383_v63  ;;  %v5538_v28 = vmul.f32 2.0, %v5383_v63 }
0x380b   :  { %v5388_v14 = vadd.f32 %v5387_v37, %v22319_v34  ;;  %v5539_v16 = vadd.f32 %v5538_v28, %v5537_v11 }
0x380d   :  { %19189 = vmatmul.mubr.msk.f32.vlgmr.msra.gmra.mxu0 %vm107_vm1, %v5388_v14 }
0x380e   :  { %19203 = vmatpush3.msra.mxu0 %v22325_v35  ;;  %19210 = vmatprep.mubr.msk.f32.mxu0 %vm21274_vm0, %v21273_v1 }
0x380f   :  { %19204 = vmatprep.subr.mxu0 %v21273_v1 }
0x3810   :  { %19205 = vmatpush3.msra.mxu0 %v22331_v62 }
0x3811   :  { %19206 = vmatprep.subr.mxu0 %v21273_v1 }
0x3812   :  { %19207 = vmatpush3.msra.mxu0 %v22373_v26 }
0x3813   :  { %19208 = vmatprep.subr.mxu0 %v21273_v1 }
0x3814   :  { %19209 = vmatpush3.msra.mxu0 %v22377_v29 }
0x3815   :  { %19224 = vmatprep.subr.mxu0 %v21273_v1 }
0x38cd   :  { %v5458_v18 = vpop.f32.mrf.mxu0 }
0x38ce   :  { %v5459_v3 = vadd.f32 %v22384_v42, %v5458_v18 }
0x38cf   :  { %v19190_v4 = vpop.f32.mrf.mxu0 }
0x38d0   :  { %20956 = vtanh.f32 %v5459_v3 }
0x38dd   :  { %v20957_v6 = vpop.eup %20956 }
0x38de   :  { %19200 = vmatmul.mubr.msk.f32.vlgmr.msra.gmra.mxu1 %vm107_vm1, %v20957_v6 }
0x38df   :  { %19214 = vmatpush3.msra.mxu1 %v22388_v46  ;;  %19221 = vmatprep.mubr.msk.f32.mxu1 %vm21274_vm0, %v21273_v1 }
0x38e0   :  { %19215 = vmatprep.subr.mxu1 %v21273_v1 }
0x38e1   :  { %19216 = vmatpush3.msra.mxu1 %v22394_v47 }
0x38e2   :  { %19217 = vmatprep.subr.mxu1 %v21273_v1 }
0x38e3   :  { %19218 = vmatpush3.msra.mxu1 %v22398_v48 }
0x38e4   :  { %19219 = vmatprep.subr.mxu1 %v21273_v1 }
0x38e5   :  { %19220 = vmatpush3.msra.mxu1 %v22402_v49 }
0x38e6   :  { %19235 = vmatprep.subr.mxu1 %v21273_v1 }
0x399e   :  { %v5532_v10 = vpop.f32.mrf.mxu1 }
0x399f   :  { %v5533_v19 = vadd.f32 %v22409_v53, %v5532_v10 }
0x39a0   :  { %v19201_v9 = vpop.f32.mrf.mxu1 }
0x39a1   :  { %v5540_v51 = vadd.f32 %v5539_v16, %v5533_v19 }
0x39a3   :  { %v5542_v21 = vmul.f32 %v22469_v20, %v5540_v51 }
0x39a5   :  { %v22473_v50 = vadd.f32 %v5542_v21, %v22319_v34 }
0x39a7   :  { %19211 = vmatmul.mubr.msk.f32.vlgmr.msra.gmra.mxu0 %vm107_vm1, %v22473_v50 }
0x39a8   :  { %19225 = vmatpush3.msra.mxu0 %v22325_v35  ;;  %19232 = vmatprep.mubr.msk.f32.mxu0 %vm21274_vm0, %v21273_v1 }
0x39a9   :  { %19226 = vmatprep.subr.mxu0 %v21273_v1 }
0x39aa   :  { %19227 = vmatpush3.msra.mxu0 %v22331_v62 }
0x39ab   :  { %19228 = vmatprep.subr.mxu0 %v21273_v1 }
0x39ac   :  { %19229 = vmatpush3.msra.mxu0 %v22373_v26 }
0x39ad   :  { %19230 = vmatprep.subr.mxu0 %v21273_v1 }
0x39ae   :  { %19231 = vmatpush3.msra.mxu0 %v22377_v29 }
0x39af   :  { %19246 = vmatprep.subr.mxu0 %v21273_v1 }
0x3a67   :  { %v5613_v12 = vpop.f32.mrf.mxu0 }
0x3a68   :  { %v5614_v22 = vadd.f32 %v22384_v42, %v5613_v12 }
0x3a69   :  { %v19212_v27 = vpop.f32.mrf.mxu0 }
0x3a6a   :  { %20958 = vtanh.f32 %v5614_v22 }
0x3a77   :  { %v20959_v13 = vpop.eup %20958 }
0x3a78   :  { %19222 = vmatmul.mubr.msk.f32.vlgmr.msra.gmra.mxu1 %vm107_vm1, %v20959_v13 }
0x3a79   :  { %19236 = vmatpush3.msra.mxu1 %v22388_v46  ;;  %19243 = vmatprep.mubr.msk.f32.mxu1 %vm21274_vm0, %v21273_v1 }
0x3a7a   :  { %19237 = vmatprep.subr.mxu1 %v21273_v1 }
0x3a7b   :  { %19238 = vmatpush3.msra.mxu1 %v22394_v47 }
0x3a7c   :  { %19239 = vmatprep.subr.mxu1 %v21273_v1 }
0x3a7d   :  { %19240 = vmatpush3.msra.mxu1 %v22398_v48 }
0x3a7e   :  { %19241 = vmatprep.subr.mxu1 %v21273_v1 }
0x3a7f   :  { %19242 = vmatpush3.msra.mxu1 %v22402_v49 }
0x3a80   :  { %19257 = vmatprep.subr.mxu1 %v21273_v1 }
0x3b38   :  { %v5687_v30 = vpop.f32.mrf.mxu1 }
0x3b39   :  { %v22500_v31 = vadd.f32 %v22409_v53, %v5687_v30 }
0x3b3a   :  { %v19223_v32 = vpop.f32.mrf.mxu1 }
0x3b3b   :  { %v5691_v33 = vmul.f32 %v22500_v31, %v22358_v8 }
0x3b3d   :  { %v5692_v34 = vadd.f32 %v5691_v33, %v22473_v50 }
0x3b3f   :  { %19233 = vmatmul.mubr.msk.f32.vlgmr.msra.gmra.mxu0 %vm107_vm1, %v5692_v34 }
0x3b40   :  { %19247 = vmatpush3.msra.mxu0 %v22325_v35  ;;  %19254 = vmatprep.mubr.msk.f32.mxu0 %vm21274_vm0, %v21273_v1 }
0x3b41   :  { %19248 = vmatprep.subr.mxu0 %v21273_v1 }
0x3b42   :  { %19249 = vmatpush3.msra.mxu0 %v22331_v62 }
0x3b43   :  { %19250 = vmatprep.subr.mxu0 %v21273_v1 }
0x3b44   :  { %19251 = vmatpush3.msra.mxu0 %v22373_v26 }
0x3b45   :  { %19252 = vmatprep.subr.mxu0 %v21273_v1 }
0x3b46   :  { %19253 = vmatpush3.msra.mxu0 %v22377_v29 }
0x3b47   :  { %19268 = vmatprep.subr.mxu0 %v21273_v1 }
0x3bff   :  { %v5762_v36 = vpop.f32.mrf.mxu0 }
0x3c00   :  { %v5763_v38 = vadd.f32 %v22384_v42, %v5762_v36 }
0x3c01   :  { %v19234_v39 = vpop.f32.mrf.mxu0 }
0x3c02   :  { %20960 = vtanh.f32 %v5763_v38 }
0x3c0f   :  { %v20961_v40 = vpop.eup %20960 }
0x3c10   :  { %19244 = vmatmul.mubr.msk.f32.vlgmr.msra.gmra.mxu1 %vm107_vm1, %v20961_v40 }
0x3c11   :  { %19258 = vmatpush3.msra.mxu1 %v22388_v46  ;;  %19265 = vmatprep.mubr.msk.f32.mxu1 %vm21274_vm0, %v21273_v1 }
0x3c12   :  { %19259 = vmatprep.subr.mxu1 %v21273_v1 }
0x3c13   :  { %19260 = vmatpush3.msra.mxu1 %v22394_v47 }
0x3c14   :  { %19261 = vmatprep.subr.mxu1 %v21273_v1 }
0x3c15   :  { %19262 = vmatpush3.msra.mxu1 %v22398_v48 }
0x3c16   :  { %19263 = vmatprep.subr.mxu1 %v21273_v1 }
0x3c17   :  { %19264 = vmatpush3.msra.mxu1 %v22402_v49 }
0x3c18   :  { %19279 = vmatprep.subr.mxu1 %v21273_v1 }
0x3cd0   :  { %v5836_v7 = vpop.f32.mrf.mxu1 }
0x3cd1   :  { %v5837_v15 = vadd.f32 %v22409_v53, %v5836_v7 }
0x3cd2   :  { %v19245_v23 = vpop.f32.mrf.mxu1 }
0x3cd3   :  { %v5840_v24 = vmul.f32 %v5837_v15, %v22358_v8  ;;  %v6138_v52 = vmul.f32 2.0, %v5837_v15 }
0x3cd5   :  { %v5841_v25 = vadd.f32 %v5840_v24, %v22473_v50  ;;  %v6139_v0 = vadd.f32 %v6138_v52, %v22500_v31 }
0x3cd7   :  { %19255 = vmatmul.mubr.msk.f32.vlgmr.msra.gmra.mxu0 %vm107_vm1, %v5841_v25 }
0x3cd8   :  { %19269 = vmatpush3.msra.mxu0 %v22325_v35  ;;  %19276 = vmatprep.mubr.msk.f32.mxu0 %vm21274_vm0, %v21273_v1 }
0x3cd9   :  { %19270 = vmatprep.subr.mxu0 %v21273_v1 }
0x3cda   :  { %19271 = vmatpush3.msra.mxu0 %v22331_v62 }
0x3cdb   :  { %19272 = vmatprep.subr.mxu0 %v21273_v1 }
0x3cdc   :  { %19273 = vmatpush3.msra.mxu0 %v22373_v26 }
0x3cdd   :  { %19274 = vmatprep.subr.mxu0 %v21273_v1 }
0x3cde   :  { %19275 = vmatpush3.msra.mxu0 %v22377_v29 }
0x3cdf   :  { %19290 = vmatprep.subr.mxu0 %v21273_v1 }
0x3d97   :  { %v5911_v41 = vpop.f32.mrf.mxu0 }
0x3d98   :  { %v5912_v43 = vadd.f32 %v22384_v42, %v5911_v41 }
0x3d99   :  { %v19256_v44 = vpop.f32.mrf.mxu0 }
0x3d9a   :  { %20962 = vtanh.f32 %v5912_v43 }
0x3da7   :  { %v20963_v45 = vpop.eup %20962 }
0x3da8   :  { %19266 = vmatmul.mubr.msk.f32.vlgmr.msra.gmra.mxu1 %vm107_vm1, %v20963_v45 }
0x3da9   :  { %19280 = vmatpush3.msra.mxu1 %v22388_v46  ;;  %19287 = vmatprep.mubr.msk.f32.mxu1 %vm21274_vm0, %v21273_v1 }
0x3daa   :  { %19281 = vmatprep.subr.mxu1 %v21273_v1 }
0x3dab   :  { %19282 = vmatpush3.msra.mxu1 %v22394_v47 }
0x3dac   :  { %19283 = vmatprep.subr.mxu1 %v21273_v1 }
0x3dad   :  { %19284 = vmatpush3.msra.mxu1 %v22398_v48 }
0x3dae   :  { %19285 = vmatprep.subr.mxu1 %v21273_v1 }
0x3daf   :  { %19286 = vmatpush3.msra.mxu1 %v22402_v49 }
0x3db0   :  { %19301 = vmatprep.subr.mxu1 %v21273_v1 }
0x3e68   :  { %v5985_v54 = vpop.f32.mrf.mxu1 }
0x3e69   :  { %v5986_v55 = vadd.f32 %v22409_v53, %v5985_v54 }
0x3e6a   :  { %v19267_v17 = vpop.f32.mrf.mxu1 }
0x3e6b   :  { %v5989_v56 = vmul.f32 %v5986_v55, %v22438_v61  ;;  %v6140_v57 = vmul.f32 2.0, %v5986_v55 }
0x3e6d   :  { %v5990_v2 = vadd.f32 %v5989_v56, %v22473_v50  ;;  %v6141_v58 = vadd.f32 %v6140_v57, %v6139_v0 }
0x3e6f   :  { %19277 = vmatmul.mubr.msk.f32.vlgmr.msra.gmra.mxu0 %vm107_vm1, %v5990_v2 }
0x3e70   :  { %19291 = vmatpush3.msra.mxu0 %v22325_v35  ;;  %19298 = vmatprep.mubr.msk.f32.mxu0 %vm21274_vm0, %v21273_v1 }
0x3e71   :  { %19292 = vmatprep.subr.mxu0 %v21273_v1 }
0x3e72   :  { %19293 = vmatpush3.msra.mxu0 %v22331_v62 }
0x3e73   :  { %19294 = vmatprep.subr.mxu0 %v21273_v1 }
0x3e74   :  { %19295 = vmatpush3.msra.mxu0 %v22373_v26 }
0x3e75   :  { %19296 = vmatprep.subr.mxu0 %v21273_v1 }
0x3e76   :  { %19297 = vmatpush3.msra.mxu0 %v22377_v29 }
0x3e77   :  { %19312 = vmatprep.subr.mxu0 %v21273_v1 }
0x3f2f   :  { %v6060_v59 = vpop.f32.mrf.mxu0 }
0x3f30   :  { %v6061_v60 = vadd.f32 %v22384_v42, %v6060_v59 }
0x3f31   :  { %v19278_v63 = vpop.f32.mrf.mxu0 }
0x3f32   :  { %20964 = vtanh.f32 %v6061_v60 }
0x3f3f   :  { %v20965_v5 = vpop.eup %20964 }
0x3f40   :  { %19288 = vmatmul.mubr.msk.f32.vlgmr.msra.gmra.mxu1 %vm107_vm1, %v20965_v5 }
0x3f41   :  { %19302 = vmatpush3.msra.mxu1 %v22388_v46  ;;  %19309 = vmatprep.mubr.msk.f32.mxu1 %vm21274_vm0, %v21273_v1 }
0x3f42   :  { %19303 = vmatprep.subr.mxu1 %v21273_v1 }
0x3f43   :  { %19304 = vmatpush3.msra.mxu1 %v22394_v47 }
0x3f44   :  { %19305 = vmatprep.subr.mxu1 %v21273_v1 }
0x3f45   :  { %19306 = vmatpush3.msra.mxu1 %v22398_v48 }
0x3f46   :  { %19307 = vmatprep.subr.mxu1 %v21273_v1 }
0x3f47   :  { %19308 = vmatpush3.msra.mxu1 %v22402_v49 }
0x3f48   :  { %19323 = vmatprep.subr.mxu1 %v21273_v1 }
0x4000   :  { %v6134_v11 = vpop.f32.mrf.mxu1 }
0x4001   :  { %v6135_v37 = vadd.f32 %v22409_v53, %v6134_v11 }
0x4002   :  { %v19289_v28 = vpop.f32.mrf.mxu1 }
0x4003   :  { %v6142_v14 = vadd.f32 %v6141_v58, %v6135_v37 }
0x4005   :  { %v6143_v16 = vmul.f32 %v6142_v14, %v22469_v20 }
0x4007   :  { %v22584_v18 = vadd.f32 %v6143_v16, %v22473_v50 }
0x4009   :  { %19299 = vmatmul.mubr.msk.f32.vlgmr.msra.gmra.mxu0 %vm107_vm1, %v22584_v18 }
0x400a   :  { %19313 = vmatpush3.msra.mxu0 %v22325_v35  ;;  %19320 = vmatprep.mubr.msk.f32.mxu0 %vm21274_vm0, %v21273_v1 }
0x400b   :  { %19314 = vmatprep.subr.mxu0 %v21273_v1 }
0x400c   :  { %19315 = vmatpush3.msra.mxu0 %v22331_v62 }
0x400d   :  { %19316 = vmatprep.subr.mxu0 %v21273_v1 }
0x400e   :  { %19317 = vmatpush3.msra.mxu0 %v22373_v26 }
0x400f   :  { %19318 = vmatprep.subr.mxu0 %v21273_v1 }
0x4010   :  { %19319 = vmatpush3.msra.mxu0 %v22377_v29 }
0x4011   :  { %19334 = vmatprep.subr.mxu0 %v21273_v1 }
0x40c9   :  { %v6214_v3 = vpop.f32.mrf.mxu0 }
0x40ca   :  { %v6215_v4 = vadd.f32 %v22384_v42, %v6214_v3 }
0x40cb   :  { %v19300_v6 = vpop.f32.mrf.mxu0 }
0x40cc   :  { %20966 = vtanh.f32 %v6215_v4 }
0x40d9   :  { %v20967_v10 = vpop.eup %20966 }
0x40da   :  { %19310 = vmatmul.mubr.msk.f32.vlgmr.msra.gmra.mxu1 %vm107_vm1, %v20967_v10 }
0x40db   :  { %19324 = vmatpush3.msra.mxu1 %v22388_v46  ;;  %19331 = vmatprep.mubr.msk.f32.mxu1 %vm21274_vm0, %v21273_v1 }
0x40dc   :  { %19325 = vmatprep.subr.mxu1 %v21273_v1 }
0x40dd   :  { %19326 = vmatpush3.msra.mxu1 %v22394_v47 }
0x40de   :  { %19327 = vmatprep.subr.mxu1 %v21273_v1 }
0x40df   :  { %19328 = vmatpush3.msra.mxu1 %v22398_v48 }
0x40e0   :  { %19329 = vmatprep.subr.mxu1 %v21273_v1 }
0x40e1   :  { %19330 = vmatpush3.msra.mxu1 %v22402_v49 }
0x40e2   :  { %19345 = vmatprep.subr.mxu1 %v21273_v1 }
0x419a   :  { %v6288_v19 = vpop.f32.mrf.mxu1 }
0x419b   :  { %v22611_v9 = vadd.f32 %v22409_v53, %v6288_v19 }
0x419c   :  { %v19311_v51 = vpop.f32.mrf.mxu1 }
0x419d   :  { %v6292_v21 = vmul.f32 %v22611_v9, %v22358_v8 }
0x419f   :  { %v6293_v50 = vadd.f32 %v6292_v21, %v22584_v18 }
0x41a1   :  { %19321 = vmatmul.mubr.msk.f32.vlgmr.msra.gmra.mxu0 %vm107_vm1, %v6293_v50 }
0x41a2   :  { %19335 = vmatpush3.msra.mxu0 %v22325_v35  ;;  %19342 = vmatprep.mubr.msk.f32.mxu0 %vm21274_vm0, %v21273_v1 }
0x41a3   :  { %19336 = vmatprep.subr.mxu0 %v21273_v1 }
0x41a4   :  { %19337 = vmatpush3.msra.mxu0 %v22331_v62 }
0x41a5   :  { %19338 = vmatprep.subr.mxu0 %v21273_v1 }
0x41a6   :  { %19339 = vmatpush3.msra.mxu0 %v22373_v26 }
0x41a7   :  { %19340 = vmatprep.subr.mxu0 %v21273_v1 }
0x41a8   :  { %19341 = vmatpush3.msra.mxu0 %v22377_v29 }
0x41a9   :  { %19356 = vmatprep.subr.mxu0 %v21273_v1 }
0x4261   :  { %v6363_v12 = vpop.f32.mrf.mxu0 }
0x4262   :  { %v6364_v22 = vadd.f32 %v22384_v42, %v6363_v12 }
0x4263   :  { %v19322_v27 = vpop.f32.mrf.mxu0 }
0x4264   :  { %20968 = vtanh.f32 %v6364_v22 }
0x4271   :  { %v20969_v13 = vpop.eup %20968 }
0x4272   :  { %19332 = vmatmul.mubr.msk.f32.vlgmr.msra.gmra.mxu1 %vm107_vm1, %v20969_v13 }
0x4273   :  { %19346 = vmatpush3.msra.mxu1 %v22388_v46  ;;  %19353 = vmatprep.mubr.msk.f32.mxu1 %vm21274_vm0, %v21273_v1 }
0x4274   :  { %19347 = vmatprep.subr.mxu1 %v21273_v1 }
0x4275   :  { %19348 = vmatpush3.msra.mxu1 %v22394_v47 }
0x4276   :  { %19349 = vmatprep.subr.mxu1 %v21273_v1 }
0x4277   :  { %19350 = vmatpush3.msra.mxu1 %v22398_v48 }
0x4278   :  { %19351 = vmatprep.subr.mxu1 %v21273_v1 }
0x4279   :  { %19352 = vmatpush3.msra.mxu1 %v22402_v49 }
0x427a   :  { %19367 = vmatprep.subr.mxu1 %v21273_v1 }
0x4332   :  { %v6437_v30 = vpop.f32.mrf.mxu1 }
0x4333   :  { %v6438_v31 = vadd.f32 %v22409_v53, %v6437_v30 }
0x4334   :  { %v19333_v32 = vpop.f32.mrf.mxu1 }
0x4335   :  { %v6441_v33 = vmul.f32 %v6438_v31, %v22358_v8  ;;  %v6739_v7 = vmul.f32 2.0, %v6438_v31 }
0x4337   :  { %v6442_v34 = vadd.f32 %v6441_v33, %v22584_v18  ;;  %v6740_v25 = vadd.f32 %v6739_v7, %v22611_v9 }
0x4339   :  { %19343 = vmatmul.mubr.msk.f32.vlgmr.msra.gmra.mxu0 %vm107_vm1, %v6442_v34 }
0x433a   :  { %19357 = vmatpush3.msra.mxu0 %v22325_v35  ;;  %19364 = vmatprep.mubr.msk.f32.mxu0 %vm21274_vm0, %v21273_v1 }
0x433b   :  { %19358 = vmatprep.subr.mxu0 %v21273_v1 }
0x433c   :  { %19359 = vmatpush3.msra.mxu0 %v22331_v62 }
0x433d   :  { %19360 = vmatprep.subr.mxu0 %v21273_v1 }
0x433e   :  { %19361 = vmatpush3.msra.mxu0 %v22373_v26 }
0x433f   :  { %19362 = vmatprep.subr.mxu0 %v21273_v1 }
0x4340   :  { %19363 = vmatpush3.msra.mxu0 %v22377_v29 }
0x4341   :  { %19378 = vmatprep.subr.mxu0 %v21273_v1 }
0x43f9   :  { %v6512_v36 = vpop.f32.mrf.mxu0 }
0x43fa   :  { %v6513_v38 = vadd.f32 %v22384_v42, %v6512_v36 }
0x43fb   :  { %v19344_v39 = vpop.f32.mrf.mxu0 }
0x43fc   :  { %20970 = vtanh.f32 %v6513_v38 }
0x4409   :  { %v20971_v40 = vpop.eup %20970 }
0x440a   :  { %19354 = vmatmul.mubr.msk.f32.vlgmr.msra.gmra.mxu1 %vm107_vm1, %v20971_v40 }
0x440b   :  { %19368 = vmatpush3.msra.mxu1 %v22388_v46  ;;  %19375 = vmatprep.mubr.msk.f32.mxu1 %vm21274_vm0, %v21273_v1 }
0x440c   :  { %19369 = vmatprep.subr.mxu1 %v21273_v1 }
0x440d   :  { %19370 = vmatpush3.msra.mxu1 %v22394_v47 }
0x440e   :  { %19371 = vmatprep.subr.mxu1 %v21273_v1 }
0x440f   :  { %19372 = vmatpush3.msra.mxu1 %v22398_v48 }
0x4410   :  { %19373 = vmatprep.subr.mxu1 %v21273_v1 }
0x4411   :  { %19374 = vmatpush3.msra.mxu1 %v22402_v49 }
0x4412   :  { %19389 = vmatprep.subr.mxu1 %v21273_v1 }
0x44ca   :  { %v6586_v15 = vpop.f32.mrf.mxu1 }
0x44cb   :  { %v6587_v23 = vadd.f32 %v22409_v53, %v6586_v15 }
0x44cc   :  { %v19355_v24 = vpop.f32.mrf.mxu1 }
0x44cd   :  { %v6590_v41 = vmul.f32 %v6587_v23, %v22438_v61  ;;  %v6741_v43 = vmul.f32 2.0, %v6587_v23 }
0x44cf   :  { %v6591_v44 = vadd.f32 %v6590_v41, %v22584_v18  ;;  %v6742_v45 = vadd.f32 %v6741_v43, %v6740_v25 }
0x44d1   :  { %19365 = vmatmul.mubr.msk.f32.vlgmr.msra.gmra.mxu0 %vm107_vm1, %v6591_v44 }
0x44d2   :  { %19379 = vmatpush3.msra.mxu0 %v22325_v35  ;;  %19386 = vmatprep.mubr.msk.f32.mxu0 %vm21274_vm0, %v21273_v1 }
0x44d3   :  { %19380 = vmatprep.subr.mxu0 %v21273_v1 }
0x44d4   :  { %19381 = vmatpush3.msra.mxu0 %v22331_v62 }
0x44d5   :  { %19382 = vmatprep.subr.mxu0 %v21273_v1 }
0x44d6   :  { %19383 = vmatpush3.msra.mxu0 %v22373_v26 }
0x44d7   :  { %19384 = vmatprep.subr.mxu0 %v21273_v1 }
0x44d8   :  { %19385 = vmatpush3.msra.mxu0 %v22377_v29 }
0x44d9   :  { %19400 = vmatprep.subr.mxu0 %v21273_v1 }
0x4591   :  { %v6661_v52 = vpop.f32.mrf.mxu0 }
0x4592   :  { %v6662_v54 = vadd.f32 %v22384_v42, %v6661_v52 }
0x4593   :  { %v19366_v55 = vpop.f32.mrf.mxu0 }
0x4594   :  { %20972 = vtanh.f32 %v6662_v54  ;;  %v22839_v54 = vstv %s7352_s18 }
0x45a1   :  { %v20973_v17 = vpop.eup %20972 }
0x45a2   :  { %19376 = vmatmul.mubr.msk.f32.vlgmr.msra.gmra.mxu1 %vm107_vm1, %v20973_v17 }
0x45a3   :  { %19390 = vmatpush3.msra.mxu1 %v22388_v46  ;;  %19397 = vmatprep.mubr.msk.f32.mxu1 %vm21274_vm0, %v21273_v1 }
0x45a4   :  { %19391 = vmatprep.subr.mxu1 %v21273_v1 }
0x45a5   :  { %19392 = vmatpush3.msra.mxu1 %v22394_v47 }
0x45a6   :  { %19393 = vmatprep.subr.mxu1 %v21273_v1 }
0x45a7   :  { %19394 = vmatpush3.msra.mxu1 %v22398_v48 }
0x45a8   :  { %19395 = vmatprep.subr.mxu1 %v21273_v1 }
0x45a9   :  { %19396 = vmatpush3.msra.mxu1 %v22402_v49 }
0x45aa   :  { %19411 = vmatprep.subr.mxu1 %v21273_v1 }
0x4662   :  { %v6735_v0 = vpop.f32.mrf.mxu1 }
0x4663   :  { %v6736_v56 = vadd.f32 %v22409_v53, %v6735_v0 }
0x4664   :  { %v19377_v57 = vpop.f32.mrf.mxu1 }
0x4665   :  { %v6743_v2 = vadd.f32 %v6742_v45, %v6736_v56  ;;  %v22848_v57 = vld [vmem:[#allocation7 + $0x18] sm:$0xff] }
0x4667   :  { %v6744_v58 = vmul.f32 %v6743_v2, %v22469_v20  ;;  %v22854_v2 = vld [vmem:[#allocation7 + $0x10] sm:$0xff] }
0x4669   :  { %v22695_v59 = vadd.f32 %v6744_v58, %v22584_v18 }
0x466b   :  { %19387 = vmatmul.mubr.msk.f32.vlgmr.msra.gmra.mxu0 %vm107_vm1, %v22695_v59 }
0x466c   :  { %19401 = vmatpush3.msra.mxu0 %v22325_v35  ;;  %19408 = vmatprep.mubr.msk.f32.mxu0 %vm21274_vm0, %v21273_v1 }
0x466d   :  { %19402 = vmatprep.subr.mxu0 %v21273_v1 }
0x466e   :  { %19403 = vmatpush3.msra.mxu0 %v22331_v62 }
0x466f   :  { %19404 = vmatprep.subr.mxu0 %v21273_v1 }
0x4670   :  { %19405 = vmatpush3.msra.mxu0 %v22373_v26 }
0x4671   :  { %19406 = vmatprep.subr.mxu0 %v21273_v1 }
0x4672   :  { %19407 = vmatpush3.msra.mxu0 %v22377_v29 }
0x4673   :  { %19422 = vmatprep.subr.mxu0 %v21273_v1 }
0x472b   :  { %v6815_v60 = vpop.f32.mrf.mxu0 }
0x472c   :  { %v6816_v63 = vadd.f32 %v22384_v42, %v6815_v60 }
0x472d   :  { %v19388_v5 = vpop.f32.mrf.mxu0 }
0x472e   :  { %20974 = vtanh.f32 %v6816_v63 }
0x473b   :  { %v20975_v11 = vpop.eup %20974 }
0x473c   :  { %19398 = vmatmul.mubr.msk.f32.vlgmr.msra.gmra.mxu1 %vm107_vm1, %v20975_v11 }
0x473d   :  { %19412 = vmatpush3.msra.mxu1 %v22388_v46  ;;  %19419 = vmatprep.mubr.msk.f32.mxu1 %vm21274_vm0, %v21273_v1 }
0x473e   :  { %19413 = vmatprep.subr.mxu1 %v21273_v1 }
0x473f   :  { %19414 = vmatpush3.msra.mxu1 %v22394_v47 }
0x4740   :  { %19415 = vmatprep.subr.mxu1 %v21273_v1 }
0x4741   :  { %19416 = vmatpush3.msra.mxu1 %v22398_v48 }
0x4742   :  { %19417 = vmatprep.subr.mxu1 %v21273_v1 }
0x4743   :  { %19418 = vmatpush3.msra.mxu1 %v22402_v49 }
0x4744   :  { %19433 = vmatprep.subr.mxu1 %v21273_v1 }
0x47fc   :  { %v6889_v37 = vpop.f32.mrf.mxu1 }
0x47fd   :  { %v22722_v28 = vadd.f32 %v22409_v53, %v6889_v37 }
0x47fe   :  { %v19399_v14 = vpop.f32.mrf.mxu1 }
0x47ff   :  { %v6893_v16 = vmul.f32 %v22722_v28, %v22358_v8  ;;  %v22899_v14 = vld [vmem:[#allocation9 + $0x18] sm:$0xff] }
0x4801   :  { %v6894_v18 = vadd.f32 %v6893_v16, %v22695_v59  ;;  %v22905_v16 = vld [vmem:[#allocation9 + $0x10] sm:$0xff] }
0x4803   :  { %19409 = vmatmul.mubr.msk.f32.vlgmr.msra.gmra.mxu0 %vm107_vm1, %v6894_v18  ;;  %v22909_v18 = vld [vmem:[#allocation9 + $0x8] sm:$0xff] }
0x4804   :  { %19423 = vmatpush3.msra.mxu0 %v22325_v35  ;;  %19430 = vmatprep.mubr.msk.f32.mxu0 %vm21274_vm0, %v21273_v1 }
0x4805   :  { %19424 = vmatprep.subr.mxu0 %v21273_v1 }
0x4806   :  { %19425 = vmatpush3.msra.mxu0 %v22331_v62 }
0x4807   :  { %19426 = vmatprep.subr.mxu0 %v21273_v1 }
0x4808   :  { %19427 = vmatpush3.msra.mxu0 %v22373_v26 }
0x4809   :  { %19428 = vmatprep.subr.mxu0 %v21273_v1 }
0x480a   :  { %19429 = vmatpush3.msra.mxu0 %v22377_v29 }
0x480b   :  { %19444 = vmatprep.subr.mxu0 %v21273_v1 }
0x48c3   :  { %v6964_v3 = vpop.f32.mrf.mxu0 }
0x48c4   :  { %v6965_v4 = vadd.f32 %v22384_v42, %v6964_v3  ;;  %v22913_v3 = vld [vmem:[#allocation9] sm:$0xff] }
0x48c5   :  { %v19410_v6 = vpop.f32.mrf.mxu0 }
0x48c6   :  { %20976 = vtanh.f32 %v6965_v4 }
0x48d3   :  { %v20977_v10 = vpop.eup %20976 }
0x48d4   :  { %19420 = vmatmul.mubr.msk.f32.vlgmr.msra.gmra.mxu1 %vm107_vm1, %v20977_v10  ;;  %v22918_v10 = vstv %s22836_s17 }
0x48d5   :  { %19434 = vmatpush3.msra.mxu1 %v22388_v46  ;;  %19441 = vmatprep.mubr.msk.f32.mxu1 %vm21274_vm0, %v21273_v1 }
0x48d6   :  { %19435 = vmatprep.subr.mxu1 %v21273_v1 }
0x48d7   :  { %19436 = vmatpush3.msra.mxu1 %v22394_v47 }
0x48d8   :  { %19437 = vmatprep.subr.mxu1 %v21273_v1 }
0x48d9   :  { %19438 = vmatpush3.msra.mxu1 %v22398_v48 }
0x48da   :  { %19439 = vmatprep.subr.mxu1 %v21273_v1 }
0x48db   :  { %19440 = vmatpush3.msra.mxu1 %v22402_v49 }
0x48dc   :  { %19455 = vmatprep.subr.mxu1 %v21273_v1 }
0x4994   :  { %v7038_v19 = vpop.f32.mrf.mxu1 }
0x4995   :  { %v7039_v9 = vadd.f32 %v22409_v53, %v7038_v19  ;;  %v22923_v19 = vld [vmem:[%s24742_s5] ss:$0 sm:$0xff] }
0x4996   :  { %v19421_v51 = vpop.f32.mrf.mxu1 }
0x4997   :  { %v7042_v21 = vmul.f32 %v7039_v9, %v22358_v8  ;;  %v7340_v13 = vmul.f32 2.0, %v7039_v9 }
0x4999   :  { %v7043_v50 = vadd.f32 %v7042_v21, %v22695_v59  ;;  %v7341_v33 = vadd.f32 %v7340_v13, %v22722_v28 }
0x499b   :  { %19431 = vmatmul.mubr.msk.f32.vlgmr.msra.gmra.mxu0 %vm107_vm1, %v7043_v50 }
0x499c   :  { %19445 = vmatpush3.msra.mxu0 %v22325_v35  ;;  %19452 = vmatprep.mubr.msk.f32.mxu0 %vm21274_vm0, %v21273_v1 }
0x499d   :  { %19446 = vmatprep.subr.mxu0 %v21273_v1 }
0x499e   :  { %19447 = vmatpush3.msra.mxu0 %v22331_v62 }
0x499f   :  { %19448 = vmatprep.subr.mxu0 %v21273_v1 }
0x49a0   :  { %19449 = vmatpush3.msra.mxu0 %v22373_v26 }
0x49a1   :  { %19450 = vmatprep.subr.mxu0 %v21273_v1 }
0x49a2   :  { %19451 = vmatpush3.msra.mxu0 %v22377_v29 }
0x49a3   :  { %19466 = vmatprep.subr.mxu0 %v21273_v1 }
0x4a5b   :  { %v7113_v8 = vpop.f32.mrf.mxu0 }
0x4a5c   :  { %v7114_v12 = vadd.f32 %v22384_v42, %v7113_v8 }
0x4a5d   :  { %v19432_v22 = vpop.f32.mrf.mxu0 }
0x4a5e   :  { %20978 = vtanh.f32 %v7114_v12 }
0x4a6b   :  { %v20979_v27 = vpop.eup %20978 }
0x4a6c   :  { %19442 = vmatmul.mubr.msk.f32.vlgmr.msra.gmra.mxu1 %vm107_vm1, %v20979_v27 }
0x4a6d   :  { %19456 = vmatpush3.msra.mxu1 %v22388_v46  ;;  %19463 = vmatprep.mubr.msk.f32.mxu1 %vm21274_vm0, %v21273_v1 }
0x4a6e   :  { %19457 = vmatprep.subr.mxu1 %v21273_v1 }
0x4a6f   :  { %19458 = vmatpush3.msra.mxu1 %v22394_v47 }
0x4a70   :  { %19459 = vmatprep.subr.mxu1 %v21273_v1 }
0x4a71   :  { %19460 = vmatpush3.msra.mxu1 %v22398_v48 }
0x4a72   :  { %19461 = vmatprep.subr.mxu1 %v21273_v1 }
0x4a73   :  { %19462 = vmatpush3.msra.mxu1 %v22402_v49 }
0x4a74   :  { %19477 = vmatprep.subr.mxu1 %v21273_v1 }
0x4b2c   :  { %v7187_v30 = vpop.f32.mrf.mxu1 }
0x4b2d   :  { %v7188_v31 = vadd.f32 %v22409_v53, %v7187_v30 }
0x4b2e   :  { %v19443_v32 = vpop.f32.mrf.mxu1 }
0x4b2f   :  { %v7191_v34 = vmul.f32 %v7188_v31, %v22438_v61  ;;  %v7342_v36 = vmul.f32 2.0, %v7188_v31 }
0x4b31   :  { %v7192_v38 = vadd.f32 %v7191_v34, %v22695_v59  ;;  %v7343_v39 = vadd.f32 %v7342_v36, %v7341_v33  ;;  %v22954_v34 = vstv %s7355_s24 }
0x4b33   :  { %19453 = vmatmul.mubr.msk.f32.vlgmr.msra.gmra.mxu0 %vm107_vm1, %v7192_v38 }
0x4b34   :  { %19467 = vmatpush3.msra.mxu0 %v22325_v35  ;;  %19474 = vmatprep.mubr.msk.f32.mxu0 %vm21274_vm0, %v21273_v1 }
0x4b35   :  { %19468 = vmatprep.subr.mxu0 %v21273_v1 }
0x4b36   :  { %19469 = vmatpush3.msra.mxu0 %v22331_v62 }
0x4b37   :  { %19470 = vmatprep.subr.mxu0 %v21273_v1 }
0x4b38   :  { %19471 = vmatpush3.msra.mxu0 %v22373_v26 }
0x4b39   :  { %19472 = vmatprep.subr.mxu0 %v21273_v1 }
0x4b3a   :  { %19473 = vmatpush3.msra.mxu0 %v22377_v29 }
0x4b3b   :  { %19488 = vmatprep.subr.mxu0 %v21273_v1 }
0x4bf3   :  { %v7262_v61 = vpop.f32.mrf.mxu0 }
0x4bf4   :  { %v7263_v40 = vadd.f32 %v22384_v42, %v7262_v61 }
0x4bf5   :  { %v19454_v7 = vpop.f32.mrf.mxu0 }
0x4bf6   :  { %20980 = vtanh.f32 %v7263_v40 }
0x4c03   :  { %v20981_v15 = vpop.eup %20980 }
0x4c04   :  { %19464 = vmatmul.mubr.msk.f32.vlgmr.msra.gmra.mxu1 %vm107_vm1, %v20981_v15 }
0x4c05   :  { %19478 = vmatpush3.msra.mxu1 %v22388_v46  ;;  %19485 = vmatprep.mubr.msk.f32.mxu1 %vm21274_vm0, %v21273_v1 }
0x4c06   :  { %19479 = vmatprep.subr.mxu1 %v21273_v1 }
0x4c07   :  { %19480 = vmatpush3.msra.mxu1 %v22394_v47 }
0x4c08   :  { %19481 = vmatprep.subr.mxu1 %v21273_v1 }
0x4c09   :  { %19482 = vmatpush3.msra.mxu1 %v22398_v48 }
0x4c0a   :  { %19483 = vmatprep.subr.mxu1 %v21273_v1 }
0x4c0b   :  { %19484 = vmatpush3.msra.mxu1 %v22402_v49 }
0x4c0c   :  { %19499 = vmatprep.subr.mxu1 %v21273_v1 }
0x4cc4   :  { %v7336_v23 = vpop.f32.mrf.mxu1 }
0x4cc5   :  { %v7337_v24 = vadd.f32 %v22409_v53, %v7336_v23 }
0x4cc6   :  { %v19465_v25 = vpop.f32.mrf.mxu1 }
0x4cc7   :  { %v7344_v41 = vadd.f32 %v7343_v39, %v7337_v24 }
0x4cc9   :  { %v7345_v43 = vmul.f32 %v7344_v41, %v22469_v20 }
0x4ccb   :  { %v22806_v44 = vadd.f32 %v7345_v43, %v22695_v59 }
0x4ccd   :  { %19475 = vmatmul.mubr.msk.f32.vlgmr.msra.gmra.mxu0 %vm107_vm1, %v22806_v44 }
0x4cce   :  { %19489 = vmatpush3.msra.mxu0 %v22325_v35  ;;  %19496 = vmatprep.mubr.msk.f32.mxu0 %vm21274_vm0, %v21273_v1 }
0x4ccf   :  { %19490 = vmatprep.subr.mxu0 %v21273_v1 }
0x4cd0   :  { %19491 = vmatpush3.msra.mxu0 %v22331_v62 }
0x4cd1   :  { %19492 = vmatprep.subr.mxu0 %v21273_v1 }
0x4cd2   :  { %19493 = vmatpush3.msra.mxu0 %v22373_v26 }
0x4cd3   :  { %19494 = vmatprep.subr.mxu0 %v21273_v1 }
0x4cd4   :  { %19495 = vmatpush3.msra.mxu0 %v22377_v29 }
0x4cd5   :  { %19510 = vmatprep.subr.mxu0 %v21273_v1 }
0x4d8d   :  { %v7425_v20 = vpop.f32.mrf.mxu0 }
0x4d8e   :  { %v7426_v35 = vadd.f32 %v22384_v42, %v7425_v20 }
0x4d8f   :  { %v19476_v45 = vpop.f32.mrf.mxu0 }
0x4d90   :  { %20982 = vtanh.f32 %v7426_v35 }
0x4d9d   :  { %v20983_v52 = vpop.eup %20982 }
0x4d9e   :  { %19486 = vmatmul.mubr.msk.f32.vlgmr.msra.gmra.mxu1 %vm107_vm1, %v20983_v52 }
0x4d9f   :  { %19500 = vmatpush3.msra.mxu1 %v22388_v46  ;;  %19507 = vmatprep.mubr.msk.f32.mxu1 %vm21274_vm0, %v21273_v1 }
0x4da0   :  { %19501 = vmatprep.subr.mxu1 %v21273_v1 }
0x4da1   :  { %19502 = vmatpush3.msra.mxu1 %v22394_v47 }
0x4da2   :  { %19503 = vmatprep.subr.mxu1 %v21273_v1 }
0x4da3   :  { %19504 = vmatpush3.msra.mxu1 %v22398_v48 }
0x4da4   :  { %19505 = vmatprep.subr.mxu1 %v21273_v1 }
0x4da5   :  { %19506 = vmatpush3.msra.mxu1 %v22402_v49 }
0x4da6   :  { %19521 = vmatprep.subr.mxu1 %v21273_v1 }
0x4e5e   :  { %v7499_v62 = vpop.f32.mrf.mxu1 }
0x4e5f   :  { %v22842_v55 = vadd.f32 %v22409_v53, %v7499_v62 }
0x4e60   :  { %v19487_v17 = vpop.f32.mrf.mxu1 }
0x4e61   :  { %v7504_v0 = vmul.f32 %v22839_v54, %v22842_v55 }
0x4e63   :  { %v7505_v56 = vadd.f32 %v7504_v0, %v22806_v44 }
0x4e65   :  { %19497 = vmatmul.mubr.msk.f32.vlgmr.msra.gmra.mxu0 %vm107_vm1, %v7505_v56 }
0x4e66   :  { %19511 = vmatpush3.msra.mxu0 %v22848_v57  ;;  %19518 = vmatprep.mubr.msk.f32.mxu0 %vm21274_vm0, %v21273_v1 }
0x4e67   :  { %19512 = vmatprep.subr.mxu0 %v21273_v1 }
0x4e68   :  { %19513 = vmatpush3.msra.mxu0 %v22854_v2 }
0x4e69   :  { %19514 = vmatprep.subr.mxu0 %v21273_v1 }
0x4e6a   :  { %19515 = vmatpush3.msra.mxu0 %v22373_v26 }
0x4e6b   :  { %19516 = vmatprep.subr.mxu0 %v21273_v1 }
0x4e6c   :  { %19517 = vmatpush3.msra.mxu0 %v22377_v29 }
0x4e6d   :  { %19532 = vmatprep.subr.mxu0 %v21273_v1 }
0x4f25   :  { %v7575_v58 = vpop.f32.mrf.mxu0 }
0x4f26   :  { %v7576_v59 = vadd.f32 %v22384_v42, %v7575_v58 }
0x4f27   :  { %v19498_v60 = vpop.f32.mrf.mxu0 }
0x4f28   :  { %20984 = vtanh.f32 %v7576_v59 }
0x4f35   :  { %v20985_v63 = vpop.eup %20984 }
0x4f36   :  { %19508 = vmatmul.mubr.msk.f32.vlgmr.msra.gmra.mxu1 %vm107_vm1, %v20985_v63 }
0x4f37   :  { %19522 = vmatpush3.msra.mxu1 %v22388_v46  ;;  %19529 = vmatprep.mubr.msk.f32.mxu1 %vm21274_vm0, %v21273_v1 }
0x4f38   :  { %19523 = vmatprep.subr.mxu1 %v21273_v1 }
0x4f39   :  { %19524 = vmatpush3.msra.mxu1 %v22394_v47  ;;  %v22884_v47 = vld [vmem:[#allocation7 + $0x8] sm:$0xff] }
0x4f3a   :  { %19525 = vmatprep.subr.mxu1 %v21273_v1 }
0x4f3b   :  { %19526 = vmatpush3.msra.mxu1 %v22398_v48  ;;  %v22888_v48 = vld [vmem:[#allocation7] sm:$0xff] }
0x4f3c   :  { %19527 = vmatprep.subr.mxu1 %v21273_v1 }
0x4f3d   :  { %19528 = vmatpush3.msra.mxu1 %v22402_v49 }
0x4f3e   :  { %19543 = vmatprep.subr.mxu1 %v21273_v1 }
0x4ff6   :  { %v7649_v26 = vpop.f32.mrf.mxu1 }
0x4ff7   :  { %v7650_v29 = vadd.f32 %v22409_v53, %v7649_v26  ;;  %v22895_v53 = vld [vmem:[%s24740_s3] ss:$0 sm:$0xff] }
0x4ff8   :  { %v19509_v42 = vpop.f32.mrf.mxu1 }
0x4ff9   :  { %v7653_v46 = vmul.f32 %v7650_v29, %v22839_v54  ;;  %v7952_v4 = vmul.f32 2.0, %v7650_v29 }
0x4ffb   :  { %v7654_v5 = vadd.f32 %v7653_v46, %v22806_v44  ;;  %v7953_v21 = vadd.f32 %v7952_v4, %v22842_v55 }
0x4ffd   :  { %19519 = vmatmul.mubr.msk.f32.vlgmr.msra.gmra.mxu0 %vm107_vm1, %v7654_v5 }
0x4ffe   :  { %19533 = vmatpush3.msra.mxu0 %v22848_v57  ;;  %19540 = vmatprep.mubr.msk.f32.mxu0 %vm21274_vm0, %v21273_v1 }
0x4fff   :  { %19534 = vmatprep.subr.mxu0 %v21273_v1 }
0x5000   :  { %19535 = vmatpush3.msra.mxu0 %v22854_v2 }
0x5001   :  { %19536 = vmatprep.subr.mxu0 %v21273_v1 }
0x5002   :  { %19537 = vmatpush3.msra.mxu0 %v22884_v47 }
0x5003   :  { %19538 = vmatprep.subr.mxu0 %v21273_v1 }
0x5004   :  { %19539 = vmatpush3.msra.mxu0 %v22888_v48 }
0x5005   :  { %19554 = vmatprep.subr.mxu0 %v21273_v1 }
0x50bd   :  { %v7724_v49 = vpop.f32.mrf.mxu0 }
0x50be   :  { %v7725_v11 = vadd.f32 %v22895_v53, %v7724_v49 }
0x50bf   :  { %v19520_v37 = vpop.f32.mrf.mxu0 }
0x50c0   :  { %20986 = vtanh.f32 %v7725_v11 }
0x50cd   :  { %v20987_v28 = vpop.eup %20986 }
0x50ce   :  { %19530 = vmatmul.mubr.msk.f32.vlgmr.msra.gmra.mxu1 %vm107_vm1, %v20987_v28 }
0x50cf   :  { %19544 = vmatpush3.msra.mxu1 %v22899_v14  ;;  %19551 = vmatprep.mubr.msk.f32.mxu1 %vm21274_vm0, %v21273_v1 }
0x50d0   :  { %19545 = vmatprep.subr.mxu1 %v21273_v1 }
0x50d1   :  { %19546 = vmatpush3.msra.mxu1 %v22905_v16 }
0x50d2   :  { %19547 = vmatprep.subr.mxu1 %v21273_v1 }
0x50d3   :  { %19548 = vmatpush3.msra.mxu1 %v22909_v18 }
0x50d4   :  { %19549 = vmatprep.subr.mxu1 %v21273_v1 }
0x50d5   :  { %19550 = vmatpush3.msra.mxu1 %v22913_v3 }
0x50d6   :  { %19565 = vmatprep.subr.mxu1 %v21273_v1 }
0x518e   :  { %v7798_v6 = vpop.f32.mrf.mxu1 }
0x518f   :  { %v7799_v9 = vadd.f32 %v22923_v19, %v7798_v6 }
0x5190   :  { %v19531_v51 = vpop.f32.mrf.mxu1 }
0x5191   :  { %v7803_v50 = vmul.f32 %v22918_v10, %v7799_v9  ;;  %v7954_v8 = vmul.f32 2.0, %v7799_v9 }
0x5193   :  { %v7804_v12 = vadd.f32 %v7803_v50, %v22806_v44  ;;  %v7955_v22 = vadd.f32 %v7954_v8, %v7953_v21 }
0x5195   :  { %19541 = vmatmul.mubr.msk.f32.vlgmr.msra.gmra.mxu0 %vm107_vm1, %v7804_v12 }
0x5196   :  { %19555 = vmatpush3.msra.mxu0 %v22848_v57  ;;  %19562 = vmatprep.mubr.msk.f32.mxu0 %vm21274_vm0, %v21273_v1 }
0x5197   :  { %19556 = vmatprep.subr.mxu0 %v21273_v1 }
0x5198   :  { %19557 = vmatpush3.msra.mxu0 %v22854_v2 }
0x5199   :  { %19558 = vmatprep.subr.mxu0 %v21273_v1 }
0x519a   :  { %19559 = vmatpush3.msra.mxu0 %v22884_v47 }
0x519b   :  { %19560 = vmatprep.subr.mxu0 %v21273_v1 }
0x519c   :  { %19561 = vmatpush3.msra.mxu0 %v22888_v48 }
0x519d   :  { %19576 = vmatprep.subr.mxu0 %v21273_v1 }
0x5255   :  { %v7874_v27 = vpop.f32.mrf.mxu0 }
0x5256   :  { %v7875_v13 = vadd.f32 %v22895_v53, %v7874_v27 }
0x5257   :  { %v19542_v30 = vpop.f32.mrf.mxu0 }
0x5258   :  { %20988 = vtanh.f32 %v7875_v13 }
0x5265   :  { %v20989_v31 = vpop.eup %20988 }
0x5266   :  { %19552 = vmatmul.mubr.msk.f32.vlgmr.msra.gmra.mxu1 %vm107_vm1, %v20989_v31 }
0x5267   :  { %19566 = vmatpush3.msra.mxu1 %v22899_v14  ;;  %19573 = vmatprep.mubr.msk.f32.mxu1 %vm21274_vm0, %v21273_v1 }
0x5268   :  { %19567 = vmatprep.subr.mxu1 %v21273_v1 }
0x5269   :  { %19568 = vmatpush3.msra.mxu1 %v22905_v16 }
0x526a   :  { %19569 = vmatprep.subr.mxu1 %v21273_v1 }
0x526b   :  { %19570 = vmatpush3.msra.mxu1 %v22909_v18 }
0x526c   :  { %19571 = vmatprep.subr.mxu1 %v21273_v1 }
0x526d   :  { %19572 = vmatpush3.msra.mxu1 %v22913_v3 }
0x526e   :  { %19587 = vmatprep.subr.mxu1 %v21273_v1 }
0x5326   :  { %v7948_v32 = vpop.f32.mrf.mxu1 }
0x5327   :  { %v7949_v33 = vadd.f32 %v22923_v19, %v7948_v32 }
0x5328   :  { %v19553_v36 = vpop.f32.mrf.mxu1 }
0x5329   :  { %v7956_v38 = vadd.f32 %v7955_v22, %v7949_v33 }
0x532b   :  { %v7958_v39 = vmul.f32 %v22954_v34, %v7956_v38 }
0x532d   :  { %v22958_v61 = vadd.f32 %v7958_v39, %v22806_v44 }
0x532f   :  { %19563 = vmatmul.mubr.msk.f32.vlgmr.msra.gmra.mxu0 %vm107_vm1, %v22958_v61 }
0x5330   :  { %19577 = vmatpush3.msra.mxu0 %v22848_v57  ;;  %19584 = vmatprep.mubr.msk.f32.mxu0 %vm21274_vm0, %v21273_v1 }
0x5331   :  { %19578 = vmatprep.subr.mxu0 %v21273_v1 }
0x5332   :  { %19579 = vmatpush3.msra.mxu0 %v22854_v2 }
0x5333   :  { %19580 = vmatprep.subr.mxu0 %v21273_v1 }
0x5334   :  { %19581 = vmatpush3.msra.mxu0 %v22884_v47 }
0x5335   :  { %19582 = vmatprep.subr.mxu0 %v21273_v1 }
0x5336   :  { %19583 = vmatpush3.msra.mxu0 %v22888_v48 }
0x5337   :  { %19598 = vmatprep.subr.mxu0 %v21273_v1 }
0x53ef   :  { %v8029_v40 = vpop.f32.mrf.mxu0 }
0x53f0   :  { %v8030_v7 = vadd.f32 %v22895_v53, %v8029_v40 }
0x53f1   :  { %v19564_v15 = vpop.f32.mrf.mxu0 }
0x53f2   :  { %20990 = vtanh.f32 %v8030_v7 }
0x53ff   :  { %v20991_v23 = vpop.eup %20990 }
0x5400   :  { %19574 = vmatmul.mubr.msk.f32.vlgmr.msra.gmra.mxu1 %vm107_vm1, %v20991_v23 }
0x5401   :  { %19588 = vmatpush3.msra.mxu1 %v22899_v14  ;;  %19595 = vmatprep.mubr.msk.f32.mxu1 %vm21274_vm0, %v21273_v1 }
0x5402   :  { %19589 = vmatprep.subr.mxu1 %v21273_v1 }
0x5403   :  { %19590 = vmatpush3.msra.mxu1 %v22905_v16 }
0x5404   :  { %19591 = vmatprep.subr.mxu1 %v21273_v1 }
0x5405   :  { %19592 = vmatpush3.msra.mxu1 %v22909_v18 }
0x5406   :  { %19593 = vmatprep.subr.mxu1 %v21273_v1 }
0x5407   :  { %19594 = vmatpush3.msra.mxu1 %v22913_v3 }
0x5408   :  { %19609 = vmatprep.subr.mxu1 %v21273_v1 }
0x54c0   :  { %v8103_v24 = vpop.f32.mrf.mxu1 }
0x54c1   :  { %v22985_v25 = vadd.f32 %v22923_v19, %v8103_v24 }
0x54c2   :  { %v19575_v41 = vpop.f32.mrf.mxu1 }
0x54c3   :  { %v8107_v43 = vmul.f32 %v22985_v25, %v22839_v54 }
0x54c5   :  { %v8108_v20 = vadd.f32 %v8107_v43, %v22958_v61 }
0x54c7   :  { %19585 = vmatmul.mubr.msk.f32.vlgmr.msra.gmra.mxu0 %vm107_vm1, %v8108_v20 }
0x54c8   :  { %19599 = vmatpush3.msra.mxu0 %v22848_v57  ;;  %19606 = vmatprep.mubr.msk.f32.mxu0 %vm21274_vm0, %v21273_v1 }
0x54c9   :  { %19600 = vmatprep.subr.mxu0 %v21273_v1 }
0x54ca   :  { %19601 = vmatpush3.msra.mxu0 %v22854_v2 }
0x54cb   :  { %19602 = vmatprep.subr.mxu0 %v21273_v1 }
0x54cc   :  { %19603 = vmatpush3.msra.mxu0 %v22884_v47 }
0x54cd   :  { %19604 = vmatprep.subr.mxu0 %v21273_v1 }
0x54ce   :  { %19605 = vmatpush3.msra.mxu0 %v22888_v48 }
0x54cf   :  { %19620 = vmatprep.subr.mxu0 %v21273_v1 }
0x5587   :  { %v8178_v35 = vpop.f32.mrf.mxu0 }
0x5588   :  { %v8179_v45 = vadd.f32 %v22895_v53, %v8178_v35 }
0x5589   :  { %v19586_v52 = vpop.f32.mrf.mxu0 }
0x558a   :  { %20992 = vtanh.f32 %v8179_v45 }
0x5597   :  { %v20993_v62 = vpop.eup %20992 }
0x5598   :  { %19596 = vmatmul.mubr.msk.f32.vlgmr.msra.gmra.mxu1 %vm107_vm1, %v20993_v62 }
0x5599   :  { %19610 = vmatpush3.msra.mxu1 %v22899_v14  ;;  %19617 = vmatprep.mubr.msk.f32.mxu1 %vm21274_vm0, %v21273_v1 }
0x559a   :  { %19611 = vmatprep.subr.mxu1 %v21273_v1 }
0x559b   :  { %19612 = vmatpush3.msra.mxu1 %v22905_v16 }
0x559c   :  { %19613 = vmatprep.subr.mxu1 %v21273_v1 }
0x559d   :  { %19614 = vmatpush3.msra.mxu1 %v22909_v18 }
0x559e   :  { %19615 = vmatprep.subr.mxu1 %v21273_v1 }
0x559f   :  { %19616 = vmatpush3.msra.mxu1 %v22913_v3 }
0x55a0   :  { %19631 = vmatprep.subr.mxu1 %v21273_v1 }
0x5658   :  { %v8252_v55 = vpop.f32.mrf.mxu1 }
0x5659   :  { %v8253_v17 = vadd.f32 %v22923_v19, %v8252_v55 }
0x565a   :  { %v19597_v0 = vpop.f32.mrf.mxu1 }
0x565b   :  { %v8256_v56 = vmul.f32 %v8253_v17, %v22839_v54  ;;  %v8554_v29 = vmul.f32 2.0, %v8253_v17 }
0x565d   :  { %v8257_v58 = vadd.f32 %v8256_v56, %v22958_v61  ;;  %v8555_v49 = vadd.f32 %v8554_v29, %v22985_v25 }
0x565f   :  { %19607 = vmatmul.mubr.msk.f32.vlgmr.msra.gmra.mxu0 %vm107_vm1, %v8257_v58 }
0x5660   :  { %19621 = vmatpush3.msra.mxu0 %v22848_v57  ;;  %19628 = vmatprep.mubr.msk.f32.mxu0 %vm21274_vm0, %v21273_v1 }
0x5661   :  { %19622 = vmatprep.subr.mxu0 %v21273_v1 }
0x5662   :  { %19623 = vmatpush3.msra.mxu0 %v22854_v2 }
0x5663   :  { %19624 = vmatprep.subr.mxu0 %v21273_v1 }
0x5664   :  { %19625 = vmatpush3.msra.mxu0 %v22884_v47 }
0x5665   :  { %19626 = vmatprep.subr.mxu0 %v21273_v1 }
0x5666   :  { %19627 = vmatpush3.msra.mxu0 %v22888_v48 }
0x5667   :  { %19642 = vmatprep.subr.mxu0 %v21273_v1 }
0x571f   :  { %v8327_v59 = vpop.f32.mrf.mxu0 }
0x5720   :  { %v8328_v60 = vadd.f32 %v22895_v53, %v8327_v59 }
0x5721   :  { %v19608_v63 = vpop.f32.mrf.mxu0 }
0x5722   :  { %20994 = vtanh.f32 %v8328_v60 }
0x572f   :  { %v20995_v26 = vpop.eup %20994 }
0x5730   :  { %19618 = vmatmul.mubr.msk.f32.vlgmr.msra.gmra.mxu1 %vm107_vm1, %v20995_v26 }
0x5731   :  { %19632 = vmatpush3.msra.mxu1 %v22899_v14  ;;  %19639 = vmatprep.mubr.msk.f32.mxu1 %vm21274_vm0, %v21273_v1 }
0x5732   :  { %19633 = vmatprep.subr.mxu1 %v21273_v1 }
0x5733   :  { %19634 = vmatpush3.msra.mxu1 %v22905_v16 }
0x5734   :  { %19635 = vmatprep.subr.mxu1 %v21273_v1 }
0x5735   :  { %19636 = vmatpush3.msra.mxu1 %v22909_v18 }
0x5736   :  { %19637 = vmatprep.subr.mxu1 %v21273_v1 }
0x5737   :  { %19638 = vmatpush3.msra.mxu1 %v22913_v3 }
0x5738   :  { %19653 = vmatprep.subr.mxu1 %v21273_v1 }
0x57f0   :  { %v8401_v42 = vpop.f32.mrf.mxu1 }
0x57f1   :  { %v8402_v46 = vadd.f32 %v22923_v19, %v8401_v42 }
0x57f2   :  { %v19619_v5 = vpop.f32.mrf.mxu1 }
0x57f3   :  { %v8405_v11 = vmul.f32 %v8402_v46, %v22918_v10  ;;  %v8556_v37 = vmul.f32 2.0, %v8402_v46 }
0x57f5   :  { %v8406_v28 = vadd.f32 %v8405_v11, %v22958_v61  ;;  %v8557_v4 = vadd.f32 %v8556_v37, %v8555_v49 }
0x57f7   :  { %19629 = vmatmul.mubr.msk.f32.vlgmr.msra.gmra.mxu0 %vm107_vm1, %v8406_v28 }
0x57f8   :  { %19643 = vmatpush3.msra.mxu0 %v22848_v57  ;;  %19650 = vmatprep.mubr.msk.f32.mxu0 %vm21274_vm0, %v21273_v1 }
0x57f9   :  { %19644 = vmatprep.subr.mxu0 %v21273_v1 }
0x57fa   :  { %19645 = vmatpush3.msra.mxu0 %v22854_v2 }
0x57fb   :  { %19646 = vmatprep.subr.mxu0 %v21273_v1 }
0x57fc   :  { %19647 = vmatpush3.msra.mxu0 %v22884_v47 }
0x57fd   :  { %19648 = vmatprep.subr.mxu0 %v21273_v1 }
0x57fe   :  { %19649 = vmatpush3.msra.mxu0 %v22888_v48 }
0x57ff   :  { %19664 = vmatprep.subr.mxu0 %v21273_v1 }
0x58b7   :  { %v8476_v6 = vpop.f32.mrf.mxu0 }
0x58b8   :  { %v8477_v9 = vadd.f32 %v22895_v53, %v8476_v6 }
0x58b9   :  { %v19630_v51 = vpop.f32.mrf.mxu0 }
0x58ba   :  { %20996 = vtanh.f32 %v8477_v9 }
0x58c7   :  { %v20997_v21 = vpop.eup %20996 }
0x58c8   :  { %19640 = vmatmul.mubr.msk.f32.vlgmr.msra.gmra.mxu1 %vm107_vm1, %v20997_v21 }
0x58c9   :  { %19654 = vmatpush3.msra.mxu1 %v22899_v14  ;;  %19661 = vmatprep.mubr.msk.f32.mxu1 %vm21274_vm0, %v21273_v1 }
0x58ca   :  { %19655 = vmatprep.subr.mxu1 %v21273_v1 }
0x58cb   :  { %19656 = vmatpush3.msra.mxu1 %v22905_v16 }
0x58cc   :  { %19657 = vmatprep.subr.mxu1 %v21273_v1 }
0x58cd   :  { %19658 = vmatpush3.msra.mxu1 %v22909_v18 }
0x58ce   :  { %19659 = vmatprep.subr.mxu1 %v21273_v1 }
0x58cf   :  { %19660 = vmatpush3.msra.mxu1 %v22913_v3 }
0x58d0   :  { %19675 = vmatprep.subr.mxu1 %v21273_v1 }
0x5988   :  { %v8550_v50 = vpop.f32.mrf.mxu1 }
0x5989   :  { %v8551_v8 = vadd.f32 %v22923_v19, %v8550_v50 }
0x598a   :  { %v19641_v12 = vpop.f32.mrf.mxu1 }
0x598b   :  { %v8558_v22 = vadd.f32 %v8557_v4, %v8551_v8 }
0x598d   :  { %v8559_v27 = vmul.f32 %v8558_v22, %v22954_v34 }
0x598f   :  { %v23069_v13 = vadd.f32 %v8559_v27, %v22958_v61 }
0x5991   :  { %19651 = vmatmul.mubr.msk.f32.vlgmr.msra.gmra.mxu0 %vm107_vm1, %v23069_v13 }
0x5992   :  { %19665 = vmatpush3.msra.mxu0 %v22848_v57  ;;  %19672 = vmatprep.mubr.msk.f32.mxu0 %vm21274_vm0, %v21273_v1 }
0x5993   :  { %19666 = vmatprep.subr.mxu0 %v21273_v1 }
0x5994   :  { %19667 = vmatpush3.msra.mxu0 %v22854_v2 }
0x5995   :  { %19668 = vmatprep.subr.mxu0 %v21273_v1 }
0x5996   :  { %19669 = vmatpush3.msra.mxu0 %v22884_v47 }
0x5997   :  { %19670 = vmatprep.subr.mxu0 %v21273_v1 }
0x5998   :  { %19671 = vmatpush3.msra.mxu0 %v22888_v48 }
0x5999   :  { %19686 = vmatprep.subr.mxu0 %v21273_v1 }
0x5a51   :  { %v8630_v30 = vpop.f32.mrf.mxu0 }
0x5a52   :  { %v8631_v31 = vadd.f32 %v22895_v53, %v8630_v30 }
0x5a53   :  { %v19652_v32 = vpop.f32.mrf.mxu0 }
0x5a54   :  { %20998 = vtanh.f32 %v8631_v31 }
0x5a61   :  { %v20999_v33 = vpop.eup %20998 }
0x5a62   :  { %19662 = vmatmul.mubr.msk.f32.vlgmr.msra.gmra.mxu1 %vm107_vm1, %v20999_v33 }
0x5a63   :  { %19676 = vmatpush3.msra.mxu1 %v22899_v14  ;;  %19683 = vmatprep.mubr.msk.f32.mxu1 %vm21274_vm0, %v21273_v1 }
0x5a64   :  { %19677 = vmatprep.subr.mxu1 %v21273_v1 }
0x5a65   :  { %19678 = vmatpush3.msra.mxu1 %v22905_v16 }
0x5a66   :  { %19679 = vmatprep.subr.mxu1 %v21273_v1 }
0x5a67   :  { %19680 = vmatpush3.msra.mxu1 %v22909_v18 }
0x5a68   :  { %19681 = vmatprep.subr.mxu1 %v21273_v1 }
0x5a69   :  { %19682 = vmatpush3.msra.mxu1 %v22913_v3 }
0x5a6a   :  { %19697 = vmatprep.subr.mxu1 %v21273_v1 }
0x5b22   :  { %v8704_v36 = vpop.f32.mrf.mxu1 }
0x5b23   :  { %v23096_v38 = vadd.f32 %v22923_v19, %v8704_v36 }
0x5b24   :  { %v19663_v39 = vpop.f32.mrf.mxu1 }
0x5b25   :  { %v8708_v61 = vmul.f32 %v23096_v38, %v22839_v54 }
0x5b27   :  { %v8709_v40 = vadd.f32 %v8708_v61, %v23069_v13 }
0x5b29   :  { %19673 = vmatmul.mubr.msk.f32.vlgmr.msra.gmra.mxu0 %vm107_vm1, %v8709_v40 }
0x5b2a   :  { %19687 = vmatpush3.msra.mxu0 %v22848_v57  ;;  %19694 = vmatprep.mubr.msk.f32.mxu0 %vm21274_vm0, %v21273_v1 }
0x5b2b   :  { %19688 = vmatprep.subr.mxu0 %v21273_v1 }
0x5b2c   :  { %19689 = vmatpush3.msra.mxu0 %v22854_v2 }
0x5b2d   :  { %19690 = vmatprep.subr.mxu0 %v21273_v1 }
0x5b2e   :  { %19691 = vmatpush3.msra.mxu0 %v22884_v47 }
0x5b2f   :  { %19692 = vmatprep.subr.mxu0 %v21273_v1 }
0x5b30   :  { %19693 = vmatpush3.msra.mxu0 %v22888_v48 }
0x5b31   :  { %19708 = vmatprep.subr.mxu0 %v21273_v1 }
0x5be9   :  { %v8779_v7 = vpop.f32.mrf.mxu0 }
0x5bea   :  { %v8780_v15 = vadd.f32 %v22895_v53, %v8779_v7 }
0x5beb   :  { %v19674_v23 = vpop.f32.mrf.mxu0 }
0x5bec   :  { %21000 = vtanh.f32 %v8780_v15 }
0x5bf9   :  { %v21001_v24 = vpop.eup %21000 }
0x5bfa   :  { %19684 = vmatmul.mubr.msk.f32.vlgmr.msra.gmra.mxu1 %vm107_vm1, %v21001_v24 }
0x5bfb   :  { %19698 = vmatpush3.msra.mxu1 %v22899_v14  ;;  %19705 = vmatprep.mubr.msk.f32.mxu1 %vm21274_vm0, %v21273_v1 }
0x5bfc   :  { %19699 = vmatprep.subr.mxu1 %v21273_v1 }
0x5bfd   :  { %19700 = vmatpush3.msra.mxu1 %v22905_v16 }
0x5bfe   :  { %19701 = vmatprep.subr.mxu1 %v21273_v1 }
0x5bff   :  { %19702 = vmatpush3.msra.mxu1 %v22909_v18 }
0x5c00   :  { %19703 = vmatprep.subr.mxu1 %v21273_v1 }
0x5c01   :  { %19704 = vmatpush3.msra.mxu1 %v22913_v3 }
0x5c02   :  { %19719 = vmatprep.subr.mxu1 %v21273_v1 }
0x5cba   :  { %v8853_v25 = vpop.f32.mrf.mxu1 }
0x5cbb   :  { %v8854_v41 = vadd.f32 %v22923_v19, %v8853_v25 }
0x5cbc   :  { %v19685_v43 = vpop.f32.mrf.mxu1 }
0x5cbd   :  { %v8857_v20 = vmul.f32 %v8854_v41, %v22839_v54  ;;  %v9155_v17 = vmul.f32 2.0, %v8854_v41 }
0x5cbf   :  { %v8858_v35 = vadd.f32 %v8857_v20, %v23069_v13  ;;  %v9156_v59 = vadd.f32 %v9155_v17, %v23096_v38 }
0x5cc1   :  { %19695 = vmatmul.mubr.msk.f32.vlgmr.msra.gmra.mxu0 %vm107_vm1, %v8858_v35 }
0x5cc2   :  { %19709 = vmatpush3.msra.mxu0 %v22848_v57  ;;  %19716 = vmatprep.mubr.msk.f32.mxu0 %vm21274_vm0, %v21273_v1 }
0x5cc3   :  { %19710 = vmatprep.subr.mxu0 %v21273_v1 }
0x5cc4   :  { %19711 = vmatpush3.msra.mxu0 %v22854_v2 }
0x5cc5   :  { %19712 = vmatprep.subr.mxu0 %v21273_v1 }
0x5cc6   :  { %19713 = vmatpush3.msra.mxu0 %v22884_v47 }
0x5cc7   :  { %19714 = vmatprep.subr.mxu0 %v21273_v1 }
0x5cc8   :  { %19715 = vmatpush3.msra.mxu0 %v22888_v48 }
0x5cc9   :  { %19730 = vmatprep.subr.mxu0 %v21273_v1 }
0x5d81   :  { %v8928_v45 = vpop.f32.mrf.mxu0 }
0x5d82   :  { %v8929_v52 = vadd.f32 %v22895_v53, %v8928_v45 }
0x5d83   :  { %v19696_v62 = vpop.f32.mrf.mxu0 }
0x5d84   :  { %21002 = vtanh.f32 %v8929_v52 }
0x5d91   :  { %v21003_v55 = vpop.eup %21002 }
0x5d92   :  { %19706 = vmatmul.mubr.msk.f32.vlgmr.msra.gmra.mxu1 %vm107_vm1, %v21003_v55 }
0x5d93   :  { %19720 = vmatpush3.msra.mxu1 %v22899_v14  ;;  %19727 = vmatprep.mubr.msk.f32.mxu1 %vm21274_vm0, %v21273_v1 }
0x5d94   :  { %19721 = vmatprep.subr.mxu1 %v21273_v1 }
0x5d95   :  { %19722 = vmatpush3.msra.mxu1 %v22905_v16 }
0x5d96   :  { %19723 = vmatprep.subr.mxu1 %v21273_v1 }
0x5d97   :  { %19724 = vmatpush3.msra.mxu1 %v22909_v18 }
0x5d98   :  { %19725 = vmatprep.subr.mxu1 %v21273_v1 }
0x5d99   :  { %19726 = vmatpush3.msra.mxu1 %v22913_v3 }
0x5d9a   :  { %19741 = vmatprep.subr.mxu1 %v21273_v1 }
0x5e52   :  { %v9002_v0 = vpop.f32.mrf.mxu1 }
0x5e53   :  { %v9003_v56 = vadd.f32 %v22923_v19, %v9002_v0 }
0x5e54   :  { %v19707_v58 = vpop.f32.mrf.mxu1 }
0x5e55   :  { %v9006_v60 = vmul.f32 %v9003_v56, %v22918_v10  ;;  %v9157_v63 = vmul.f32 2.0, %v9003_v56 }
0x5e57   :  { %v9007_v26 = vadd.f32 %v9006_v60, %v23069_v13  ;;  %v9158_v29 = vadd.f32 %v9157_v63, %v9156_v59 }
0x5e59   :  { %19717 = vmatmul.mubr.msk.f32.vlgmr.msra.gmra.mxu0 %vm107_vm1, %v9007_v26 }
0x5e5a   :  { %19731 = vmatpush3.msra.mxu0 %v22848_v57  ;;  %19738 = vmatprep.mubr.msk.f32.mxu0 %vm21274_vm0, %v21273_v1 }
0x5e5b   :  { %19732 = vmatprep.subr.mxu0 %v21273_v1 }
0x5e5c   :  { %19733 = vmatpush3.msra.mxu0 %v22854_v2 }
0x5e5d   :  { %19734 = vmatprep.subr.mxu0 %v21273_v1 }
0x5e5e   :  { %19735 = vmatpush3.msra.mxu0 %v22884_v47 }
0x5e5f   :  { %19736 = vmatprep.subr.mxu0 %v21273_v1 }
0x5e60   :  { %19737 = vmatpush3.msra.mxu0 %v22888_v48 }
0x5e61   :  { %19752 = vmatprep.subr.mxu0 %v21273_v1 }
0x5f19   :  { %v9077_v42 = vpop.f32.mrf.mxu0 }
0x5f1a   :  { %v9078_v46 = vadd.f32 %v22895_v53, %v9077_v42 }
0x5f1b   :  { %v19718_v5 = vpop.f32.mrf.mxu0 }
0x5f1c   :  { %21004 = vtanh.f32 %v9078_v46 }
0x5f29   :  { %v21005_v49 = vpop.eup %21004 }
0x5f2a   :  { %19728 = vmatmul.mubr.msk.f32.vlgmr.msra.gmra.mxu1 %vm107_vm1, %v21005_v49 }
0x5f2b   :  { %19742 = vmatpush3.msra.mxu1 %v22899_v14  ;;  %19749 = vmatprep.mubr.msk.f32.mxu1 %vm21274_vm0, %v21273_v1 }
0x5f2c   :  { %19743 = vmatprep.subr.mxu1 %v21273_v1 }
0x5f2d   :  { %19744 = vmatpush3.msra.mxu1 %v22905_v16 }
0x5f2e   :  { %19745 = vmatprep.subr.mxu1 %v21273_v1 }
0x5f2f   :  { %19746 = vmatpush3.msra.mxu1 %v22909_v18 }
0x5f30   :  { %19747 = vmatprep.subr.mxu1 %v21273_v1 }
0x5f31   :  { %19748 = vmatpush3.msra.mxu1 %v22913_v3 }
0x5f32   :  { %19763 = vmatprep.subr.mxu1 %v21273_v1 }
0x5fea   :  { %v9151_v11 = vpop.f32.mrf.mxu1 }
0x5feb   :  { %v9152_v37 = vadd.f32 %v22923_v19, %v9151_v11  ;;  %v23324_v11 = vstv %s9768_s28 }
0x5fec   :  { %v19729_v28 = vpop.f32.mrf.mxu1 }
0x5fed   :  { %v9159_v4 = vadd.f32 %v9158_v29, %v9152_v37 }
0x5fef   :  { %v9160_v6 = vmul.f32 %v9159_v4, %v22954_v34 }
0x5ff1   :  { %v23180_v9 = vadd.f32 %v9160_v6, %v23069_v13 }
0x5ff3   :  { %19739 = vmatmul.mubr.msk.f32.vlgmr.msra.gmra.mxu0 %vm107_vm1, %v23180_v9 }
0x5ff4   :  { %19753 = vmatpush3.msra.mxu0 %v22848_v57  ;;  %19760 = vmatprep.mubr.msk.f32.mxu0 %vm21274_vm0, %v21273_v1 }
0x5ff5   :  { %19754 = vmatprep.subr.mxu0 %v21273_v1 }
0x5ff6   :  { %19755 = vmatpush3.msra.mxu0 %v22854_v2 }
0x5ff7   :  { %19756 = vmatprep.subr.mxu0 %v21273_v1 }
0x5ff8   :  { %19757 = vmatpush3.msra.mxu0 %v22884_v47 }
0x5ff9   :  { %19758 = vmatprep.subr.mxu0 %v21273_v1 }
0x5ffa   :  { %19759 = vmatpush3.msra.mxu0 %v22888_v48 }
0x5ffb   :  { %19774 = vmatprep.subr.mxu0 %v21273_v1 }
0x60b3   :  { %v9231_v51 = vpop.f32.mrf.mxu0 }
0x60b4   :  { %v9232_v21 = vadd.f32 %v22895_v53, %v9231_v51 }
0x60b5   :  { %v19740_v50 = vpop.f32.mrf.mxu0 }
0x60b6   :  { %21006 = vtanh.f32 %v9232_v21 }
0x60c3   :  { %v21007_v8 = vpop.eup %21006 }
0x60c4   :  { %19750 = vmatmul.mubr.msk.f32.vlgmr.msra.gmra.mxu1 %vm107_vm1, %v21007_v8 }
0x60c5   :  { %19764 = vmatpush3.msra.mxu1 %v22899_v14  ;;  %19771 = vmatprep.mubr.msk.f32.mxu1 %vm21274_vm0, %v21273_v1 }
0x60c6   :  { %19765 = vmatprep.subr.mxu1 %v21273_v1 }
0x60c7   :  { %19766 = vmatpush3.msra.mxu1 %v22905_v16 }
0x60c8   :  { %19767 = vmatprep.subr.mxu1 %v21273_v1 }
0x60c9   :  { %19768 = vmatpush3.msra.mxu1 %v22909_v18 }
0x60ca   :  { %19769 = vmatprep.subr.mxu1 %v21273_v1 }
0x60cb   :  { %19770 = vmatpush3.msra.mxu1 %v22913_v3 }
0x60cc   :  { %19785 = vmatprep.subr.mxu1 %v21273_v1 }
0x6184   :  { %v9305_v12 = vpop.f32.mrf.mxu1 }
0x6185   :  { %v23207_v22 = vadd.f32 %v22923_v19, %v9305_v12 }
0x6186   :  { %v19751_v27 = vpop.f32.mrf.mxu1 }
0x6187   :  { %v9309_v13 = vmul.f32 %v23207_v22, %v22839_v54  ;;  %v23359_v27 = vld [vmem:[#allocation7 + $0x18] sm:$0xff] }
0x6189   :  { %v9310_v30 = vadd.f32 %v9309_v13, %v23180_v9  ;;  %v23365_v13 = vld [vmem:[#allocation7 + $0x10] sm:$0xff] }
0x618b   :  { %19761 = vmatmul.mubr.msk.f32.vlgmr.msra.gmra.mxu0 %vm107_vm1, %v9310_v30 }
0x618c   :  { %19775 = vmatpush3.msra.mxu0 %v22848_v57  ;;  %19782 = vmatprep.mubr.msk.f32.mxu0 %vm21274_vm0, %v21273_v1 }
0x618d   :  { %19776 = vmatprep.subr.mxu0 %v21273_v1 }
0x618e   :  { %19777 = vmatpush3.msra.mxu0 %v22854_v2 }
0x618f   :  { %19778 = vmatprep.subr.mxu0 %v21273_v1 }
0x6190   :  { %19779 = vmatpush3.msra.mxu0 %v22884_v47 }
0x6191   :  { %19780 = vmatprep.subr.mxu0 %v21273_v1 }
0x6192   :  { %19781 = vmatpush3.msra.mxu0 %v22888_v48 }
0x6193   :  { %19796 = vmatprep.subr.mxu0 %v21273_v1 }
0x624b   :  { %v9380_v31 = vpop.f32.mrf.mxu0 }
0x624c   :  { %v9381_v32 = vadd.f32 %v22895_v53, %v9380_v31 }
0x624d   :  { %v19762_v33 = vpop.f32.mrf.mxu0 }
0x624e   :  { %21008 = vtanh.f32 %v9381_v32 }
0x625b   :  { %v21009_v36 = vpop.eup %21008 }
0x625c   :  { %19772 = vmatmul.mubr.msk.f32.vlgmr.msra.gmra.mxu1 %vm107_vm1, %v21009_v36 }
0x625d   :  { %19786 = vmatpush3.msra.mxu1 %v22899_v14  ;;  %19793 = vmatprep.mubr.msk.f32.mxu1 %vm21274_vm0, %v21273_v1 }
0x625e   :  { %19787 = vmatprep.subr.mxu1 %v21273_v1 }
0x625f   :  { %19788 = vmatpush3.msra.mxu1 %v22905_v16 }
0x6260   :  { %19789 = vmatprep.subr.mxu1 %v21273_v1 }
0x6261   :  { %19790 = vmatpush3.msra.mxu1 %v22909_v18 }
0x6262   :  { %19791 = vmatprep.subr.mxu1 %v21273_v1 }
0x6263   :  { %19792 = vmatpush3.msra.mxu1 %v22913_v3 }
0x6264   :  { %19807 = vmatprep.subr.mxu1 %v21273_v1 }
0x631c   :  { %v9454_v38 = vpop.f32.mrf.mxu1 }
0x631d   :  { %v9455_v39 = vadd.f32 %v22923_v19, %v9454_v38 }
0x631e   :  { %v19773_v61 = vpop.f32.mrf.mxu1 }
0x631f   :  { %v9458_v40 = vmul.f32 %v9455_v39, %v22839_v54  ;;  %v9756_v25 = vmul.f32 2.0, %v9455_v39 }
0x6321   :  { %v9459_v7 = vadd.f32 %v9458_v40, %v23180_v9  ;;  %v9757_v35 = vadd.f32 %v9756_v25, %v23207_v22  ;;  %v23420_v25 = vld [vmem:[#allocation9 + $0x10] sm:$0xff] }
0x6323   :  { %19783 = vmatmul.mubr.msk.f32.vlgmr.msra.gmra.mxu0 %vm107_vm1, %v9459_v7  ;;  %v23410_v7 = vld [vmem:[%s24740_s3] ss:$0 sm:$0xff] }
0x6324   :  { %19797 = vmatpush3.msra.mxu0 %v22848_v57  ;;  %19804 = vmatprep.mubr.msk.f32.mxu0 %vm21274_vm0, %v21273_v1 }
0x6325   :  { %19798 = vmatprep.subr.mxu0 %v21273_v1 }
0x6326   :  { %19799 = vmatpush3.msra.mxu0 %v22854_v2 }
0x6327   :  { %19800 = vmatprep.subr.mxu0 %v21273_v1 }
0x6328   :  { %19801 = vmatpush3.msra.mxu0 %v22884_v47 }
0x6329   :  { %19802 = vmatprep.subr.mxu0 %v21273_v1 }
0x632a   :  { %19803 = vmatpush3.msra.mxu0 %v22888_v48 }
0x632b   :  { %19818 = vmatprep.subr.mxu0 %v21273_v1 }
0x63e3   :  { %v9529_v54 = vpop.f32.mrf.mxu0 }
0x63e4   :  { %v9530_v15 = vadd.f32 %v22895_v53, %v9529_v54 }
0x63e5   :  { %v19784_v23 = vpop.f32.mrf.mxu0 }
0x63e6   :  { %21010 = vtanh.f32 %v9530_v15 }
0x63f3   :  { %v21011_v24 = vpop.eup %21010 }
0x63f4   :  { %19794 = vmatmul.mubr.msk.f32.vlgmr.msra.gmra.mxu1 %vm107_vm1, %v21011_v24  ;;  %v23414_v24 = vld [vmem:[#allocation9 + $0x18] sm:$0xff] }
0x63f5   :  { %19808 = vmatpush3.msra.mxu1 %v22899_v14  ;;  %19815 = vmatprep.mubr.msk.f32.mxu1 %vm21274_vm0, %v21273_v1 }
0x63f6   :  { %19809 = vmatprep.subr.mxu1 %v21273_v1 }
0x63f7   :  { %19810 = vmatpush3.msra.mxu1 %v22905_v16 }
0x63f8   :  { %19811 = vmatprep.subr.mxu1 %v21273_v1 }
0x63f9   :  { %19812 = vmatpush3.msra.mxu1 %v22909_v18 }
0x63fa   :  { %19813 = vmatprep.subr.mxu1 %v21273_v1 }
0x63fb   :  { %19814 = vmatpush3.msra.mxu1 %v22913_v3 }
0x63fc   :  { %19829 = vmatprep.subr.mxu1 %v21273_v1 }
0x64b4   :  { %v9603_v41 = vpop.f32.mrf.mxu1 }
0x64b5   :  { %v9604_v43 = vadd.f32 %v22923_v19, %v9603_v41  ;;  %v23424_v41 = vld [vmem:[#allocation9 + $0x8] sm:$0xff] }
0x64b6   :  { %v19795_v20 = vpop.f32.mrf.mxu1 }
0x64b7   :  { %v9607_v45 = vmul.f32 %v9604_v43, %v22918_v10  ;;  %v9758_v52 = vmul.f32 2.0, %v9604_v43  ;;  %v23428_v43 = vld [vmem:[#allocation9] sm:$0xff] }
0x64b9   :  { %v9608_v62 = vadd.f32 %v9607_v45, %v23180_v9  ;;  %v9759_v55 = vadd.f32 %v9758_v52, %v9757_v35  ;;  %v23436_v35 = vld [vmem:[%s24742_s5] ss:$0 sm:$0xff]  ;;  %v23439_v52 = vstv %s9771_s7 }
0x64bb   :  { %19805 = vmatmul.mubr.msk.f32.vlgmr.msra.gmra.mxu0 %vm107_vm1, %v9608_v62 }
0x64bc   :  { %19819 = vmatpush3.msra.mxu0 %v22848_v57  ;;  %19826 = vmatprep.mubr.msk.f32.mxu0 %vm21274_vm0, %v21273_v1 }
0x64bd   :  { %19820 = vmatprep.subr.mxu0 %v21273_v1 }
0x64be   :  { %19821 = vmatpush3.msra.mxu0 %v22854_v2 }
0x64bf   :  { %19822 = vmatprep.subr.mxu0 %v21273_v1 }
0x64c0   :  { %19823 = vmatpush3.msra.mxu0 %v22884_v47 }
0x64c1   :  { %19824 = vmatprep.subr.mxu0 %v21273_v1 }
0x64c2   :  { %19825 = vmatpush3.msra.mxu0 %v22888_v48 }
0x64c3   :  { %19840 = vmatprep.subr.mxu0 %v21273_v1 }
0x657b   :  { %v9678_v10 = vpop.f32.mrf.mxu0 }
0x657c   :  { %v9679_v17 = vadd.f32 %v22895_v53, %v9678_v10 }
0x657d   :  { %v19806_v0 = vpop.f32.mrf.mxu0 }
0x657e   :  { %21012 = vtanh.f32 %v9679_v17 }
0x658b   :  { %v21013_v56 = vpop.eup %21012 }
0x658c   :  { %19816 = vmatmul.mubr.msk.f32.vlgmr.msra.gmra.mxu1 %vm107_vm1, %v21013_v56 }
0x658d   :  { %19830 = vmatpush3.msra.mxu1 %v22899_v14  ;;  %19837 = vmatprep.mubr.msk.f32.mxu1 %vm21274_vm0, %v21273_v1 }
0x658e   :  { %19831 = vmatprep.subr.mxu1 %v21273_v1 }
0x658f   :  { %19832 = vmatpush3.msra.mxu1 %v22905_v16 }
0x6590   :  { %19833 = vmatprep.subr.mxu1 %v21273_v1 }
0x6591   :  { %19834 = vmatpush3.msra.mxu1 %v22909_v18 }
0x6592   :  { %19835 = vmatprep.subr.mxu1 %v21273_v1 }
0x6593   :  { %19836 = vmatpush3.msra.mxu1 %v22913_v3 }
0x6594   :  { %19851 = vmatprep.subr.mxu1 %v21273_v1 }
0x664c   :  { %v9752_v58 = vpop.f32.mrf.mxu1 }
0x664d   :  { %v9753_v59 = vadd.f32 %v22923_v19, %v9752_v58 }
0x664e   :  { %v19817_v60 = vpop.f32.mrf.mxu1 }
0x664f   :  { %v9760_v63 = vadd.f32 %v9759_v55, %v9753_v59 }
0x6651   :  { %v9761_v26 = vmul.f32 %v9760_v63, %v22954_v34 }
0x6653   :  { %v23291_v29 = vadd.f32 %v9761_v26, %v23180_v9 }
0x6655   :  { %19827 = vmatmul.mubr.msk.f32.vlgmr.msra.gmra.mxu0 %vm107_vm1, %v23291_v29 }
0x6656   :  { %19841 = vmatpush3.msra.mxu0 %v22848_v57  ;;  %19848 = vmatprep.mubr.msk.f32.mxu0 %vm21274_vm0, %v21273_v1 }
0x6657   :  { %19842 = vmatprep.subr.mxu0 %v21273_v1 }
0x6658   :  { %19843 = vmatpush3.msra.mxu0 %v22854_v2 }
0x6659   :  { %19844 = vmatprep.subr.mxu0 %v21273_v1 }
0x665a   :  { %19845 = vmatpush3.msra.mxu0 %v22884_v47 }
0x665b   :  { %19846 = vmatprep.subr.mxu0 %v21273_v1 }
0x665c   :  { %19847 = vmatpush3.msra.mxu0 %v22888_v48 }
0x665d   :  { %19862 = vmatprep.subr.mxu0 %v21273_v1 }
0x6715   :  { %v9841_v34 = vpop.f32.mrf.mxu0 }
0x6716   :  { %v9842_v42 = vadd.f32 %v22895_v53, %v9841_v34 }
0x6717   :  { %v19828_v46 = vpop.f32.mrf.mxu0 }
0x6718   :  { %21014 = vtanh.f32 %v9842_v42 }
0x6725   :  { %v21015_v5 = vpop.eup %21014 }
0x6726   :  { %19838 = vmatmul.mubr.msk.f32.vlgmr.msra.gmra.mxu1 %vm107_vm1, %v21015_v5 }
0x6727   :  { %19852 = vmatpush3.msra.mxu1 %v22899_v14  ;;  %19859 = vmatprep.mubr.msk.f32.mxu1 %vm21274_vm0, %v21273_v1 }
0x6728   :  { %19853 = vmatprep.subr.mxu1 %v21273_v1 }
0x6729   :  { %19854 = vmatpush3.msra.mxu1 %v22905_v16 }
0x672a   :  { %19855 = vmatprep.subr.mxu1 %v21273_v1 }
0x672b   :  { %19856 = vmatpush3.msra.mxu1 %v22909_v18 }
0x672c   :  { %19857 = vmatprep.subr.mxu1 %v21273_v1 }
0x672d   :  { %19858 = vmatpush3.msra.mxu1 %v22913_v3 }
0x672e   :  { %19873 = vmatprep.subr.mxu1 %v21273_v1 }
0x67e6   :  { %v9915_v49 = vpop.f32.mrf.mxu1 }
0x67e7   :  { %v23327_v37 = vadd.f32 %v22923_v19, %v9915_v49 }
0x67e8   :  { %v19839_v28 = vpop.f32.mrf.mxu1 }
0x67e9   :  { %v9920_v4 = vmul.f32 %v23324_v11, %v23327_v37 }
0x67eb   :  { %v9921_v6 = vadd.f32 %v9920_v4, %v23291_v29 }
0x67ed   :  { %19849 = vmatmul.mubr.msk.f32.vlgmr.msra.gmra.mxu0 %vm107_vm1, %v9921_v6 }
0x67ee   :  { %19863 = vmatpush3.msra.mxu0 %v22848_v57  ;;  %19870 = vmatprep.mubr.msk.f32.mxu0 %vm21274_vm0, %v21273_v1 }
0x67ef   :  { %19864 = vmatprep.subr.mxu0 %v21273_v1 }
0x67f0   :  { %19865 = vmatpush3.msra.mxu0 %v22854_v2 }
0x67f1   :  { %19866 = vmatprep.subr.mxu0 %v21273_v1 }
0x67f2   :  { %19867 = vmatpush3.msra.mxu0 %v22884_v47 }
0x67f3   :  { %19868 = vmatprep.subr.mxu0 %v21273_v1 }
0x67f4   :  { %19869 = vmatpush3.msra.mxu0 %v22888_v48 }
0x67f5   :  { %19884 = vmatprep.subr.mxu0 %v21273_v1 }
0x68ad   :  { %v9991_v9 = vpop.f32.mrf.mxu0 }
0x68ae   :  { %v9992_v57 = vadd.f32 %v22895_v53, %v9991_v9 }
0x68af   :  { %v19850_v51 = vpop.f32.mrf.mxu0 }
0x68b0   :  { %21016 = vtanh.f32 %v9992_v57 }
0x68bd   :  { %v21017_v21 = vpop.eup %21016 }
0x68be   :  { %19860 = vmatmul.mubr.msk.f32.vlgmr.msra.gmra.mxu1 %vm107_vm1, %v21017_v21 }
0x68bf   :  { %19874 = vmatpush3.msra.mxu1 %v22899_v14  ;;  %19881 = vmatprep.mubr.msk.f32.mxu1 %vm21274_vm0, %v21273_v1 }
0x68c0   :  { %19875 = vmatprep.subr.mxu1 %v21273_v1 }
0x68c1   :  { %19876 = vmatpush3.msra.mxu1 %v22905_v16 }
0x68c2   :  { %19877 = vmatprep.subr.mxu1 %v21273_v1 }
0x68c3   :  { %19878 = vmatpush3.msra.mxu1 %v22909_v18 }
0x68c4   :  { %19879 = vmatprep.subr.mxu1 %v21273_v1 }
0x68c5   :  { %19880 = vmatpush3.msra.mxu1 %v22913_v3 }
0x68c6   :  { %19895 = vmatprep.subr.mxu1 %v21273_v1 }
0x697e   :  { %v10065_v2 = vpop.f32.mrf.mxu1 }
0x697f   :  { %v10066_v50 = vadd.f32 %v22923_v19, %v10065_v2 }
0x6980   :  { %v19861_v8 = vpop.f32.mrf.mxu1 }
0x6981   :  { %v10069_v12 = vmul.f32 %v10066_v50, %v23324_v11 }
0x6983   :  { %v10070_v22 = vadd.f32 %v10069_v12, %v23291_v29 }
0x6985   :  { %19871 = vmatmul.mubr.msk.f32.vlgmr.msra.gmra.mxu0 %vm107_vm1, %v10070_v22 }
0x6986   :  { %19885 = vmatpush3.msra.mxu0 %v23359_v27  ;;  %19892 = vmatprep.mubr.msk.f32.mxu0 %vm21274_vm0, %v21273_v1 }
0x6987   :  { %19886 = vmatprep.subr.mxu0 %v21273_v1 }
0x6988   :  { %19887 = vmatpush3.msra.mxu0 %v23365_v13 }
0x6989   :  { %19888 = vmatprep.subr.mxu0 %v21273_v1 }
0x698a   :  { %19889 = vmatpush3.msra.mxu0 %v22884_v47  ;;  %v10368_v47 = vmul.f32 2.0, %v10066_v50 }
0x698b   :  { %19890 = vmatprep.subr.mxu0 %v21273_v1 }
0x698c   :  { %19891 = vmatpush3.msra.mxu0 %v22888_v48  ;;  %v10369_v38 = vadd.f32 %v10368_v47, %v23327_v37 }
0x698d   :  { %19906 = vmatprep.subr.mxu0 %v21273_v1 }
0x6a45   :  { %v10140_v30 = vpop.f32.mrf.mxu0 }
0x6a46   :  { %v10141_v31 = vadd.f32 %v22895_v53, %v10140_v30  ;;  %v23386_v53 = vstv %s23321_s27 }
0x6a47   :  { %v19872_v32 = vpop.f32.mrf.mxu0 }
0x6a48   :  { %21018 = vtanh.f32 %v10141_v31 }
0x6a55   :  { %v21019_v33 = vpop.eup %21018 }
0x6a56   :  { %19882 = vmatmul.mubr.msk.f32.vlgmr.msra.gmra.mxu1 %vm107_vm1, %v21019_v33 }
0x6a57   :  { %19896 = vmatpush3.msra.mxu1 %v22899_v14  ;;  %19903 = vmatprep.mubr.msk.f32.mxu1 %vm21274_vm0, %v21273_v1 }
0x6a58   :  { %19897 = vmatprep.subr.mxu1 %v21273_v1 }
0x6a59   :  { %19898 = vmatpush3.msra.mxu1 %v22905_v16 }
0x6a5a   :  { %19899 = vmatprep.subr.mxu1 %v21273_v1 }
0x6a5b   :  { %19900 = vmatpush3.msra.mxu1 %v22909_v18 }
0x6a5c   :  { %19901 = vmatprep.subr.mxu1 %v21273_v1 }
0x6a5d   :  { %19902 = vmatpush3.msra.mxu1 %v22913_v3  ;;  %v23399_v3 = vld [vmem:[#allocation7 + $0x8] sm:$0xff] }
0x6a5e   :  { %19917 = vmatprep.subr.mxu1 %v21273_v1 }
0x6b16   :  { %v10214_v48 = vpop.f32.mrf.mxu1 }
0x6b17   :  { %v10215_v14 = vadd.f32 %v22923_v19, %v10214_v48  ;;  %v23403_v19 = vld [vmem:[#allocation7] sm:$0xff] }
0x6b18   :  { %v19883_v36 = vpop.f32.mrf.mxu1 }
0x6b19   :  { %v10219_v16 = vmul.f32 %v23386_v53, %v10215_v14  ;;  %v10370_v39 = vmul.f32 2.0, %v10215_v14 }
0x6b1b   :  { %v10220_v18 = vadd.f32 %v10219_v16, %v23291_v29  ;;  %v10371_v61 = vadd.f32 %v10370_v39, %v10369_v38 }
0x6b1d   :  { %19893 = vmatmul.mubr.msk.f32.vlgmr.msra.gmra.mxu0 %vm107_vm1, %v10220_v18 }
0x6b1e   :  { %19907 = vmatpush3.msra.mxu0 %v23359_v27  ;;  %19914 = vmatprep.mubr.msk.f32.mxu0 %vm21274_vm0, %v21273_v1 }
0x6b1f   :  { %19908 = vmatprep.subr.mxu0 %v21273_v1 }
0x6b20   :  { %19909 = vmatpush3.msra.mxu0 %v23365_v13 }
0x6b21   :  { %19910 = vmatprep.subr.mxu0 %v21273_v1 }
0x6b22   :  { %19911 = vmatpush3.msra.mxu0 %v23399_v3 }
0x6b23   :  { %19912 = vmatprep.subr.mxu0 %v21273_v1 }
0x6b24   :  { %19913 = vmatpush3.msra.mxu0 %v23403_v19 }
0x6b25   :  { %19928 = vmatprep.subr.mxu0 %v21273_v1 }
0x6bdd   :  { %v10290_v40 = vpop.f32.mrf.mxu0 }
0x6bde   :  { %v10291_v54 = vadd.f32 %v23410_v7, %v10290_v40 }
0x6bdf   :  { %v19894_v15 = vpop.f32.mrf.mxu0 }
0x6be0   :  { %21020 = vtanh.f32 %v10291_v54 }
0x6bed   :  { %v21021_v23 = vpop.eup %21020 }
0x6bee   :  { %19904 = vmatmul.mubr.msk.f32.vlgmr.msra.gmra.mxu1 %vm107_vm1, %v21021_v23 }
0x6bef   :  { %19918 = vmatpush3.msra.mxu1 %v23414_v24  ;;  %19925 = vmatprep.mubr.msk.f32.mxu1 %vm21274_vm0, %v21273_v1 }
0x6bf0   :  { %19919 = vmatprep.subr.mxu1 %v21273_v1 }
0x6bf1   :  { %19920 = vmatpush3.msra.mxu1 %v23420_v25 }
0x6bf2   :  { %19921 = vmatprep.subr.mxu1 %v21273_v1 }
0x6bf3   :  { %19922 = vmatpush3.msra.mxu1 %v23424_v41 }
0x6bf4   :  { %19923 = vmatprep.subr.mxu1 %v21273_v1 }
0x6bf5   :  { %19924 = vmatpush3.msra.mxu1 %v23428_v43 }
0x6bf6   :  { %19939 = vmatprep.subr.mxu1 %v21273_v1 }
0x6cae   :  { %v10364_v20 = vpop.f32.mrf.mxu1 }
0x6caf   :  { %v10365_v45 = vadd.f32 %v23436_v35, %v10364_v20 }
0x6cb0   :  { %v19905_v62 = vpop.f32.mrf.mxu1 }
0x6cb1   :  { %v10372_v55 = vadd.f32 %v10371_v61, %v10365_v45 }
0x6cb3   :  { %v10374_v10 = vmul.f32 %v23439_v52, %v10372_v55 }
0x6cb5   :  { %v23443_v17 = vadd.f32 %v10374_v10, %v23291_v29 }
0x6cb7   :  { %19915 = vmatmul.mubr.msk.f32.vlgmr.msra.gmra.mxu0 %vm107_vm1, %v23443_v17 }
0x6cb8   :  { %19929 = vmatpush3.msra.mxu0 %v23359_v27  ;;  %19936 = vmatprep.mubr.msk.f32.mxu0 %vm21274_vm0, %v21273_v1 }
0x6cb9   :  { %19930 = vmatprep.subr.mxu0 %v21273_v1 }
0x6cba   :  { %19931 = vmatpush3.msra.mxu0 %v23365_v13 }
0x6cbb   :  { %19932 = vmatprep.subr.mxu0 %v21273_v1 }
0x6cbc   :  { %19933 = vmatpush3.msra.mxu0 %v23399_v3 }
0x6cbd   :  { %19934 = vmatprep.subr.mxu0 %v21273_v1 }
0x6cbe   :  { %19935 = vmatpush3.msra.mxu0 %v23403_v19 }
0x6cbf   :  { %19950 = vmatprep.subr.mxu0 %v21273_v1 }
0x6d77   :  { %v10445_v0 = vpop.f32.mrf.mxu0 }
0x6d78   :  { %v10446_v56 = vadd.f32 %v23410_v7, %v10445_v0 }
0x6d79   :  { %v19916_v58 = vpop.f32.mrf.mxu0 }
0x6d7a   :  { %21022 = vtanh.f32 %v10446_v56 }
0x6d87   :  { %v21023_v59 = vpop.eup %21022 }
0x6d88   :  { %19926 = vmatmul.mubr.msk.f32.vlgmr.msra.gmra.mxu1 %vm107_vm1, %v21023_v59 }
0x6d89   :  { %19940 = vmatpush3.msra.mxu1 %v23414_v24  ;;  %19947 = vmatprep.mubr.msk.f32.mxu1 %vm21274_vm0, %v21273_v1 }
0x6d8a   :  { %19941 = vmatprep.subr.mxu1 %v21273_v1 }
0x6d8b   :  { %19942 = vmatpush3.msra.mxu1 %v23420_v25 }
0x6d8c   :  { %19943 = vmatprep.subr.mxu1 %v21273_v1 }
0x6d8d   :  { %19944 = vmatpush3.msra.mxu1 %v23424_v41 }
0x6d8e   :  { %19945 = vmatprep.subr.mxu1 %v21273_v1 }
0x6d8f   :  { %19946 = vmatpush3.msra.mxu1 %v23428_v43 }
0x6d90   :  { %19961 = vmatprep.subr.mxu1 %v21273_v1 }
0x6e48   :  { %v10519_v60 = vpop.f32.mrf.mxu1 }
0x6e49   :  { %v23470_v63 = vadd.f32 %v23436_v35, %v10519_v60 }
0x6e4a   :  { %v19927_v26 = vpop.f32.mrf.mxu1 }
0x6e4b   :  { %v10523_v34 = vmul.f32 %v23470_v63, %v23324_v11 }
0x6e4d   :  { %v10524_v42 = vadd.f32 %v10523_v34, %v23443_v17 }
0x6e4f   :  { %19937 = vmatmul.mubr.msk.f32.vlgmr.msra.gmra.mxu0 %vm107_vm1, %v10524_v42 }
0x6e50   :  { %19951 = vmatpush3.msra.mxu0 %v23359_v27  ;;  %19958 = vmatprep.mubr.msk.f32.mxu0 %vm21274_vm0, %v21273_v1 }
0x6e51   :  { %19952 = vmatprep.subr.mxu0 %v21273_v1 }
0x6e52   :  { %19953 = vmatpush3.msra.mxu0 %v23365_v13 }
0x6e53   :  { %19954 = vmatprep.subr.mxu0 %v21273_v1 }
0x6e54   :  { %19955 = vmatpush3.msra.mxu0 %v23399_v3 }
0x6e55   :  { %19956 = vmatprep.subr.mxu0 %v21273_v1 }
0x6e56   :  { %19957 = vmatpush3.msra.mxu0 %v23403_v19 }
0x6e57   :  { %19972 = vmatprep.subr.mxu0 %v21273_v1 }
0x6f0f   :  { %v10594_v46 = vpop.f32.mrf.mxu0 }
0x6f10   :  { %v10595_v5 = vadd.f32 %v23410_v7, %v10594_v46 }
0x6f11   :  { %v19938_v49 = vpop.f32.mrf.mxu0 }
0x6f12   :  { %21024 = vtanh.f32 %v10595_v5 }
0x6f1f   :  { %v21025_v37 = vpop.eup %21024 }
0x6f20   :  { %19948 = vmatmul.mubr.msk.f32.vlgmr.msra.gmra.mxu1 %vm107_vm1, %v21025_v37 }
0x6f21   :  { %19962 = vmatpush3.msra.mxu1 %v23414_v24  ;;  %19969 = vmatprep.mubr.msk.f32.mxu1 %vm21274_vm0, %v21273_v1 }
0x6f22   :  { %19963 = vmatprep.subr.mxu1 %v21273_v1 }
0x6f23   :  { %19964 = vmatpush3.msra.mxu1 %v23420_v25 }
0x6f24   :  { %19965 = vmatprep.subr.mxu1 %v21273_v1 }
0x6f25   :  { %19966 = vmatpush3.msra.mxu1 %v23424_v41 }
0x6f26   :  { %19967 = vmatprep.subr.mxu1 %v21273_v1 }
0x6f27   :  { %19968 = vmatpush3.msra.mxu1 %v23428_v43 }
0x6f28   :  { %19983 = vmatprep.subr.mxu1 %v21273_v1 }
0x6fe0   :  { %v10668_v28 = vpop.f32.mrf.mxu1 }
0x6fe1   :  { %v10669_v4 = vadd.f32 %v23436_v35, %v10668_v28 }
0x6fe2   :  { %v19949_v6 = vpop.f32.mrf.mxu1 }
0x6fe3   :  { %v10672_v9 = vmul.f32 %v10669_v4, %v23324_v11  ;;  %v10970_v8 = vmul.f32 2.0, %v10669_v4 }
0x6fe5   :  { %v10673_v57 = vadd.f32 %v10672_v9, %v23443_v17  ;;  %v10971_v31 = vadd.f32 %v10970_v8, %v23470_v63 }
0x6fe7   :  { %19959 = vmatmul.mubr.msk.f32.vlgmr.msra.gmra.mxu0 %vm107_vm1, %v10673_v57 }
0x6fe8   :  { %19973 = vmatpush3.msra.mxu0 %v23359_v27  ;;  %19980 = vmatprep.mubr.msk.f32.mxu0 %vm21274_vm0, %v21273_v1 }
0x6fe9   :  { %19974 = vmatprep.subr.mxu0 %v21273_v1 }
0x6fea   :  { %19975 = vmatpush3.msra.mxu0 %v23365_v13 }
0x6feb   :  { %19976 = vmatprep.subr.mxu0 %v21273_v1 }
0x6fec   :  { %19977 = vmatpush3.msra.mxu0 %v23399_v3 }
0x6fed   :  { %19978 = vmatprep.subr.mxu0 %v21273_v1 }
0x6fee   :  { %19979 = vmatpush3.msra.mxu0 %v23403_v19 }
0x6fef   :  { %19994 = vmatprep.subr.mxu0 %v21273_v1 }
0x70a7   :  { %v10743_v51 = vpop.f32.mrf.mxu0 }
0x70a8   :  { %v10744_v21 = vadd.f32 %v23410_v7, %v10743_v51 }
0x70a9   :  { %v19960_v2 = vpop.f32.mrf.mxu0 }
0x70aa   :  { %21026 = vtanh.f32 %v10744_v21 }
0x70b7   :  { %v21027_v50 = vpop.eup %21026 }
0x70b8   :  { %19970 = vmatmul.mubr.msk.f32.vlgmr.msra.gmra.mxu1 %vm107_vm1, %v21027_v50 }
0x70b9   :  { %19984 = vmatpush3.msra.mxu1 %v23414_v24  ;;  %19991 = vmatprep.mubr.msk.f32.mxu1 %vm21274_vm0, %v21273_v1 }
0x70ba   :  { %19985 = vmatprep.subr.mxu1 %v21273_v1 }
0x70bb   :  { %19986 = vmatpush3.msra.mxu1 %v23420_v25 }
0x70bc   :  { %19987 = vmatprep.subr.mxu1 %v21273_v1 }
0x70bd   :  { %19988 = vmatpush3.msra.mxu1 %v23424_v41 }
0x70be   :  { %19989 = vmatprep.subr.mxu1 %v21273_v1 }
0x70bf   :  { %19990 = vmatpush3.msra.mxu1 %v23428_v43 }
0x70c0   :  { %20005 = vmatprep.subr.mxu1 %v21273_v1 }
0x7178   :  { %v10817_v12 = vpop.f32.mrf.mxu1 }
0x7179   :  { %v10818_v22 = vadd.f32 %v23436_v35, %v10817_v12 }
0x717a   :  { %v19971_v30 = vpop.f32.mrf.mxu1 }
0x717b   :  { %v10821_v32 = vmul.f32 %v10818_v22, %v23386_v53  ;;  %v10972_v33 = vmul.f32 2.0, %v10818_v22 }
0x717d   :  { %v10822_v47 = vadd.f32 %v10821_v32, %v23443_v17  ;;  %v10973_v48 = vadd.f32 %v10972_v33, %v10971_v31 }
0x717f   :  { %19981 = vmatmul.mubr.msk.f32.vlgmr.msra.gmra.mxu0 %vm107_vm1, %v10822_v47 }
0x7180   :  { %19995 = vmatpush3.msra.mxu0 %v23359_v27  ;;  %20002 = vmatprep.mubr.msk.f32.mxu0 %vm21274_vm0, %v21273_v1 }
0x7181   :  { %19996 = vmatprep.subr.mxu0 %v21273_v1 }
0x7182   :  { %19997 = vmatpush3.msra.mxu0 %v23365_v13 }
0x7183   :  { %19998 = vmatprep.subr.mxu0 %v21273_v1 }
0x7184   :  { %19999 = vmatpush3.msra.mxu0 %v23399_v3 }
0x7185   :  { %20000 = vmatprep.subr.mxu0 %v21273_v1 }
0x7186   :  { %20001 = vmatpush3.msra.mxu0 %v23403_v19 }
0x7187   :  { %20016 = vmatprep.subr.mxu0 %v21273_v1 }
0x723f   :  { %v10892_v14 = vpop.f32.mrf.mxu0 }
0x7240   :  { %v10893_v36 = vadd.f32 %v23410_v7, %v10892_v14 }
0x7241   :  { %v19982_v38 = vpop.f32.mrf.mxu0 }
0x7242   :  { %21028 = vtanh.f32 %v10893_v36 }
0x724f   :  { %v21029_v16 = vpop.eup %21028 }
0x7250   :  { %19992 = vmatmul.mubr.msk.f32.vlgmr.msra.gmra.mxu1 %vm107_vm1, %v21029_v16 }
0x7251   :  { %20006 = vmatpush3.msra.mxu1 %v23414_v24  ;;  %20013 = vmatprep.mubr.msk.f32.mxu1 %vm21274_vm0, %v21273_v1 }
0x7252   :  { %20007 = vmatprep.subr.mxu1 %v21273_v1 }
0x7253   :  { %20008 = vmatpush3.msra.mxu1 %v23420_v25 }
0x7254   :  { %20009 = vmatprep.subr.mxu1 %v21273_v1 }
0x7255   :  { %20010 = vmatpush3.msra.mxu1 %v23424_v41 }
0x7256   :  { %20011 = vmatprep.subr.mxu1 %v21273_v1 }
0x7257   :  { %20012 = vmatpush3.msra.mxu1 %v23428_v43 }
0x7258   :  { %20027 = vmatprep.subr.mxu1 %v21273_v1 }
0x7310   :  { %v10966_v39 = vpop.f32.mrf.mxu1 }
0x7311   :  { %v10967_v18 = vadd.f32 %v23436_v35, %v10966_v39 }
0x7312   :  { %v19993_v61 = vpop.f32.mrf.mxu1 }
0x7313   :  { %v10974_v40 = vadd.f32 %v10973_v48, %v10967_v18 }
0x7315   :  { %v10975_v54 = vmul.f32 %v10974_v40, %v23439_v52 }
0x7317   :  { %v23554_v15 = vadd.f32 %v10975_v54, %v23443_v17 }
0x7319   :  { %20003 = vmatmul.mubr.msk.f32.vlgmr.msra.gmra.mxu0 %vm107_vm1, %v23554_v15 }
0x731a   :  { %20017 = vmatpush3.msra.mxu0 %v23359_v27  ;;  %20024 = vmatprep.mubr.msk.f32.mxu0 %vm21274_vm0, %v21273_v1 }
0x731b   :  { %20018 = vmatprep.subr.mxu0 %v21273_v1 }
0x731c   :  { %20019 = vmatpush3.msra.mxu0 %v23365_v13 }
0x731d   :  { %20020 = vmatprep.subr.mxu0 %v21273_v1 }
0x731e   :  { %20021 = vmatpush3.msra.mxu0 %v23399_v3 }
0x731f   :  { %20022 = vmatprep.subr.mxu0 %v21273_v1 }
0x7320   :  { %20023 = vmatpush3.msra.mxu0 %v23403_v19 }
0x7321   :  { %20038 = vmatprep.subr.mxu0 %v21273_v1 }
0x73d9   :  { %v11046_v23 = vpop.f32.mrf.mxu0 }
0x73da   :  { %v11047_v20 = vadd.f32 %v23410_v7, %v11046_v23 }
0x73db   :  { %v20004_v45 = vpop.f32.mrf.mxu0 }
0x73dc   :  { %21030 = vtanh.f32 %v11047_v20 }
0x73e9   :  { %v21031_v62 = vpop.eup %21030 }
0x73ea   :  { %20014 = vmatmul.mubr.msk.f32.vlgmr.msra.gmra.mxu1 %vm107_vm1, %v21031_v62 }
0x73eb   :  { %20028 = vmatpush3.msra.mxu1 %v23414_v24  ;;  %20035 = vmatprep.mubr.msk.f32.mxu1 %vm21274_vm0, %v21273_v1 }
0x73ec   :  { %20029 = vmatprep.subr.mxu1 %v21273_v1 }
0x73ed   :  { %20030 = vmatpush3.msra.mxu1 %v23420_v25 }
0x73ee   :  { %20031 = vmatprep.subr.mxu1 %v21273_v1 }
0x73ef   :  { %20032 = vmatpush3.msra.mxu1 %v23424_v41 }
0x73f0   :  { %20033 = vmatprep.subr.mxu1 %v21273_v1 }
0x73f1   :  { %20034 = vmatpush3.msra.mxu1 %v23428_v43 }
0x73f2   :  { %20049 = vmatprep.subr.mxu1 %v21273_v1 }
0x74aa   :  { %v11120_v55 = vpop.f32.mrf.mxu1 }
0x74ab   :  { %v23581_v10 = vadd.f32 %v23436_v35, %v11120_v55 }
0x74ac   :  { %v20015_v17 = vpop.f32.mrf.mxu1 }
0x74ad   :  { %v11124_v0 = vmul.f32 %v23581_v10, %v23324_v11 }
0x74af   :  { %v11125_v56 = vadd.f32 %v11124_v0, %v23554_v15 }
0x74b1   :  { %20025 = vmatmul.mubr.msk.f32.vlgmr.msra.gmra.mxu0 %vm107_vm1, %v11125_v56 }
0x74b2   :  { %20039 = vmatpush3.msra.mxu0 %v23359_v27  ;;  %20046 = vmatprep.mubr.msk.f32.mxu0 %vm21274_vm0, %v21273_v1 }
0x74b3   :  { %20040 = vmatprep.subr.mxu0 %v21273_v1 }
0x74b4   :  { %20041 = vmatpush3.msra.mxu0 %v23365_v13 }
0x74b5   :  { %20042 = vmatprep.subr.mxu0 %v21273_v1 }
0x74b6   :  { %20043 = vmatpush3.msra.mxu0 %v23399_v3 }
0x74b7   :  { %20044 = vmatprep.subr.mxu0 %v21273_v1 }
0x74b8   :  { %20045 = vmatpush3.msra.mxu0 %v23403_v19 }
0x74b9   :  { %20060 = vmatprep.subr.mxu0 %v21273_v1 }
0x7571   :  { %v11195_v58 = vpop.f32.mrf.mxu0 }
0x7572   :  { %v11196_v59 = vadd.f32 %v23410_v7, %v11195_v58 }
0x7573   :  { %v20026_v60 = vpop.f32.mrf.mxu0 }
0x7574   :  { %21032 = vtanh.f32 %v11196_v59 }
0x7581   :  { %v21033_v63 = vpop.eup %21032 }
0x7582   :  { %20036 = vmatmul.mubr.msk.f32.vlgmr.msra.gmra.mxu1 %vm107_vm1, %v21033_v63 }
0x7583   :  { %20050 = vmatpush3.msra.mxu1 %v23414_v24  ;;  %20057 = vmatprep.mubr.msk.f32.mxu1 %vm21274_vm0, %v21273_v1 }
0x7584   :  { %20051 = vmatprep.subr.mxu1 %v21273_v1 }
0x7585   :  { %20052 = vmatpush3.msra.mxu1 %v23420_v25 }
0x7586   :  { %20053 = vmatprep.subr.mxu1 %v21273_v1 }
0x7587   :  { %20054 = vmatpush3.msra.mxu1 %v23424_v41 }
0x7588   :  { %20055 = vmatprep.subr.mxu1 %v21273_v1 }
0x7589   :  { %20056 = vmatpush3.msra.mxu1 %v23428_v43 }
0x758a   :  { %20071 = vmatprep.subr.mxu1 %v21273_v1 }
0x7642   :  { %v11269_v26 = vpop.f32.mrf.mxu1 }
0x7643   :  { %v11270_v34 = vadd.f32 %v23436_v35, %v11269_v26 }
0x7644   :  { %v20037_v42 = vpop.f32.mrf.mxu1 }
0x7645   :  { %v11273_v46 = vmul.f32 %v11270_v34, %v23324_v11  ;;  %v11571_v6 = vmul.f32 2.0, %v11270_v34 }
0x7647   :  { %v11274_v5 = vadd.f32 %v11273_v46, %v23554_v15  ;;  %v11572_v21 = vadd.f32 %v11571_v6, %v23581_v10 }
0x7649   :  { %20047 = vmatmul.mubr.msk.f32.vlgmr.msra.gmra.mxu0 %vm107_vm1, %v11274_v5 }
0x764a   :  { %20061 = vmatpush3.msra.mxu0 %v23359_v27  ;;  %20068 = vmatprep.mubr.msk.f32.mxu0 %vm21274_vm0, %v21273_v1 }
0x764b   :  { %20062 = vmatprep.subr.mxu0 %v21273_v1 }
0x764c   :  { %20063 = vmatpush3.msra.mxu0 %v23365_v13 }
0x764d   :  { %20064 = vmatprep.subr.mxu0 %v21273_v1 }
0x764e   :  { %20065 = vmatpush3.msra.mxu0 %v23399_v3 }
0x764f   :  { %20066 = vmatprep.subr.mxu0 %v21273_v1 }
0x7650   :  { %20067 = vmatpush3.msra.mxu0 %v23403_v19 }
0x7651   :  { %20082 = vmatprep.subr.mxu0 %v21273_v1 }
0x7709   :  { %v11344_v49 = vpop.f32.mrf.mxu0 }
0x770a   :  { %v11345_v37 = vadd.f32 %v23410_v7, %v11344_v49 }
0x770b   :  { %v20048_v28 = vpop.f32.mrf.mxu0 }
0x770c   :  { %21034 = vtanh.f32 %v11345_v37 }
0x7719   :  { %v21035_v4 = vpop.eup %21034 }
0x771a   :  { %20058 = vmatmul.mubr.msk.f32.vlgmr.msra.gmra.mxu1 %vm107_vm1, %v21035_v4 }
0x771b   :  { %20072 = vmatpush3.msra.mxu1 %v23414_v24  ;;  %20079 = vmatprep.mubr.msk.f32.mxu1 %vm21274_vm0, %v21273_v1 }
0x771c   :  { %20073 = vmatprep.subr.mxu1 %v21273_v1 }
0x771d   :  { %20074 = vmatpush3.msra.mxu1 %v23420_v25 }
0x771e   :  { %20075 = vmatprep.subr.mxu1 %v21273_v1 }
0x771f   :  { %20076 = vmatpush3.msra.mxu1 %v23424_v41 }
0x7720   :  { %20077 = vmatprep.subr.mxu1 %v21273_v1 }
0x7721   :  { %20078 = vmatpush3.msra.mxu1 %v23428_v43 }
0x7722   :  { %20093 = vmatprep.subr.mxu1 %v21273_v1 }
0x77da   :  { %v11418_v9 = vpop.f32.mrf.mxu1 }
0x77db   :  { %v11419_v57 = vadd.f32 %v23436_v35, %v11418_v9 }
0x77dc   :  { %v20059_v51 = vpop.f32.mrf.mxu1 }
0x77dd   :  { %v11422_v2 = vmul.f32 %v11419_v57, %v23386_v53  ;;  %v11573_v50 = vmul.f32 2.0, %v11419_v57 }
0x77df   :  { %v11423_v8 = vadd.f32 %v11422_v2, %v23554_v15  ;;  %v11574_v12 = vadd.f32 %v11573_v50, %v11572_v21 }
0x77e1   :  { %20069 = vmatmul.mubr.msk.f32.vlgmr.msra.gmra.mxu0 %vm107_vm1, %v11423_v8 }
0x77e2   :  { %20083 = vmatpush3.msra.mxu0 %v23359_v27  ;;  %20090 = vmatprep.mubr.msk.f32.mxu0 %vm21274_vm0, %v21273_v1 }
0x77e3   :  { %20084 = vmatprep.subr.mxu0 %v21273_v1 }
0x77e4   :  { %20085 = vmatpush3.msra.mxu0 %v23365_v13 }
0x77e5   :  { %20086 = vmatprep.subr.mxu0 %v21273_v1 }
0x77e6   :  { %20087 = vmatpush3.msra.mxu0 %v23399_v3 }
0x77e7   :  { %20088 = vmatprep.subr.mxu0 %v21273_v1 }
0x77e8   :  { %20089 = vmatpush3.msra.mxu0 %v23403_v19 }
0x77e9   :  { %20104 = vmatprep.subr.mxu0 %v21273_v1 }
0x78a1   :  { %v11493_v22 = vpop.f32.mrf.mxu0 }
0x78a2   :  { %v11494_v30 = vadd.f32 %v23410_v7, %v11493_v22 }
0x78a3   :  { %v20070_v31 = vpop.f32.mrf.mxu0 }
0x78a4   :  { %21036 = vtanh.f32 %v11494_v30  ;;  %v17015_v31 = vpop.permute.xlu1 %17014 }
0x78b1   :  { %v21037_v32 = vpop.eup %21036 }
0x78b2   :  { %20080 = vmatmul.mubr.msk.f32.vlgmr.msra.gmra.mxu1 %vm107_vm1, %v21037_v32  ;;  %v21150_v32 = vld [vmem:[#allocation6] sm:$0xff] }
0x78b3   :  { %20094 = vmatpush3.msra.mxu1 %v23414_v24  ;;  %20101 = vmatprep.mubr.msk.f32.mxu1 %vm21274_vm0, %v21273_v1 }
0x78b4   :  { %20095 = vmatprep.subr.mxu1 %v21273_v1 }
0x78b5   :  { %20096 = vmatpush3.msra.mxu1 %v23420_v25 }
0x78b6   :  { %20097 = vmatprep.subr.mxu1 %v21273_v1 }
0x78b7   :  { %20098 = vmatpush3.msra.mxu1 %v23424_v41 }
0x78b8   :  { %20099 = vmatprep.subr.mxu1 %v21273_v1 }
0x78b9   :  { %20100 = vmatpush3.msra.mxu1 %v23428_v43 }
0x78ba   :  { %20115 = vmatprep.subr.mxu1 %v21273_v1 }
0x7972   :  { %v11567_v33 = vpop.f32.mrf.mxu1 }
0x7973   :  { %v11568_v47 = vadd.f32 %v23436_v35, %v11567_v33 }
0x7974   :  { %v20081_v48 = vpop.f32.mrf.mxu1 }
0x7975   :  { %v11575_v14 = vadd.f32 %v11574_v12, %v11568_v47 }
0x7977   :  { %v11576_v36 = vmul.f32 %v11575_v14, %v23439_v52 }
0x7979   :  { %v23665_v38 = vadd.f32 %v11576_v36, %v23554_v15 }
0x797b   :  { %20091 = vmatmul.mubr.msk.f32.vlgmr.msra.gmra.mxu0 %vm107_vm1, %v23665_v38 }
0x797c   :  { %20105 = vmatpush3.msra.mxu0 %v23359_v27  ;;  %20112 = vmatprep.mubr.msk.f32.mxu0 %vm21274_vm0, %v21273_v1 }
0x797d   :  { %20106 = vmatprep.subr.mxu0 %v21273_v1 }
0x797e   :  { %20107 = vmatpush3.msra.mxu0 %v23365_v13 }
0x797f   :  { %20108 = vmatprep.subr.mxu0 %v21273_v1 }
0x7980   :  { %20109 = vmatpush3.msra.mxu0 %v23399_v3 }
0x7981   :  { %20110 = vmatprep.subr.mxu0 %v21273_v1 }
0x7982   :  { %20111 = vmatpush3.msra.mxu0 %v23403_v19 }
0x7983   :  { %20126 = vmatprep.subr.mxu0 %v21273_v1 }
0x7a3b   :  { %v11647_v16 = vpop.f32.mrf.mxu0 }
0x7a3c   :  { %v11648_v39 = vadd.f32 %v23410_v7, %v11647_v16 }
0x7a3d   :  { %v20092_v18 = vpop.f32.mrf.mxu0 }
0x7a3e   :  { %21038 = vtanh.f32 %v11648_v39 }
0x7a4b   :  { %v21039_v61 = vpop.eup %21038 }
0x7a4c   :  { %20102 = vmatmul.mubr.msk.f32.vlgmr.msra.gmra.mxu1 %vm107_vm1, %v21039_v61 }
0x7a4d   :  { %20116 = vmatpush3.msra.mxu1 %v23414_v24  ;;  %20123 = vmatprep.mubr.msk.f32.mxu1 %vm21274_vm0, %v21273_v1 }
0x7a4e   :  { %20117 = vmatprep.subr.mxu1 %v21273_v1 }
0x7a4f   :  { %20118 = vmatpush3.msra.mxu1 %v23420_v25 }
0x7a50   :  { %20119 = vmatprep.subr.mxu1 %v21273_v1 }
0x7a51   :  { %20120 = vmatpush3.msra.mxu1 %v23424_v41 }
0x7a52   :  { %20121 = vmatprep.subr.mxu1 %v21273_v1 }
0x7a53   :  { %20122 = vmatpush3.msra.mxu1 %v23428_v43 }
0x7a54   :  { %20137 = vmatprep.subr.mxu1 %v21273_v1 }
0x7b0c   :  { %v11721_v40 = vpop.f32.mrf.mxu1 }
0x7b0d   :  { %v23692_v54 = vadd.f32 %v23436_v35, %v11721_v40 }
0x7b0e   :  { %v20103_v15 = vpop.f32.mrf.mxu1 }
0x7b0f   :  { %v11725_v23 = vmul.f32 %v23692_v54, %v23324_v11 }
0x7b11   :  { %v11726_v20 = vadd.f32 %v11725_v23, %v23665_v38 }
0x7b13   :  { %20113 = vmatmul.mubr.msk.f32.vlgmr.msra.gmra.mxu0 %vm107_vm1, %v11726_v20 }
0x7b14   :  { %20127 = vmatpush3.msra.mxu0 %v23359_v27  ;;  %20134 = vmatprep.mubr.msk.f32.mxu0 %vm21274_vm0, %v21273_v1 }
0x7b15   :  { %20128 = vmatprep.subr.mxu0 %v21273_v1 }
0x7b16   :  { %20129 = vmatpush3.msra.mxu0 %v23365_v13 }
0x7b17   :  { %20130 = vmatprep.subr.mxu0 %v21273_v1 }
0x7b18   :  { %20131 = vmatpush3.msra.mxu0 %v23399_v3 }
0x7b19   :  { %20132 = vmatprep.subr.mxu0 %v21273_v1 }
0x7b1a   :  { %20133 = vmatpush3.msra.mxu0 %v23403_v19 }
0x7b1b   :  { %20148 = vmatprep.subr.mxu0 %v21273_v1 }
0x7bd3   :  { %v11796_v45 = vpop.f32.mrf.mxu0 }
0x7bd4   :  { %v11797_v62 = vadd.f32 %v23410_v7, %v11796_v45 }
0x7bd5   :  { %v20114_v55 = vpop.f32.mrf.mxu0 }
0x7bd6   :  { %21040 = vtanh.f32 %v11797_v62 }
0x7be3   :  { %v21041_v10 = vpop.eup %21040 }
0x7be4   :  { %20124 = vmatmul.mubr.msk.f32.vlgmr.msra.gmra.mxu1 %vm107_vm1, %v21041_v10 }
0x7be5   :  { %20138 = vmatpush3.msra.mxu1 %v23414_v24  ;;  %20145 = vmatprep.mubr.msk.f32.mxu1 %vm21274_vm0, %v21273_v1 }
0x7be6   :  { %20139 = vmatprep.subr.mxu1 %v21273_v1 }
0x7be7   :  { %20140 = vmatpush3.msra.mxu1 %v23420_v25 }
0x7be8   :  { %20141 = vmatprep.subr.mxu1 %v21273_v1 }
0x7be9   :  { %20142 = vmatpush3.msra.mxu1 %v23424_v41 }
0x7bea   :  { %20143 = vmatprep.subr.mxu1 %v21273_v1 }
0x7beb   :  { %20144 = vmatpush3.msra.mxu1 %v23428_v43 }
0x7bec   :  { %20159 = vmatprep.subr.mxu1 %v21273_v1 }
0x7ca4   :  { %v11870_v17 = vpop.f32.mrf.mxu1 }
0x7ca5   :  { %v11871_v0 = vadd.f32 %v23436_v35, %v11870_v17 }
0x7ca6   :  { %v20125_v56 = vpop.f32.mrf.mxu1 }
0x7ca7   :  { %v11874_v58 = vmul.f32 %v11871_v0, %v23324_v11  ;;  %v12172_v34 = vmul.f32 2.0, %v11871_v0  ;;  %v23853_v0 = vld [vmem:[#allocation7 + $0x18] sm:$0xff]  ;;  %v23859_v56 = vld [vmem:[#allocation7 + $0x10] sm:$0xff] }
0x7ca9   :  { %v11875_v59 = vadd.f32 %v11874_v58, %v23665_v38  ;;  %v12173_v49 = vadd.f32 %v12172_v34, %v23692_v54 }
0x7cab   :  { %20135 = vmatmul.mubr.msk.f32.vlgmr.msra.gmra.mxu0 %vm107_vm1, %v11875_v59 }
0x7cac   :  { %20149 = vmatpush3.msra.mxu0 %v23359_v27  ;;  %20156 = vmatprep.mubr.msk.f32.mxu0 %vm21274_vm0, %v21273_v1 }
0x7cad   :  { %20150 = vmatprep.subr.mxu0 %v21273_v1 }
0x7cae   :  { %20151 = vmatpush3.msra.mxu0 %v23365_v13 }
0x7caf   :  { %20152 = vmatprep.subr.mxu0 %v21273_v1 }
0x7cb0   :  { %20153 = vmatpush3.msra.mxu0 %v23399_v3 }
0x7cb1   :  { %20154 = vmatprep.subr.mxu0 %v21273_v1 }
0x7cb2   :  { %20155 = vmatpush3.msra.mxu0 %v23403_v19 }
0x7cb3   :  { %20170 = vmatprep.subr.mxu0 %v21273_v1 }
0x7d6b   :  { %v11945_v11 = vpop.f32.mrf.mxu0 }
0x7d6c   :  { %v11946_v60 = vadd.f32 %v23410_v7, %v11945_v11 }
0x7d6d   :  { %v20136_v63 = vpop.f32.mrf.mxu0 }
0x7d6e   :  { %21042 = vtanh.f32 %v11946_v60 }
0x7d7b   :  { %v21043_v26 = vpop.eup %21042 }
0x7d7c   :  { %20146 = vmatmul.mubr.msk.f32.vlgmr.msra.gmra.mxu1 %vm107_vm1, %v21043_v26 }
0x7d7d   :  { %20160 = vmatpush3.msra.mxu1 %v23414_v24  ;;  %20167 = vmatprep.mubr.msk.f32.mxu1 %vm21274_vm0, %v21273_v1 }
0x7d7e   :  { %20161 = vmatprep.subr.mxu1 %v21273_v1 }
0x7d7f   :  { %20162 = vmatpush3.msra.mxu1 %v23420_v25 }
0x7d80   :  { %20163 = vmatprep.subr.mxu1 %v21273_v1 }
0x7d81   :  { %20164 = vmatpush3.msra.mxu1 %v23424_v41 }
0x7d82   :  { %20165 = vmatprep.subr.mxu1 %v21273_v1 }
0x7d83   :  { %20166 = vmatpush3.msra.mxu1 %v23428_v43 }
0x7d84   :  { %20181 = vmatprep.subr.mxu1 %v21273_v1 }
0x7e3c   :  { %v12019_v42 = vpop.f32.mrf.mxu1 }
0x7e3d   :  { %v12020_v46 = vadd.f32 %v23436_v35, %v12019_v42 }
0x7e3e   :  { %v20147_v5 = vpop.f32.mrf.mxu1 }
0x7e3f   :  { %v12023_v37 = vmul.f32 %v12020_v46, %v23386_v53  ;;  %v12174_v28 = vmul.f32 2.0, %v12020_v46  ;;  %v23904_v5 = vld [vmem:[%s24740_s3] ss:$0 sm:$0xff] }
0x7e41   :  { %v12024_v4 = vadd.f32 %v12023_v37, %v23665_v38  ;;  %v12175_v6 = vadd.f32 %v12174_v28, %v12173_v49 }
0x7e43   :  { %20157 = vmatmul.mubr.msk.f32.vlgmr.msra.gmra.mxu0 %vm107_vm1, %v12024_v4  ;;  %v23908_v4 = vld [vmem:[#allocation9 + $0x18] sm:$0xff] }
0x7e44   :  { %20171 = vmatpush3.msra.mxu0 %v23359_v27  ;;  %20178 = vmatprep.mubr.msk.f32.mxu0 %vm21274_vm0, %v21273_v1 }
0x7e45   :  { %20172 = vmatprep.subr.mxu0 %v21273_v1 }
0x7e46   :  { %20173 = vmatpush3.msra.mxu0 %v23365_v13 }
0x7e47   :  { %20174 = vmatprep.subr.mxu0 %v21273_v1 }
0x7e48   :  { %20175 = vmatpush3.msra.mxu0 %v23399_v3 }
0x7e49   :  { %20176 = vmatprep.subr.mxu0 %v21273_v1 }
0x7e4a   :  { %20177 = vmatpush3.msra.mxu0 %v23403_v19 }
0x7e4b   :  { %20192 = vmatprep.subr.mxu0 %v21273_v1 }
0x7f03   :  { %v12094_v53 = vpop.f32.mrf.mxu0 }
0x7f04   :  { %v12095_v9 = vadd.f32 %v23410_v7, %v12094_v53  ;;  %v23918_v53 = vld [vmem:[#allocation9 + $0x8] sm:$0xff] }
0x7f05   :  { %v20158_v57 = vpop.f32.mrf.mxu0 }
0x7f06   :  { %21044 = vtanh.f32 %v12095_v9  ;;  %v23922_v9 = vld [vmem:[#allocation9] sm:$0xff] }
0x7f13   :  { %v21045_v51 = vpop.eup %21044 }
0x7f14   :  { %20168 = vmatmul.mubr.msk.f32.vlgmr.msra.gmra.mxu1 %vm107_vm1, %v21045_v51  ;;  %v23930_v51 = vld [vmem:[%s24742_s5] ss:$0 sm:$0xff] }
0x7f15   :  { %20182 = vmatpush3.msra.mxu1 %v23414_v24  ;;  %20189 = vmatprep.mubr.msk.f32.mxu1 %vm21274_vm0, %v21273_v1 }
0x7f16   :  { %20183 = vmatprep.subr.mxu1 %v21273_v1 }
0x7f17   :  { %20184 = vmatpush3.msra.mxu1 %v23420_v25 }
0x7f18   :  { %20185 = vmatprep.subr.mxu1 %v21273_v1 }
0x7f19   :  { %20186 = vmatpush3.msra.mxu1 %v23424_v41 }
0x7f1a   :  { %20187 = vmatprep.subr.mxu1 %v21273_v1 }
0x7f1b   :  { %20188 = vmatpush3.msra.mxu1 %v23428_v43 }
0x7f1c   :  { %20203 = vmatprep.subr.mxu1 %v21273_v1 }
0x7fd4   :  { %v12168_v21 = vpop.f32.mrf.mxu1 }
0x7fd5   :  { %v12169_v2 = vadd.f32 %v23436_v35, %v12168_v21 }
0x7fd6   :  { %v20169_v50 = vpop.f32.mrf.mxu1 }
0x7fd7   :  { %v12176_v8 = vadd.f32 %v12175_v6, %v12169_v2  ;;  %v23914_v6 = vld [vmem:[#allocation9 + $0x10] sm:$0xff] }
0x7fd9   :  { %v12177_v12 = vmul.f32 %v12176_v8, %v23439_v52  ;;  %v17012_v52 = vpop.permute.xlu0 %17011 }
0x7fda   :  { %v17030_v33 = vsel %vm107_vm1, %v21150_v32, %v17012_v52 }
0x7fdb   :  { %v23776_v22 = vadd.f32 %v12177_v12, %v23665_v38 }
0x7fdd   :  { %17020 = vrot.lane.b32.xlu0 %v23776_v22, %s21275_s23  ;;  %20179 = vmatmul.mubr.msk.f32.vlgmr.msra.gmra.mxu0 %vm107_vm1, %v23776_v22  ;;  %s23811_s23 = sld [smem:[#allocation2 + $0x6]] }
0x7fde   :  { %20193 = vmatpush3.msra.mxu0 %v23359_v27  ;;  %20200 = vmatprep.mubr.msk.f32.mxu0 %vm21274_vm0, %v21273_v1 }
0x7fdf   :  { %20194 = vmatprep.subr.mxu0 %v21273_v1 }
0x7fe0   :  { %20195 = vmatpush3.msra.mxu0 %v23365_v13 }
0x7fe1   :  { %17017 = vrot.lane.b32.xlu0 %v22806_v44, %s21277_s11  ;;  %20196 = vmatprep.subr.mxu0 %v21273_v1  ;;  %v17032_v44 = vsel %vm17031_vm2, %v17030_v33, %v17015_v31 }
0x7fe2   :  { %20197 = vmatpush3.msra.mxu0 %v23399_v3 }
0x7fe3   :  { %20198 = vmatprep.subr.mxu0 %v21273_v1  ;;  %s12180_s12 = ssub.f32 %s23811_s23, %s23317_s25 }
0x7fe4   :  { %20199 = vmatpush3.msra.mxu0 %v23403_v19 }
0x7fe5   :  { %20214 = vmatprep.subr.mxu0 %v21273_v1  ;;  %s23815_s2 = smul.f32 0.25, %s12180_s12 }
0x7fe7   :  { %s12184_s13 = smul.f32 0.5, %s23815_s2 }
0x7fe8   :  { %s12187_s1 = smul.f32 0.16666667, %s23815_s2 }
0x7fe9   :  { %v23818_v18 = vstv %s12184_s13 }
0x7fea   :  { %v23933_v2 = vstv %s12187_s1 }
0x804f   :  { %v23794_v30 = vpop.permute.xlu0 %17020 }
0x8053   :  { %v17018_v47 = vpop.permute.xlu0 %17017 }
0x8054   :  { %v17034_v48 = vsel %vm17033_vm3, %v17032_v44, %v17018_v47 }
0x8055   :  { %17038 = vst [vmem:[#allocation10] sm:$0xff] %v17034_v48 }
0x809d   :  { %v12257_v14 = vpop.f32.mrf.mxu0 }
0x809e   :  { %v12258_v36 = vadd.f32 %v23410_v7, %v12257_v14 }
0x809f   :  { %v20180_v38 = vpop.f32.mrf.mxu0 }
0x80a0   :  { %21046 = vtanh.f32 %v12258_v36 }
0x80ad   :  { %v21047_v16 = vpop.eup %21046 }
0x80ae   :  { %20190 = vmatmul.mubr.msk.f32.vlgmr.msra.gmra.mxu1 %vm107_vm1, %v21047_v16 }
0x80af   :  { %20204 = vmatpush3.msra.mxu1 %v23414_v24  ;;  %20211 = vmatprep.mubr.msk.f32.mxu1 %vm21274_vm0, %v21273_v1 }
0x80b0   :  { %20205 = vmatprep.subr.mxu1 %v21273_v1 }
0x80b1   :  { %20206 = vmatpush3.msra.mxu1 %v23420_v25 }
0x80b2   :  { %20207 = vmatprep.subr.mxu1 %v21273_v1 }
0x80b3   :  { %20208 = vmatpush3.msra.mxu1 %v23424_v41 }
0x80b4   :  { %20209 = vmatprep.subr.mxu1 %v21273_v1 }
0x80b5   :  { %20210 = vmatpush3.msra.mxu1 %v23428_v43 }
0x80b6   :  { %20225 = vmatprep.subr.mxu1 %v21273_v1 }
0x816e   :  { %v12331_v39 = vpop.f32.mrf.mxu1 }
0x816f   :  { %v23821_v61 = vadd.f32 %v23436_v35, %v12331_v39 }
0x8170   :  { %v20191_v40 = vpop.f32.mrf.mxu1 }
0x8171   :  { %v12336_v54 = vmul.f32 %v23818_v18, %v23821_v61 }
0x8173   :  { %v12337_v15 = vadd.f32 %v12336_v54, %v23776_v22 }
0x8175   :  { %20201 = vmatmul.mubr.msk.f32.vlgmr.msra.gmra.mxu0 %vm107_vm1, %v12337_v15 }
0x8176   :  { %20215 = vmatpush3.msra.mxu0 %v23359_v27  ;;  %20222 = vmatprep.mubr.msk.f32.mxu0 %vm21274_vm0, %v21273_v1 }
0x8177   :  { %20216 = vmatprep.subr.mxu0 %v21273_v1 }
0x8178   :  { %20217 = vmatpush3.msra.mxu0 %v23365_v13 }
0x8179   :  { %20218 = vmatprep.subr.mxu0 %v21273_v1 }
0x817a   :  { %20219 = vmatpush3.msra.mxu0 %v23399_v3 }
0x817b   :  { %20220 = vmatprep.subr.mxu0 %v21273_v1 }
0x817c   :  { %20221 = vmatpush3.msra.mxu0 %v23403_v19 }
0x817d   :  { %20236 = vmatprep.subr.mxu0 %v21273_v1 }
0x8235   :  { %v12407_v23 = vpop.f32.mrf.mxu0 }
0x8236   :  { %v12408_v27 = vadd.f32 %v23410_v7, %v12407_v23 }
0x8237   :  { %v20202_v20 = vpop.f32.mrf.mxu0 }
0x8238   :  { %21048 = vtanh.f32 %v12408_v27 }
0x8245   :  { %v21049_v45 = vpop.eup %21048 }
0x8246   :  { %20212 = vmatmul.mubr.msk.f32.vlgmr.msra.gmra.mxu1 %vm107_vm1, %v21049_v45 }
0x8247   :  { %20226 = vmatpush3.msra.mxu1 %v23414_v24  ;;  %20233 = vmatprep.mubr.msk.f32.mxu1 %vm21274_vm0, %v21273_v1 }
0x8248   :  { %20227 = vmatprep.subr.mxu1 %v21273_v1 }
0x8249   :  { %20228 = vmatpush3.msra.mxu1 %v23420_v25 }
0x824a   :  { %20229 = vmatprep.subr.mxu1 %v21273_v1 }
0x824b   :  { %20230 = vmatpush3.msra.mxu1 %v23424_v41 }
0x824c   :  { %20231 = vmatprep.subr.mxu1 %v21273_v1 }
0x824d   :  { %20232 = vmatpush3.msra.mxu1 %v23428_v43 }
0x824e   :  { %20247 = vmatprep.subr.mxu1 %v21273_v1 }
0x8306   :  { %v12481_v13 = vpop.f32.mrf.mxu1 }
0x8307   :  { %v12482_v62 = vadd.f32 %v23436_v35, %v12481_v13 }
0x8308   :  { %v20213_v55 = vpop.f32.mrf.mxu1 }
0x8309   :  { %v12485_v10 = vmul.f32 %v12482_v62, %v23818_v18 }
0x830b   :  { %v12486_v17 = vadd.f32 %v12485_v10, %v23776_v22 }
0x830d   :  { %20223 = vmatmul.mubr.msk.f32.vlgmr.msra.gmra.mxu0 %vm107_vm1, %v12486_v17 }
0x830e   :  { %20237 = vmatpush3.msra.mxu0 %v23853_v0  ;;  %20244 = vmatprep.mubr.msk.f32.mxu0 %vm21274_vm0, %v21273_v1 }
0x830f   :  { %20238 = vmatprep.subr.mxu0 %v21273_v1 }
0x8310   :  { %20239 = vmatpush3.msra.mxu0 %v23859_v56 }
0x8311   :  { %20240 = vmatprep.subr.mxu0 %v21273_v1 }
0x8312   :  { %20241 = vmatpush3.msra.mxu0 %v23399_v3  ;;  %v12784_v3 = vmul.f32 2.0, %v12482_v62 }
0x8313   :  { %20242 = vmatprep.subr.mxu0 %v21273_v1 }
0x8314   :  { %20243 = vmatpush3.msra.mxu0 %v23403_v19  ;;  %v12785_v26 = vadd.f32 %v12784_v3, %v23821_v61 }
0x8315   :  { %20258 = vmatprep.subr.mxu0 %v21273_v1 }
0x83cd   :  { %v12556_v58 = vpop.f32.mrf.mxu0 }
0x83ce   :  { %v12557_v59 = vadd.f32 %v23410_v7, %v12556_v58  ;;  %v23880_v7 = vstv %s23815_s2 }
0x83cf   :  { %v20224_v11 = vpop.f32.mrf.mxu0 }
0x83d0   :  { %21050 = vtanh.f32 %v12557_v59 }
0x83dd   :  { %v21051_v60 = vpop.eup %21050 }
0x83de   :  { %20234 = vmatmul.mubr.msk.f32.vlgmr.msra.gmra.mxu1 %vm107_vm1, %v21051_v60 }
0x83df   :  { %20248 = vmatpush3.msra.mxu1 %v23414_v24  ;;  %20255 = vmatprep.mubr.msk.f32.mxu1 %vm21274_vm0, %v21273_v1 }
0x83e0   :  { %20249 = vmatprep.subr.mxu1 %v21273_v1 }
0x83e1   :  { %20250 = vmatpush3.msra.mxu1 %v23420_v25 }
0x83e2   :  { %20251 = vmatprep.subr.mxu1 %v21273_v1 }
0x83e3   :  { %20252 = vmatpush3.msra.mxu1 %v23424_v41 }
0x83e4   :  { %20253 = vmatprep.subr.mxu1 %v21273_v1 }
0x83e5   :  { %20254 = vmatpush3.msra.mxu1 %v23428_v43  ;;  %v23893_v43 = vld [vmem:[#allocation7 + $0x8] sm:$0xff] }
0x83e6   :  { %20269 = vmatprep.subr.mxu1 %v21273_v1 }
0x849e   :  { %v12630_v19 = vpop.f32.mrf.mxu1 }
0x849f   :  { %v12631_v24 = vadd.f32 %v23436_v35, %v12630_v19  ;;  %v23897_v35 = vld [vmem:[#allocation7] sm:$0xff] }
0x84a0   :  { %v20235_v63 = vpop.f32.mrf.mxu1 }
0x84a1   :  { %v12635_v25 = vmul.f32 %v23880_v7, %v12631_v24  ;;  %v12786_v34 = vmul.f32 2.0, %v12631_v24 }
0x84a3   :  { %v12636_v41 = vadd.f32 %v12635_v25, %v23776_v22  ;;  %v12787_v42 = vadd.f32 %v12786_v34, %v12785_v26 }
0x84a5   :  { %20245 = vmatmul.mubr.msk.f32.vlgmr.msra.gmra.mxu0 %vm107_vm1, %v12636_v41 }
0x84a6   :  { %20259 = vmatpush3.msra.mxu0 %v23853_v0  ;;  %20266 = vmatprep.mubr.msk.f32.mxu0 %vm21274_vm0, %v21273_v1 }
0x84a7   :  { %20260 = vmatprep.subr.mxu0 %v21273_v1 }
0x84a8   :  { %20261 = vmatpush3.msra.mxu0 %v23859_v56 }
0x84a9   :  { %20262 = vmatprep.subr.mxu0 %v21273_v1 }
0x84aa   :  { %20263 = vmatpush3.msra.mxu0 %v23893_v43 }
0x84ab   :  { %20264 = vmatprep.subr.mxu0 %v21273_v1 }
0x84ac   :  { %20265 = vmatpush3.msra.mxu0 %v23897_v35 }
0x84ad   :  { %20280 = vmatprep.subr.mxu0 %v21273_v1 }
0x8565   :  { %v12706_v46 = vpop.f32.mrf.mxu0 }
0x8566   :  { %v12707_v49 = vadd.f32 %v23904_v5, %v12706_v46 }
0x8567   :  { %v20246_v37 = vpop.f32.mrf.mxu0 }
0x8568   :  { %21052 = vtanh.f32 %v12707_v49 }
0x8575   :  { %v21053_v28 = vpop.eup %21052 }
0x8576   :  { %20256 = vmatmul.mubr.msk.f32.vlgmr.msra.gmra.mxu1 %vm107_vm1, %v21053_v28 }
0x8577   :  { %20270 = vmatpush3.msra.mxu1 %v23908_v4  ;;  %20277 = vmatprep.mubr.msk.f32.mxu1 %vm21274_vm0, %v21273_v1 }
0x8578   :  { %20271 = vmatprep.subr.mxu1 %v21273_v1 }
0x8579   :  { %20272 = vmatpush3.msra.mxu1 %v23914_v6 }
0x857a   :  { %20273 = vmatprep.subr.mxu1 %v21273_v1 }
0x857b   :  { %20274 = vmatpush3.msra.mxu1 %v23918_v53 }
0x857c   :  { %20275 = vmatprep.subr.mxu1 %v21273_v1 }
0x857d   :  { %20276 = vmatpush3.msra.mxu1 %v23922_v9 }
0x857e   :  { %20291 = vmatprep.subr.mxu1 %v21273_v1 }
0x8636   :  { %v12780_v57 = vpop.f32.mrf.mxu1 }
0x8637   :  { %v12781_v21 = vadd.f32 %v23930_v51, %v12780_v57 }
0x8638   :  { %v20257_v50 = vpop.f32.mrf.mxu1 }
0x8639   :  { %v12788_v8 = vadd.f32 %v12787_v42, %v12781_v21 }
0x863b   :  { %v12790_v12 = vmul.f32 %v23933_v2, %v12788_v8 }
0x863d   :  { %v23937_v52 = vadd.f32 %v12790_v12, %v23776_v22 }
0x863f   :  { %20267 = vmatmul.mubr.msk.f32.vlgmr.msra.gmra.mxu0 %vm107_vm1, %v23937_v52 }
0x8640   :  { %20281 = vmatpush3.msra.mxu0 %v23853_v0  ;;  %20288 = vmatprep.mubr.msk.f32.mxu0 %vm21274_vm0, %v21273_v1 }
0x8641   :  { %20282 = vmatprep.subr.mxu0 %v21273_v1 }
0x8642   :  { %20283 = vmatpush3.msra.mxu0 %v23859_v56 }
0x8643   :  { %20284 = vmatprep.subr.mxu0 %v21273_v1 }
0x8644   :  { %20285 = vmatpush3.msra.mxu0 %v23893_v43 }
0x8645   :  { %20286 = vmatprep.subr.mxu0 %v21273_v1 }
0x8646   :  { %20287 = vmatpush3.msra.mxu0 %v23897_v35 }
0x8647   :  { %20302 = vmatprep.subr.mxu0 %v21273_v1 }
0x86ff   :  { %v12861_v22 = vpop.f32.mrf.mxu0 }
0x8700   :  { %v12862_v31 = vadd.f32 %v23904_v5, %v12861_v22 }
0x8701   :  { %v20268_v32 = vpop.f32.mrf.mxu0 }
0x8702   :  { %21054 = vtanh.f32 %v12862_v31 }
0x870f   :  { %v21055_v33 = vpop.eup %21054 }
0x8710   :  { %20278 = vmatmul.mubr.msk.f32.vlgmr.msra.gmra.mxu1 %vm107_vm1, %v21055_v33 }
0x8711   :  { %20292 = vmatpush3.msra.mxu1 %v23908_v4  ;;  %20299 = vmatprep.mubr.msk.f32.mxu1 %vm21274_vm0, %v21273_v1 }
0x8712   :  { %20293 = vmatprep.subr.mxu1 %v21273_v1 }
0x8713   :  { %20294 = vmatpush3.msra.mxu1 %v23914_v6 }
0x8714   :  { %20295 = vmatprep.subr.mxu1 %v21273_v1 }
0x8715   :  { %20296 = vmatpush3.msra.mxu1 %v23918_v53 }
0x8716   :  { %20297 = vmatprep.subr.mxu1 %v21273_v1 }
0x8717   :  { %20298 = vmatpush3.msra.mxu1 %v23922_v9 }
0x8718   :  { %20313 = vmatprep.subr.mxu1 %v21273_v1 }
0x87d0   :  { %v12935_v44 = vpop.f32.mrf.mxu1 }
0x87d1   :  { %v23964_v47 = vadd.f32 %v23930_v51, %v12935_v44 }
0x87d2   :  { %v20279_v48 = vpop.f32.mrf.mxu1 }
0x87d3   :  { %v12939_v14 = vmul.f32 %v23964_v47, %v23818_v18 }
0x87d5   :  { %v12940_v36 = vadd.f32 %v12939_v14, %v23937_v52 }
0x87d7   :  { %20289 = vmatmul.mubr.msk.f32.vlgmr.msra.gmra.mxu0 %vm107_vm1, %v12940_v36 }
0x87d8   :  { %20303 = vmatpush3.msra.mxu0 %v23853_v0  ;;  %20310 = vmatprep.mubr.msk.f32.mxu0 %vm21274_vm0, %v21273_v1 }
0x87d9   :  { %20304 = vmatprep.subr.mxu0 %v21273_v1 }
0x87da   :  { %20305 = vmatpush3.msra.mxu0 %v23859_v56 }
0x87db   :  { %20306 = vmatprep.subr.mxu0 %v21273_v1 }
0x87dc   :  { %20307 = vmatpush3.msra.mxu0 %v23893_v43 }
0x87dd   :  { %20308 = vmatprep.subr.mxu0 %v21273_v1 }
0x87de   :  { %20309 = vmatpush3.msra.mxu0 %v23897_v35 }
0x87df   :  { %20324 = vmatprep.subr.mxu0 %v21273_v1 }
0x8897   :  { %v13010_v38 = vpop.f32.mrf.mxu0 }
0x8898   :  { %v13011_v16 = vadd.f32 %v23904_v5, %v13010_v38 }
0x8899   :  { %v20290_v39 = vpop.f32.mrf.mxu0 }
0x889a   :  { %21056 = vtanh.f32 %v13011_v16 }
0x88a7   :  { %v21057_v61 = vpop.eup %21056 }
0x88a8   :  { %20300 = vmatmul.mubr.msk.f32.vlgmr.msra.gmra.mxu1 %vm107_vm1, %v21057_v61 }
0x88a9   :  { %20314 = vmatpush3.msra.mxu1 %v23908_v4  ;;  %20321 = vmatprep.mubr.msk.f32.mxu1 %vm21274_vm0, %v21273_v1 }
0x88aa   :  { %20315 = vmatprep.subr.mxu1 %v21273_v1 }
0x88ab   :  { %20316 = vmatpush3.msra.mxu1 %v23914_v6 }
0x88ac   :  { %20317 = vmatprep.subr.mxu1 %v21273_v1 }
0x88ad   :  { %20318 = vmatpush3.msra.mxu1 %v23918_v53 }
0x88ae   :  { %20319 = vmatprep.subr.mxu1 %v21273_v1 }
0x88af   :  { %20320 = vmatpush3.msra.mxu1 %v23922_v9 }
0x88b0   :  { %20335 = vmatprep.subr.mxu1 %v21273_v1 }
0x8968   :  { %v13084_v40 = vpop.f32.mrf.mxu1 }
0x8969   :  { %v13085_v54 = vadd.f32 %v23930_v51, %v13084_v40 }
0x896a   :  { %v20301_v15 = vpop.f32.mrf.mxu1 }
0x896b   :  { %v13088_v23 = vmul.f32 %v13085_v54, %v23818_v18  ;;  %v13386_v55 = vmul.f32 2.0, %v13085_v54 }
0x896d   :  { %v13089_v27 = vadd.f32 %v13088_v23, %v23937_v52  ;;  %v13387_v59 = vadd.f32 %v13386_v55, %v23964_v47 }
0x896f   :  { %20311 = vmatmul.mubr.msk.f32.vlgmr.msra.gmra.mxu0 %vm107_vm1, %v13089_v27 }
0x8970   :  { %20325 = vmatpush3.msra.mxu0 %v23853_v0  ;;  %20332 = vmatprep.mubr.msk.f32.mxu0 %vm21274_vm0, %v21273_v1 }
0x8971   :  { %20326 = vmatprep.subr.mxu0 %v21273_v1 }
0x8972   :  { %20327 = vmatpush3.msra.mxu0 %v23859_v56 }
0x8973   :  { %20328 = vmatprep.subr.mxu0 %v21273_v1 }
0x8974   :  { %20329 = vmatpush3.msra.mxu0 %v23893_v43 }
0x8975   :  { %20330 = vmatprep.subr.mxu0 %v21273_v1 }
0x8976   :  { %20331 = vmatpush3.msra.mxu0 %v23897_v35 }
0x8977   :  { %20346 = vmatprep.subr.mxu0 %v21273_v1 }
0x8a2f   :  { %v13159_v20 = vpop.f32.mrf.mxu0 }
0x8a30   :  { %v13160_v45 = vadd.f32 %v23904_v5, %v13159_v20 }
0x8a31   :  { %v20312_v13 = vpop.f32.mrf.mxu0 }
0x8a32   :  { %21058 = vtanh.f32 %v13160_v45 }
0x8a3f   :  { %v21059_v62 = vpop.eup %21058 }
0x8a40   :  { %20322 = vmatmul.mubr.msk.f32.vlgmr.msra.gmra.mxu1 %vm107_vm1, %v21059_v62 }
0x8a41   :  { %20336 = vmatpush3.msra.mxu1 %v23908_v4  ;;  %20343 = vmatprep.mubr.msk.f32.mxu1 %vm21274_vm0, %v21273_v1 }
0x8a42   :  { %20337 = vmatprep.subr.mxu1 %v21273_v1 }
0x8a43   :  { %20338 = vmatpush3.msra.mxu1 %v23914_v6 }
0x8a44   :  { %20339 = vmatprep.subr.mxu1 %v21273_v1 }
0x8a45   :  { %20340 = vmatpush3.msra.mxu1 %v23918_v53 }
0x8a46   :  { %20341 = vmatprep.subr.mxu1 %v21273_v1 }
0x8a47   :  { %20342 = vmatpush3.msra.mxu1 %v23922_v9 }
0x8a48   :  { %20357 = vmatprep.subr.mxu1 %v21273_v1 }
0x8b00   :  { %v13233_v10 = vpop.f32.mrf.mxu1 }
0x8b01   :  { %v13234_v17 = vadd.f32 %v23930_v51, %v13233_v10 }
0x8b02   :  { %v20323_v58 = vpop.f32.mrf.mxu1 }
0x8b03   :  { %v13237_v11 = vmul.f32 %v13234_v17, %v23880_v7  ;;  %v13388_v60 = vmul.f32 2.0, %v13234_v17 }
0x8b05   :  { %v13238_v3 = vadd.f32 %v13237_v11, %v23937_v52  ;;  %v13389_v19 = vadd.f32 %v13388_v60, %v13387_v59 }
0x8b07   :  { %20333 = vmatmul.mubr.msk.f32.vlgmr.msra.gmra.mxu0 %vm107_vm1, %v13238_v3 }
0x8b08   :  { %20347 = vmatpush3.msra.mxu0 %v23853_v0  ;;  %20354 = vmatprep.mubr.msk.f32.mxu0 %vm21274_vm0, %v21273_v1 }
0x8b09   :  { %20348 = vmatprep.subr.mxu0 %v21273_v1 }
0x8b0a   :  { %20349 = vmatpush3.msra.mxu0 %v23859_v56 }
0x8b0b   :  { %20350 = vmatprep.subr.mxu0 %v21273_v1 }
0x8b0c   :  { %20351 = vmatpush3.msra.mxu0 %v23893_v43 }
0x8b0d   :  { %20352 = vmatprep.subr.mxu0 %v21273_v1 }
0x8b0e   :  { %20353 = vmatpush3.msra.mxu0 %v23897_v35 }
0x8b0f   :  { %20368 = vmatprep.subr.mxu0 %v21273_v1 }
0x8bc7   :  { %v13308_v24 = vpop.f32.mrf.mxu0 }
0x8bc8   :  { %v13309_v63 = vadd.f32 %v23904_v5, %v13308_v24 }
0x8bc9   :  { %v20334_v26 = vpop.f32.mrf.mxu0 }
0x8bca   :  { %21060 = vtanh.f32 %v13309_v63 }
0x8bd7   :  { %v21061_v25 = vpop.eup %21060 }
0x8bd8   :  { %20344 = vmatmul.mubr.msk.f32.vlgmr.msra.gmra.mxu1 %vm107_vm1, %v21061_v25 }
0x8bd9   :  { %20358 = vmatpush3.msra.mxu1 %v23908_v4  ;;  %20365 = vmatprep.mubr.msk.f32.mxu1 %vm21274_vm0, %v21273_v1 }
0x8bda   :  { %20359 = vmatprep.subr.mxu1 %v21273_v1 }
0x8bdb   :  { %20360 = vmatpush3.msra.mxu1 %v23914_v6 }
0x8bdc   :  { %20361 = vmatprep.subr.mxu1 %v21273_v1 }
0x8bdd   :  { %20362 = vmatpush3.msra.mxu1 %v23918_v53 }
0x8bde   :  { %20363 = vmatprep.subr.mxu1 %v21273_v1 }
0x8bdf   :  { %20364 = vmatpush3.msra.mxu1 %v23922_v9 }
0x8be0   :  { %20379 = vmatprep.subr.mxu1 %v21273_v1 }
0x8c98   :  { %v13382_v34 = vpop.f32.mrf.mxu1 }
0x8c99   :  { %v13383_v41 = vadd.f32 %v23930_v51, %v13382_v34 }
0x8c9a   :  { %v20345_v42 = vpop.f32.mrf.mxu1 }
0x8c9b   :  { %v13390_v46 = vadd.f32 %v13389_v19, %v13383_v41 }
0x8c9d   :  { %v13391_v49 = vmul.f32 %v13390_v46, %v23933_v2 }
0x8c9f   :  { %v24048_v37 = vadd.f32 %v13391_v49, %v23937_v52 }
0x8ca1   :  { %20355 = vmatmul.mubr.msk.f32.vlgmr.msra.gmra.mxu0 %vm107_vm1, %v24048_v37 }
0x8ca2   :  { %20369 = vmatpush3.msra.mxu0 %v23853_v0  ;;  %20376 = vmatprep.mubr.msk.f32.mxu0 %vm21274_vm0, %v21273_v1 }
0x8ca3   :  { %20370 = vmatprep.subr.mxu0 %v21273_v1 }
0x8ca4   :  { %20371 = vmatpush3.msra.mxu0 %v23859_v56 }
0x8ca5   :  { %20372 = vmatprep.subr.mxu0 %v21273_v1 }
0x8ca6   :  { %20373 = vmatpush3.msra.mxu0 %v23893_v43 }
0x8ca7   :  { %20374 = vmatprep.subr.mxu0 %v21273_v1 }
0x8ca8   :  { %20375 = vmatpush3.msra.mxu0 %v23897_v35 }
0x8ca9   :  { %20390 = vmatprep.subr.mxu0 %v21273_v1 }
0x8d61   :  { %v13462_v28 = vpop.f32.mrf.mxu0 }
0x8d62   :  { %v13463_v57 = vadd.f32 %v23904_v5, %v13462_v28 }
0x8d63   :  { %v20356_v21 = vpop.f32.mrf.mxu0 }
0x8d64   :  { %21062 = vtanh.f32 %v13463_v57 }
0x8d71   :  { %v21063_v50 = vpop.eup %21062 }
0x8d72   :  { %20366 = vmatmul.mubr.msk.f32.vlgmr.msra.gmra.mxu1 %vm107_vm1, %v21063_v50 }
0x8d73   :  { %20380 = vmatpush3.msra.mxu1 %v23908_v4  ;;  %20387 = vmatprep.mubr.msk.f32.mxu1 %vm21274_vm0, %v21273_v1 }
0x8d74   :  { %20381 = vmatprep.subr.mxu1 %v21273_v1 }
0x8d75   :  { %20382 = vmatpush3.msra.mxu1 %v23914_v6 }
0x8d76   :  { %20383 = vmatprep.subr.mxu1 %v21273_v1 }
0x8d77   :  { %20384 = vmatpush3.msra.mxu1 %v23918_v53 }
0x8d78   :  { %20385 = vmatprep.subr.mxu1 %v21273_v1 }
0x8d79   :  { %20386 = vmatpush3.msra.mxu1 %v23922_v9 }
0x8d7a   :  { %20401 = vmatprep.subr.mxu1 %v21273_v1 }
0x8e32   :  { %v13536_v8 = vpop.f32.mrf.mxu1 }
0x8e33   :  { %v24075_v12 = vadd.f32 %v23930_v51, %v13536_v8 }
0x8e34   :  { %v20367_v52 = vpop.f32.mrf.mxu1 }
0x8e35   :  { %v13540_v22 = vmul.f32 %v24075_v12, %v23818_v18 }
0x8e37   :  { %v13541_v31 = vadd.f32 %v13540_v22, %v24048_v37 }
0x8e39   :  { %20377 = vmatmul.mubr.msk.f32.vlgmr.msra.gmra.mxu0 %vm107_vm1, %v13541_v31 }
0x8e3a   :  { %20391 = vmatpush3.msra.mxu0 %v23853_v0  ;;  %20398 = vmatprep.mubr.msk.f32.mxu0 %vm21274_vm0, %v21273_v1 }
0x8e3b   :  { %20392 = vmatprep.subr.mxu0 %v21273_v1 }
0x8e3c   :  { %20393 = vmatpush3.msra.mxu0 %v23859_v56 }
0x8e3d   :  { %20394 = vmatprep.subr.mxu0 %v21273_v1 }
0x8e3e   :  { %20395 = vmatpush3.msra.mxu0 %v23893_v43 }
0x8e3f   :  { %20396 = vmatprep.subr.mxu0 %v21273_v1 }
0x8e40   :  { %20397 = vmatpush3.msra.mxu0 %v23897_v35 }
0x8e41   :  { %20412 = vmatprep.subr.mxu0 %v21273_v1 }
0x8ef9   :  { %v13611_v32 = vpop.f32.mrf.mxu0 }
0x8efa   :  { %v13612_v33 = vadd.f32 %v23904_v5, %v13611_v32 }
0x8efb   :  { %v20378_v44 = vpop.f32.mrf.mxu0 }
0x8efc   :  { %21064 = vtanh.f32 %v13612_v33 }
0x8f09   :  { %v21065_v47 = vpop.eup %21064 }
0x8f0a   :  { %20388 = vmatmul.mubr.msk.f32.vlgmr.msra.gmra.mxu1 %vm107_vm1, %v21065_v47 }
0x8f0b   :  { %20402 = vmatpush3.msra.mxu1 %v23908_v4  ;;  %20409 = vmatprep.mubr.msk.f32.mxu1 %vm21274_vm0, %v21273_v1 }
0x8f0c   :  { %20403 = vmatprep.subr.mxu1 %v21273_v1 }
0x8f0d   :  { %20404 = vmatpush3.msra.mxu1 %v23914_v6 }
0x8f0e   :  { %20405 = vmatprep.subr.mxu1 %v21273_v1 }
0x8f0f   :  { %20406 = vmatpush3.msra.mxu1 %v23918_v53 }
0x8f10   :  { %20407 = vmatprep.subr.mxu1 %v21273_v1 }
0x8f11   :  { %20408 = vmatpush3.msra.mxu1 %v23922_v9 }
0x8f12   :  { %20423 = vmatprep.subr.mxu1 %v21273_v1 }
0x8fca   :  { %v13685_v48 = vpop.f32.mrf.mxu1 }
0x8fcb   :  { %v13686_v14 = vadd.f32 %v23930_v51, %v13685_v48 }
0x8fcc   :  { %v20389_v36 = vpop.f32.mrf.mxu1 }
0x8fcd   :  { %v13689_v38 = vmul.f32 %v13686_v14, %v23818_v18  ;;  %v13987_v15 = vmul.f32 2.0, %v13686_v14 }
0x8fcf   :  { %v13690_v16 = vadd.f32 %v13689_v38, %v24048_v37  ;;  %v13988_v45 = vadd.f32 %v13987_v15, %v24075_v12 }
0x8fd1   :  { %20399 = vmatmul.mubr.msk.f32.vlgmr.msra.gmra.mxu0 %vm107_vm1, %v13690_v16 }
0x8fd2   :  { %20413 = vmatpush3.msra.mxu0 %v23853_v0  ;;  %20420 = vmatprep.mubr.msk.f32.mxu0 %vm21274_vm0, %v21273_v1 }
0x8fd3   :  { %20414 = vmatprep.subr.mxu0 %v21273_v1 }
0x8fd4   :  { %20415 = vmatpush3.msra.mxu0 %v23859_v56 }
0x8fd5   :  { %20416 = vmatprep.subr.mxu0 %v21273_v1 }
0x8fd6   :  { %20417 = vmatpush3.msra.mxu0 %v23893_v43 }
0x8fd7   :  { %20418 = vmatprep.subr.mxu0 %v21273_v1 }
0x8fd8   :  { %20419 = vmatpush3.msra.mxu0 %v23897_v35 }
0x8fd9   :  { %20434 = vmatprep.subr.mxu0 %v21273_v1 }
0x9091   :  { %v13760_v39 = vpop.f32.mrf.mxu0 }
0x9092   :  { %v13761_v61 = vadd.f32 %v23904_v5, %v13760_v39 }
0x9093   :  { %v20400_v40 = vpop.f32.mrf.mxu0 }
0x9094   :  { %21066 = vtanh.f32 %v13761_v61 }
0x90a1   :  { %v21067_v54 = vpop.eup %21066 }
0x90a2   :  { %20410 = vmatmul.mubr.msk.f32.vlgmr.msra.gmra.mxu1 %vm107_vm1, %v21067_v54 }
0x90a3   :  { %20424 = vmatpush3.msra.mxu1 %v23908_v4  ;;  %20431 = vmatprep.mubr.msk.f32.mxu1 %vm21274_vm0, %v21273_v1 }
0x90a4   :  { %20425 = vmatprep.subr.mxu1 %v21273_v1 }
0x90a5   :  { %20426 = vmatpush3.msra.mxu1 %v23914_v6 }
0x90a6   :  { %20427 = vmatprep.subr.mxu1 %v21273_v1 }
0x90a7   :  { %20428 = vmatpush3.msra.mxu1 %v23918_v53 }
0x90a8   :  { %20429 = vmatprep.subr.mxu1 %v21273_v1 }
0x90a9   :  { %20430 = vmatpush3.msra.mxu1 %v23922_v9 }
0x90aa   :  { %20445 = vmatprep.subr.mxu1 %v21273_v1 }
0x9162   :  { %v13834_v23 = vpop.f32.mrf.mxu1 }
0x9163   :  { %v13835_v27 = vadd.f32 %v23930_v51, %v13834_v23 }
0x9164   :  { %v20411_v20 = vpop.f32.mrf.mxu1 }
0x9165   :  { %v13838_v13 = vmul.f32 %v13835_v27, %v23880_v7  ;;  %v13989_v62 = vmul.f32 2.0, %v13835_v27 }
0x9167   :  { %v13839_v55 = vadd.f32 %v13838_v13, %v24048_v37  ;;  %v13990_v10 = vadd.f32 %v13989_v62, %v13988_v45 }
0x9169   :  { %20421 = vmatmul.mubr.msk.f32.vlgmr.msra.gmra.mxu0 %vm107_vm1, %v13839_v55 }
0x916a   :  { %20435 = vmatpush3.msra.mxu0 %v23853_v0  ;;  %20442 = vmatprep.mubr.msk.f32.mxu0 %vm21274_vm0, %v21273_v1 }
0x916b   :  { %20436 = vmatprep.subr.mxu0 %v21273_v1 }
0x916c   :  { %20437 = vmatpush3.msra.mxu0 %v23859_v56 }
0x916d   :  { %20438 = vmatprep.subr.mxu0 %v21273_v1 }
0x916e   :  { %20439 = vmatpush3.msra.mxu0 %v23893_v43 }
0x916f   :  { %20440 = vmatprep.subr.mxu0 %v21273_v1 }
0x9170   :  { %20441 = vmatpush3.msra.mxu0 %v23897_v35 }
0x9171   :  { %20456 = vmatprep.subr.mxu0 %v21273_v1 }
0x9229   :  { %v13909_v17 = vpop.f32.mrf.mxu0 }
0x922a   :  { %v13910_v58 = vadd.f32 %v23904_v5, %v13909_v17 }
0x922b   :  { %v20422_v59 = vpop.f32.mrf.mxu0 }
0x922c   :  { %21068 = vtanh.f32 %v13910_v58 }
0x9239   :  { %v21069_v11 = vpop.eup %21068 }
0x923a   :  { %20432 = vmatmul.mubr.msk.f32.vlgmr.msra.gmra.mxu1 %vm107_vm1, %v21069_v11 }
0x923b   :  { %20446 = vmatpush3.msra.mxu1 %v23908_v4  ;;  %20453 = vmatprep.mubr.msk.f32.mxu1 %vm21274_vm0, %v21273_v1 }
0x923c   :  { %20447 = vmatprep.subr.mxu1 %v21273_v1 }
0x923d   :  { %20448 = vmatpush3.msra.mxu1 %v23914_v6 }
0x923e   :  { %20449 = vmatprep.subr.mxu1 %v21273_v1 }
0x923f   :  { %20450 = vmatpush3.msra.mxu1 %v23918_v53 }
0x9240   :  { %20451 = vmatprep.subr.mxu1 %v21273_v1 }
0x9241   :  { %20452 = vmatpush3.msra.mxu1 %v23922_v9 }
0x9242   :  { %20467 = vmatprep.subr.mxu1 %v21273_v1 }
0x92fa   :  { %v13983_v60 = vpop.f32.mrf.mxu1 }
0x92fb   :  { %v13984_v3 = vadd.f32 %v23930_v51, %v13983_v60 }
0x92fc   :  { %v20433_v19 = vpop.f32.mrf.mxu1 }
0x92fd   :  { %v13991_v24 = vadd.f32 %v13990_v10, %v13984_v3 }
0x92ff   :  { %v13992_v63 = vmul.f32 %v13991_v24, %v23933_v2 }
0x9301   :  { %v24159_v26 = vadd.f32 %v13992_v63, %v24048_v37 }
0x9303   :  { %20443 = vmatmul.mubr.msk.f32.vlgmr.msra.gmra.mxu0 %vm107_vm1, %v24159_v26 }
0x9304   :  { %20457 = vmatpush3.msra.mxu0 %v23853_v0  ;;  %20464 = vmatprep.mubr.msk.f32.mxu0 %vm21274_vm0, %v21273_v1 }
0x9305   :  { %20458 = vmatprep.subr.mxu0 %v21273_v1 }
0x9306   :  { %20459 = vmatpush3.msra.mxu0 %v23859_v56 }
0x9307   :  { %20460 = vmatprep.subr.mxu0 %v21273_v1 }
0x9308   :  { %20461 = vmatpush3.msra.mxu0 %v23893_v43 }
0x9309   :  { %20462 = vmatprep.subr.mxu0 %v21273_v1 }
0x930a   :  { %20463 = vmatpush3.msra.mxu0 %v23897_v35 }
0x930b   :  { %20478 = vmatprep.subr.mxu0 %v21273_v1 }
0x93c3   :  { %v14063_v25 = vpop.f32.mrf.mxu0 }
0x93c4   :  { %v14064_v34 = vadd.f32 %v23904_v5, %v14063_v25 }
0x93c5   :  { %v20444_v41 = vpop.f32.mrf.mxu0 }
0x93c6   :  { %21070 = vtanh.f32 %v14064_v34 }
0x93d3   :  { %v21071_v42 = vpop.eup %21070 }
0x93d4   :  { %20454 = vmatmul.mubr.msk.f32.vlgmr.msra.gmra.mxu1 %vm107_vm1, %v21071_v42 }
0x93d5   :  { %20468 = vmatpush3.msra.mxu1 %v23908_v4  ;;  %20475 = vmatprep.mubr.msk.f32.mxu1 %vm21274_vm0, %v21273_v1 }
0x93d6   :  { %20469 = vmatprep.subr.mxu1 %v21273_v1 }
0x93d7   :  { %20470 = vmatpush3.msra.mxu1 %v23914_v6 }
0x93d8   :  { %20471 = vmatprep.subr.mxu1 %v21273_v1 }
0x93d9   :  { %20472 = vmatpush3.msra.mxu1 %v23918_v53 }
0x93da   :  { %20473 = vmatprep.subr.mxu1 %v21273_v1 }
0x93db   :  { %20474 = vmatpush3.msra.mxu1 %v23922_v9 }
0x93dc   :  { %20489 = vmatprep.subr.mxu1 %v21273_v1 }
0x9494   :  { %v14137_v46 = vpop.f32.mrf.mxu1 }
0x9495   :  { %v24186_v49 = vadd.f32 %v23930_v51, %v14137_v46 }
0x9496   :  { %v20455_v37 = vpop.f32.mrf.mxu1 }
0x9497   :  { %v14141_v28 = vmul.f32 %v24186_v49, %v23818_v18 }
0x9499   :  { %v14142_v57 = vadd.f32 %v14141_v28, %v24159_v26 }
0x949b   :  { %20465 = vmatmul.mubr.msk.f32.vlgmr.msra.gmra.mxu0 %vm107_vm1, %v14142_v57 }
0x949c   :  { %20479 = vmatpush3.msra.mxu0 %v23853_v0  ;;  %20486 = vmatprep.mubr.msk.f32.mxu0 %vm21274_vm0, %v21273_v1 }
0x949d   :  { %20480 = vmatprep.subr.mxu0 %v21273_v1 }
0x949e   :  { %20481 = vmatpush3.msra.mxu0 %v23859_v56 }
0x949f   :  { %20482 = vmatprep.subr.mxu0 %v21273_v1 }
0x94a0   :  { %20483 = vmatpush3.msra.mxu0 %v23893_v43 }
0x94a1   :  { %20484 = vmatprep.subr.mxu0 %v21273_v1 }
0x94a2   :  { %20485 = vmatpush3.msra.mxu0 %v23897_v35 }
0x94a3   :  { %20500 = vmatprep.subr.mxu0 %v21273_v1 }
0x955b   :  { %v14212_v21 = vpop.f32.mrf.mxu0 }
0x955c   :  { %v14213_v50 = vadd.f32 %v23904_v5, %v14212_v21 }
0x955d   :  { %v20466_v8 = vpop.f32.mrf.mxu0 }
0x955e   :  { %21072 = vtanh.f32 %v14213_v50 }
0x956b   :  { %v21073_v12 = vpop.eup %21072 }
0x956c   :  { %20476 = vmatmul.mubr.msk.f32.vlgmr.msra.gmra.mxu1 %vm107_vm1, %v21073_v12 }
0x956d   :  { %20490 = vmatpush3.msra.mxu1 %v23908_v4  ;;  %20497 = vmatprep.mubr.msk.f32.mxu1 %vm21274_vm0, %v21273_v1 }
0x956e   :  { %20491 = vmatprep.subr.mxu1 %v21273_v1 }
0x956f   :  { %20492 = vmatpush3.msra.mxu1 %v23914_v6 }
0x9570   :  { %20493 = vmatprep.subr.mxu1 %v21273_v1 }
0x9571   :  { %20494 = vmatpush3.msra.mxu1 %v23918_v53 }
0x9572   :  { %20495 = vmatprep.subr.mxu1 %v21273_v1 }
0x9573   :  { %20496 = vmatpush3.msra.mxu1 %v23922_v9 }
0x9574   :  { %20511 = vmatprep.subr.mxu1 %v21273_v1 }
0x962c   :  { %v14286_v52 = vpop.f32.mrf.mxu1 }
0x962d   :  { %v14287_v22 = vadd.f32 %v23930_v51, %v14286_v52 }
0x962e   :  { %v20477_v31 = vpop.f32.mrf.mxu1 }
0x962f   :  { %v14290_v32 = vmul.f32 %v14287_v22, %v23818_v18  ;;  %v14588_v14 = vmul.f32 2.0, %v14287_v22 }
0x9631   :  { %v14291_v33 = vadd.f32 %v14290_v32, %v24159_v26  ;;  %v14589_v39 = vadd.f32 %v14588_v14, %v24186_v49  ;;  %v24373_v14 = vld [vmem:[#allocation7 + $0x10] sm:$0xff] }
0x9633   :  { %20487 = vmatmul.mubr.msk.f32.vlgmr.msra.gmra.mxu0 %vm107_vm1, %v14291_v33 }
0x9634   :  { %20501 = vmatpush3.msra.mxu0 %v23853_v0  ;;  %20508 = vmatprep.mubr.msk.f32.mxu0 %vm21274_vm0, %v21273_v1 }
0x9635   :  { %20502 = vmatprep.subr.mxu0 %v21273_v1 }
0x9636   :  { %20503 = vmatpush3.msra.mxu0 %v23859_v56 }
0x9637   :  { %20504 = vmatprep.subr.mxu0 %v21273_v1 }
0x9638   :  { %20505 = vmatpush3.msra.mxu0 %v23893_v43 }
0x9639   :  { %20506 = vmatprep.subr.mxu0 %v21273_v1 }
0x963a   :  { %20507 = vmatpush3.msra.mxu0 %v23897_v35 }
0x963b   :  { %20522 = vmatprep.subr.mxu0 %v21273_v1 }
0x96f3   :  { %v14361_v18 = vpop.f32.mrf.mxu0 }
0x96f4   :  { %v14362_v44 = vadd.f32 %v23904_v5, %v14361_v18 }
0x96f5   :  { %v20488_v47 = vpop.f32.mrf.mxu0 }
0x96f6   :  { %21074 = vtanh.f32 %v14362_v44 }
0x9703   :  { %v21075_v48 = vpop.eup %21074 }
0x9704   :  { %20498 = vmatmul.mubr.msk.f32.vlgmr.msra.gmra.mxu1 %vm107_vm1, %v21075_v48  ;;  %v24367_v48 = vld [vmem:[#allocation7 + $0x18] sm:$0xff] }
0x9705   :  { %20512 = vmatpush3.msra.mxu1 %v23908_v4  ;;  %20519 = vmatprep.mubr.msk.f32.mxu1 %vm21274_vm0, %v21273_v1 }
0x9706   :  { %20513 = vmatprep.subr.mxu1 %v21273_v1 }
0x9707   :  { %20514 = vmatpush3.msra.mxu1 %v23914_v6 }
0x9708   :  { %20515 = vmatprep.subr.mxu1 %v21273_v1 }
0x9709   :  { %20516 = vmatpush3.msra.mxu1 %v23918_v53 }
0x970a   :  { %20517 = vmatprep.subr.mxu1 %v21273_v1 }
0x970b   :  { %20518 = vmatpush3.msra.mxu1 %v23922_v9 }
0x970c   :  { %20533 = vmatprep.subr.mxu1 %v21273_v1 }
0x97c4   :  { %v14435_v36 = vpop.f32.mrf.mxu1 }
0x97c5   :  { %v14436_v38 = vadd.f32 %v23930_v51, %v14435_v36 }
0x97c6   :  { %v20499_v16 = vpop.f32.mrf.mxu1 }
0x97c7   :  { %v14439_v61 = vmul.f32 %v14436_v38, %v23880_v7  ;;  %v14590_v40 = vmul.f32 2.0, %v14436_v38 }
0x97c9   :  { %v14440_v54 = vadd.f32 %v14439_v61, %v24159_v26  ;;  %v14591_v15 = vadd.f32 %v14590_v40, %v14589_v39 }
0x97cb   :  { %20509 = vmatmul.mubr.msk.f32.vlgmr.msra.gmra.mxu0 %vm107_vm1, %v14440_v54  ;;  %v24420_v54 = vld [vmem:[%s24740_s3] ss:$0 sm:$0xff] }
0x97cc   :  { %20523 = vmatpush3.msra.mxu0 %v23853_v0  ;;  %20530 = vmatprep.mubr.msk.f32.mxu0 %vm21274_vm0, %v21273_v1 }
0x97cd   :  { %20524 = vmatprep.subr.mxu0 %v21273_v1 }
0x97ce   :  { %20525 = vmatpush3.msra.mxu0 %v23859_v56 }
0x97cf   :  { %20526 = vmatprep.subr.mxu0 %v21273_v1 }
0x97d0   :  { %20527 = vmatpush3.msra.mxu0 %v23893_v43 }
0x97d1   :  { %20528 = vmatprep.subr.mxu0 %v21273_v1 }
0x97d2   :  { %20529 = vmatpush3.msra.mxu0 %v23897_v35 }
0x97d3   :  { %20544 = vmatprep.subr.mxu0 %v21273_v1 }
0x988b   :  { %v14510_v7 = vpop.f32.mrf.mxu0 }
0x988c   :  { %v14511_v23 = vadd.f32 %v23904_v5, %v14510_v7 }
0x988d   :  { %v20510_v27 = vpop.f32.mrf.mxu0 }
0x988e   :  { %21076 = vtanh.f32 %v14511_v23  ;;  %v24424_v27 = vld [vmem:[#allocation9 + $0x18] sm:$0xff] }
0x989b   :  { %v21077_v20 = vpop.eup %21076 }
0x989c   :  { %20520 = vmatmul.mubr.msk.f32.vlgmr.msra.gmra.mxu1 %vm107_vm1, %v21077_v20  ;;  %v24430_v20 = vld [vmem:[#allocation9 + $0x10] sm:$0xff] }
0x989d   :  { %20534 = vmatpush3.msra.mxu1 %v23908_v4  ;;  %20541 = vmatprep.mubr.msk.f32.mxu1 %vm21274_vm0, %v21273_v1 }
0x989e   :  { %20535 = vmatprep.subr.mxu1 %v21273_v1 }
0x989f   :  { %20536 = vmatpush3.msra.mxu1 %v23914_v6 }
0x98a0   :  { %20537 = vmatprep.subr.mxu1 %v21273_v1 }
0x98a1   :  { %20538 = vmatpush3.msra.mxu1 %v23918_v53 }
0x98a2   :  { %20539 = vmatprep.subr.mxu1 %v21273_v1 }
0x98a3   :  { %20540 = vmatpush3.msra.mxu1 %v23922_v9 }
0x98a4   :  { %20555 = vmatprep.subr.mxu1 %v21273_v1 }
0x995c   :  { %v14584_v45 = vpop.f32.mrf.mxu1 }
0x995d   :  { %v14585_v13 = vadd.f32 %v23930_v51, %v14584_v45  ;;  %v24434_v45 = vld [vmem:[#allocation9 + $0x8] sm:$0xff] }
0x995e   :  { %v20521_v62 = vpop.f32.mrf.mxu1 }
0x995f   :  { %v14592_v55 = vadd.f32 %v14591_v15, %v14585_v13  ;;  %v24438_v13 = vld [vmem:[#allocation9] sm:$0xff] }
0x9961   :  { %v14593_v10 = vmul.f32 %v14592_v55, %v23933_v2  ;;  %v24445_v55 = vld [vmem:[%s24742_s5] ss:$0 sm:$0xff]  ;;  %s21278_s5 = smov [#allocation10]  }
0x9962   :  { %s17046_s24 = sshll.u32 %s21278_s5, 4  ;;  %s17047_s24 = int_to_ptr.vmem [resolvable:$true] %s17046_s24 }
0x9963   :  { %v24270_v17 = vadd.f32 %v14593_v10, %v24159_v26  ;;  %s21239_s25 = scalar_lea.vmem %s17047_s24, 256  ;;  %p21244_p2 = scmp.lt.s32.totalorder %s17047_s24, %s17047_s24 }
0x9964   :  { %p21240_p1 = scmp.ne.s32.totalorder %s17047_s24, %s21239_s25  ;;  %p21245_p3 = scmp.lt.s32.totalorder %s21239_s25, %s21239_s25 }
0x9965   :  { %17023 = vrot.lane.b32.xlu1 %v24270_v17, %s21276_s9  ;;  %20531 = vmatmul.mubr.msk.f32.vlgmr.msra.gmra.mxu0 %vm107_vm1, %v24270_v17  ;;  %s17257_s9 = sld [smem:[#allocation2 + $0x7]] }
0x9966   :  { %20545 = vmatpush3.msra.mxu0 %v23853_v0  ;;  %20552 = vmatprep.mubr.msk.f32.mxu0 %vm21274_vm0, %v21273_v1  ;;  %p21246_p4 = por %p21245_p3, %p21244_p2 }
0x9967   :  { %20546 = vmatprep.subr.mxu0 %v21273_v1 }
0x9968   :  { %20547 = vmatpush3.msra.mxu0 %v23859_v56  ;;  %p21247_p5 = pnand %p21246_p4, %p21240_p1 }
0x9969   :  { %20548 = vmatprep.subr.mxu0 %v21273_v1 }
0x996a   :  { %20549 = vmatpush3.msra.mxu0 %v23893_v43 }
0x996b   :  { %20550 = vmatprep.subr.mxu0 %v21273_v1  ;;  %s14596_s16 = ssub.f32 %s17257_s9, %s23811_s23 }
0x996c   :  { %20551 = vmatpush3.msra.mxu0 %v23897_v35 }
0x996d   :  { %20566 = vmatprep.subr.mxu0 %v21273_v1  ;;  %s24299_s17 = smul.f32 0.25, %s14596_s16 }
0x996f   :  { %s14600_s18 = smul.f32 0.5, %s24299_s17  ;;  %v24360_v52 = vstv %s24299_s17 }
0x9970   :  { %s14603_s19 = smul.f32 0.16666667, %s24299_s17 }
0x9971   :  { %v24302_v3 = vstv %s14600_s18 }
0x9a25   :  { %v14673_v2 = vpop.f32.mrf.mxu0 }
0x9a26   :  { %v14674_v58 = vadd.f32 %v23904_v5, %v14673_v2 }
0x9a27   :  { %v20532_v59 = vpop.f32.mrf.mxu0 }
0x9a28   :  { %21078 = vtanh.f32 %v14674_v58 }
0x9a35   :  { %v21079_v11 = vpop.eup %21078 }
0x9a36   :  { %20542 = vmatmul.mubr.msk.f32.vlgmr.msra.gmra.mxu1 %vm107_vm1, %v21079_v11 }
0x9a37   :  { %20556 = vmatpush3.msra.mxu1 %v23908_v4  ;;  %20563 = vmatprep.mubr.msk.f32.mxu1 %vm21274_vm0, %v21273_v1 }
0x9a38   :  { %20557 = vmatprep.subr.mxu1 %v21273_v1 }
0x9a39   :  { %20558 = vmatpush3.msra.mxu1 %v23914_v6 }
0x9a3a   :  { %20559 = vmatprep.subr.mxu1 %v21273_v1 }
0x9a3b   :  { %20560 = vmatpush3.msra.mxu1 %v23918_v53 }
0x9a3c   :  { %20561 = vmatprep.subr.mxu1 %v21273_v1 }
0x9a3d   :  { %20562 = vmatpush3.msra.mxu1 %v23922_v9 }
0x9a3e   :  { %20577 = vmatprep.subr.mxu1 %v21273_v1 }
0x9af6   :  { %v14747_v60 = vpop.f32.mrf.mxu1 }
0x9af7   :  { %v24305_v19 = vadd.f32 %v23930_v51, %v14747_v60 }
0x9af8   :  { %v20543_v24 = vpop.f32.mrf.mxu1 }
0x9af9   :  { %v14752_v63 = vmul.f32 %v24302_v3, %v24305_v19 }
0x9afb   :  { %v14753_v26 = vadd.f32 %v14752_v63, %v24270_v17 }
0x9afd   :  { %20553 = vmatmul.mubr.msk.f32.vlgmr.msra.gmra.mxu0 %vm107_vm1, %v14753_v26 }
0x9afe   :  { %20567 = vmatpush3.msra.mxu0 %v23853_v0  ;;  %20574 = vmatprep.mubr.msk.f32.mxu0 %vm21274_vm0, %v21273_v1 }
0x9aff   :  { %20568 = vmatprep.subr.mxu0 %v21273_v1 }
0x9b00   :  { %20569 = vmatpush3.msra.mxu0 %v23859_v56 }
0x9b01   :  { %20570 = vmatprep.subr.mxu0 %v21273_v1 }
0x9b02   :  { %20571 = vmatpush3.msra.mxu0 %v23893_v43 }
0x9b03   :  { %20572 = vmatprep.subr.mxu0 %v21273_v1 }
0x9b04   :  { %20573 = vmatpush3.msra.mxu0 %v23897_v35 }
0x9b05   :  { %20588 = vmatprep.subr.mxu0 %v21273_v1 }
0x9bbd   :  { %v14823_v25 = vpop.f32.mrf.mxu0 }
0x9bbe   :  { %v14824_v34 = vadd.f32 %v23904_v5, %v14823_v25 }
0x9bbf   :  { %v20554_v41 = vpop.f32.mrf.mxu0 }
0x9bc0   :  { %21080 = vtanh.f32 %v14824_v34 }
0x9bcd   :  { %v21081_v42 = vpop.eup %21080 }
0x9bce   :  { %20564 = vmatmul.mubr.msk.f32.vlgmr.msra.gmra.mxu1 %vm107_vm1, %v21081_v42 }
0x9bcf   :  { %20578 = vmatpush3.msra.mxu1 %v23908_v4  ;;  %20585 = vmatprep.mubr.msk.f32.mxu1 %vm21274_vm0, %v21273_v1 }
0x9bd0   :  { %20579 = vmatprep.subr.mxu1 %v21273_v1 }
0x9bd1   :  { %20580 = vmatpush3.msra.mxu1 %v23914_v6 }
0x9bd2   :  { %20581 = vmatprep.subr.mxu1 %v21273_v1 }
0x9bd3   :  { %20582 = vmatpush3.msra.mxu1 %v23918_v53 }
0x9bd4   :  { %20583 = vmatprep.subr.mxu1 %v21273_v1 }
0x9bd5   :  { %20584 = vmatpush3.msra.mxu1 %v23922_v9 }
0x9bd6   :  { %20599 = vmatprep.subr.mxu1 %v21273_v1 }
0x9c8e   :  { %v14897_v46 = vpop.f32.mrf.mxu1 }
0x9c8f   :  { %v14898_v49 = vadd.f32 %v23930_v51, %v14897_v46 }
0x9c90   :  { %v20565_v37 = vpop.f32.mrf.mxu1 }
0x9c91   :  { %v14901_v28 = vmul.f32 %v14898_v49, %v24302_v3 }
0x9c93   :  { %v14902_v57 = vadd.f32 %v14901_v28, %v24270_v17 }
0x9c95   :  { %20575 = vmatmul.mubr.msk.f32.vlgmr.msra.gmra.mxu0 %vm107_vm1, %v14902_v57 }
0x9c96   :  { %20589 = vmatpush3.msra.mxu0 %v23853_v0  ;;  %20596 = vmatprep.mubr.msk.f32.mxu0 %vm21274_vm0, %v21273_v1 }
0x9c97   :  { %20590 = vmatprep.subr.mxu0 %v21273_v1 }
0x9c98   :  { %20591 = vmatpush3.msra.mxu0 %v23859_v56  ;;  %v15200_v56 = vmul.f32 2.0, %v14898_v49 }
0x9c99   :  { %20592 = vmatprep.subr.mxu0 %v21273_v1 }
0x9c9a   :  { %20593 = vmatpush3.msra.mxu0 %v23893_v43  ;;  %v15201_v32 = vadd.f32 %v15200_v56, %v24305_v19 }
0x9c9b   :  { %20594 = vmatprep.subr.mxu0 %v21273_v1 }
0x9c9c   :  { %20595 = vmatpush3.msra.mxu0 %v23897_v35 }
0x9c9d   :  { %20610 = vmatprep.subr.mxu0 %v21273_v1 }
0x9d55   :  { %v14972_v21 = vpop.f32.mrf.mxu0 }
0x9d56   :  { %v14973_v0 = vadd.f32 %v23904_v5, %v14972_v21 }
0x9d57   :  { %v20576_v50 = vpop.f32.mrf.mxu0 }
0x9d58   :  { %21082 = vtanh.f32 %v14973_v0 }
0x9d65   :  { %v21083_v8 = vpop.eup %21082 }
0x9d66   :  { %20586 = vmatmul.mubr.msk.f32.vlgmr.msra.gmra.mxu1 %vm107_vm1, %v21083_v8 }
0x9d67   :  { %20600 = vmatpush3.msra.mxu1 %v23908_v4  ;;  %20607 = vmatprep.mubr.msk.f32.mxu1 %vm21274_vm0, %v21273_v1 }
0x9d68   :  { %20601 = vmatprep.subr.mxu1 %v21273_v1 }
0x9d69   :  { %20602 = vmatpush3.msra.mxu1 %v23914_v6 }
0x9d6a   :  { %20603 = vmatprep.subr.mxu1 %v21273_v1 }
0x9d6b   :  { %20604 = vmatpush3.msra.mxu1 %v23918_v53 }
0x9d6c   :  { %20605 = vmatprep.subr.mxu1 %v21273_v1 }
0x9d6d   :  { %20606 = vmatpush3.msra.mxu1 %v23922_v9 }
0x9d6e   :  { %20621 = vmatprep.subr.mxu1 %v21273_v1 }
0x9e26   :  { %v15046_v12 = vpop.f32.mrf.mxu1 }
0x9e27   :  { %v15047_v22 = vadd.f32 %v23930_v51, %v15046_v12 }
0x9e28   :  { %v20587_v31 = vpop.f32.mrf.mxu1 }
0x9e29   :  { %v15051_v33 = vmul.f32 %v24360_v52, %v15047_v22  ;;  %v15202_v18 = vmul.f32 2.0, %v15047_v22 }
0x9e2b   :  { %v15052_v44 = vadd.f32 %v15051_v33, %v24270_v17  ;;  %v15203_v47 = vadd.f32 %v15202_v18, %v15201_v32 }
0x9e2d   :  { %20597 = vmatmul.mubr.msk.f32.vlgmr.msra.gmra.mxu0 %vm107_vm1, %v15052_v44 }
0x9e2e   :  { %20611 = vmatpush3.msra.mxu0 %v24367_v48  ;;  %20618 = vmatprep.mubr.msk.f32.mxu0 %vm21274_vm0, %v21273_v1 }
0x9e2f   :  { %20612 = vmatprep.subr.mxu0 %v21273_v1 }
0x9e30   :  { %20613 = vmatpush3.msra.mxu0 %v24373_v14 }
0x9e31   :  { %20614 = vmatprep.subr.mxu0 %v21273_v1 }
0x9e32   :  { %20615 = vmatpush3.msra.mxu0 %v23893_v43 }
0x9e33   :  { %20616 = vmatprep.subr.mxu0 %v21273_v1 }
0x9e34   :  { %20617 = vmatpush3.msra.mxu0 %v23897_v35 }
0x9e35   :  { %20632 = vmatprep.subr.mxu0 %v21273_v1 }
0x9eed   :  { %v15122_v36 = vpop.f32.mrf.mxu0 }
0x9eee   :  { %v15123_v38 = vadd.f32 %v23904_v5, %v15122_v36  ;;  %v24395_v5 = vstv %s14603_s19 }
0x9eef   :  { %v20598_v16 = vpop.f32.mrf.mxu0 }
0x9ef0   :  { %21084 = vtanh.f32 %v15123_v38 }
0x9efd   :  { %v21085_v39 = vpop.eup %21084 }
0x9efe   :  { %20608 = vmatmul.mubr.msk.f32.vlgmr.msra.gmra.mxu1 %vm107_vm1, %v21085_v39 }
0x9eff   :  { %20622 = vmatpush3.msra.mxu1 %v23908_v4  ;;  %20629 = vmatprep.mubr.msk.f32.mxu1 %vm21274_vm0, %v21273_v1 }
0x9f00   :  { %20623 = vmatprep.subr.mxu1 %v21273_v1 }
0x9f01   :  { %20624 = vmatpush3.msra.mxu1 %v23914_v6 }
0x9f02   :  { %20625 = vmatprep.subr.mxu1 %v21273_v1 }
0x9f03   :  { %20626 = vmatpush3.msra.mxu1 %v23918_v53  ;;  %v24409_v53 = vld [vmem:[#allocation7 + $0x8] sm:$0xff] }
0x9f04   :  { %20627 = vmatprep.subr.mxu1 %v21273_v1 }
0x9f05   :  { %20628 = vmatpush3.msra.mxu1 %v23922_v9  ;;  %v24413_v9 = vld [vmem:[#allocation7] sm:$0xff] }
0x9f06   :  { %20643 = vmatprep.subr.mxu1 %v21273_v1 }
0x9fbe   :  { %v15196_v43 = vpop.f32.mrf.mxu1 }
0x9fbf   :  { %v15197_v35 = vadd.f32 %v23930_v51, %v15196_v43 }
0x9fc0   :  { %v20609_v4 = vpop.f32.mrf.mxu1 }
0x9fc1   :  { %v15204_v61 = vadd.f32 %v15203_v47, %v15197_v35 }
0x9fc3   :  { %v15206_v6 = vmul.f32 %v24395_v5, %v15204_v61 }
0x9fc5   :  { %v24399_v40 = vadd.f32 %v15206_v6, %v24270_v17 }
0x9fc7   :  { %20619 = vmatmul.mubr.msk.f32.vlgmr.msra.gmra.mxu0 %vm107_vm1, %v24399_v40 }
0x9fc8   :  { %20633 = vmatpush3.msra.mxu0 %v24367_v48  ;;  %20640 = vmatprep.mubr.msk.f32.mxu0 %vm21274_vm0, %v21273_v1 }
0x9fc9   :  { %20634 = vmatprep.subr.mxu0 %v21273_v1 }
0x9fca   :  { %20635 = vmatpush3.msra.mxu0 %v24373_v14 }
0x9fcb   :  { %20636 = vmatprep.subr.mxu0 %v21273_v1 }
0x9fcc   :  { %20637 = vmatpush3.msra.mxu0 %v24409_v53 }
0x9fcd   :  { %20638 = vmatprep.subr.mxu0 %v21273_v1 }
0x9fce   :  { %20639 = vmatpush3.msra.mxu0 %v24413_v9 }
0x9fcf   :  { %20654 = vmatprep.subr.mxu0 %v21273_v1 }
0xa087   :  { %v15277_v51 = vpop.f32.mrf.mxu0 }
0xa088   :  { %v15278_v15 = vadd.f32 %v24420_v54, %v15277_v51 }
0xa089   :  { %v20620_v7 = vpop.f32.mrf.mxu0 }
0xa08a   :  { %21086 = vtanh.f32 %v15278_v15 }
0xa097   :  { %v21087_v23 = vpop.eup %21086 }
0xa098   :  { %20630 = vmatmul.mubr.msk.f32.vlgmr.msra.gmra.mxu1 %vm107_vm1, %v21087_v23 }
0xa099   :  { %20644 = vmatpush3.msra.mxu1 %v24424_v27  ;;  %20651 = vmatprep.mubr.msk.f32.mxu1 %vm21274_vm0, %v21273_v1 }
0xa09a   :  { %20645 = vmatprep.subr.mxu1 %v21273_v1 }
0xa09b   :  { %20646 = vmatpush3.msra.mxu1 %v24430_v20 }
0xa09c   :  { %20647 = vmatprep.subr.mxu1 %v21273_v1 }
0xa09d   :  { %20648 = vmatpush3.msra.mxu1 %v24434_v45 }
0xa09e   :  { %20649 = vmatprep.subr.mxu1 %v21273_v1 }
0xa09f   :  { %20650 = vmatpush3.msra.mxu1 %v24438_v13 }
0xa0a0   :  { %20665 = vmatprep.subr.mxu1 %v21273_v1 }
0xa158   :  { %v15351_v62 = vpop.f32.mrf.mxu1 }
0xa159   :  { %v24448_v10 = vadd.f32 %v24445_v55, %v15351_v62 }
0xa15a   :  { %v20631_v17 = vpop.f32.mrf.mxu1 }
0xa15b   :  { %v15355_v2 = vmul.f32 %v24448_v10, %v24302_v3 }
0xa15d   :  { %v15356_v58 = vadd.f32 %v15355_v2, %v24399_v40 }
0xa15f   :  { %20641 = vmatmul.mubr.msk.f32.vlgmr.msra.gmra.mxu0 %vm107_vm1, %v15356_v58 }
0xa160   :  { %20655 = vmatpush3.msra.mxu0 %v24367_v48  ;;  %20662 = vmatprep.mubr.msk.f32.mxu0 %vm21274_vm0, %v21273_v1 }
0xa161   :  { %20656 = vmatprep.subr.mxu0 %v21273_v1 }
0xa162   :  { %20657 = vmatpush3.msra.mxu0 %v24373_v14 }
0xa163   :  { %20658 = vmatprep.subr.mxu0 %v21273_v1 }
0xa164   :  { %20659 = vmatpush3.msra.mxu0 %v24409_v53 }
0xa165   :  { %20660 = vmatprep.subr.mxu0 %v21273_v1 }
0xa166   :  { %20661 = vmatpush3.msra.mxu0 %v24413_v9 }
0xa167   :  { %20676 = vmatprep.subr.mxu0 %v21273_v1 }
0xa21f   :  { %v15426_v59 = vpop.f32.mrf.mxu0 }
0xa220   :  { %v15427_v11 = vadd.f32 %v24420_v54, %v15426_v59 }
0xa221   :  { %v20642_v60 = vpop.f32.mrf.mxu0 }
0xa222   :  { %21088 = vtanh.f32 %v15427_v11 }
0xa22f   :  { %v21089_v19 = vpop.eup %21088 }
0xa230   :  { %20652 = vmatmul.mubr.msk.f32.vlgmr.msra.gmra.mxu1 %vm107_vm1, %v21089_v19 }
0xa231   :  { %20666 = vmatpush3.msra.mxu1 %v24424_v27  ;;  %20673 = vmatprep.mubr.msk.f32.mxu1 %vm21274_vm0, %v21273_v1 }
0xa232   :  { %20667 = vmatprep.subr.mxu1 %v21273_v1 }
0xa233   :  { %20668 = vmatpush3.msra.mxu1 %v24430_v20 }
0xa234   :  { %20669 = vmatprep.subr.mxu1 %v21273_v1 }
0xa235   :  { %20670 = vmatpush3.msra.mxu1 %v24434_v45 }
0xa236   :  { %20671 = vmatprep.subr.mxu1 %v21273_v1 }
0xa237   :  { %20672 = vmatpush3.msra.mxu1 %v24438_v13 }
0xa238   :  { %20687 = vmatprep.subr.mxu1 %v21273_v1 }
0xa2f0   :  { %v15500_v24 = vpop.f32.mrf.mxu1 }
0xa2f1   :  { %v15501_v63 = vadd.f32 %v24445_v55, %v15500_v24 }
0xa2f2   :  { %v20653_v26 = vpop.f32.mrf.mxu1 }
0xa2f3   :  { %v15504_v25 = vmul.f32 %v15501_v63, %v24302_v3  ;;  %v15802_v37 = vmul.f32 2.0, %v15501_v63 }
0xa2f5   :  { %v15505_v34 = vadd.f32 %v15504_v25, %v24399_v40  ;;  %v15803_v0 = vadd.f32 %v15802_v37, %v24448_v10 }
0xa2f7   :  { %20663 = vmatmul.mubr.msk.f32.vlgmr.msra.gmra.mxu0 %vm107_vm1, %v15505_v34 }
0xa2f8   :  { %20677 = vmatpush3.msra.mxu0 %v24367_v48  ;;  %20684 = vmatprep.mubr.msk.f32.mxu0 %vm21274_vm0, %v21273_v1 }
0xa2f9   :  { %20678 = vmatprep.subr.mxu0 %v21273_v1 }
0xa2fa   :  { %20679 = vmatpush3.msra.mxu0 %v24373_v14 }
0xa2fb   :  { %20680 = vmatprep.subr.mxu0 %v21273_v1 }
0xa2fc   :  { %20681 = vmatpush3.msra.mxu0 %v24409_v53 }
0xa2fd   :  { %20682 = vmatprep.subr.mxu0 %v21273_v1 }
0xa2fe   :  { %20683 = vmatpush3.msra.mxu0 %v24413_v9 }
0xa2ff   :  { %20698 = vmatprep.subr.mxu0 %v21273_v1 }
0xa3b7   :  { %v15575_v41 = vpop.f32.mrf.mxu0 }
0xa3b8   :  { %v15576_v42 = vadd.f32 %v24420_v54, %v15575_v41 }
0xa3b9   :  { %v20664_v46 = vpop.f32.mrf.mxu0 }
0xa3ba   :  { %21090 = vtanh.f32 %v15576_v42 }
0xa3c7   :  { %v21091_v49 = vpop.eup %21090 }
0xa3c8   :  { %20674 = vmatmul.mubr.msk.f32.vlgmr.msra.gmra.mxu1 %vm107_vm1, %v21091_v49 }
0xa3c9   :  { %20688 = vmatpush3.msra.mxu1 %v24424_v27  ;;  %20695 = vmatprep.mubr.msk.f32.mxu1 %vm21274_vm0, %v21273_v1 }
0xa3ca   :  { %20689 = vmatprep.subr.mxu1 %v21273_v1 }
0xa3cb   :  { %20690 = vmatpush3.msra.mxu1 %v24430_v20 }
0xa3cc   :  { %20691 = vmatprep.subr.mxu1 %v21273_v1 }
0xa3cd   :  { %20692 = vmatpush3.msra.mxu1 %v24434_v45 }
0xa3ce   :  { %20693 = vmatprep.subr.mxu1 %v21273_v1 }
0xa3cf   :  { %20694 = vmatpush3.msra.mxu1 %v24438_v13 }
0xa3d0   :  { %20709 = vmatprep.subr.mxu1 %v21273_v1 }
0xa488   :  { %v15649_v28 = vpop.f32.mrf.mxu1 }
0xa489   :  { %v15650_v57 = vadd.f32 %v24445_v55, %v15649_v28 }
0xa48a   :  { %v20675_v21 = vpop.f32.mrf.mxu1 }
0xa48b   :  { %v15653_v50 = vmul.f32 %v15650_v57, %v24360_v52  ;;  %v15804_v8 = vmul.f32 2.0, %v15650_v57 }
0xa48d   :  { %v15654_v56 = vadd.f32 %v15653_v50, %v24399_v40  ;;  %v15805_v12 = vadd.f32 %v15804_v8, %v15803_v0 }
0xa48f   :  { %20685 = vmatmul.mubr.msk.f32.vlgmr.msra.gmra.mxu0 %vm107_vm1, %v15654_v56 }
0xa490   :  { %20699 = vmatpush3.msra.mxu0 %v24367_v48  ;;  %20706 = vmatprep.mubr.msk.f32.mxu0 %vm21274_vm0, %v21273_v1 }
0xa491   :  { %20700 = vmatprep.subr.mxu0 %v21273_v1 }
0xa492   :  { %20701 = vmatpush3.msra.mxu0 %v24373_v14 }
0xa493   :  { %20702 = vmatprep.subr.mxu0 %v21273_v1 }
0xa494   :  { %20703 = vmatpush3.msra.mxu0 %v24409_v53 }
0xa495   :  { %20704 = vmatprep.subr.mxu0 %v21273_v1 }
0xa496   :  { %20705 = vmatpush3.msra.mxu0 %v24413_v9 }
0xa497   :  { %20720 = vmatprep.subr.mxu0 %v21273_v1 }
0xa54f   :  { %v15724_v22 = vpop.f32.mrf.mxu0 }
0xa550   :  { %v15725_v31 = vadd.f32 %v24420_v54, %v15724_v22 }
0xa551   :  { %v20686_v32 = vpop.f32.mrf.mxu0 }
0xa552   :  { %21092 = vtanh.f32 %v15725_v31 }
0xa55f   :  { %v21093_v33 = vpop.eup %21092 }
0xa560   :  { %20696 = vmatmul.mubr.msk.f32.vlgmr.msra.gmra.mxu1 %vm107_vm1, %v21093_v33 }
0xa561   :  { %20710 = vmatpush3.msra.mxu1 %v24424_v27  ;;  %20717 = vmatprep.mubr.msk.f32.mxu1 %vm21274_vm0, %v21273_v1 }
0xa562   :  { %20711 = vmatprep.subr.mxu1 %v21273_v1 }
0xa563   :  { %20712 = vmatpush3.msra.mxu1 %v24430_v20 }
0xa564   :  { %20713 = vmatprep.subr.mxu1 %v21273_v1 }
0xa565   :  { %20714 = vmatpush3.msra.mxu1 %v24434_v45 }
0xa566   :  { %20715 = vmatprep.subr.mxu1 %v21273_v1 }
0xa567   :  { %20716 = vmatpush3.msra.mxu1 %v24438_v13 }
0xa568   :  { %20731 = vmatprep.subr.mxu1 %v21273_v1 }
0xa620   :  { %v15798_v18 = vpop.f32.mrf.mxu1 }
0xa621   :  { %v15799_v44 = vadd.f32 %v24445_v55, %v15798_v18 }
0xa622   :  { %v20697_v47 = vpop.f32.mrf.mxu1 }
0xa623   :  { %v15806_v36 = vadd.f32 %v15805_v12, %v15799_v44 }
0xa625   :  { %v15807_v38 = vmul.f32 %v15806_v36, %v24395_v5 }
0xa627   :  { %v24532_v16 = vadd.f32 %v15807_v38, %v24399_v40 }
0xa629   :  { %20707 = vmatmul.mubr.msk.f32.vlgmr.msra.gmra.mxu0 %vm107_vm1, %v24532_v16 }
0xa62a   :  { %20721 = vmatpush3.msra.mxu0 %v24367_v48  ;;  %20728 = vmatprep.mubr.msk.f32.mxu0 %vm21274_vm0, %v21273_v1 }
0xa62b   :  { %20722 = vmatprep.subr.mxu0 %v21273_v1 }
0xa62c   :  { %20723 = vmatpush3.msra.mxu0 %v24373_v14 }
0xa62d   :  { %20724 = vmatprep.subr.mxu0 %v21273_v1 }
0xa62e   :  { %20725 = vmatpush3.msra.mxu0 %v24409_v53 }
0xa62f   :  { %20726 = vmatprep.subr.mxu0 %v21273_v1 }
0xa630   :  { %20727 = vmatpush3.msra.mxu0 %v24413_v9 }
0xa631   :  { %20742 = vmatprep.subr.mxu0 %v21273_v1 }
0xa6e9   :  { %v15878_v39 = vpop.f32.mrf.mxu0 }
0xa6ea   :  { %v15879_v43 = vadd.f32 %v24420_v54, %v15878_v39 }
0xa6eb   :  { %v20708_v35 = vpop.f32.mrf.mxu0 }
0xa6ec   :  { %21094 = vtanh.f32 %v15879_v43 }
0xa6f9   :  { %v21095_v4 = vpop.eup %21094 }
0xa6fa   :  { %20718 = vmatmul.mubr.msk.f32.vlgmr.msra.gmra.mxu1 %vm107_vm1, %v21095_v4 }
0xa6fb   :  { %20732 = vmatpush3.msra.mxu1 %v24424_v27  ;;  %20739 = vmatprep.mubr.msk.f32.mxu1 %vm21274_vm0, %v21273_v1 }
0xa6fc   :  { %20733 = vmatprep.subr.mxu1 %v21273_v1 }
0xa6fd   :  { %20734 = vmatpush3.msra.mxu1 %v24430_v20 }
0xa6fe   :  { %20735 = vmatprep.subr.mxu1 %v21273_v1 }
0xa6ff   :  { %20736 = vmatpush3.msra.mxu1 %v24434_v45 }
0xa700   :  { %20737 = vmatprep.subr.mxu1 %v21273_v1 }
0xa701   :  { %20738 = vmatpush3.msra.mxu1 %v24438_v13 }
0xa702   :  { %20753 = vmatprep.subr.mxu1 %v21273_v1 }
0xa7ba   :  { %v15952_v61 = vpop.f32.mrf.mxu1 }
0xa7bb   :  { %v24559_v6 = vadd.f32 %v24445_v55, %v15952_v61 }
0xa7bc   :  { %v20719_v40 = vpop.f32.mrf.mxu1 }
0xa7bd   :  { %v15956_v51 = vmul.f32 %v24559_v6, %v24302_v3 }
0xa7bf   :  { %v15957_v15 = vadd.f32 %v15956_v51, %v24532_v16 }
0xa7c1   :  { %20729 = vmatmul.mubr.msk.f32.vlgmr.msra.gmra.mxu0 %vm107_vm1, %v15957_v15 }
0xa7c2   :  { %20743 = vmatpush3.msra.mxu0 %v24367_v48  ;;  %20750 = vmatprep.mubr.msk.f32.mxu0 %vm21274_vm0, %v21273_v1 }
0xa7c3   :  { %20744 = vmatprep.subr.mxu0 %v21273_v1 }
0xa7c4   :  { %20745 = vmatpush3.msra.mxu0 %v24373_v14 }
0xa7c5   :  { %20746 = vmatprep.subr.mxu0 %v21273_v1 }
0xa7c6   :  { %20747 = vmatpush3.msra.mxu0 %v24409_v53 }
0xa7c7   :  { %20748 = vmatprep.subr.mxu0 %v21273_v1 }
0xa7c8   :  { %20749 = vmatpush3.msra.mxu0 %v24413_v9 }
0xa7c9   :  { %20764 = vmatprep.subr.mxu0 %v21273_v1 }
0xa881   :  { %v16027_v7 = vpop.f32.mrf.mxu0 }
0xa882   :  { %v16028_v23 = vadd.f32 %v24420_v54, %v16027_v7 }
0xa883   :  { %v20730_v62 = vpop.f32.mrf.mxu0 }
0xa884   :  { %21096 = vtanh.f32 %v16028_v23 }
0xa891   :  { %v21097_v10 = vpop.eup %21096 }
0xa892   :  { %20740 = vmatmul.mubr.msk.f32.vlgmr.msra.gmra.mxu1 %vm107_vm1, %v21097_v10 }
0xa893   :  { %20754 = vmatpush3.msra.mxu1 %v24424_v27  ;;  %20761 = vmatprep.mubr.msk.f32.mxu1 %vm21274_vm0, %v21273_v1 }
0xa894   :  { %20755 = vmatprep.subr.mxu1 %v21273_v1 }
0xa895   :  { %20756 = vmatpush3.msra.mxu1 %v24430_v20 }
0xa896   :  { %20757 = vmatprep.subr.mxu1 %v21273_v1 }
0xa897   :  { %20758 = vmatpush3.msra.mxu1 %v24434_v45 }
0xa898   :  { %20759 = vmatprep.subr.mxu1 %v21273_v1 }
0xa899   :  { %20760 = vmatpush3.msra.mxu1 %v24438_v13 }
0xa89a   :  { %20775 = vmatprep.subr.mxu1 %v21273_v1 }
0xa952   :  { %v16101_v17 = vpop.f32.mrf.mxu1 }
0xa953   :  { %v16102_v2 = vadd.f32 %v24445_v55, %v16101_v17 }
0xa954   :  { %v20741_v58 = vpop.f32.mrf.mxu1 }
0xa955   :  { %v16105_v59 = vmul.f32 %v16102_v2, %v24302_v3  ;;  %v16403_v26 = vmul.f32 2.0, %v16102_v2 }
0xa957   :  { %v16106_v11 = vadd.f32 %v16105_v59, %v24532_v16  ;;  %v16404_v42 = vadd.f32 %v16403_v26, %v24559_v6 }
0xa959   :  { %20751 = vmatmul.mubr.msk.f32.vlgmr.msra.gmra.mxu0 %vm107_vm1, %v16106_v11 }
0xa95a   :  { %20765 = vmatpush3.msra.mxu0 %v24367_v48  ;;  %20772 = vmatprep.mubr.msk.f32.mxu0 %vm21274_vm0, %v21273_v1 }
0xa95b   :  { %20766 = vmatprep.subr.mxu0 %v21273_v1 }
0xa95c   :  { %20767 = vmatpush3.msra.mxu0 %v24373_v14 }
0xa95d   :  { %20768 = vmatprep.subr.mxu0 %v21273_v1 }
0xa95e   :  { %20769 = vmatpush3.msra.mxu0 %v24409_v53 }
0xa95f   :  { %20770 = vmatprep.subr.mxu0 %v21273_v1 }
0xa960   :  { %20771 = vmatpush3.msra.mxu0 %v24413_v9 }
0xa961   :  { %20786 = vmatprep.subr.mxu0 %v21273_v1 }
0xaa19   :  { %v16176_v60 = vpop.f32.mrf.mxu0 }
0xaa1a   :  { %v16177_v19 = vadd.f32 %v24420_v54, %v16176_v60 }
0xaa1b   :  { %v20752_v24 = vpop.f32.mrf.mxu0 }
0xaa1c   :  { %21098 = vtanh.f32 %v16177_v19 }
0xaa29   :  { %v21099_v63 = vpop.eup %21098 }
0xaa2a   :  { %20762 = vmatmul.mubr.msk.f32.vlgmr.msra.gmra.mxu1 %vm107_vm1, %v21099_v63 }
0xaa2b   :  { %20776 = vmatpush3.msra.mxu1 %v24424_v27  ;;  %20783 = vmatprep.mubr.msk.f32.mxu1 %vm21274_vm0, %v21273_v1 }
0xaa2c   :  { %20777 = vmatprep.subr.mxu1 %v21273_v1 }
0xaa2d   :  { %20778 = vmatpush3.msra.mxu1 %v24430_v20 }
0xaa2e   :  { %20779 = vmatprep.subr.mxu1 %v21273_v1 }
0xaa2f   :  { %20780 = vmatpush3.msra.mxu1 %v24434_v45 }
0xaa30   :  { %20781 = vmatprep.subr.mxu1 %v21273_v1 }
0xaa31   :  { %20782 = vmatpush3.msra.mxu1 %v24438_v13 }
0xaa32   :  { %20797 = vmatprep.subr.mxu1 %v21273_v1 }
0xaaea   :  { %v16250_v25 = vpop.f32.mrf.mxu1 }
0xaaeb   :  { %v16251_v34 = vadd.f32 %v24445_v55, %v16250_v25  ;;  %v17024_v25 = vpop.permute.xlu1 %17023 }
0xaaec   :  { %v20763_v41 = vpop.f32.mrf.mxu1 }
0xaaed   :  { %v16254_v46 = vmul.f32 %v16251_v34, %v24360_v52  ;;  %v16405_v49 = vmul.f32 2.0, %v16251_v34 }
0xaaef   :  { %v16255_v37 = vadd.f32 %v16254_v46, %v24532_v16  ;;  %v16406_v28 = vadd.f32 %v16405_v49, %v16404_v42 }
0xaaf1   :  { %20773 = vmatmul.mubr.msk.f32.vlgmr.msra.gmra.mxu0 %vm107_vm1, %v16255_v37 }
0xaaf2   :  { %20787 = vmatpush3.msra.mxu0 %v24367_v48  ;;  %20794 = vmatprep.mubr.msk.f32.mxu0 %vm21274_vm0, %v21273_v1 }
0xaaf3   :  { %20788 = vmatprep.subr.mxu0 %v21273_v1 }
0xaaf4   :  { %20789 = vmatpush3.msra.mxu0 %v24373_v14 }
0xaaf5   :  { %20790 = vmatprep.subr.mxu0 %v21273_v1 }
0xaaf6   :  { %20791 = vmatpush3.msra.mxu0 %v24409_v53 }
0xaaf7   :  { %20792 = vmatprep.subr.mxu0 %v21273_v1 }
0xaaf8   :  { %20793 = vmatpush3.msra.mxu0 %v24413_v9 }
0xaaf9   :  { %20808 = vmatprep.subr.mxu0 %v21273_v1 }
0xabb1   :  { %v16325_v57 = vpop.f32.mrf.mxu0 }
0xabb2   :  { %v16326_v21 = vadd.f32 %v24420_v54, %v16325_v57 }
0xabb3   :  { %v20774_v0 = vpop.f32.mrf.mxu0 }
0xabb4   :  { %21100 = vtanh.f32 %v16326_v21 }
0xabc1   :  { %v21101_v50 = vpop.eup %21100 }
0xabc2   :  { %20784 = vmatmul.mubr.msk.f32.vlgmr.msra.gmra.mxu1 %vm107_vm1, %v21101_v50 }
0xabc3   :  { %20798 = vmatpush3.msra.mxu1 %v24424_v27  ;;  %20805 = vmatprep.mubr.msk.f32.mxu1 %vm21274_vm0, %v21273_v1 }
0xabc4   :  { %20799 = vmatprep.subr.mxu1 %v21273_v1 }
0xabc5   :  { %20800 = vmatpush3.msra.mxu1 %v24430_v20 }
0xabc6   :  { %20801 = vmatprep.subr.mxu1 %v21273_v1 }
0xabc7   :  { %20802 = vmatpush3.msra.mxu1 %v24434_v45 }
0xabc8   :  { %20803 = vmatprep.subr.mxu1 %v21273_v1 }
0xabc9   :  { %20804 = vmatpush3.msra.mxu1 %v24438_v13 }
0xabca   :  { %20819 = vmatprep.subr.mxu1 %v21273_v1 }
0xac82   :  { %v16399_v8 = vpop.f32.mrf.mxu1 }
0xac83   :  { %v16400_v56 = vadd.f32 %v24445_v55, %v16399_v8 }
0xac84   :  { %v20785_v12 = vpop.f32.mrf.mxu1 }
0xac85   :  { %v16407_v22 = vadd.f32 %v16406_v28, %v16400_v56 }
0xac87   :  { %v16408_v31 = vmul.f32 %v16407_v22, %v24395_v5 }
0xac89   :  { %v24643_v32 = vadd.f32 %v16408_v31, %v24532_v16 }
0xac8b   :  { %20795 = vmatmul.mubr.msk.f32.vlgmr.msra.gmra.mxu0 %vm107_vm1, %v24643_v32 }
0xac8c   :  { %20809 = vmatpush3.msra.mxu0 %v24367_v48  ;;  %20816 = vmatprep.mubr.msk.f32.mxu0 %vm21274_vm0, %v21273_v1 }
0xac8d   :  { %20810 = vmatprep.subr.mxu0 %v21273_v1 }
0xac8e   :  { %20811 = vmatpush3.msra.mxu0 %v24373_v14 }
0xac8f   :  { %20812 = vmatprep.subr.mxu0 %v21273_v1 }
0xac90   :  { %20813 = vmatpush3.msra.mxu0 %v24409_v53 }
0xac91   :  { %20814 = vmatprep.subr.mxu0 %v21273_v1 }
0xac92   :  { %20815 = vmatpush3.msra.mxu0 %v24413_v9 }
0xac93   :  { %20830 = vmatprep.subr.mxu0 %v21273_v1 }
0xad4b   :  { %v16479_v33 = vpop.f32.mrf.mxu0 }
0xad4c   :  { %v16480_v18 = vadd.f32 %v24420_v54, %v16479_v33 }
0xad4d   :  { %v20796_v44 = vpop.f32.mrf.mxu0 }
0xad4e   :  { %21102 = vtanh.f32 %v16480_v18 }
0xad5b   :  { %v21103_v47 = vpop.eup %21102 }
0xad5c   :  { %20806 = vmatmul.mubr.msk.f32.vlgmr.msra.gmra.mxu1 %vm107_vm1, %v21103_v47 }
0xad5d   :  { %20820 = vmatpush3.msra.mxu1 %v24424_v27  ;;  %20827 = vmatprep.mubr.msk.f32.mxu1 %vm21274_vm0, %v21273_v1 }
0xad5e   :  { %20821 = vmatprep.subr.mxu1 %v21273_v1 }
0xad5f   :  { %20822 = vmatpush3.msra.mxu1 %v24430_v20 }
0xad60   :  { %20823 = vmatprep.subr.mxu1 %v21273_v1 }
0xad61   :  { %20824 = vmatpush3.msra.mxu1 %v24434_v45 }
0xad62   :  { %20825 = vmatprep.subr.mxu1 %v21273_v1 }
0xad63   :  { %20826 = vmatpush3.msra.mxu1 %v24438_v13 }
0xad64   :  { %20841 = vmatprep.subr.mxu1 %v21273_v1 }
0xae1c   :  { %v16553_v36 = vpop.f32.mrf.mxu1 }
0xae1d   :  { %v16554_v38 = vadd.f32 %v24445_v55, %v16553_v36 }
0xae1e   :  { %v20807_v16 = vpop.f32.mrf.mxu1 }
0xae1f   :  { %v16557_v39 = vmul.f32 %v16554_v38, %v24302_v3 }
0xae21   :  { %v16558_v43 = vadd.f32 %v16557_v39, %v24643_v32 }
0xae23   :  { %20817 = vmatmul.mubr.msk.f32.vlgmr.msra.gmra.mxu0 %vm107_vm1, %v16558_v43 }
0xae24   :  { %20831 = vmatpush3.msra.mxu0 %v24367_v48  ;;  %20838 = vmatprep.mubr.msk.f32.mxu0 %vm21274_vm0, %v21273_v1 }
0xae25   :  { %20832 = vmatprep.subr.mxu0 %v21273_v1 }
0xae26   :  { %20833 = vmatpush3.msra.mxu0 %v24373_v14 }
0xae27   :  { %20834 = vmatprep.subr.mxu0 %v21273_v1 }
0xae28   :  { %20835 = vmatpush3.msra.mxu0 %v24409_v53 }
0xae29   :  { %20836 = vmatprep.subr.mxu0 %v21273_v1 }
0xae2a   :  { %20837 = vmatpush3.msra.mxu0 %v24413_v9 }
0xae2b   :  { %20852 = vmatprep.subr.mxu0 %v21273_v1 }
0xaee3   :  { %v16628_v35 = vpop.f32.mrf.mxu0 }
0xaee4   :  { %v16629_v4 = vadd.f32 %v24420_v54, %v16628_v35 }
0xaee5   :  { %v20818_v61 = vpop.f32.mrf.mxu0 }
0xaee6   :  { %21104 = vtanh.f32 %v16629_v4 }
0xaef3   :  { %v21105_v6 = vpop.eup %21104 }
0xaef4   :  { %20828 = vmatmul.mubr.msk.f32.vlgmr.msra.gmra.mxu1 %vm107_vm1, %v21105_v6 }
0xaef5   :  { %20842 = vmatpush3.msra.mxu1 %v24424_v27  ;;  %20849 = vmatprep.mubr.msk.f32.mxu1 %vm21274_vm0, %v21273_v1 }
0xaef6   :  { %20843 = vmatprep.subr.mxu1 %v21273_v1 }
0xaef7   :  { %20844 = vmatpush3.msra.mxu1 %v24430_v20 }
0xaef8   :  { %20845 = vmatprep.subr.mxu1 %v21273_v1 }
0xaef9   :  { %20846 = vmatpush3.msra.mxu1 %v24434_v45 }
0xaefa   :  { %20847 = vmatprep.subr.mxu1 %v21273_v1 }
0xaefb   :  { %20848 = vmatpush3.msra.mxu1 %v24438_v13 }
0xaefc   :  { %20863 = vmatprep.subr.mxu1 %v21273_v1 }
0xafb4   :  { %v16702_v40 = vpop.f32.mrf.mxu1 }
0xafb5   :  { %v16703_v51 = vadd.f32 %v24445_v55, %v16702_v40 }
0xafb6   :  { %v20829_v15 = vpop.f32.mrf.mxu1 }
0xafb7   :  { %v16706_v7 = vmul.f32 %v16703_v51, %v24302_v3 }
0xafb9   :  { %v16707_v23 = vadd.f32 %v16706_v7, %v24643_v32 }
0xafbb   :  { %20839 = vmatmul.mubr.msk.f32.vlgmr.msra.gmra.mxu0 %vm107_vm1, %v16707_v23 }
0xafbc   :  { %20853 = vmatpush3.msra.mxu0 %v24367_v48  ;;  %20860 = vmatprep.mubr.msk.f32.mxu0 %vm21274_vm0, %v21273_v1 }
0xafbd   :  { %20854 = vmatprep.subr.mxu0 %v21273_v1 }
0xafbe   :  { %20855 = vmatpush3.msra.mxu0 %v24373_v14  ;;  %v17004_v14 = vmul.f32 2.0, %v16703_v51 }
0xafbf   :  { %20856 = vmatprep.subr.mxu0 %v21273_v1 }
0xafc0   :  { %20857 = vmatpush3.msra.mxu0 %v24409_v53  ;;  %v17005_v17 = vadd.f32 %v17004_v14, %v16554_v38 }
0xafc1   :  { %20858 = vmatprep.subr.mxu0 %v21273_v1 }
0xafc2   :  { %20859 = vmatpush3.msra.mxu0 %v24413_v9 }
0xb07b   :  { %v16777_v3 = vpop.f32.mrf.mxu0 }
0xb07c   :  { %v16778_v62 = vadd.f32 %v24420_v54, %v16777_v3 }
0xb07d   :  { %v20840_v10 = vpop.f32.mrf.mxu0 }
0xb07e   :  { %21106 = vtanh.f32 %v16778_v62 }
0xb08b   :  { %v21107_v48 = vpop.eup %21106 }
0xb08c   :  { %20850 = vmatmul.mubr.msk.f32.vlgmr.msra.gmra.mxu1 %vm107_vm1, %v21107_v48 }
0xb08d   :  { %20864 = vmatpush3.msra.mxu1 %v24424_v27  ;;  %20871 = vmatprep.mubr.msk.f32.mxu1 %vm21274_vm0, %v21273_v1 }
0xb08e   :  { %20865 = vmatprep.subr.mxu1 %v21273_v1 }
0xb08f   :  { %20866 = vmatpush3.msra.mxu1 %v24430_v20 }
0xb090   :  { %20867 = vmatprep.subr.mxu1 %v21273_v1 }
0xb091   :  { %20868 = vmatpush3.msra.mxu1 %v24434_v45 }
0xb092   :  { %20869 = vmatprep.subr.mxu1 %v21273_v1 }
0xb093   :  { %20870 = vmatpush3.msra.mxu1 %v24438_v13 }
0xb14c   :  { %v16851_v53 = vpop.f32.mrf.mxu1 }
0xb14d   :  { %v16852_v9 = vadd.f32 %v24445_v55, %v16851_v53 }
0xb14e   :  { %v20851_v27 = vpop.f32.mrf.mxu1 }
0xb14f   :  { %v16855_v2 = vmul.f32 %v16852_v9, %v24360_v52  ;;  %v17006_v58 = vmul.f32 2.0, %v16852_v9 }
0xb151   :  { %v16856_v59 = vadd.f32 %v16855_v2, %v24643_v32  ;;  %v17007_v20 = vadd.f32 %v17006_v58, %v17005_v17 }
0xb153   :  { %20861 = vmatmul.mubr.msk.f32.vlgmr.msra.gmra.mxu0 %vm107_vm1, %v16856_v59 }
0xb213   :  { %v16926_v11 = vpop.f32.mrf.mxu0 }
0xb214   :  { %v16927_v45 = vadd.f32 %v24420_v54, %v16926_v11  ;;  %v17035_v54 = vsel %vm107_vm1, %v23291_v29, %v23794_v30 }
0xb215   :  { %v20862_v1 = vpop.f32.mrf.mxu0  ;;  %v17036_v34 = vsel %vm17031_vm2, %v17035_v54, %v17024_v25 }
0xb216   :  { %21108 = vtanh.f32 %v16927_v45 }
0xb223   :  { %v21109_v13 = vpop.eup %21108 }
0xb224   :  { %20872 = vmatmul.mubr.msk.f32.vlgmr.msra.gmra.mxu1 %vm107_vm1, %v21109_v13 }
0xb2e4   :  { %v17000_v60 = vpop.f32.mrf.mxu1 }
0xb2e5   :  { %v17001_v19 = vadd.f32 %v24445_v55, %v17000_v60 }
0xb2e6   :  { %v20873_v24 = vpop.f32.mrf.mxu1 }
0xb2e7   :  { %v17008_v63 = vadd.f32 %v17007_v20, %v17001_v19 }
0xb2e9   :  { %v17009_v52 = vmul.f32 %v17008_v63, %v24395_v5 }
0xb2eb   :  { %v17010_v26 = vadd.f32 %v17009_v52, %v24643_v32 }
0xb2ed   :  { %17027 = vrot.lane.b32.xlu1 %v17010_v26, %s21277_s11 }
0xb35f   :  { %v17028_v41 = vpop.permute.xlu1 %17027 }
0xb360   :  { %v17037_v55 = vsel %vm17033_vm3, %v17036_v34, %v17028_v41 }
0xb361   :  { %17039 = vst [vmem:[#allocation10 + $0x8] sm:$0xff] %v17037_v55 }
0xb362   :  { %21250 = shalt.err (!%p21247_p5)
}
0xb363   :  { %17049 = dma.vmem_to_hbm [thread:$0]  %s17047_s24, 256, %s24743_s6, [#allocation4]  }
0xb364   :  { %21265 = dma.done.wait [#allocation4], 256  }
0xb365   :  { %21266 = vsyncadd [#allocation4], 4294967040 }
0xb366   :  { %17053 = vsyncpa [#allocation3], 1 }
0xb367   :  { %17054 = vsyncpa [#allocation8], 1 }
0xb368   :  { %17055 = vsyncpa [#allocation4], 1 }
0xb369   :  { %17056 = vsyncpa [#allocation5], 1 }

</bundles_post_ra>
